<compile_context>
chip_gen: v7x
topology: tpu7x:2x2x1
jax: 0.10.0
libtpu: 0.0.40
codegen_flags: <defaults>
</compile_context>

<pallas_src>
import functools

import jax
import jax.numpy as jnp
from jax import lax
from jax.experimental import pallas as pl
from jax.experimental.pallas import tpu as pltpu


def _jacdet_kernel(x_ref, xprev_ref, o_ref, acc_ref, *, d_total):
    """One (3, TD, H, W) D-tile of the flow field.

    x_ref     : (3, TD, H, W) flow components for d in [g*TD, g*TD + TD)
    xprev_ref : (3, 1,  H, W) flow at d = g*TD - 1 (halo slice, clamped)
    o_ref     : (1, 8, 128)   per-core-split partial loss (scalar replicated)
    acc_ref   : (H, W) f32    running per-(h, w) partial sums
    """
    c = pl.program_id(0)            # core-split index          ("parallel")
    i = pl.program_id(1)            # D-tile index within split ("arbitrary")
    n_i = pl.num_programs(1)
    g = c * n_i + i                 # global D-tile index (overhang is masked)

    _, td, H, W = x_ref.shape

    @pl.when(i == 0)
    def _init():
        acc_ref[...] = jnp.zeros_like(acc_ref)

    y = x_ref[...].astype(jnp.float32)            # (3, td, H, W)
    yprev = xprev_ref[...].astype(jnp.float32)    # (3, 1, H, W)

    # Backward differences of the *raw* flow.  The identity grid of the
    # reference is folded in algebraically: diff of the grid along its own
    # axis is exactly 1 and 0 along the others -> only diagonal terms get +1.
    y_dm1 = jnp.concatenate([yprev, y[:, :td - 1]], axis=1)   # d-1 slices
    dD = y - y_dm1                                            # (3, td, H, W)

    yf = y.reshape(3 * td, H, W)    # free reshape (major dims merged)
    dH = (yf - pltpu.roll(yf, shift=1, axis=1)).reshape(3, td, H, W)
    dW = (yf - pltpu.roll(yf, shift=1, axis=2)).reshape(3, td, H, W)

    dx0 = dD[0] + 1.0
    dx1 = dD[1]
    dx2 = dD[2]
    dy0 = dH[0]
    dy1 = dH[1] + 1.0
    dy2 = dH[2]
    dz0 = dW[0]
    dz1 = dW[1]
    dz2 = dW[2] + 1.0

    # Cofactors first keeps fewer diff arrays live at once.
    cof0 = dy1 * dz2 - dy2 * dz1
    cof1 = dy0 * dz2 - dy2 * dz0
    cof2 = dy0 * dz1 - dy1 * dz0
    jdet = dx0 * cof0 - dx1 * cof1 + dx2 * cof2

    # Only the interior (1 <= d < D, h >= 1, w >= 1) contributes: the
    # reference's zero-padded boundary diffs give Jdet == 0 there; the roll
    # wraparound rows/cols and any D-overhang of the last tile are masked out.
    t_i = lax.broadcasted_iota(jnp.int32, (td, H, W), 0)
    h_i = lax.broadcasted_iota(jnp.int32, (td, H, W), 1)
    w_i = lax.broadcasted_iota(jnp.int32, (td, H, W), 2)
    d_i = g * td + t_i
    interior = (d_i >= 1) & (d_i < d_total) & (h_i >= 1) & (w_i >= 1)

    contrib = jnp.where(interior, jnp.maximum(-jdet, 0.0), 0.0)
    acc_ref[...] += jnp.sum(contrib, axis=0)      # cheap major-axis reduce

    @pl.when(i == n_i - 1)
    def _finalize():
        total = jnp.sum(acc_ref[...])             # single XLU reduce, once
        o_ref[0] = jnp.zeros((8, 128), jnp.float32) + total


def flow_jacdet_loss(x, *, num_core_splits=2, target_tile_bytes=1 << 20):
    """x: (1, D, H, W, 3) flow. Returns scalar loss = sum(relu(-Jdet))."""
    _, D, H, W, C = x.shape
    assert C == 3, "flow must have 3 components"
    if D < 2 or H < 2 or W < 2:
        return jnp.float32(0.0)   # everything is boundary -> Jdet == 0

    # One contiguous (3, D, H, W) transpose instead of three stride-3 channel
    # gathers; keep the input dtype through the DMA (upcast inside the kernel).
    flow = jnp.moveaxis(x[0], -1, 0)

    # D-tile sized for VMEM: per-step f32 working set is ~10x the input tile,
    # so keep the input tile around `target_tile_bytes` (raise on v5e/v6e).
    slice_bytes = 3 * H * W * 4
    td = int(min(D, max(2, target_tile_bytes // slice_bytes)))
    n_tiles = -(-D // td)
    nc = max(1, int(num_core_splits))   # 2 -> both TensorCores on v7x
    tpc = -(-n_tiles // nc)             # D-tiles per core split

    def main_map(c, i):
        return (0, jnp.minimum(c * tpc + i, n_tiles - 1), 0, 0)

    def halo_map(c, i):                 # block size 1 on D -> element index
        return (0, jnp.clip((c * tpc + i) * td - 1, 0, D - 1), 0, 0)

    grid_spec = pltpu.PrefetchScalarGridSpec(
        num_scalar_prefetch=0,
        grid=(nc, tpc),
        in_specs=[
            pl.BlockSpec((3, td, H, W), main_map),
            pl.BlockSpec((3, 1, H, W), halo_map),
        ],
        out_specs=pl.BlockSpec((1, 8, 128), lambda c, i: (c, 0, 0)),
        scratch_shapes=[pltpu.VMEM((H, W), jnp.float32)],
    )

    partial_out = pl.pallas_call(
        functools.partial(_jacdet_kernel, d_total=D),
        out_shape=jax.ShapeDtypeStruct((nc, 8, 128), jnp.float32),
        grid_spec=grid_spec,
        compiler_params=pltpu.CompilerParams(
            dimension_semantics=("parallel", "arbitrary"),
            vmem_limit_bytes=48 * 1024 * 1024,
        ),
        cost_estimate=pl.CostEstimate(
            flops=33 * D * H * W,
            transcendentals=0,
            bytes_accessed=3 * D * H * W * flow.dtype.itemsize + nc * 8 * 128 * 4,
        ),
    )(flow, flow)           # same array through both specs (main tile + halo)

    return jnp.sum(partial_out[:, 0, 0])


def _reference_loss(x):
    """Pure-JAX port of the PyTorch module (full shapes, zero-padded diffs)."""
    _, D, H, W, _ = x.shape
    gd, gh, gw = jnp.meshgrid(jnp.arange(D), jnp.arange(H), jnp.arange(W),
                              indexing="ij")
    grid = jnp.stack([gd, gh, gw], axis=-1).astype(jnp.float32)[None]
    y = x.astype(jnp.float32) + grid

    def bdiff(a, ax):
        d = jnp.diff(a, axis=ax)
        pad = [(0, 0)] * a.ndim
        pad[ax] = (1, 0)
        return jnp.pad(d, pad)

    dx = bdiff(y, 1)[0]
    dy = bdiff(y, 2)[0]
    dz = bdiff(y, 3)[0]

    jdet = (dx[..., 0] * (dy[..., 1] * dz[..., 2] - dy[..., 2] * dz[..., 1])
            - dx[..., 1] * (dy[..., 0] * dz[..., 2] - dy[..., 2] * dz[..., 0])
            + dx[..., 2] * (dy[..., 0] * dz[..., 1] - dy[..., 1] * dz[..., 0]))
    return jnp.sum(jnp.maximum(0.0, -jdet))


if __name__ == "__main__":
    key = jax.random.PRNGKey(0)
    D, H, W = 96, 16, 128   # lane-dense W; D large enough to exercise tiling
    # Flow large enough that many local Jacobian determinants go negative.
    x = 1.5 * jax.random.normal(key, (1, D, H, W, 3), dtype=jnp.float32)

    loss = jax.block_until_ready(flow_jacdet_loss(x))
    ref = jax.block_until_ready(_reference_loss(x))

    assert jnp.allclose(loss, ref, rtol=2e-3, atol=1.0), (loss, ref)
    print("KERNEL_OK")
</pallas_src>

<mosaic_0001>
module attributes {stable_mosaic.version = 11 : i64} {
  func.func @_jacdet_kernel(%arg0: i32, %arg1: i32, %arg2: memref<3x42x16x128xf32, #tpu.memory_space<vmem>>, %arg3: memref<3x1x16x128xf32, #tpu.memory_space<vmem>>, %arg4: memref<1x8x128xf32, #tpu.memory_space<vmem>>, %arg5: memref<16x128xf32, #tpu.memory_space<vmem>>) attributes {dimension_semantics = [#tpu.dimension_semantics<parallel>, #tpu.dimension_semantics<arbitrary>], iteration_bounds = array<i64: 2, 2>, scalar_prefetch = 0 : i64, scratch_operands = 1 : i64, tpu.core_type = #tpu.core_type<tc>, window_params = [{transform_indices = @transform_0, window_bounds = array<i64: 3, 42, 16, 128>}, {transform_indices = @transform_1, window_bounds = array<i64: 3, 1, 16, 128>}, {transform_indices = @transform_2, window_bounds = array<i64: 1, 8, 128>}]} {
    %c2_i32 = arith.constant 2 : i32
    %0 = arith.muli %arg0, %c2_i32 : i32
    %1 = arith.addi %0, %arg1 : i32
    %c0_i32 = arith.constant 0 : i32
    %2 = arith.cmpi eq, %arg1, %c0_i32 : i32
    %3 = arith.extui %2 : i1 to i32
    %c0_i32_0 = arith.constant 0 : i32
    %4 = arith.cmpi ne, %3, %c0_i32_0 : i32
    scf.if %4 {
      %cst_24 = arith.constant 0.000000e+00 : f32
      %85 = vector.broadcast %cst_24 : f32 to vector<16x128xf32>
      %c0_25 = arith.constant 0 : index
      %c0_26 = arith.constant 0 : index
      %86 = vector.load %arg5[%c0_25, %c0_26] : memref<16x128xf32, #tpu.memory_space<vmem>>, vector<16x128xf32>
      tpu.vector_store %arg5[%c0_25, %c0_26], %85 {strides = array<i32>} : memref<16x128xf32, #tpu.memory_space<vmem>>, vector<16x128xf32>,
    } else {
    }
    %c0 = arith.constant 0 : index
    %c0_1 = arith.constant 0 : index
    %c0_2 = arith.constant 0 : index
    %c0_3 = arith.constant 0 : index
    %5 = vector.load %arg2[%c0, %c0_1, %c0_2, %c0_3] : memref<3x42x16x128xf32, #tpu.memory_space<vmem>>, vector<3x42x16x128xf32>
    %c0_4 = arith.constant 0 : index
    %c0_5 = arith.constant 0 : index
    %c0_6 = arith.constant 0 : index
    %c0_7 = arith.constant 0 : index
    %6 = vector.load %arg3[%c0_4, %c0_5, %c0_6, %c0_7] : memref<3x1x16x128xf32, #tpu.memory_space<vmem>>, vector<3x1x16x128xf32>
    %7 = vector.extract_strided_slice %5 {offsets = [0, 0, 0, 0], sizes = [3, 41, 16, 128], strides = [1, 1, 1, 1]} : vector<3x42x16x128xf32> to vector<3x41x16x128xf32>
    %8 = tpu.concatenate %6, %7 in 1 : vector<3x1x16x128xf32>, vector<3x41x16x128xf32> -> vector<3x42x16x128xf32>
    %9 = arith.subf %5, %8 : vector<3x42x16x128xf32>
    %10 = vector.shape_cast %5 : vector<3x42x16x128xf32> to vector<126x16x128xf32>
    %c1_i32 = arith.constant 1 : i32
    %11 = tpu.dynamic_rotate %10 by %c1_i32 dim 1 : vector<126x16x128xf32>, i32 -> vector<126x16x128xf32>
    %12 = arith.subf %10, %11 : vector<126x16x128xf32>
    %13 = vector.shape_cast %12 : vector<126x16x128xf32> to vector<3x42x16x128xf32>
    %c1_i32_8 = arith.constant 1 : i32
    %14 = tpu.dynamic_rotate %10 by %c1_i32_8 dim 2 : vector<126x16x128xf32>, i32 -> vector<126x16x128xf32>
    %15 = arith.subf %10, %14 : vector<126x16x128xf32>
    %16 = vector.shape_cast %15 : vector<126x16x128xf32> to vector<3x42x16x128xf32>
    %17 = vector.extract_strided_slice %9 {offsets = [0, 0, 0, 0], sizes = [1, 42, 16, 128], strides = [1, 1, 1, 1]} : vector<3x42x16x128xf32> to vector<1x42x16x128xf32>
    %18 = vector.shape_cast %17 : vector<1x42x16x128xf32> to vector<42x16x128xf32>
    %cst = arith.constant 1.000000e+00 : f32
    %19 = vector.broadcast %cst : f32 to vector<42x16x128xf32>
    %20 = arith.addf %18, %19 : vector<42x16x128xf32>
    %21 = vector.extract_strided_slice %9 {offsets = [1, 0, 0, 0], sizes = [1, 42, 16, 128], strides = [1, 1, 1, 1]} : vector<3x42x16x128xf32> to vector<1x42x16x128xf32>
    %22 = vector.shape_cast %21 : vector<1x42x16x128xf32> to vector<42x16x128xf32>
    %23 = vector.extract_strided_slice %9 {offsets = [2, 0, 0, 0], sizes = [1, 42, 16, 128], strides = [1, 1, 1, 1]} : vector<3x42x16x128xf32> to vector<1x42x16x128xf32>
    %24 = vector.shape_cast %23 : vector<1x42x16x128xf32> to vector<42x16x128xf32>
    %25 = vector.extract_strided_slice %13 {offsets = [0, 0, 0, 0], sizes = [1, 42, 16, 128], strides = [1, 1, 1, 1]} : vector<3x42x16x128xf32> to vector<1x42x16x128xf32>
    %26 = vector.shape_cast %25 : vector<1x42x16x128xf32> to vector<42x16x128xf32>
    %27 = vector.extract_strided_slice %13 {offsets = [1, 0, 0, 0], sizes = [1, 42, 16, 128], strides = [1, 1, 1, 1]} : vector<3x42x16x128xf32> to vector<1x42x16x128xf32>
    %28 = vector.shape_cast %27 : vector<1x42x16x128xf32> to vector<42x16x128xf32>
    %cst_9 = arith.constant 1.000000e+00 : f32
    %29 = vector.broadcast %cst_9 : f32 to vector<42x16x128xf32>
    %30 = arith.addf %28, %29 : vector<42x16x128xf32>
    %31 = vector.extract_strided_slice %13 {offsets = [2, 0, 0, 0], sizes = [1, 42, 16, 128], strides = [1, 1, 1, 1]} : vector<3x42x16x128xf32> to vector<1x42x16x128xf32>
    %32 = vector.shape_cast %31 : vector<1x42x16x128xf32> to vector<42x16x128xf32>
    %33 = vector.extract_strided_slice %16 {offsets = [0, 0, 0, 0], sizes = [1, 42, 16, 128], strides = [1, 1, 1, 1]} : vector<3x42x16x128xf32> to vector<1x42x16x128xf32>
    %34 = vector.shape_cast %33 : vector<1x42x16x128xf32> to vector<42x16x128xf32>
    %35 = vector.extract_strided_slice %16 {offsets = [1, 0, 0, 0], sizes = [1, 42, 16, 128], strides = [1, 1, 1, 1]} : vector<3x42x16x128xf32> to vector<1x42x16x128xf32>
    %36 = vector.shape_cast %35 : vector<1x42x16x128xf32> to vector<42x16x128xf32>
    %37 = vector.extract_strided_slice %16 {offsets = [2, 0, 0, 0], sizes = [1, 42, 16, 128], strides = [1, 1, 1, 1]} : vector<3x42x16x128xf32> to vector<1x42x16x128xf32>
    %38 = vector.shape_cast %37 : vector<1x42x16x128xf32> to vector<42x16x128xf32>
    %cst_10 = arith.constant 1.000000e+00 : f32
    %39 = vector.broadcast %cst_10 : f32 to vector<42x16x128xf32>
    %40 = arith.addf %38, %39 : vector<42x16x128xf32>
    %41 = arith.mulf %30, %40 : vector<42x16x128xf32>
    %42 = arith.mulf %32, %36 : vector<42x16x128xf32>
    %43 = arith.subf %41, %42 : vector<42x16x128xf32>
    %44 = arith.mulf %26, %40 : vector<42x16x128xf32>
    %45 = arith.mulf %32, %34 : vector<42x16x128xf32>
    %46 = arith.subf %44, %45 : vector<42x16x128xf32>
    %47 = arith.mulf %26, %36 : vector<42x16x128xf32>
    %48 = arith.mulf %30, %34 : vector<42x16x128xf32>
    %49 = arith.subf %47, %48 : vector<42x16x128xf32>
    %50 = arith.mulf %20, %43 : vector<42x16x128xf32>
    %51 = arith.mulf %22, %46 : vector<42x16x128xf32>
    %52 = arith.subf %50, %51 : vector<42x16x128xf32>
    %53 = arith.mulf %24, %49 : vector<42x16x128xf32>
    %54 = arith.addf %52, %53 : vector<42x16x128xf32>
    %55 = tpu.iota {dimensions = array<i32: 0>} : vector<42x16x128xi32>
    %56 = tpu.iota {dimensions = array<i32: 1>} : vector<42x16x128xi32>
    %57 = tpu.iota {dimensions = array<i32: 2>} : vector<42x16x128xi32>
    %c42_i32 = arith.constant 42 : i32
    %58 = arith.muli %1, %c42_i32 : i32
    %59 = vector.broadcast %58 : i32 to vector<42x16x128xi32>
    %60 = arith.addi %59, %55 : vector<42x16x128xi32>
    %c1_i32_11 = arith.constant 1 : i32
    %61 = vector.broadcast %c1_i32_11 : i32 to vector<42x16x128xi32>
    %62 = arith.cmpi sge, %60, %61 : vector<42x16x128xi32>
    %c96_i32 = arith.constant 96 : i32
    %63 = vector.broadcast %c96_i32 : i32 to vector<42x16x128xi32>
    %64 = arith.cmpi slt, %60, %63 : vector<42x16x128xi32>
    %65 = arith.andi %62, %64 : vector<42x16x128xi1>
    %c1_i32_12 = arith.constant 1 : i32
    %66 = vector.broadcast %c1_i32_12 : i32 to vector<42x16x128xi32>
    %67 = arith.cmpi sge, %56, %66 : vector<42x16x128xi32>
    %68 = arith.andi %65, %67 : vector<42x16x128xi1>
    %c1_i32_13 = arith.constant 1 : i32
    %69 = vector.broadcast %c1_i32_13 : i32 to vector<42x16x128xi32>
    %70 = arith.cmpi sge, %57, %69 : vector<42x16x128xi32>
    %71 = arith.andi %68, %70 : vector<42x16x128xi1>
    %cst_14 = arith.constant 0.000000e+00 : f32
    %72 = vector.broadcast %cst_14 : f32 to vector<42x16x128xf32>
    %73 = arith.subf %72, %54 : vector<42x16x128xf32>
    %cst_15 = arith.constant 0.000000e+00 : f32
    %74 = vector.broadcast %cst_15 : f32 to vector<42x16x128xf32>
    %75 = arith.maximumf %73, %74 : vector<42x16x128xf32>
    %cst_16 = arith.constant 0.000000e+00 : f32
    %76 = vector.broadcast %cst_16 : f32 to vector<42x16x128xf32>
    %77 = arith.select %71, %75, %76 : vector<42x16x128xi1>, vector<42x16x128xf32>
    %c0_17 = arith.constant 0 : index
    %c0_18 = arith.constant 0 : index
    %78 = vector.load %arg5[%c0_17, %c0_18] : memref<16x128xf32, #tpu.memory_space<vmem>>, vector<16x128xf32>
    %cst_19 = arith.constant dense<0.000000e+00> : vector<16x128xf32>
    %79 = vector.multi_reduction <add>, %77, %cst_19 [0] : vector<42x16x128xf32> to vector<16x128xf32>
    %80 = arith.addf %78, %79 : vector<16x128xf32>
    %c0_20 = arith.constant 0 : index
    %c0_21 = arith.constant 0 : index
    %81 = vector.load %arg5[%c0_20, %c0_21] : memref<16x128xf32, #tpu.memory_space<vmem>>, vector<16x128xf32>
    tpu.vector_store %arg5[%c0_20, %c0_21], %80 {strides = array<i32>} : memref<16x128xf32, #tpu.memory_space<vmem>>, vector<16x128xf32>,
    %c1_i32_22 = arith.constant 1 : i32
    %82 = arith.cmpi eq, %arg1, %c1_i32_22 : i32
    %83 = arith.extui %82 : i1 to i32
    %c0_i32_23 = arith.constant 0 : i32
    %84 = arith.cmpi ne, %83, %c0_i32_23 : i32
    scf.if %84 {
      %c0_24 = arith.constant 0 : index
      %c0_25 = arith.constant 0 : index
      %85 = vector.load %arg5[%c0_24, %c0_25] : memref<16x128xf32, #tpu.memory_space<vmem>>, vector<16x128xf32>
      %86 = vector.shape_cast %85 : vector<16x128xf32> to vector<1x16x128xf32>
      %cst_26 = arith.constant dense<0.000000e+00> : vector<1xf32>
      %87 = vector.multi_reduction <add>, %86, %cst_26 [1, 2] : vector<1x16x128xf32> to vector<1xf32>
      %88 = vector.shape_cast %87 : vector<1xf32> to vector<1x1x1xf32>
      %89 = vector.extract %88[0, 0, 0] : f32 from vector<1x1x1xf32>
      %cst_27 = arith.constant 0.000000e+00 : f32
      %90 = vector.broadcast %cst_27 : f32 to vector<8x128xf32>
      %91 = vector.broadcast %89 : f32 to vector<8x128xf32>
      %92 = arith.addf %90, %91 : vector<8x128xf32>
      %c0_28 = arith.constant 0 : index
      %c0_29 = arith.constant 0 : index
      %c0_30 = arith.constant 0 : index
      %93 = vector.load %arg4[%c0_28, %c0_29, %c0_30] : memref<1x8x128xf32, #tpu.memory_space<vmem>>, vector<1x8x128xf32>
      %94 = vector.shape_cast %93 : vector<1x8x128xf32> to vector<8x128xf32>
      %95 = vector.shape_cast %92 : vector<8x128xf32> to vector<1x8x128xf32>
      tpu.vector_store %arg4[%c0_28, %c0_29, %c0_30], %95 {strides = array<i32>} : memref<1x8x128xf32, #tpu.memory_space<vmem>>, vector<1x8x128xf32>,
    } else {
    }
    return
  }
  func.func @transform_0(%arg0: i32, %arg1: i32) -> (i32, i32, i32, i32) {
    %c2_i32 = arith.constant 2 : i32
    %0 = arith.muli %arg0, %c2_i32 : i32
    %1 = arith.addi %0, %arg1 : i32
    %c2_i32_0 = arith.constant 2 : i32
    %2 = arith.minsi %1, %c2_i32_0 : i32
    %c0_i32 = arith.constant 0 : i32
    %c0_i32_1 = arith.constant 0 : i32
    %c0_i32_2 = arith.constant 0 : i32
    %c0_i32_3 = arith.constant 0 : i32
    return %c0_i32, %2, %c0_i32_1, %c0_i32_2 : i32, i32, i32, i32
  }
  func.func @transform_1(%arg0: i32, %arg1: i32) -> (i32, i32, i32, i32) {
    %c2_i32 = arith.constant 2 : i32
    %0 = arith.muli %arg0, %c2_i32 : i32
    %1 = arith.addi %0, %arg1 : i32
    %c42_i32 = arith.constant 42 : i32
    %2 = arith.muli %1, %c42_i32 : i32
    %c1_i32 = arith.constant 1 : i32
    %3 = arith.subi %2, %c1_i32 : i32
    %c0_i32 = arith.constant 0 : i32
    %c95_i32 = arith.constant 95 : i32
    %4 = arith.maxsi %c0_i32, %3 : i32
    %5 = arith.minsi %c95_i32, %4 : i32
    %c0_i32_0 = arith.constant 0 : i32
    %c0_i32_1 = arith.constant 0 : i32
    %c0_i32_2 = arith.constant 0 : i32
    %c0_i32_3 = arith.constant 0 : i32
    return %c0_i32_0, %5, %c0_i32_1, %c0_i32_2 : i32, i32, i32, i32
  }
  func.func @transform_2(%arg0: i32, %arg1: i32) -> (i32, i32, i32) {
    %c0_i32 = arith.constant 0 : i32
    %c0_i32_0 = arith.constant 0 : i32
    %c0_i32_1 = arith.constant 0 : i32
    return %arg0, %c0_i32, %c0_i32_0 : i32, i32, i32
  }
}

</mosaic_0001>

<bundles_post_ra>
// kernel: tpu_custom_call.1
= control target key start
LH: loop header
LB: loop body
LE: loop exit
PB: predicated region body
PF: predicated region fallthrough
CT: control target
= control target key end

     0   :  { %s13858_s0 = inlined_call_operand.hbm [shape: f32[3,96,16,128], index: 0, kind: input, shape index: {}]   ;;  %s13859_s1 = inlined_call_operand.hbm [shape: f32[3,96,16,128], index: 1, kind: input, shape index: {}]   ;;  %s13860_s2 = inlined_call_operand.hbm [shape: f32[2,8,128], index: 2, kind: output, shape index: {}]  }
   0x1   :  { %14415 = sst [smem:[#allocation499_spill]] %s13860_s2 }
   0x2   :  { %7 = vsyncpa [#allocation4], 0 }
   0x3   :  { %9 = vsyncpa [#allocation4 + $0x1], 0 }
   0x4   :  { %10 = vsyncpa [#allocation7], 0 }
   0x5   :  { %12 = vsyncpa [#allocation7 + $0x1], 0 }
   0x6   :  { %13 = vsyncpa [#allocation5], 0 }
   0x7   :  { %15 = vsyncpa [#allocation5 + $0x1], 0  ;;  %s5675_s9 = smov 0   ;;  %s5677_s10 = smov 0  }
   0x8   :  { %s5679_s11 = smov 0   ;;  %s5681_s12 = smov 0  }
   0x9   :  { %s5683_s13 = smov 0   ;;  %s5685_s14 = smov 0  }
   0xa   :  { %s5687_s15 = smov 0   ;;  %s5689_s16 = smov 0  }
   0xb   :  { %s5691_s17 = smov 0   ;;  %s5693_s18 = smov 0  }
   0xc   :  { %s5695_s19 = smov 0   ;;  %s5697_s20 = smov 0  }
   0xd   :  { %s5699_s21 = smov 0   ;;  %s5701_s22 = smov 0  }
   0xe LB: > { %14416 = sst [smem:[#allocation17_spill]] %s5592_s9  ;;  %s13861_s23 = sadd.s32 4294967295, %s5644_s22   ;;  %s5644_s22 = sphi %s5701_s22, %s21_s22   ;;  %s5640_s21 = sphi %s5699_s21, %s16596_s21   ;;  %s5636_s20 = sphi %s5697_s20, %s16606_s20   ;;  %s5632_s19 = sphi %s5695_s19, %s16594_s19   ;;  %s5628_s18 = sphi %s5693_s18, %s16605_s18   ;;  %s5624_s17 = sphi %s5691_s17, %s16592_s17   ;;  %s5620_s16 = sphi %s5689_s16, %s16604_s16   ;;  %s5616_s15 = sphi %s5687_s15, %s16603_s15   ;;  %s5612_s14 = sphi %s5685_s14, %s16602_s14   ;;  %s5608_s13 = sphi %s5683_s13, %s16601_s13   ;;  %s5604_s12 = sphi %s5681_s12, %s16600_s12   ;;  %s5600_s11 = sphi %s5679_s11, %s16589_s11   ;;  %s5596_s10 = sphi %s5677_s10, %s16599_s10   ;;  %s5592_s9 = sphi %s5675_s9, %s16598_s9  }
   0xf   : > { %14417 = sst [smem:[#allocation18_spill]] %s5600_s11  ;;  %s30_s25 = sadd.s32 1, %s5636_s20 }
  0x10   : > { %14418 = sst [smem:[#allocation19_spill]] %s5624_s17  ;;  %s33_s26 = sadd.s32 1, %s5640_s21 }
  0x11   : > { %14419 = sst [smem:[#allocation20_spill]] %s5636_s20  ;;  %p31_p0 = scmp.ge.s32.totalorder %s30_s25, 2 }
  0x12   : > { %14420 = sst [smem:[#allocation21_spill]] %s5640_s21  ;;  %s4611_s27 = sshll.u32 %s5640_s21, 1 }
  0x13   : > { %s38_s28 = sadd.s32 %s5636_s20, %s4611_s27  ;;  %s48_s29 = sadd.s32 1, %s5624_s17 }
  0x14   : > { %s16608_s25 = smov (%p31_p0, %s30_s25), 0  ;;  %s16610_s26 = smov (!%p31_p0, %s33_s26), %s5640_s21 }
  0x15   : > { %14421 = sst [smem:[#allocation22_spill]] %s16608_s25  ;;  %p39_p1 = scmp.lt.s32.totalorder %s38_s28, 2 }
  0x16   : > { %p55_p2 = scmp.ne.s32.totalorder %s5624_s17, %s5620_s16  ;;  %p35_p3 = scmp.ge.s32.totalorder %s16610_s26, 2 }
  0x17   : > { %p56_p4 = scmp.eq.s32.totalorder %s5644_s22, 0  ;;  %p61_p6 = scmp.ne.s32.totalorder %s5620_s16, %s5616_s15 }
  0x18   : > { %s5758_s30 = scalar_select %p39_p1, %s38_s28, 2 }
  0x19   : > { %s16612_s26 = smov (%p35_p3, %s16610_s26), 0  ;;  %p5764_p5 = por %p56_p4, %p55_p2 }
  0x1a   : > { %14422 = sst [smem:[#allocation23_spill]] %s16612_s26  ;;  %s4612_s4 = sshll.u32 %s16612_s26, 1 }
  0x1b   : > { %p5773_p7 = scmp.eq.s32.totalorder %s13861_s23, 0  ;;  %s42_s6 = sadd.s32 %s4612_s4, %s16608_s25 }
  0x1c   : > { %s73_s7 = smul.u32 42, %s38_s28  ;;  %p43_p8 = scmp.lt.s32.totalorder %s42_s6, 2 }
  0x1d   : > { %p5780_p9 = por %p5773_p7, %p61_p6  ;;  %s81_s27 = smul.u32 42, %s42_s6 }
  0x1e   : > { %s4614_s15 = sadd.s32 4294967295, %s73_s7  ;;  %s16614_s6 = smov (!%p43_p8, %s42_s6), 2 }
  0x1f   : > { %p75_p10 = scmp.gt.s32.totalorder %s4614_s15, 0  ;;  %p4615_p11 = scmp.lt.s32.totalorder %s4614_s15, 95 }
  0x20   : > { %s45_s4 = ssub.s32 %s5758_s30, %s16614_s6  ;;  %s4621_s28 = sadd.s32 4294967295, %s81_s27 }
  0x21   : > { %p46_p12 = scmp.eq.s32.totalorder %s45_s4, 0  ;;  %p83_p13 = scmp.gt.s32.totalorder %s4621_s28, 0 }
  0x22   : > { %s16616_s15 = smov (!%p75_p10, %s4614_s15), 0  ;;  %p4622_p0 = scmp.lt.s32.totalorder %s4621_s28, 95 }
  0x23   : > { %s5786_s24 = scalar_select %p46_p12, %s5624_s17, %s48_s29  }
  0x24   : > { %s16618_s15 = smov (!%p4615_p11, %s16616_s15), 95  ;;  %s90_s6 = sadd.s32 1, %s5612_s14 }
  0x25   : > { %14426 = sst [smem:[#allocation24_spill]] %s5786_s24  ;;  %p97_p1 = scmp.ne.s32.totalorder %s5612_s14, %s5608_s13 }
  0x26   : > { %s84_s7 = scalar_select %p83_p13, %s4621_s28, 0 }
  0x27   : > { %p103_p2 = scmp.ne.s32.totalorder %s5608_s13, %s5604_s12  ;;  %p5797_p3 = por %p97_p1, %p56_p4 }
  0x28   : > { %s16620_s7 = smov (!%p4622_p0, %s84_s7), 95  ;;  %s113_s23 = ssub.s32 %s5640_s21, %s16612_s26 }
  0x29   : > { %p5803_p6 = por %p103_p2, %p5773_p7  ;;  %s87_s4 = ssub.s32 %s16618_s15, %s16620_s7 }
  0x2a   : > { %p88_p8 = scmp.eq.s32.totalorder %s87_s4, 0  ;;  %p114_p10 = scmp.eq.s32.totalorder %s113_s23, 0 }
  0x2b   : > { %s116_s28 = sadd.s32 1, %s5600_s11  ;;  %p126_p11 = scmp.ne.s32.totalorder %s5600_s11, %s5596_s10 }
  0x2c   : > { %s5814_s25 = scalar_select %p88_p8, %s5612_s14, %s90_s6  }
  0x2d   : > { %s5817_s12 = scalar_select %p114_p10, %s5600_s11, %s116_s28  }
  0x2e   : > { %14429 = sst [smem:[#allocation25_spill]] %s5814_s25  ;;  %s14431_s20 = sadd.s32 4294967295, %s5644_s22  }
  0x2f   : > { %14430 = sst [smem:[#allocation26_spill]] %s5817_s12  ;;  %p127_p4 = scmp.eq.s32.totalorder %s14431_s20, 3 }
  0x30   : > { %p132_p12 = scmp.ne.s32.totalorder %s5596_s10, %s5592_s9  ;;  %s14432_s24 = sadd.s32 4294967294, %s5644_s22  }
  0x31   : > { %p133_p13 = scmp.eq.s32.totalorder %s14432_s24, 3  ;;  %p5825_p0 = por %p127_p4, %p126_p11 }
  0x32   : > { %p4628_p1 = scmp.ge.s32.totalorder %s5644_s22, 4 }
  0x33   : > { %p5829_p7 = por %p133_p13, %p132_p12 }
  0x34   : > { %149 = sbr.rel (%p4628_p1) target bundleno = 100 (0x64), region = 16 }
  0x35   : > { %s14434_s7 = scalar_select %p5829_p7, 1, 0 }
  0x37   : > { %14435 = sst [smem:[#allocation27_spill]] %s14434_s7 }
  0x3b   : > { %152 = sbr.rel (!%p5764_p5) target bundleno = 86 (0x56), region = 20 }
  0x42   : > { %s153_s20 = sand.u32 1, %s5624_s17   ;;  %s162_s23 = smul.u32 42, %s5758_s30 }
  0x43   : > { %s4671_s6 = smul.u32 2016, %s153_s20  ;;  %s154_s26 = scalar_lea.sflag [#allocation4], %s153_s20 }
  0x44   : > { %s163_s24 = ssub.s32 96, %s162_s23 }
  0x45   : > { %p164_p2 = scmp.lt.s32.totalorder %s163_s24, 42  ;;  %s157_s21 = scalar_lea.vmem [#allocation3], %s4671_s6 }
  0x47   : > { %s16622_s24 = smov (!%p164_p2, %s163_s24), 42 }
  0x48   : > { %s5838_s4 = smul.u32 768, %s16622_s24 }
  0x4a   : > { %s169_s28 = ssub.s32 32256, %s5838_s4 }
  0x4b   : > { %170 = vsyncadd %s154_s26, %s169_s28  ;;  %p4631_p8 = scmp.ne.s32.totalorder %s5838_s4, 0  ;;  %s4670_s3 = smul.u32 10752, %s5758_s30 }
  0x4c   : > { %s4634_s25 = sshll.u32 %s16622_s24, 1  ;;  %s182_s12 = sld [smem:[#allocation0]]  }
  0x4d   : > { %s174_s7 = scalar_lea.hbm %s13858_s0, %s4670_s3  ;;  %s190_s23 = sshll.u32 %s157_s21, 4  ;;  %s191_s23 = int_to_ptr.vmem [resolvable:$true] %s190_s23 }
  0x4e   : > { %s5646_s9 = smov 24576   ;;  %s5647_s2 = smov 10752  }
  0x4f   : > { %197 = sst [smem:[#allocation10]] %s5646_s9  ;;  %s5648_s6 = smov 128  }
  0x50   : > { %199 = sst [smem:[#allocation10 + $0x1]] %s5647_s2  ;;  %s5649_s30 = smov 8  }
  0x51   : > { %201 = sst [smem:[#allocation10 + $0x2]] %s4634_s25  ;;  %s5650_s24 = smov [#allocation9]  }
  0x52   : > { %s4637_s20 = sshll.u32 %s182_s12, 26  ;;  %203 = sst [smem:[#allocation10 + $0x3]] %s5648_s6 }
  0x53   : > { %s4638_s28 = sadd.s32 134217728, %s4637_s20  ;;  %205 = sst [smem:[#allocation10 + $0x4]] %s5648_s6 }
  0x54   : > { %207 = sst [smem:[#allocation10 + $0x5]] %s5649_s30 }
  0x55   : > { %209 = dma.general (%p4631_p8), %s174_s7, %s5838_s4, %s191_s23, %s154_s26, %s5650_s24, [#allocation10], %s4638_s28, 0  }
  0x56 PF: > { %s213_s2 = sand.u32 1, %s5612_s14   ;;  %s4669_s11 = sshll.u32 %s16618_s15, 8 }
  0x57   : > { %s4672_s9 = smul.u32 48, %s213_s2  ;;  %s5651_s17 = smov 24576  }
  0x58   : > { %4678 = sst [smem:[#allocation12]] (%p5797_p3), %s5651_s17  ;;  %s231_s12 = scalar_lea.hbm %s13859_s1, %s4669_s11 }
  0x59   : > { %s4677_s21 = scalar_select %p5797_p3, [#allocation0], [#allocation13] }
  0x5a   : > { %s217_s4 = scalar_lea.vmem [#allocation6], %s4672_s9  ;;  %s5652_s23 = smov 256  }
  0x5b   : > { %s236_s7 = sld [smem:[%s4677_s21]]   ;;  %s244_s3 = sshll.u32 %s217_s4, 4  ;;  %s245_s3 = int_to_ptr.vmem [resolvable:$true] %s244_s3 }
  0x5c   : > { %4679 = sst [smem:[#allocation12 + $0x1]] (%p5797_p3), %s5652_s23  ;;  %s5653_s20 = smov 2  }
  0x5d   : > { %4680 = sst [smem:[#allocation12 + $0x2]] (%p5797_p3), %s5653_s20  ;;  %s5654_s15 = smov 128  }
  0x5e   : > { %4681 = sst [smem:[#allocation12 + $0x3]] (%p5797_p3), %s5654_s15  ;;  %s5655_s6 = smov 8  }
  0x5f   : > { %4682 = sst [smem:[#allocation12 + $0x4]] (%p5797_p3), %s5654_s15  ;;  %s214_s24 = scalar_lea.sflag [#allocation7], %s213_s2 }
  0x60   : > { %4683 = sst [smem:[#allocation12 + $0x5]] (%p5797_p3), %s5655_s6  ;;  %s5656_s9 = smov [#allocation11]  }
  0x61   : > { %s4649_s28 = sshll.u32 %s236_s7, 26 }
  0x62   : > { %s4650_s30 = sadd.s32 134217728, %s4649_s28 }
  0x63   : > { %4684 = dma.general (%p5797_p3), %s231_s12, 768, %s245_s3, %s214_s24, %s5656_s9, [#allocation12], %s4650_s30, 0  }
  0x64 PF: > { %p4651_p5 = scmp.ge.s32.totalorder %s5644_s22, 1  ;;  %p265_p10 = scmp.lt.s32.totalorder %s5644_s22, 5 }
  0x66   : > { %p266_p11 = pnand %p4651_p5, %p265_p10 }
  0x68   : > { %269 = sbr.rel (%p266_p11) target bundleno = 1330 (0x532), region = 28 }
  0x6f   : > { %s271_s11 = sand.u32 1, %s5620_s16  }
  0x70   : > { %s4673_s17 = smul.u32 2016, %s271_s11  ;;  %s272_s21 = scalar_lea.sflag [#allocation4], %s271_s11 }
  0x72   : > { %s5873_s25 = scalar_lea.vmem [#allocation3], %s4673_s17 }
  0x73   : > { %5579 = dma.done.wait (%p5780_p9), %s272_s21, 32256  }
  0x74   : > { %5581 = vsyncadd (%p5780_p9), %s272_s21, 4294935040  ;;  %s280_s27 = sand.u32 1, %s5608_s13  }
  0x75   : > { %s4674_s2 = smul.u32 48, %s280_s27  ;;  %s281_s26 = scalar_lea.sflag [#allocation7], %s280_s27 }
  0x77   : > { %s5880_s12 = scalar_lea.vmem [#allocation6], %s4674_s2 }
  0x78   : > { %5583 = dma.done.wait (%p5803_p6), %s281_s26, 768  }
  0x79   : > { %5585 = vsyncadd (%p5803_p6), %s281_s26, 4294966528  ;;  %s307_s7 = sand.u32 1, %s5596_s10   ;;  %s4653_s4 = sshll.u32 %s5632_s19, 1 }
  0x7a   : > { %s5890_s8 = sshll.u32 %s307_s7, 3  ;;  %s5893_s3 = sadd.s32 %s5628_s18, %s4653_s4 }
  0x7b   : > { %s309_s23 = scalar_lea.vmem [#allocation8], %s5890_s8  ;;  %p4654_p9 = scmp.ne.s32.totalorder %s5628_s18, 0 }
  0x7c   : > { %v5657_v0 = vmov (!%p4654_p9), 0.0  }
  0x7d   : > { %333 = sbr.rel (%p4654_p9) target bundleno = 132 (0x84), region = 40  ;;  %334 = vst [vmem:[#allocation2] sm:$0xff] (!%p4654_p9), %v5657_v0  ;;  %335 = vst [vmem:[#allocation2 + $0x8] sm:$0xff] (!%p4654_p9), %v5657_v0 }
  0x84 PF: > { %v338_v1 = vld [vmem:[%s5873_s25 + $0x10] sm:$0xff]  ;;  %v336_v2 = vld [vmem:[%s5873_s25] sm:$0xff]  ;;  %s5658_s29 = smov 1   ;;  %v339_v3 = vld [vmem:[%s5873_s25 + $0x18] sm:$0xff]  ;;  %v13871_v11 = vlaneseq  ;;  %s3792_s20 = smul.u32 42, %s5893_s3 }
  0x85   : > { %1609 = vrot.lane.b32.xlu1 %v338_v1, %s5658_s29  ;;  %1605 = vrot.lane.b32.xlu0 %v336_v2, %s5658_s29  ;;  %v337_v4 = vld [vmem:[%s5873_s25 + $0x8] sm:$0xff]  ;;  %v340_v6 = vld [vmem:[%s5873_s25 + $0x20] sm:$0xff]  ;;  %p4655_p3 = scmp.ne.s32.totalorder %s5628_s18, 1 }
  0x86   : > { %v341_v5 = vld [vmem:[%s5873_s25 + $0x28] sm:$0xff]  ;;  %v343_v7 = vld [vmem:[%s5873_s25 + $0x38] sm:$0xff]  ;;  %v342_v8 = vld [vmem:[%s5873_s25 + $0x30] sm:$0xff]  ;;  %v5920_v14 = vshrl.u32 %v13871_v11, 7 }
  0x87   : > { %v345_v9 = vld [vmem:[%s5873_s25 + $0x48] sm:$0xff]  ;;  %v344_v10 = vld [vmem:[%s5873_s25 + $0x40] sm:$0xff]  ;;  %v347_v12 = vld [vmem:[%s5873_s25 + $0x58] sm:$0xff] }
  0x88   : > { %v346_v13 = vld [vmem:[%s5873_s25 + $0x50] sm:$0xff]  ;;  %v5926_v16 = vld [vmem:[%s5873_s25 + $0x2b8] sm:$0xff]  ;;  %v349_v17 = vld [vmem:[%s5873_s25 + $0x68] sm:$0xff]  ;;  %vm1100_vm0 = vcmp.lt.s32.totalorder %v5920_v14, 1  ;;  %vm3961_vm3 = vcmp.ge.s32.totalorder %v5920_v14, 1 }
  0x89   : > { %1611 = vrot.lane.b32.xlu1 %v339_v3, %s5658_s29  ;;  %1607 = vrot.lane.b32.xlu0 %v337_v4, %s5658_s29  ;;  %v422_v15 = vld [vmem:[%s5873_s25 + $0x2b0] sm:$0xff]  ;;  %v348_v18 = vld [vmem:[%s5873_s25 + $0x60] sm:$0xff]  ;;  %v1015_v20 = vrot.slane %v5926_v16, 7 }
  0x8a   : > { %v889_v19 = vrot.slane %v422_v15, 7  ;;  %v506_v21 = vld [vmem:[%s5873_s25 + $0x550] sm:$0xff]  ;;  %v507_v22 = vld [vmem:[%s5873_s25 + $0x558] sm:$0xff]  ;;  %v5935_v23 = vld [vmem:[%s5873_s25 + $0x2a0] sm:$0xff] }
  0x8b   : > { %v5938_v24 = vld [vmem:[%s5873_s25 + $0x2a8] sm:$0xff]  ;;  %v351_v25 = vld [vmem:[%s5873_s25 + $0x78] sm:$0xff]  ;;  %v350_v26 = vld [vmem:[%s5873_s25 + $0x70] sm:$0xff]  ;;  %v931_v27 = vrot.slane %v506_v21, 7  ;;  %v1057_v28 = vrot.slane %v507_v22, 7  ;;  %v888_v32 = vrot.slane %v5935_v23, 7 }
  0x8c   : > { %v1270_v29 = vsel %vm1100_vm0, %v1015_v20, %v889_v19  ;;  %v504_v30 = vld [vmem:[%s5873_s25 + $0x540] sm:$0xff]  ;;  %v505_v31 = vld [vmem:[%s5873_s25 + $0x548] sm:$0xff]  ;;  %v1014_v33 = vrot.slane %v5938_v24, 7  ;;  %v1144_v43 = vsel %vm1100_vm0, %v889_v19, %v1015_v20  ;;  %v5967_v44 = vld [vmem:[%s5873_s25 + $0x2d0] sm:$0xff] }
  0x8d   : > { %1615 = vrot.lane.b32.xlu1 %v341_v5, %s5658_s29  ;;  %1613 = vrot.lane.b32.xlu0 %v340_v6, %s5658_s29  ;;  %v1439_v34 = vsub.f32 %v422_v15, %v1270_v29  ;;  %v930_v35 = vrot.slane %v504_v30, 7  ;;  %v1056_v36 = vrot.slane %v505_v31, 7  ;;  %v5953_v37 = vld [vmem:[%s5873_s25 + $0x2c0] sm:$0xff]  ;;  %v5956_v38 = vld [vmem:[%s5873_s25 + $0x2c8] sm:$0xff]  ;;  %v1312_v41 = vsel %vm1100_vm0, %v1057_v28, %v931_v27 }
  0x8e   : > { %v353_v39 = vld [vmem:[%s5873_s25 + $0x88] sm:$0xff]  ;;  %v352_v40 = vld [vmem:[%s5873_s25 + $0x80] sm:$0xff]  ;;  %v1269_v42 = vsel %vm1100_vm0, %v1014_v33, %v888_v32  ;;  %v5970_v45 = vld [vmem:[%s5873_s25 + $0x2d8] sm:$0xff]  ;;  %v1143_v47 = vsel %vm1100_vm0, %v888_v32, %v1014_v33  ;;  %v890_v50 = vrot.slane %v5953_v37, 7  ;;  %v1016_v51 = vrot.slane %v5956_v38, 7 }
  0x8f   : > { %v355_v46 = vld [vmem:[%s5873_s25 + $0x98] sm:$0xff]  ;;  %v5976_v48 = vld [vmem:[%s5873_s25 + $0x560] sm:$0xff]  ;;  %v5979_v49 = vld [vmem:[%s5873_s25 + $0x568] sm:$0xff]  ;;  %v5985_v52 = vsub.f32 %v506_v21, %v1312_v41  ;;  %v5987_v53 = vadd.f32 1.0, %v1439_v34  ;;  %v1311_v54 = vsel %vm1100_vm0, %v1056_v36, %v930_v35  ;;  %v1186_v55 = vsel %vm1100_vm0, %v931_v27, %v1057_v28 }
  0x90   : > { %v5994_v56 = vld [vmem:[%s5873_s25 + $0x570] sm:$0xff]  ;;  %v5997_v57 = vld [vmem:[%s5873_s25 + $0x578] sm:$0xff]  ;;  %v1437_v59 = vsub.f32 %v5935_v23, %v1269_v42  ;;  %v1440_v60 = vsub.f32 %v5926_v16, %v1144_v43  ;;  %v891_v61 = vrot.slane %v5967_v44, 7  ;;  %v1017_v62 = vrot.slane %v5970_v45, 7  ;;  %v6005_v63 = vld [vmem:[%s5873_s25 + $0x2e0] sm:$0xff] }
  0x91   : > { %1619 = vrot.lane.b32.xlu1 %v343_v7, %s5658_s29  ;;  %1617 = vrot.lane.b32.xlu0 %v342_v8, %s5658_s29  ;;  %14436 = vst [vmem:[#allocation28_spill] sm:$0xff] %v5985_v52  ;;  %14437 = vst [vmem:[#allocation29_spill] sm:$0xff] %v5987_v53  ;;  %v354_v58 = vld [vmem:[%s5873_s25 + $0x90] sm:$0xff]  ;;  %v6008_v0 = vld [vmem:[%s5873_s25 + $0x2e8] sm:$0xff]  ;;  %v1185_v1 = vsel %vm1100_vm0, %v930_v35, %v1056_v36  ;;  %v1438_v2 = vsub.f32 %v5938_v24, %v1143_v47  ;;  %v932_v3 = vrot.slane %v5976_v48, 7 }
  0x92   : > { %v1058_v4 = vrot.slane %v5979_v49, 7  ;;  %v1145_v5 = vsel %vm1100_vm0, %v890_v50, %v1016_v51  ;;  %v1271_v6 = vsel %vm1100_vm0, %v1016_v51, %v890_v50  ;;  %v933_v7 = vrot.slane %v5994_v56, 7  ;;  %v6046_v23 = vld [vmem:[%s5873_s25 + $0x2f0] sm:$0xff]  ;;  %v6055_v28 = vld [vmem:[%s5873_s25 + $0x2f8] sm:$0xff] }
  0x93   : > { %v1059_v8 = vrot.slane %v5997_v57, 7  ;;  %v892_v15 = vrot.slane %v6005_v63, 7  ;;  %v1018_v16 = vrot.slane %v6008_v0, 7  ;;  %v6037_v19 = vadd.f32 1.0, %v1437_v59  ;;  %v6058_v29 = vld [vmem:[%s5873_s25 + $0x590] sm:$0xff] }
  0x94   : > { %v6039_v20 = vadd.f32 1.0, %v1440_v60  ;;  %v6041_v21 = vsub.f32 %v505_v31, %v1185_v1  ;;  %v6048_v24 = vadd.f32 1.0, %v1438_v2  ;;  %v1441_v27 = vsub.f32 %v5953_v37, %v1271_v6  ;;  %v6109_v60 = vld [vmem:[%s5873_s25 + $0x308] sm:$0xff]  ;;  %v6121_v2 = vld [vmem:[%s5873_s25 + $0x310] sm:$0xff] }
  0x95   : > { %1623 = vrot.lane.b32.xlu1 %v345_v9, %s5658_s29  ;;  %1621 = vrot.lane.b32.xlu0 %v344_v10, %s5658_s29  ;;  %v6023_v9 = vsub.f32 %v504_v30, %v1311_v54  ;;  %v6025_v10 = vsub.f32 %v507_v22, %v1186_v55  ;;  %14440 = vst [vmem:[#allocation32_spill] sm:$0xff] %v6037_v19  ;;  %v6061_v30 = vld [vmem:[%s5873_s25 + $0x598] sm:$0xff]  ;;  %v935_v42 = vrot.slane %v6058_v29, 7  ;;  %v1019_v43 = vrot.slane %v6055_v28, 7  ;;  %v6095_v54 = vld [vmem:[%s5873_s25 + $0x300] sm:$0xff] }
  0x96   : > { %14441 = vst [vmem:[#allocation33_spill] sm:$0xff] %v6039_v20  ;;  %14442 = vst [vmem:[#allocation34_spill] sm:$0xff] %v6041_v21  ;;  %v1146_v22 = vsel %vm1100_vm0, %v891_v61, %v1017_v62  ;;  %v1313_v31 = vsel %vm1100_vm0, %v1058_v4, %v932_v3  ;;  %v1188_v32 = vsel %vm1100_vm0, %v933_v7, %v1059_v8  ;;  %v6092_v51 = vadd.f32 1.0, %v1441_v27  ;;  %v6098_v55 = vld [vmem:[%s5873_s25 + $0x5a0] sm:$0xff]  ;;  %v6149_v27 = vld [vmem:[%s5873_s25 + $0x5b8] sm:$0xff] }
  0x97   : > { %14438 = vst [vmem:[#allocation30_spill] sm:$0xff] %v6023_v9  ;;  %14439 = vst [vmem:[#allocation31_spill] sm:$0xff] %v6025_v10  ;;  %v1444_v35 = vsub.f32 %v5970_v45, %v1146_v22  ;;  %v1272_v36 = vsel %vm1100_vm0, %v1017_v62, %v891_v61  ;;  %v1147_v37 = vsel %vm1100_vm0, %v892_v15, %v1018_v16  ;;  %v1061_v45 = vrot.slane %v6061_v30, 7  ;;  %v517_v61 = vld [vmem:[%s5873_s25 + $0x5a8] sm:$0xff] }
  0x98   : > { %14443 = vst [vmem:[#allocation35_spill] sm:$0xff] %v6048_v24  ;;  %v1273_v41 = vsel %vm1100_vm0, %v1018_v16, %v892_v15  ;;  %v6090_v50 = vsub.f32 %v5976_v48, %v1313_v31  ;;  %14447 = vst [vmem:[#allocation39_spill] sm:$0xff] %v6092_v51  ;;  %v1443_v59 = vsub.f32 %v5967_v44, %v1272_v36  ;;  %v1020_v16 = vrot.slane %v6109_v60, 7 }
  0x99   : > { %1627 = vrot.lane.b32.xlu1 %v347_v12, %s5658_s29  ;;  %1625 = vrot.lane.b32.xlu0 %v346_v13, %s5658_s29  ;;  %v6028_v12 = vld [vmem:[%s5873_s25 + $0x580] sm:$0xff]  ;;  %v6031_v13 = vld [vmem:[%s5873_s25 + $0x588] sm:$0xff]  ;;  %v6114_v62 = vadd.f32 1.0, %v1444_v35  ;;  %v1445_v44 = vsub.f32 %v6005_v63, %v1273_v41  ;;  %v1316_v15 = vsel %vm1100_vm0, %v1061_v45, %v935_v42  ;;  %v895_v31 = vrot.slane %v6121_v2, 7 }
  0x9a   : > { %v934_v33 = vrot.slane %v6028_v12, 7  ;;  %v1060_v34 = vrot.slane %v6031_v13, 7  ;;  %14446 = vst [vmem:[#allocation38_spill] sm:$0xff] %v6090_v50  ;;  %v6178_v41 = vld [vmem:[%s5873_s25 + $0x328] sm:$0xff] }
  0x9b   : > { %14449 = vst [vmem:[#allocation41_spill] sm:$0xff] %v6114_v62  ;;  %v6164_v36 = vadd.f32 1.0, %v1445_v44  ;;  %v1022_v44 = vrot.slane %v6178_v41, 7 }
  0x9c   : > { %v1189_v48 = vsel %vm1100_vm0, %v934_v33, %v1060_v34  ;;  %v1315_v1 = vsel %vm1100_vm0, %v1060_v34, %v934_v33  ;;  %v362_v33 = vld [vmem:[%s5873_s25 + $0xd0] sm:$0xff] }
  0x9d   : > { %1631 = vrot.lane.b32.xlu1 %v349_v17, %s5658_s29  ;;  %1629 = vrot.lane.b32.xlu0 %v348_v18, %s5658_s29  ;;  %v357_v17 = vld [vmem:[%s5873_s25 + $0xa8] sm:$0xff]  ;;  %v356_v18 = vld [vmem:[%s5873_s25 + $0xa0] sm:$0xff]  ;;  %v6162_v35 = vsub.f32 %v6028_v12, %v1315_v1  ;;  %14455 = vst [vmem:[#allocation47_spill] sm:$0xff] %v6164_v36 }
  0x9e   : > { %v521_v12 = vld [vmem:[%s5873_s25 + $0x5c8] sm:$0xff] }
  0x9f   : > { %14454 = vst [vmem:[#allocation46_spill] sm:$0xff] %v6162_v35 }
  0xa1   : > { %1635 = vrot.lane.b32.xlu1 %v351_v25, %s5658_s29  ;;  %1633 = vrot.lane.b32.xlu0 %v350_v26, %s5658_s29  ;;  %v1187_v25 = vsel %vm1100_vm0, %v932_v3, %v1058_v4  ;;  %v1442_v26 = vsub.f32 %v5956_v38, %v1145_v5  ;;  %v893_v38 = vrot.slane %v6046_v23, 7  ;;  %v6124_v3 = vld [vmem:[%s5873_s25 + $0x318] sm:$0xff]  ;;  %v361_v4 = vld [vmem:[%s5873_s25 + $0xc8] sm:$0xff] }
  0xa2   : > { %v360_v5 = vld [vmem:[%s5873_s25 + $0xc0] sm:$0xff] }
  0xa3   : > { %v6087_v47 = vadd.f32 1.0, %v1442_v26  ;;  %v1148_v6 = vsel %vm1100_vm0, %v893_v38, %v1019_v43  ;;  %v1274_v63 = vsel %vm1100_vm0, %v1019_v43, %v893_v38  ;;  %v6146_v26 = vld [vmem:[%s5873_s25 + $0x5b0] sm:$0xff] }
  0xa4   : > { %v1448_v38 = vsub.f32 %v6055_v28, %v1148_v6  ;;  %v6208_v6 = vld [vmem:[%s5873_s25 + $0x338] sm:$0xff] }
  0xa5   : > { %1639 = vrot.lane.b32.xlu1 %v353_v39, %s5658_s29  ;;  %1637 = vrot.lane.b32.xlu0 %v352_v40, %s5658_s29  ;;  %v359_v39 = vld [vmem:[%s5873_s25 + $0xb8] sm:$0xff]  ;;  %v358_v40 = vld [vmem:[%s5873_s25 + $0xb0] sm:$0xff]  ;;  %14445 = vst [vmem:[#allocation37_spill] sm:$0xff] %v6087_v47 }
  0xa9   : > { %1643 = vrot.lane.b32.xlu1 %v355_v46, %s5658_s29  ;;  %1641 = vrot.lane.b32.xlu0 %v354_v58, %s5658_s29  ;;  %v6085_v46 = vsub.f32 %v5979_v49, %v1187_v25  ;;  %v6101_v58 = vsub.f32 %v5997_v57, %v1188_v32  ;;  %v1314_v49 = vsel %vm1100_vm0, %v1059_v8, %v933_v7  ;;  %v936_v8 = vrot.slane %v6098_v55, 7 }
  0xaa   : > { %v1446_v57 = vsub.f32 %v6008_v0, %v1147_v37  ;;  %v1190_v7 = vsel %vm1100_vm0, %v935_v42, %v1061_v45  ;;  %v894_v0 = vrot.slane %v6095_v54, 7  ;;  %v6141_v22 = vsub.f32 %v5994_v56, %v1314_v49  ;;  %v6167_v37 = vld [vmem:[%s5873_s25 + $0x320] sm:$0xff] }
  0xab   : > { %14444 = vst [vmem:[#allocation36_spill] sm:$0xff] %v6085_v46  ;;  %14448 = vst [vmem:[#allocation40_spill] sm:$0xff] %v6101_v58  ;;  %v6143_v25 = vadd.f32 1.0, %v1443_v59  ;;  %v1021_v32 = vrot.slane %v6124_v3, 7  ;;  %v6157_v56 = vsub.f32 %v6031_v13, %v1189_v48  ;;  %v6175_v13 = vsub.f32 %v6058_v29, %v1316_v15  ;;  %v6181_v42 = vld [vmem:[%s5873_s25 + $0x5c0] sm:$0xff]  ;;  %v365_v29 = vld [vmem:[%s5873_s25 + $0xe8] sm:$0xff] }
  0xac   : > { %14450 = vst [vmem:[#allocation42_spill] sm:$0xff] %v6141_v22  ;;  %v6159_v34 = vadd.f32 1.0, %v1446_v57  ;;  %v1149_v43 = vsel %vm1100_vm0, %v894_v0, %v1020_v16  ;;  %v1275_v45 = vsel %vm1100_vm0, %v1020_v16, %v894_v0  ;;  %v896_v57 = vrot.slane %v6167_v37, 7  ;;  %v6219_v16 = vld [vmem:[%s5873_s25 + $0x5d0] sm:$0xff] }
  0xad   : > { %1647 = vrot.lane.b32.xlu1 %v357_v17, %s5658_s29  ;;  %1645 = vrot.lane.b32.xlu0 %v356_v18, %s5658_s29  ;;  %v1062_v17 = vrot.slane %v517_v61, 7  ;;  %v363_v18 = vld [vmem:[%s5873_s25 + $0xd8] sm:$0xff]  ;;  %14451 = vst [vmem:[#allocation43_spill] sm:$0xff] %v6143_v25  ;;  %14452 = vst [vmem:[#allocation44_spill] sm:$0xff] %v6157_v56  ;;  %v1150_v59 = vsel %vm1100_vm0, %v895_v31, %v1021_v32  ;;  %v1276_v48 = vsel %vm1100_vm0, %v1021_v32, %v895_v31 }
  0xae   : > { %14453 = vst [vmem:[#allocation45_spill] sm:$0xff] %v6159_v34  ;;  %14457 = vst [vmem:[#allocation49_spill] sm:$0xff] %v6175_v13  ;;  %v938_v1 = vrot.slane %v6181_v42, 7  ;;  %v6211_v0 = vadd.f32 1.0, %v1448_v38  ;;  %v6231_v38 = vld [vmem:[%s5873_s25 + $0x340] sm:$0xff] }
  0xaf   : > { %v1191_v28 = vsel %vm1100_vm0, %v936_v8, %v1062_v17  ;;  %v1317_v49 = vsel %vm1100_vm0, %v1062_v17, %v936_v8  ;;  %v523_v17 = vld [vmem:[%s5873_s25 + $0x5d8] sm:$0xff] }
  0xb0   : > { %14458 = vst [vmem:[#allocation50_spill] sm:$0xff] %v6211_v0  ;;  %v6216_v15 = vsub.f32 %v517_v61, %v1191_v28  ;;  %v6224_v31 = vsub.f32 %v6098_v55, %v1317_v49  ;;  %v1452_v61 = vsub.f32 %v6124_v3, %v1150_v59  ;;  %v1023_v55 = vrot.slane %v6208_v6, 7 }
  0xb1   : > { %1651 = vrot.lane.b32.xlu1 %v359_v39, %s5658_s29  ;;  %1649 = vrot.lane.b32.xlu0 %v358_v40, %s5658_s29  ;;  %v6171_v39 = vsub.f32 %v6061_v30, %v1190_v7  ;;  %v1447_v40 = vsub.f32 %v6046_v23, %v1274_v63  ;;  %v937_v30 = vrot.slane %v6146_v26, 7  ;;  %v1063_v23 = vrot.slane %v6149_v27, 7  ;;  %v364_v7 = vld [vmem:[%s5873_s25 + $0xe0] sm:$0xff] }
  0xb2   : > { %v1450_v63 = vsub.f32 %v6109_v60, %v1149_v43  ;;  %14460 = vst [vmem:[#allocation52_spill] sm:$0xff] %v6216_v15  ;;  %14461 = vst [vmem:[#allocation53_spill] sm:$0xff] %v6224_v31  ;;  %v6234_v60 = vld [vmem:[%s5873_s25 + $0x348] sm:$0xff]  ;;  %v1151_v43 = vsel %vm1100_vm0, %v896_v57, %v1022_v44  ;;  %v939_v3 = vrot.slane %v6219_v16, 7  ;;  %v898_v49 = vrot.slane %v6231_v38, 7 }
  0xb3   : > { %14456 = vst [vmem:[#allocation48_spill] sm:$0xff] %v6171_v39  ;;  %v6213_v8 = vadd.f32 1.0, %v1447_v40  ;;  %v1192_v32 = vsel %vm1100_vm0, %v937_v30, %v1063_v23  ;;  %v1451_v40 = vsub.f32 %v6121_v2, %v1276_v48  ;;  %v367_v2 = vld [vmem:[%s5873_s25 + $0xf8] sm:$0xff]  ;;  %v1024_v59 = vrot.slane %v6234_v60, 7 }
  0xb4   : > { %v6255_v48 = vadd.f32 1.0, %v1450_v63  ;;  %v6260_v11 = vsub.f32 %v6149_v27, %v1192_v32 }
  0xb5   : > { %1655 = vrot.lane.b32.xlu1 %v361_v4, %s5658_s29  ;;  %1653 = vrot.lane.b32.xlu0 %v360_v5, %s5658_s29  ;;  %v1064_v4 = vrot.slane %v521_v12, 7  ;;  %v6205_v5 = vld [vmem:[%s5873_s25 + $0x330] sm:$0xff]  ;;  %14459 = vst [vmem:[#allocation51_spill] sm:$0xff] %v6213_v8  ;;  %v6284_v32 = vadd.f32 1.0, %v1451_v40 }
  0xb6   : > { %14462 = vst [vmem:[#allocation54_spill] sm:$0xff] %v6255_v48  ;;  %14464 = vst [vmem:[#allocation56_spill] sm:$0xff] %v6260_v11  ;;  %v370_v11 = vld [vmem:[%s5873_s25 + $0x110] sm:$0xff]  ;;  %v372_v48 = vld [vmem:[%s5873_s25 + $0x120] sm:$0xff] }
  0xb7   : > { %v1193_v28 = vsel %vm1100_vm0, %v938_v1, %v1064_v4  ;;  %14467 = vst [vmem:[#allocation59_spill] sm:$0xff] %v6284_v32 }
  0xb9   : > { %1659 = vrot.lane.b32.xlu1 %v363_v18, %s5658_s29  ;;  %1657 = vrot.lane.b32.xlu0 %v362_v33, %s5658_s29  ;;  %v1449_v18 = vsub.f32 %v6095_v54, %v1275_v45  ;;  %v1318_v33 = vsel %vm1100_vm0, %v1063_v23, %v937_v30  ;;  %v897_v54 = vrot.slane %v6205_v5, 7  ;;  %v1065_v30 = vrot.slane %v523_v17, 7  ;;  %v366_v23 = vld [vmem:[%s5873_s25 + $0xf0] sm:$0xff] }
  0xba   : > { %v1319_v45 = vsel %vm1100_vm0, %v1064_v4, %v938_v1  ;;  %v6263_v31 = vsub.f32 %v6146_v26, %v1318_v33  ;;  %v525_v1 = vld [vmem:[%s5873_s25 + $0x5e8] sm:$0xff]  ;;  %v1454_v4 = vsub.f32 %v6178_v41, %v1151_v43  ;;  %v6280_v26 = vld [vmem:[%s5873_s25 + $0x358] sm:$0xff]  ;;  %v6286_v33 = vsub.f32 %v521_v12, %v1193_v28 }
  0xbb   : > { %v1152_v63 = vsel %vm1100_vm0, %v897_v54, %v1023_v55  ;;  %v1278_v27 = vsel %vm1100_vm0, %v1023_v55, %v897_v54  ;;  %v6293_v54 = vld [vmem:[%s5873_s25 + $0x5f0] sm:$0xff]  ;;  %v527_v55 = vld [vmem:[%s5873_s25 + $0x5f8] sm:$0xff]  ;;  %v369_v43 = vld [vmem:[%s5873_s25 + $0x108] sm:$0xff]  ;;  %v1153_v12 = vsel %vm1100_vm0, %v898_v49, %v1024_v59  ;;  %v1320_v32 = vsel %vm1100_vm0, %v1065_v30, %v939_v3 }
  0xbc   : > { %14465 = vst [vmem:[#allocation57_spill] sm:$0xff] %v6263_v31  ;;  %14468 = vst [vmem:[#allocation60_spill] sm:$0xff] %v6286_v33  ;;  %v368_v31 = vld [vmem:[%s5873_s25 + $0x100] sm:$0xff]  ;;  %v1456_v28 = vsub.f32 %v6208_v6, %v1152_v63  ;;  %v6313_v33 = vadd.f32 1.0, %v1454_v4  ;;  %v941_v6 = vrot.slane %v6293_v54, 7  ;;  %v1067_v63 = vrot.slane %v527_v55, 7 }
  0xbd   : > { %1663 = vrot.lane.b32.xlu1 %v365_v29, %s5658_s29  ;;  %1661 = vrot.lane.b32.xlu0 %v364_v7, %s5658_s29  ;;  %v1277_v29 = vsel %vm1100_vm0, %v1022_v44, %v896_v57  ;;  %v6257_v7 = vadd.f32 1.0, %v1449_v18  ;;  %v6266_v57 = vld [vmem:[%s5873_s25 + $0x5e0] sm:$0xff]  ;;  %v6269_v44 = vadd.f32 1.0, %v1452_v61  ;;  %v6277_v18 = vld [vmem:[%s5873_s25 + $0x350] sm:$0xff]  ;;  %v6290_v61 = vsub.f32 %v6181_v42, %v1319_v45 }
  0xbe   : > { %v1453_v41 = vsub.f32 %v6167_v37, %v1277_v29  ;;  %v940_v40 = vrot.slane %v6266_v57, 7  ;;  %v1455_v37 = vsub.f32 %v6205_v5, %v1278_v27  ;;  %v899_v42 = vrot.slane %v6277_v18, 7  ;;  %v6308_v45 = vld [vmem:[%s5873_s25 + $0x360] sm:$0xff]  ;;  %14470 = vst [vmem:[#allocation62_spill] sm:$0xff] %v6313_v33 }
  0xbf   : > { %14463 = vst [vmem:[#allocation55_spill] sm:$0xff] %v6257_v7  ;;  %14466 = vst [vmem:[#allocation58_spill] sm:$0xff] %v6269_v44  ;;  %v1025_v29 = vrot.slane %v6280_v26, 7  ;;  %v1458_v44 = vsub.f32 %v6234_v60, %v1153_v12  ;;  %v1279_v4 = vsel %vm1100_vm0, %v1024_v59, %v898_v49  ;;  %v6328_v33 = vld [vmem:[%s5873_s25 + $0x600] sm:$0xff]  ;;  %v6342_v49 = vsub.f32 %v6219_v16, %v1320_v32  ;;  %v6349_v12 = vld [vmem:[%s5873_s25 + $0x370] sm:$0xff] }
  0xc0   : > { %14469 = vst [vmem:[#allocation61_spill] sm:$0xff] %v6290_v61  ;;  %v6311_v61 = vld [vmem:[%s5873_s25 + $0x368] sm:$0xff]  ;;  %v6320_v5 = vadd.f32 1.0, %v1453_v41  ;;  %v900_v41 = vrot.slane %v6308_v45, 7  ;;  %v6344_v59 = vadd.f32 1.0, %v1455_v37  ;;  %v942_v32 = vrot.slane %v6328_v33, 7 }
  0xc1   : > { %1667 = vrot.lane.b32.xlu1 %v367_v2, %s5658_s29  ;;  %1665 = vrot.lane.b32.xlu0 %v366_v23, %s5658_s29  ;;  %v1194_v2 = vsel %vm1100_vm0, %v939_v3, %v1065_v30  ;;  %v1066_v23 = vrot.slane %v525_v1, 7  ;;  %v529_v3 = vld [vmem:[%s5873_s25 + $0x608] sm:$0xff]  ;;  %v371_v30 = vld [vmem:[%s5873_s25 + $0x118] sm:$0xff]  ;;  %v1026_v60 = vrot.slane %v6311_v61, 7  ;;  %14474 = vst [vmem:[#allocation66_spill] sm:$0xff] %v6342_v49  ;;  %v1280_v16 = vsel %vm1100_vm0, %v1025_v29, %v899_v42 }
  0xc2   : > { %14471 = vst [vmem:[#allocation63_spill] sm:$0xff] %v6320_v5  ;;  %v6322_v27 = vsub.f32 %v523_v17, %v1194_v2  ;;  %14475 = vst [vmem:[#allocation67_spill] sm:$0xff] %v6344_v59  ;;  %v1154_v2 = vsel %vm1100_vm0, %v899_v42, %v1025_v29  ;;  %v6360_v37 = vld [vmem:[%s5873_s25 + $0x610] sm:$0xff]  ;;  %v6363_v59 = vld [vmem:[%s5873_s25 + $0x618] sm:$0xff] }
  0xc3   : > { %v1321_v17 = vsel %vm1100_vm0, %v1066_v23, %v940_v40  ;;  %v6376_v29 = vld [vmem:[%s5873_s25 + $0x380] sm:$0xff]  ;;  %v6379_v5 = vld [vmem:[%s5873_s25 + $0x388] sm:$0xff] }
  0xc4   : > { %14472 = vst [vmem:[#allocation64_spill] sm:$0xff] %v6322_v27  ;;  %v1457_v27 = vsub.f32 %v6231_v38, %v1279_v4  ;;  %v6373_v42 = vsub.f32 %v6266_v57, %v1321_v17  ;;  %v373_v7 = vld [vmem:[%s5873_s25 + $0x128] sm:$0xff]  ;;  %v1322_v57 = vsel %vm1100_vm0, %v1067_v63, %v941_v6  ;;  %v1459_v4 = vsub.f32 %v6277_v18, %v1280_v16 }
  0xc5   : > { %1671 = vrot.lane.b32.xlu1 %v369_v43, %s5658_s29  ;;  %1669 = vrot.lane.b32.xlu0 %v368_v31, %s5658_s29  ;;  %v1195_v31 = vsel %vm1100_vm0, %v940_v40, %v1066_v23  ;;  %v6339_v43 = vadd.f32 1.0, %v1456_v28  ;;  %v6352_v40 = vld [vmem:[%s5873_s25 + $0x378] sm:$0xff]  ;;  %v1196_v23 = vsel %vm1100_vm0, %v941_v6, %v1067_v63  ;;  %v1068_v28 = vrot.slane %v529_v3, 7 }
  0xc6   : > { %v6367_v49 = vsub.f32 %v525_v1, %v1195_v31  ;;  %14478 = vst [vmem:[#allocation70_spill] sm:$0xff] %v6373_v42  ;;  %v901_v1 = vrot.slane %v6349_v12, 7  ;;  %v1027_v38 = vrot.slane %v6352_v40, 7  ;;  %v943_v31 = vrot.slane %v6360_v37, 7  ;;  %v533_v42 = vld [vmem:[%s5873_s25 + $0x628] sm:$0xff] }
  0xc7   : > { %14473 = vst [vmem:[#allocation65_spill] sm:$0xff] %v6339_v43  ;;  %v6369_v43 = vadd.f32 1.0, %v1458_v44  ;;  %v6388_v44 = vsub.f32 %v527_v55, %v1196_v23  ;;  %v1069_v17 = vrot.slane %v6363_v59, 7  ;;  %v902_v55 = vrot.slane %v6376_v29, 7 }
  0xc8   : > { %14476 = vst [vmem:[#allocation68_spill] sm:$0xff] %v6367_v49  ;;  %v1028_v23 = vrot.slane %v6379_v5, 7  ;;  %v6405_v18 = vadd.f32 1.0, %v1457_v27  ;;  %v1281_v63 = vsel %vm1100_vm0, %v1026_v60, %v900_v41  ;;  %v1323_v16 = vsel %vm1100_vm0, %v1068_v28, %v942_v32 }
  0xc9   : > { %1675 = vrot.lane.b32.xlu1 %v371_v30, %s5658_s29  ;;  %1673 = vrot.lane.b32.xlu0 %v370_v11, %s5658_s29  ;;  %14477 = vst [vmem:[#allocation69_spill] sm:$0xff] %v6369_v43  ;;  %v1460_v30 = vsub.f32 %v6280_v26, %v1154_v2  ;;  %v1155_v11 = vsel %vm1100_vm0, %v900_v41, %v1026_v60  ;;  %14479 = vst [vmem:[#allocation71_spill] sm:$0xff] %v6388_v44  ;;  %v6398_v2 = vld [vmem:[%s5873_s25 + $0x620] sm:$0xff]  ;;  %v375_v44 = vld [vmem:[%s5873_s25 + $0x138] sm:$0xff]  ;;  %v6423_v27 = vadd.f32 1.0, %v1459_v4 }
  0xca   : > { %v1197_v26 = vsel %vm1100_vm0, %v942_v32, %v1068_v28  ;;  %14480 = vst [vmem:[#allocation72_spill] sm:$0xff] %v6405_v18  ;;  %v1462_v6 = vsub.f32 %v6311_v61, %v1155_v11  ;;  %v374_v43 = vld [vmem:[%s5873_s25 + $0x130] sm:$0xff]  ;;  %v1282_v61 = vsel %vm1100_vm0, %v1027_v38, %v901_v1  ;;  %v944_v60 = vrot.slane %v6398_v2, 7 }
  0xcb   : > { %v6414_v49 = vadd.f32 1.0, %v1460_v30  ;;  %14483 = vst [vmem:[#allocation75_spill] sm:$0xff] %v6423_v27  ;;  %v6425_v41 = vsub.f32 %v529_v3, %v1197_v26  ;;  %v1070_v32 = vrot.slane %v533_v42, 7  ;;  %v6429_v28 = vld [vmem:[%s5873_s25 + $0x390] sm:$0xff]  ;;  %v1461_v11 = vsub.f32 %v6308_v45, %v1281_v63  ;;  %v6457_v63 = vld [vmem:[%s5873_s25 + $0x3a0] sm:$0xff] }
  0xcc   : > { %v6435_v30 = vld [vmem:[%s5873_s25 + $0x630] sm:$0xff]  ;;  %v1198_v3 = vsel %vm1100_vm0, %v943_v31, %v1069_v17  ;;  %v6450_v4 = vadd.f32 1.0, %v1462_v6  ;;  %v1463_v45 = vsub.f32 %v6349_v12, %v1282_v61  ;;  %v6481_v61 = vld [vmem:[%s5873_s25 + $0x640] sm:$0xff]  ;;  %v904_v27 = vrot.slane %v6457_v63, 7 }
  0xcd   : > { %1679 = vrot.lane.b32.xlu1 %v373_v7, %s5658_s29  ;;  %1677 = vrot.lane.b32.xlu0 %v372_v48, %s5658_s29  ;;  %14481 = vst [vmem:[#allocation73_spill] sm:$0xff] %v6414_v49  ;;  %v6417_v7 = vsub.f32 %v6293_v54, %v1322_v57  ;;  %v1156_v48 = vsel %vm1100_vm0, %v901_v1, %v1027_v38  ;;  %14484 = vst [vmem:[#allocation76_spill] sm:$0xff] %v6425_v41  ;;  %v6432_v54 = vld [vmem:[%s5873_s25 + $0x398] sm:$0xff]  ;;  %v376_v41 = vld [vmem:[%s5873_s25 + $0x140] sm:$0xff] }
  0xce   : > { %v6439_v1 = vsub.f32 %v6328_v33, %v1323_v16  ;;  %v1157_v38 = vsel %vm1100_vm0, %v902_v55, %v1028_v23  ;;  %v6446_v57 = vld [vmem:[%s5873_s25 + $0x638] sm:$0xff]  ;;  %14486 = vst [vmem:[#allocation78_spill] sm:$0xff] %v6450_v4  ;;  %v1464_v26 = vsub.f32 %v6352_v40, %v1156_v48  ;;  %v1324_v33 = vsel %vm1100_vm0, %v1069_v17, %v943_v31  ;;  %v6460_v16 = vld [vmem:[%s5873_s25 + $0x3a8] sm:$0xff] }
  0xcf   : > { %14482 = vst [vmem:[#allocation74_spill] sm:$0xff] %v6417_v7  ;;  %v945_v40 = vrot.slane %v6435_v30, 7  ;;  %v1029_v6 = vrot.slane %v6432_v54, 7  ;;  %v1199_v31 = vsel %vm1100_vm0, %v944_v60, %v1070_v32  ;;  %v1466_v12 = vsub.f32 %v6379_v5, %v1157_v38  ;;  %v6484_v4 = vld [vmem:[%s5873_s25 + $0x648] sm:$0xff]  ;;  %v6502_v38 = vld [vmem:[%s5873_s25 + $0x3b8] sm:$0xff]  ;;  %v380_v7 = vld [vmem:[%s5873_s25 + $0x160] sm:$0xff] }
  0xd0   : > { %14485 = vst [vmem:[#allocation77_spill] sm:$0xff] %v6439_v1  ;;  %v377_v1 = vld [vmem:[%s5873_s25 + $0x148] sm:$0xff]  ;;  %v1325_v17 = vsel %vm1100_vm0, %v1070_v32, %v944_v60  ;;  %v1071_v48 = vrot.slane %v6446_v57, 7  ;;  %v1030_v5 = vrot.slane %v6460_v16, 7  ;;  %v6490_v60 = vadd.f32 1.0, %v1464_v26 }
  0xd1   : > { %1683 = vrot.lane.b32.xlu1 %v375_v44, %s5658_s29  ;;  %1681 = vrot.lane.b32.xlu0 %v374_v43, %s5658_s29  ;;  %v1283_v43 = vsel %vm1100_vm0, %v1028_v23, %v902_v55  ;;  %v903_v44 = vrot.slane %v6429_v28, 7  ;;  %v6475_v55 = vadd.f32 1.0, %v1461_v11  ;;  %v6478_v23 = vsub.f32 %v6363_v59, %v1198_v3  ;;  %v6499_v3 = vld [vmem:[%s5873_s25 + $0x3b0] sm:$0xff] }
  0xd2   : > { %14489 = vst [vmem:[#allocation81_spill] sm:$0xff] %v6490_v60  ;;  %v6493_v32 = vsub.f32 %v6360_v37, %v1324_v33  ;;  %v6495_v59 = vadd.f32 1.0, %v1463_v45  ;;  %v1465_v11 = vsub.f32 %v6376_v29, %v1283_v43  ;;  %v6516_v33 = vld [vmem:[%s5873_s25 + $0x650] sm:$0xff]  ;;  %v6518_v29 = vadd.f32 1.0, %v1466_v12  ;;  %v539_v43 = vld [vmem:[%s5873_s25 + $0x658] sm:$0xff]  ;;  %v381_v60 = vld [vmem:[%s5873_s25 + $0x168] sm:$0xff] }
  0xd3   : > { %14487 = vst [vmem:[#allocation79_spill] sm:$0xff] %v6475_v55  ;;  %14488 = vst [vmem:[#allocation80_spill] sm:$0xff] %v6478_v23  ;;  %v379_v23 = vld [vmem:[%s5873_s25 + $0x158] sm:$0xff]  ;;  %v6506_v55 = vsub.f32 %v533_v42, %v1199_v31  ;;  %v1158_v37 = vsel %vm1100_vm0, %v903_v44, %v1029_v6  ;;  %v1284_v26 = vsel %vm1100_vm0, %v1029_v6, %v903_v44  ;;  %v946_v42 = vrot.slane %v6481_v61, 7  ;;  %v6526_v31 = vld [vmem:[%s5873_s25 + $0x3c0] sm:$0xff] }
  0xd4   : > { %14490 = vst [vmem:[#allocation82_spill] sm:$0xff] %v6493_v32  ;;  %14491 = vst [vmem:[#allocation83_spill] sm:$0xff] %v6495_v59  ;;  %v1200_v45 = vsel %vm1100_vm0, %v945_v40, %v1071_v48  ;;  %v1159_v44 = vsel %vm1100_vm0, %v904_v27, %v1030_v5  ;;  %v1285_v6 = vsel %vm1100_vm0, %v1030_v5, %v904_v27  ;;  %v905_v12 = vrot.slane %v6499_v3, 7  ;;  %v6546_v27 = vld [vmem:[%s5873_s25 + $0x660] sm:$0xff]  ;;  %v6549_v5 = vld [vmem:[%s5873_s25 + $0x668] sm:$0xff] }
  0xd5   : > { %1687 = vrot.lane.b32.xlu1 %v377_v1, %s5658_s29  ;;  %1685 = vrot.lane.b32.xlu0 %v376_v41, %s5658_s29  ;;  %v378_v1 = vld [vmem:[%s5873_s25 + $0x150] sm:$0xff]  ;;  %14492 = vst [vmem:[#allocation84_spill] sm:$0xff] %v6506_v55  ;;  %v6509_v41 = vsub.f32 %v6398_v2, %v1325_v17  ;;  %14494 = vst [vmem:[#allocation86_spill] sm:$0xff] %v6518_v29  ;;  %v1072_v2 = vrot.slane %v6484_v4, 7  ;;  %v6529_v17 = vld [vmem:[%s5873_s25 + $0x3c8] sm:$0xff]  ;;  %v6539_v29 = vadd.f32 1.0, %v1465_v11 }
  0xd6   : > { %v1468_v55 = vsub.f32 %v6432_v54, %v1158_v37  ;;  %v1326_v59 = vsel %vm1100_vm0, %v1071_v48, %v945_v40  ;;  %v1467_v32 = vsub.f32 %v6429_v28, %v1284_v26  ;;  %v1073_v11 = vrot.slane %v539_v43, 7  ;;  %v6564_v26 = vld [vmem:[%s5873_s25 + $0x3d0] sm:$0xff] }
  0xd7   : > { %14493 = vst [vmem:[#allocation85_spill] sm:$0xff] %v6509_v41  ;;  %v1031_v41 = vrot.slane %v6502_v38, 7  ;;  %14495 = vst [vmem:[#allocation87_spill] sm:$0xff] %v6539_v29  ;;  %v1032_v54 = vrot.slane %v6529_v17, 7  ;;  %v6557_v37 = vsub.f32 %v6446_v57, %v1200_v45  ;;  %v1201_v28 = vsel %vm1100_vm0, %v946_v42, %v1072_v2  ;;  %v6567_v29 = vld [vmem:[%s5873_s25 + $0x3d8] sm:$0xff] }
  0xd8   : > { %v1470_v40 = vsub.f32 %v6460_v16, %v1159_v44  ;;  %v1469_v48 = vsub.f32 %v6457_v63, %v1285_v6  ;;  %v948_v45 = vrot.slane %v6546_v27, 7  ;;  %v383_v63 = vld [vmem:[%s5873_s25 + $0x178] sm:$0xff]  ;;  %v6578_v16 = vadd.f32 1.0, %v1468_v55 }
  0xd9   : > { %1691 = vrot.lane.b32.xlu1 %v379_v23, %s5658_s29  ;;  %1689 = vrot.lane.b32.xlu0 %v378_v1, %s5658_s29  ;;  %v947_v23 = vrot.slane %v6516_v33, 7  ;;  %v906_v1 = vrot.slane %v6526_v31, 7  ;;  %14496 = vst [vmem:[#allocation88_spill] sm:$0xff] %v6557_v37  ;;  %v1160_v49 = vsel %vm1100_vm0, %v905_v12, %v1031_v41  ;;  %v1286_v57 = vsel %vm1100_vm0, %v1031_v41, %v905_v12  ;;  %v382_v12 = vld [vmem:[%s5873_s25 + $0x170] sm:$0xff]  ;;  %v6596_v55 = vld [vmem:[%s5873_s25 + $0x678] sm:$0xff] }
  0xda   : > { %v1074_v37 = vrot.slane %v6549_v5, 7  ;;  %14497 = vst [vmem:[#allocation89_spill] sm:$0xff] %v6578_v16  ;;  %v6581_v44 = vsub.f32 %v6435_v30, %v1326_v59  ;;  %v6583_v6 = vadd.f32 1.0, %v1467_v32  ;;  %v1327_v41 = vsel %vm1100_vm0, %v1072_v2, %v946_v42 }
  0xdb   : > { %v1202_v18 = vsel %vm1100_vm0, %v947_v23, %v1073_v11  ;;  %v907_v16 = vrot.slane %v6564_v26, 7  ;;  %v1033_v30 = vrot.slane %v6567_v29, 7  ;;  %v6601_v32 = vsub.f32 %v6484_v4, %v1201_v28 }
  0xdc   : > { %14498 = vst [vmem:[#allocation90_spill] sm:$0xff] %v6581_v44  ;;  %14499 = vst [vmem:[#allocation91_spill] sm:$0xff] %v6583_v6  ;;  %v6603_v59 = vadd.f32 1.0, %v1470_v40  ;;  %v1472_v42 = vsub.f32 %v6502_v38, %v1160_v49  ;;  %v1471_v2 = vsub.f32 %v6499_v3, %v1286_v57  ;;  %v6608_v6 = vld [vmem:[%s5873_s25 + $0x3e0] sm:$0xff]  ;;  %v6611_v44 = vld [vmem:[%s5873_s25 + $0x3e8] sm:$0xff]  ;;  %v6614_v15 = vsub.f32 %v6481_v61, %v1327_v41 }
  0xdd   : > { %1695 = vrot.lane.b32.xlu1 %v381_v60, %s5658_s29  ;;  %1693 = vrot.lane.b32.xlu0 %v380_v7, %s5658_s29  ;;  %v1161_v7 = vsel %vm1100_vm0, %v906_v1, %v1032_v54  ;;  %v6593_v60 = vld [vmem:[%s5873_s25 + $0x670] sm:$0xff]  ;;  %14500 = vst [vmem:[#allocation92_spill] sm:$0xff] %v6601_v32  ;;  %v6616_v8 = vadd.f32 1.0, %v1469_v48  ;;  %v1328_v4 = vsel %vm1100_vm0, %v1073_v11, %v947_v23  ;;  %v1075_v38 = vrot.slane %v6596_v55, 7  ;;  %v544_v40 = vld [vmem:[%s5873_s25 + $0x680] sm:$0xff] }
  0xde   : > { %14501 = vst [vmem:[#allocation93_spill] sm:$0xff] %v6603_v59  ;;  %14502 = vst [vmem:[#allocation94_spill] sm:$0xff] %v6614_v15  ;;  %v1203_v28 = vsel %vm1100_vm0, %v948_v45, %v1074_v37  ;;  %v6624_v49 = vsub.f32 %v539_v43, %v1202_v18  ;;  %v1474_v3 = vsub.f32 %v6529_v17, %v1161_v7  ;;  %v949_v61 = vrot.slane %v6593_v60, 7  ;;  %v545_v48 = vld [vmem:[%s5873_s25 + $0x688] sm:$0xff]  ;;  %v384_v11 = vld [vmem:[%s5873_s25 + $0x180] sm:$0xff] }
  0xdf   : > { %14503 = vst [vmem:[#allocation95_spill] sm:$0xff] %v6616_v8  ;;  %v385_v23 = vld [vmem:[%s5873_s25 + $0x188] sm:$0xff]  ;;  %v1287_v57 = vsel %vm1100_vm0, %v1032_v54, %v906_v1  ;;  %v1162_v18 = vsel %vm1100_vm0, %v907_v16, %v1033_v30  ;;  %v908_v43 = vrot.slane %v6608_v6, 7  ;;  %v1034_v17 = vrot.slane %v6611_v44, 7  ;;  %v6650_v1 = vld [vmem:[%s5873_s25 + $0x3f0] sm:$0xff]  ;;  %v6653_v54 = vld [vmem:[%s5873_s25 + $0x3f8] sm:$0xff] }
  0xe0   : > { %14504 = vst [vmem:[#allocation96_spill] sm:$0xff] %v6624_v49  ;;  %v6642_v41 = vsub.f32 %v6516_v33, %v1328_v4  ;;  %v6647_v7 = vsub.f32 %v6549_v5, %v1203_v28  ;;  %v1288_v33 = vsel %vm1100_vm0, %v1033_v30, %v907_v16  ;;  %v950_v4 = vrot.slane %v544_v40, 7  ;;  %v6674_v16 = vld [vmem:[%s5873_s25 + $0x400] sm:$0xff]  ;;  %v6677_v30 = vld [vmem:[%s5873_s25 + $0x408] sm:$0xff] }
  0xe1   : > { %1699 = vrot.lane.b32.xlu1 %v383_v63, %s5658_s29  ;;  %1697 = vrot.lane.b32.xlu0 %v382_v12, %s5658_s29  ;;  %v6639_v63 = vadd.f32 1.0, %v1472_v42  ;;  %v6644_v12 = vadd.f32 1.0, %v1471_v2  ;;  %v1329_v42 = vsel %vm1100_vm0, %v1074_v37, %v948_v45  ;;  %v1076_v2 = vrot.slane %v545_v48, 7  ;;  %v549_v15 = vld [vmem:[%s5873_s25 + $0x6a8] sm:$0xff]  ;;  %v388_v59 = vld [vmem:[%s5873_s25 + $0x1a0] sm:$0xff] }
  0xe2   : > { %14506 = vst [vmem:[#allocation98_spill] sm:$0xff] %v6642_v41  ;;  %14508 = vst [vmem:[#allocation100_spill] sm:$0xff] %v6647_v7  ;;  %v6663_v41 = vld [vmem:[%s5873_s25 + $0x698] sm:$0xff]  ;;  %v6667_v5 = vadd.f32 1.0, %v1474_v3  ;;  %v1473_v28 = vsub.f32 %v6526_v31, %v1287_v57  ;;  %v1204_v37 = vsel %vm1100_vm0, %v949_v61, %v1075_v38  ;;  %v1476_v45 = vsub.f32 %v6567_v29, %v1162_v18 }
  0xe3   : > { %14505 = vst [vmem:[#allocation97_spill] sm:$0xff] %v6639_v63  ;;  %14507 = vst [vmem:[#allocation99_spill] sm:$0xff] %v6644_v12  ;;  %v6660_v12 = vld [vmem:[%s5873_s25 + $0x690] sm:$0xff]  ;;  %v387_v7 = vld [vmem:[%s5873_s25 + $0x198] sm:$0xff]  ;;  %v1163_v3 = vsel %vm1100_vm0, %v908_v43, %v1034_v17  ;;  %v1035_v31 = vrot.slane %v6653_v54, 7  ;;  %v1475_v57 = vsub.f32 %v6564_v26, %v1288_v33  ;;  %v1289_v29 = vsel %vm1100_vm0, %v1034_v17, %v908_v43 }
  0xe4   : > { %14509 = vst [vmem:[#allocation101_spill] sm:$0xff] %v6667_v5  ;;  %v386_v63 = vld [vmem:[%s5873_s25 + $0x190] sm:$0xff]  ;;  %v951_v18 = vrot.slane %v6660_v12, 7  ;;  %v1077_v5 = vrot.slane %v6663_v41, 7  ;;  %v1331_v49 = vsel %vm1100_vm0, %v1076_v2, %v950_v4  ;;  %v910_v8 = vrot.slane %v6674_v16, 7 }
  0xe5   : > { %1703 = vrot.lane.b32.xlu1 %v385_v23, %s5658_s29  ;;  %1701 = vrot.lane.b32.xlu0 %v384_v11, %s5658_s29  ;;  %v1330_v23 = vsel %vm1100_vm0, %v1075_v38, %v949_v61  ;;  %v909_v11 = vrot.slane %v6650_v1, 7  ;;  %v389_v61 = vld [vmem:[%s5873_s25 + $0x1a8] sm:$0xff]  ;;  %v1205_v38 = vsel %vm1100_vm0, %v950_v4, %v1076_v2  ;;  %v1036_v26 = vrot.slane %v6677_v30, 7  ;;  %v548_v2 = vld [vmem:[%s5873_s25 + $0x6a0] sm:$0xff] }
  0xe6   : > { %v6702_v43 = vsub.f32 %v6546_v27, %v1329_v42  ;;  %v6704_v17 = vadd.f32 1.0, %v1473_v28  ;;  %v6707_v33 = vsub.f32 %v6596_v55, %v1204_v37  ;;  %v1478_v4 = vsub.f32 %v6611_v44, %v1163_v3  ;;  %v6722_v42 = vld [vmem:[%s5873_s25 + $0x410] sm:$0xff]  ;;  %v6725_v55 = vld [vmem:[%s5873_s25 + $0x418] sm:$0xff] }
  0xe7   : > { %v6713_v32 = vadd.f32 1.0, %v1476_v45  ;;  %v1477_v27 = vsub.f32 %v6608_v6, %v1289_v29  ;;  %v6727_v44 = vadd.f32 1.0, %v1475_v57  ;;  %v6729_v28 = vsub.f32 %v545_v48, %v1205_v38  ;;  %v6740_v29 = vld [vmem:[%s5873_s25 + $0x420] sm:$0xff]  ;;  %v6743_v57 = vld [vmem:[%s5873_s25 + $0x428] sm:$0xff]  ;;  %v6751_v48 = vld [vmem:[%s5873_s25 + $0x6b0] sm:$0xff] }
  0xe8   : > { %14510 = vst [vmem:[#allocation102_spill] sm:$0xff] %v6702_v43  ;;  %14511 = vst [vmem:[#allocation103_spill] sm:$0xff] %v6704_v17  ;;  %v6731_v37 = vsub.f32 %v544_v40, %v1331_v49  ;;  %v1206_v6 = vsel %vm1100_vm0, %v951_v18, %v1077_v5  ;;  %v952_v45 = vrot.slane %v548_v2, 7  ;;  %v1165_v3 = vsel %vm1100_vm0, %v910_v8, %v1036_v26 }
  0xe9   : > { %1707 = vrot.lane.b32.xlu1 %v387_v7, %s5658_s29  ;;  %1705 = vrot.lane.b32.xlu0 %v386_v63, %s5658_s29  ;;  %14512 = vst [vmem:[#allocation104_spill] sm:$0xff] %v6707_v33  ;;  %14513 = vst [vmem:[#allocation105_spill] sm:$0xff] %v6713_v32  ;;  %v6716_v7 = vsub.f32 %v6593_v60, %v1330_v23  ;;  %v1164_v63 = vsel %vm1100_vm0, %v909_v11, %v1035_v31  ;;  %v1078_v23 = vrot.slane %v549_v15, 7  ;;  %v397_v32 = vld [vmem:[%s5873_s25 + $0x1e8] sm:$0xff]  ;;  %v396_v33 = vld [vmem:[%s5873_s25 + $0x1e0] sm:$0xff] }
  0xea   : > { %14515 = vst [vmem:[#allocation107_spill] sm:$0xff] %v6727_v44  ;;  %14516 = vst [vmem:[#allocation108_spill] sm:$0xff] %v6729_v28  ;;  %v1290_v60 = vsel %vm1100_vm0, %v1035_v31, %v909_v11  ;;  %v6747_v49 = vadd.f32 1.0, %v1478_v4  ;;  %v1480_v40 = vsub.f32 %v6653_v54, %v1164_v63  ;;  %v551_v11 = vld [vmem:[%s5873_s25 + $0x6b8] sm:$0xff]  ;;  %v911_v31 = vrot.slane %v6722_v42, 7  ;;  %v390_v28 = vld [vmem:[%s5873_s25 + $0x1b0] sm:$0xff] }
  0xeb   : > { %14514 = vst [vmem:[#allocation106_spill] sm:$0xff] %v6716_v7  ;;  %14517 = vst [vmem:[#allocation109_spill] sm:$0xff] %v6731_v37  ;;  %v1037_v38 = vrot.slane %v6725_v55, 7  ;;  %v391_v37 = vld [vmem:[%s5873_s25 + $0x1b8] sm:$0xff]  ;;  %v6758_v44 = vadd.f32 1.0, %v1477_v27  ;;  %v1291_v4 = vsel %vm1100_vm0, %v1036_v26, %v910_v8  ;;  %v6766_v54 = vsub.f32 %v6663_v41, %v1206_v6  ;;  %v553_v27 = vld [vmem:[%s5873_s25 + $0x6c8] sm:$0xff] }
  0xec   : > { %14518 = vst [vmem:[#allocation110_spill] sm:$0xff] %v6747_v49  ;;  %v1482_v63 = vsub.f32 %v6677_v30, %v1165_v3  ;;  %v6770_v49 = vld [vmem:[%s5873_s25 + $0x6c0] sm:$0xff]  ;;  %v1333_v8 = vsel %vm1100_vm0, %v1078_v23, %v952_v45  ;;  %v953_v41 = vrot.slane %v6751_v48, 7  ;;  %v6782_v30 = vadd.f32 1.0, %v1480_v40  ;;  %v393_v3 = vld [vmem:[%s5873_s25 + $0x1c8] sm:$0xff]  ;;  %v394_v7 = vld [vmem:[%s5873_s25 + $0x1d0] sm:$0xff] }
  0xed   : > { %1711 = vrot.lane.b32.xlu1 %v389_v61, %s5658_s29  ;;  %1709 = vrot.lane.b32.xlu0 %v388_v59, %s5658_s29  ;;  %14519 = vst [vmem:[#allocation111_spill] sm:$0xff] %v6758_v44  ;;  %v1332_v61 = vsel %vm1100_vm0, %v1077_v5, %v951_v18  ;;  %v1479_v59 = vsub.f32 %v6650_v1, %v1290_v60  ;;  %14520 = vst [vmem:[#allocation112_spill] sm:$0xff] %v6766_v54  ;;  %v912_v44 = vrot.slane %v6740_v29, 7  ;;  %v6812_v54 = vld [vmem:[%s5873_s25 + $0x6d0] sm:$0xff] }
  0xee   : > { %v1038_v5 = vrot.slane %v6743_v57, 7  ;;  %v1207_v1 = vsel %vm1100_vm0, %v952_v45, %v1078_v23  ;;  %v1079_v18 = vrot.slane %v551_v11, 7  ;;  %14521 = vst [vmem:[#allocation113_spill] sm:$0xff] %v6782_v30  ;;  %v6785_v26 = vsub.f32 %v6660_v12, %v1332_v61  ;;  %v6791_v45 = vld [vmem:[%s5873_s25 + $0x430] sm:$0xff]  ;;  %v6794_v23 = vld [vmem:[%s5873_s25 + $0x438] sm:$0xff] }
  0xef   : > { %v1481_v60 = vsub.f32 %v6674_v16, %v1291_v4  ;;  %v1166_v6 = vsel %vm1100_vm0, %v911_v31, %v1037_v38  ;;  %v1292_v12 = vsel %vm1100_vm0, %v1037_v38, %v911_v31  ;;  %v954_v40 = vrot.slane %v6770_v49, 7 }
  0xf0   : > { %14522 = vst [vmem:[#allocation114_spill] sm:$0xff] %v6785_v26  ;;  %v1080_v61 = vrot.slane %v553_v27, 7  ;;  %v6803_v16 = vsub.f32 %v549_v15, %v1207_v1  ;;  %v6805_v4 = vadd.f32 1.0, %v1482_v63  ;;  %v6807_v26 = vsub.f32 %v548_v2, %v1333_v8  ;;  %v6823_v63 = vld [vmem:[%s5873_s25 + $0x440] sm:$0xff]  ;;  %v6826_v1 = vld [vmem:[%s5873_s25 + $0x448] sm:$0xff] }
  0xf1   : > { %1715 = vrot.lane.b32.xlu1 %v391_v37, %s5658_s29  ;;  %1713 = vrot.lane.b32.xlu0 %v390_v28, %s5658_s29  ;;  %v392_v37 = vld [vmem:[%s5873_s25 + $0x1c0] sm:$0xff]  ;;  %v6798_v28 = vadd.f32 1.0, %v1479_v59  ;;  %v1167_v30 = vsel %vm1100_vm0, %v912_v44, %v1038_v5  ;;  %v6815_v59 = vld [vmem:[%s5873_s25 + $0x6d8] sm:$0xff]  ;;  %v1208_v31 = vsel %vm1100_vm0, %v953_v41, %v1079_v18  ;;  %v1484_v15 = vsub.f32 %v6725_v55, %v1166_v6 }
  0xf2   : > { %14524 = vst [vmem:[#allocation116_spill] sm:$0xff] %v6803_v16  ;;  %14525 = vst [vmem:[#allocation117_spill] sm:$0xff] %v6805_v4  ;;  %v913_v38 = vrot.slane %v6791_v45, 7  ;;  %v1039_v2 = vrot.slane %v6794_v23, 7  ;;  %v6830_v8 = vadd.f32 1.0, %v1481_v60  ;;  %v1483_v4 = vsub.f32 %v6722_v42, %v1292_v12  ;;  %v6838_v6 = vld [vmem:[%s5873_s25 + $0x6e0] sm:$0xff] }
  0xf3   : > { %14523 = vst [vmem:[#allocation115_spill] sm:$0xff] %v6798_v28  ;;  %14526 = vst [vmem:[#allocation118_spill] sm:$0xff] %v6807_v26  ;;  %v1334_v26 = vsel %vm1100_vm0, %v1079_v18, %v953_v41  ;;  %v1293_v55 = vsel %vm1100_vm0, %v1038_v5, %v912_v44  ;;  %v6841_v16 = vld [vmem:[%s5873_s25 + $0x6e8] sm:$0xff]  ;;  %v395_v28 = vld [vmem:[%s5873_s25 + $0x1d8] sm:$0xff]  ;;  %v1486_v60 = vsub.f32 %v6743_v57, %v1167_v30  ;;  %v1081_v41 = vrot.slane %v6815_v59, 7 }
  0xf4   : > { %14527 = vst [vmem:[#allocation119_spill] sm:$0xff] %v6830_v8  ;;  %v6850_v12 = vsub.f32 %v551_v11, %v1208_v31  ;;  %v1335_v44 = vsel %vm1100_vm0, %v1080_v61, %v954_v40  ;;  %v914_v5 = vrot.slane %v6823_v63, 7  ;;  %v1040_v8 = vrot.slane %v6826_v1, 7 }
  0xf5   : > { %1719 = vrot.lane.b32.xlu1 %v393_v3, %s5658_s29  ;;  %1717 = vrot.lane.b32.xlu0 %v392_v37, %s5658_s29  ;;  %v1209_v3 = vsel %vm1100_vm0, %v954_v40, %v1080_v61  ;;  %v955_v37 = vrot.slane %v6812_v54, 7  ;;  %v6858_v57 = vsub.f32 %v6751_v48, %v1334_v26  ;;  %v1168_v30 = vsel %vm1100_vm0, %v913_v38, %v1039_v2 }
  0xf6   : > { %14528 = vst [vmem:[#allocation120_spill] sm:$0xff] %v6850_v12  ;;  %v956_v11 = vrot.slane %v6838_v6, 7  ;;  %v1082_v31 = vrot.slane %v6841_v16, 7  ;;  %v6866_v40 = vadd.f32 1.0, %v1484_v15  ;;  %v6868_v61 = vadd.f32 1.0, %v1483_v4  ;;  %v6877_v12 = vld [vmem:[%s5873_s25 + $0x6f0] sm:$0xff] }
  0xf7   : > { %v1610_v42 = vpop.permute.xlu1 %1609  ;;  %v1606_v18 = vpop.permute.xlu0 %1605  ;;  %14529 = vst [vmem:[#allocation121_spill] sm:$0xff] %v6858_v57  ;;  %v6870_v48 = vsub.f32 %v553_v27, %v1209_v3  ;;  %v1485_v26 = vsub.f32 %v6740_v29, %v1293_v55  ;;  %v6874_v57 = vld [vmem:[%s5873_s25 + $0x450] sm:$0xff]  ;;  %v6880_v17 = vadd.f32 1.0, %v1486_v60  ;;  %v1294_v27 = vsel %vm1100_vm0, %v1039_v2, %v913_v38  ;;  %v6890_v4 = vld [vmem:[%s5873_s25 + $0x458] sm:$0xff] }
  0xf8   : > { %14530 = vst [vmem:[#allocation122_spill] sm:$0xff] %v6866_v40  ;;  %14531 = vst [vmem:[#allocation123_spill] sm:$0xff] %v6868_v61  ;;  %v6893_v29 = vld [vmem:[%s5873_s25 + $0x6f8] sm:$0xff]  ;;  %v4819_v15 = vld [vmem:[%s5873_s25 + $0x10] sm:$0xff]  ;;  %v1488_v60 = vsub.f32 %v6794_v23, %v1168_v30  ;;  %v1211_v2 = vsel %vm1100_vm0, %v956_v11, %v1082_v31  ;;  %v1487_v23 = vsub.f32 %v6791_v45, %v1294_v27 }
  0xf9   : > { %1723 = vrot.lane.b32.xlu1 %v395_v28, %s5658_s29  ;;  %1721 = vrot.lane.b32.xlu0 %v394_v7, %s5658_s29  ;;  %14532 = vst [vmem:[#allocation124_spill] sm:$0xff] %v6870_v48  ;;  %14533 = vst [vmem:[#allocation125_spill] sm:$0xff] %v6880_v17  ;;  %v6883_v28 = vsub.f32 %v6770_v49, %v1335_v44  ;;  %v1210_v7 = vsel %vm1100_vm0, %v955_v37, %v1081_v41  ;;  %v399_v30 = vld [vmem:[%s5873_s25 + $0x1f8] sm:$0xff]  ;;  %v398_v17 = vld [vmem:[%s5873_s25 + $0x1f0] sm:$0xff]  ;;  %v6918_v61 = vadd.f32 1.0, %v1485_v26 }
  0xfa   : > { %v2111_v55 = vsub.f32 %v4819_v15, %v1610_v42  ;;  %v1336_v49 = vsel %vm1100_vm0, %v1081_v41, %v955_v37  ;;  %v1169_v44 = vsel %vm1100_vm0, %v914_v5, %v1040_v8  ;;  %v915_v42 = vrot.slane %v6874_v57, 7 }
  0xfb   : > { %14534 = vst [vmem:[#allocation126_spill] sm:$0xff] %v6883_v28  ;;  %v1612_v3 = vpop.permute.xlu1 %1611  ;;  %v1608_v48 = vpop.permute.xlu0 %1607  ;;  %v6902_v28 = vld [vmem:[%s5873_s25] sm:$0xff]  ;;  %v957_v15 = vrot.slane %v6877_v12, 7  ;;  %v1295_v37 = vsel %vm1100_vm0, %v1040_v8, %v914_v5  ;;  %v1041_v41 = vrot.slane %v6890_v4, 7  ;;  %14535 = vst [vmem:[#allocation127_spill] sm:$0xff] %v6918_v61  ;;  %v1490_v45 = vsub.f32 %v6826_v1, %v1169_v44  ;;  %v6952_v44 = vld [vmem:[%s5873_s25 + $0x468] sm:$0xff] }
  0xfc   : > { %v2109_v38 = vsub.f32 %v6902_v28, %v1606_v18  ;;  %v1083_v18 = vrot.slane %v6893_v29, 7  ;;  %v6928_v8 = vmul.f32 %v2111_v55, %v5985_v52  ;;  %v6930_v40 = vadd.f32 1.0, %v1488_v60 }
  0xfd   : > { %1727 = vrot.lane.b32.xlu1 %v397_v32, %s5658_s29  ;;  %1725 = vrot.lane.b32.xlu0 %v396_v33, %s5658_s29  ;;  %v6921_v32 = vsub.f32 %v6815_v59, %v1210_v7  ;;  %v6924_v33 = vsub.f32 %v6812_v54, %v1336_v49  ;;  %v6933_v26 = vsub.f32 %v6841_v16, %v1211_v2  ;;  %v6938_v7 = vld [vmem:[%s5873_s25 + $0x460] sm:$0xff]  ;;  %v6947_v49 = vld [vmem:[%s5873_s25 + $0x18] sm:$0xff] }
  0xfe   : > { %14538 = vst [vmem:[#allocation130_spill] sm:$0xff] %v6928_v8  ;;  %14539 = vst [vmem:[#allocation131_spill] sm:$0xff] %v6930_v40  ;;  %v1337_v59 = vsel %vm1100_vm0, %v1082_v31, %v956_v11  ;;  %v6941_v54 = vmul.f32 %v5987_v53, %v2111_v55  ;;  %v6944_v1 = vmul.f32 %v2109_v38, %v6023_v9  ;;  %v6955_v2 = vld [vmem:[%s5873_s25 + $0x700] sm:$0xff]  ;;  %v6958_v11 = vld [vmem:[%s5873_s25 + $0x708] sm:$0xff]  ;;  %v6966_v8 = vadd.f32 1.0, %v1487_v23 }
  0xff   : > { %14536 = vst [vmem:[#allocation128_spill] sm:$0xff] %v6921_v32  ;;  %14537 = vst [vmem:[#allocation129_spill] sm:$0xff] %v6924_v33  ;;  %v1616_v5 = vpop.permute.xlu1 %1615  ;;  %v1614_v27 = vpop.permute.xlu0 %1613  ;;  %v2112_v60 = vsub.f32 %v6947_v49, %v1612_v3  ;;  %v1489_v16 = vsub.f32 %v6823_v63, %v1295_v37  ;;  %v6961_v31 = vld [vmem:[%s5873_s25 + $0x8] sm:$0xff]  ;;  %v1170_v63 = vsel %vm1100_vm0, %v915_v42, %v1041_v41  ;;  %v916_v52 = vrot.slane %v6938_v7, 7  ;;  %v7003_v9 = vld [vmem:[%s5873_s25 + $0x478] sm:$0xff] }
 0x100   : > { %14540 = vst [vmem:[#allocation132_spill] sm:$0xff] %v6933_v26  ;;  %14541 = vst [vmem:[#allocation133_spill] sm:$0xff] %v6941_v54  ;;  %v2110_v55 = vsub.f32 %v6961_v31, %v1608_v48  ;;  %v1212_v3 = vsel %vm1100_vm0, %v957_v15, %v1083_v18  ;;  %v6973_v37 = vmul.f32 %v6037_v19, %v2109_v38  ;;  %v401_v53 = vld [vmem:[%s5873_s25 + $0x208] sm:$0xff]  ;;  %v6977_v48 = vadd.f32 1.0, %v1490_v45 }
 0x101   : > { %14542 = vst [vmem:[#allocation134_spill] sm:$0xff] %v6944_v1  ;;  %1731 = vrot.lane.b32.xlu1 %v399_v30, %s5658_s29  ;;  %1729 = vrot.lane.b32.xlu0 %v398_v17, %s5658_s29  ;;  %14543 = vst [vmem:[#allocation135_spill] sm:$0xff] %v6966_v8  ;;  %v400_v1 = vld [vmem:[%s5873_s25 + $0x200] sm:$0xff]  ;;  %v6980_v17 = vsub.f32 %v6838_v6, %v1337_v59  ;;  %v6984_v23 = vsel %vm1100_vm0, %v1041_v41, %v915_v42  ;;  %v958_v38 = vrot.slane %v6955_v2, 7 }
 0x102   : > { %14544 = vst [vmem:[#allocation136_spill] sm:$0xff] %v6973_v37  ;;  %14545 = vst [vmem:[#allocation137_spill] sm:$0xff] %v6977_v48  ;;  %v1042_v19 = vrot.slane %v6952_v44, 7  ;;  %v1084_v45 = vrot.slane %v6958_v11, 7  ;;  %v6991_v37 = vld [vmem:[%s5873_s25 + $0x470] sm:$0xff]  ;;  %v6994_v6 = vmul.f32 %v2112_v60, %v6025_v10  ;;  %v1492_v42 = vsub.f32 %v6890_v4, %v1170_v63 }
 0x103   : > { %14546 = vst [vmem:[#allocation138_spill] sm:$0xff] %v6980_v17  ;;  %v1620_v30 = vpop.permute.xlu1 %1619  ;;  %v1618_v54 = vpop.permute.xlu0 %1617  ;;  %v6998_v41 = vsub.f32 %v6893_v29, %v1212_v3  ;;  %v1338_v59 = vsel %vm1100_vm0, %v1083_v18, %v957_v15  ;;  %v7006_v17 = vld [vmem:[%s5873_s25 + $0x710] sm:$0xff]  ;;  %v7009_v48 = vmul.f32 %v6039_v20, %v2112_v60  ;;  %v7012_v10 = vmul.f32 %v2110_v55, %v6041_v21  ;;  %v7023_v15 = vld [vmem:[%s5873_s25 + $0x718] sm:$0xff]  ;;  %v7029_v60 = vld [vmem:[%s5873_s25 + $0x20] sm:$0xff] }
 0x104   : > { %14547 = vst [vmem:[#allocation139_spill] sm:$0xff] %v6994_v6  ;;  %v7015_v6 = vld [vmem:[%s5873_s25 + $0x28] sm:$0xff]  ;;  %v7020_v29 = vadd.f32 1.0, %v1489_v16  ;;  %v7026_v18 = vmul.f32 %v6048_v24, %v2110_v55  ;;  %v2113_v63 = vsub.f32 %v7029_v60, %v1614_v27  ;;  %v403_v3 = vld [vmem:[%s5873_s25 + $0x218] sm:$0xff]  ;;  %v402_v20 = vld [vmem:[%s5873_s25 + $0x210] sm:$0xff]  ;;  %v1213_v55 = vsel %vm1100_vm0, %v958_v38, %v1084_v45 }
 0x105   : > { %14548 = vst [vmem:[#allocation140_spill] sm:$0xff] %v6998_v41  ;;  %14549 = vst [vmem:[#allocation141_spill] sm:$0xff] %v7009_v48  ;;  %v2114_v4 = vsub.f32 %v7015_v6, %v1616_v5  ;;  %1735 = vrot.lane.b32.xlu1 %v401_v53, %s5658_s29  ;;  %1733 = vrot.lane.b32.xlu0 %v400_v1, %s5658_s29  ;;  %v1491_v53 = vsub.f32 %v6874_v57, %v6984_v23  ;;  %v917_v5 = vrot.slane %v6991_v37, 7  ;;  %v7044_v48 = vld [vmem:[%s5873_s25 + $0x38] sm:$0xff] }
 0x106   : > { %14550 = vst [vmem:[#allocation142_spill] sm:$0xff] %v7012_v10  ;;  %14551 = vst [vmem:[#allocation143_spill] sm:$0xff] %v7020_v29  ;;  %v1171_v10 = vsel %vm1100_vm0, %v916_v52, %v1042_v19  ;;  %v959_v24 = vrot.slane %v7006_v17, 7  ;;  %v1043_v27 = vrot.slane %v7003_v9, 7  ;;  %v2116_v57 = vsub.f32 %v7044_v48, %v1620_v30  ;;  %v7058_v29 = vld [vmem:[%s5873_s25 + $0x30] sm:$0xff] }
 0x107   : > { %14552 = vst [vmem:[#allocation144_spill] sm:$0xff] %v7026_v18  ;;  %v1624_v1 = vpop.permute.xlu1 %1623  ;;  %v1622_v16 = vpop.permute.xlu0 %1621  ;;  %v7049_v23 = vsel %vm1100_vm0, %v1042_v19, %v916_v52  ;;  %v1339_v18 = vsel %vm1100_vm0, %v1084_v45, %v958_v38  ;;  %v1085_v21 = vrot.slane %v7023_v15, 7  ;;  %v7055_v41 = vmul.f32 %v2114_v4, %v6085_v46  ;;  %v405_v45 = vld [vmem:[%s5873_s25 + $0x228] sm:$0xff] }
 0x108   : > { %v2115_v26 = vsub.f32 %v7058_v29, %v1618_v54  ;;  %v7063_v52 = vadd.f32 1.0, %v1492_v42  ;;  %v7066_v19 = vsub.f32 %v6877_v12, %v1338_v59  ;;  %v7069_v30 = vmul.f32 %v6087_v47, %v2114_v4  ;;  %v7118_v47 = vld [vmem:[%s5873_s25 + $0x40] sm:$0xff] }
 0x109   : > { %14553 = vst [vmem:[#allocation145_spill] sm:$0xff] %v7055_v41  ;;  %1739 = vrot.lane.b32.xlu1 %v403_v3, %s5658_s29  ;;  %1737 = vrot.lane.b32.xlu0 %v402_v20, %s5658_s29  ;;  %v7072_v38 = vmul.f32 %v2113_v63, %v6090_v50  ;;  %v7075_v54 = vmul.f32 %v6092_v51, %v2113_v63  ;;  %v404_v3 = vld [vmem:[%s5873_s25 + $0x220] sm:$0xff] }
 0x10a   : > { %14554 = vst [vmem:[#allocation146_spill] sm:$0xff] %v7063_v52  ;;  %14555 = vst [vmem:[#allocation147_spill] sm:$0xff] %v7066_v19  ;;  %v1494_v20 = vsub.f32 %v6952_v44, %v1171_v10  ;;  %v7081_v12 = vsub.f32 %v6958_v11, %v1213_v55  ;;  %v1493_v59 = vsub.f32 %v6938_v7, %v7049_v23  ;;  %v7094_v10 = vld [vmem:[%s5873_s25 + $0x488] sm:$0xff]  ;;  %v7109_v55 = vld [vmem:[%s5873_s25 + $0x720] sm:$0xff] }
 0x10b   : > { %14556 = vst [vmem:[#allocation148_spill] sm:$0xff] %v7069_v30  ;;  %14557 = vst [vmem:[#allocation149_spill] sm:$0xff] %v7072_v38  ;;  %v1628_v42 = vpop.permute.xlu1 %1627  ;;  %v1626_v41 = vpop.permute.xlu0 %1625  ;;  %v7086_v4 = vsub.f32 %v6955_v2, %v1339_v18  ;;  %v1172_v63 = vsel %vm1100_vm0, %v917_v5, %v1043_v27  ;;  %v7091_v38 = vld [vmem:[%s5873_s25 + $0x480] sm:$0xff]  ;;  %v7097_v44 = vmul.f32 %v2116_v57, %v6101_v58  ;;  %v7103_v7 = vld [vmem:[%s5873_s25 + $0x48] sm:$0xff] }
 0x10c   : > { %14558 = vst [vmem:[#allocation150_spill] sm:$0xff] %v7075_v54  ;;  %14559 = vst [vmem:[#allocation151_spill] sm:$0xff] %v7081_v12  ;;  %v7100_v11 = vmul.f32 %v6114_v62, %v2116_v57  ;;  %v2118_v2 = vsub.f32 %v7103_v7, %v1624_v1  ;;  %v1214_v18 = vsel %vm1100_vm0, %v959_v24, %v1085_v21  ;;  %v7123_v1 = vadd.f32 1.0, %v1491_v53  ;;  %v407_v62 = vld [vmem:[%s5873_s25 + $0x238] sm:$0xff]  ;;  %v409_v54 = vld [vmem:[%s5873_s25 + $0x248] sm:$0xff] }
 0x10d   : > { %14560 = vst [vmem:[#allocation152_spill] sm:$0xff] %v7086_v4  ;;  %14561 = vst [vmem:[#allocation153_spill] sm:$0xff] %v7097_v44  ;;  %v7112_v23 = vmul.f32 %v2115_v26, %v6141_v22  ;;  %v7115_v51 = vmul.f32 %v6143_v25, %v2115_v26  ;;  %v2117_v57 = vsub.f32 %v7118_v47, %v1622_v16  ;;  %1743 = vrot.lane.b32.xlu1 %v405_v45, %s5658_s29  ;;  %v7126_v44 = vld [vmem:[%s5873_s25 + $0x728] sm:$0xff]  ;;  %v406_v22 = vld [vmem:[%s5873_s25 + $0x230] sm:$0xff] }
 0x10e   : > { %14562 = vst [vmem:[#allocation154_spill] sm:$0xff] %v7100_v11  ;;  %1741 = vrot.lane.b32.xlu0 %v404_v3, %s5658_s29  ;;  %14565 = vst [vmem:[#allocation157_spill] sm:$0xff] %v7123_v1  ;;  %v1298_v26 = vsel %vm1100_vm0, %v1043_v27, %v917_v5  ;;  %v918_v16 = vrot.slane %v7091_v38, 7  ;;  %v1044_v45 = vrot.slane %v7094_v10, 7  ;;  %v7135_v25 = vadd.f32 1.0, %v1494_v20  ;;  %v7144_v5 = vld [vmem:[%s5873_s25 + $0x490] sm:$0xff] }
 0x10f   : > { %14563 = vst [vmem:[#allocation155_spill] sm:$0xff] %v7112_v23  ;;  %14564 = vst [vmem:[#allocation156_spill] sm:$0xff] %v7115_v51  ;;  %v1496_v23 = vsub.f32 %v7003_v9, %v1172_v63  ;;  %v1632_v3 = vpop.permute.xlu1 %1631  ;;  %v1630_v53 = vpop.permute.xlu0 %1629  ;;  %v7138_v51 = vsub.f32 %v7023_v15, %v1214_v18  ;;  %v1340_v9 = vsel %vm1100_vm0, %v1085_v21, %v959_v24  ;;  %v960_v63 = vrot.slane %v7109_v55, 7  ;;  %v7153_v20 = vld [vmem:[%s5873_s25 + $0x58] sm:$0xff]  ;;  %v7161_v21 = vld [vmem:[%s5873_s25 + $0x730] sm:$0xff] }
 0x110   : > { %14566 = vst [vmem:[#allocation158_spill] sm:$0xff] %v7135_v25  ;;  %v7147_v27 = vmul.f32 %v2118_v2, %v6157_v56  ;;  %v7150_v58 = vmul.f32 %v6159_v34, %v2118_v2  ;;  %v2120_v15 = vsub.f32 %v7153_v20, %v1628_v42  ;;  %v1086_v18 = vrot.slane %v7126_v44, 7  ;;  %v7158_v11 = vld [vmem:[%s5873_s25 + $0x498] sm:$0xff]  ;;  %v408_v30 = vld [vmem:[%s5873_s25 + $0x240] sm:$0xff]  ;;  %v7373_v4 = vld [vmem:[%s5873_s25 + $0x4c8] sm:$0xff] }
 0x111   : > { %14567 = vst [vmem:[#allocation159_spill] sm:$0xff] %v7138_v51  ;;  %v7164_v24 = vld [vmem:[%s5873_s25 + $0x738] sm:$0xff]  ;;  %v7167_v56 = vmul.f32 %v2117_v57, %v6162_v35  ;;  %1747 = vrot.lane.b32.xlu1 %v407_v62, %s5658_s29  ;;  %v7175_v42 = vadd.f32 1.0, %v1493_v59  ;;  %v1495_v34 = vsub.f32 %v6991_v37, %v1298_v26  ;;  %v7183_v35 = vadd.f32 1.0, %v1496_v23  ;;  %v14639_v25 = vld [vmem:[#allocation70_spill] sm:$0xff] }
 0x112   : > { %14568 = vst [vmem:[#allocation160_spill] sm:$0xff] %v7147_v27  ;;  %14569 = vst [vmem:[#allocation161_spill] sm:$0xff] %v7150_v58  ;;  %v7170_v27 = vld [vmem:[%s5873_s25 + $0x50] sm:$0xff]  ;;  %1745 = vrot.lane.b32.xlu0 %v406_v22, %s5658_s29  ;;  %v7179_v58 = vmul.f32 %v6164_v36, %v2117_v57  ;;  %v7190_v22 = vsel %vm1100_vm0, %v1044_v45, %v918_v16  ;;  %v961_v37 = vrot.slane %v7161_v21, 7  ;;  %v1045_v59 = vrot.slane %v7158_v11, 7 }
 0x113   : > { %14570 = vst [vmem:[#allocation162_spill] sm:$0xff] %v7167_v56  ;;  %v2119_v2 = vsub.f32 %v7170_v27, %v1626_v41  ;;  %14571 = vst [vmem:[#allocation163_spill] sm:$0xff] %v7175_v42  ;;  %v1173_v56 = vsel %vm1100_vm0, %v918_v16, %v1044_v45  ;;  %v919_v41 = vrot.slane %v7144_v5, 7  ;;  %v1636_v62 = vpop.permute.xlu1 %1635  ;;  %v1634_v50 = vpop.permute.xlu0 %1633  ;;  %v1087_v23 = vrot.slane %v7164_v24, 7  ;;  %v14609_v42 = vld [vmem:[#allocation61_spill] sm:$0xff] }
 0x114   : > { %14572 = vst [vmem:[#allocation164_spill] sm:$0xff] %v7179_v58  ;;  %14573 = vst [vmem:[#allocation165_spill] sm:$0xff] %v7183_v35  ;;  %v7196_v57 = vmul.f32 %v2120_v15, %v6171_v39  ;;  %v7199_v26 = vmul.f32 %v6211_v0, %v2120_v15  ;;  %v7202_v36 = vsub.f32 %v7006_v17, %v1340_v9  ;;  %v7210_v58 = vld [vmem:[%s5873_s25 + $0x68] sm:$0xff]  ;;  %v7215_v15 = vadd.f32 1.0, %v1495_v34  ;;  %v7219_v17 = vld [vmem:[%s5873_s25 + $0x4a0] sm:$0xff] }
 0x115   : > { %v1215_v16 = vsel %vm1100_vm0, %v960_v63, %v1086_v18  ;;  %v7207_v45 = vmul.f32 %v2119_v2, %v6175_v13  ;;  %v2122_v46 = vsub.f32 %v7210_v58, %v1632_v3  ;;  %1751 = vrot.lane.b32.xlu1 %v409_v54, %s5658_s29  ;;  %v7222_v9 = vld [vmem:[%s5873_s25 + $0x4a8] sm:$0xff]  ;;  %v411_v54 = vld [vmem:[%s5873_s25 + $0x258] sm:$0xff]  ;;  %v410_v39 = vld [vmem:[%s5873_s25 + $0x250] sm:$0xff]  ;;  %v1341_v34 = vsel %vm1100_vm0, %v1086_v18, %v960_v63 }
 0x116   : > { %14574 = vst [vmem:[#allocation166_spill] sm:$0xff] %v7196_v57  ;;  %14575 = vst [vmem:[#allocation167_spill] sm:$0xff] %v7199_v26  ;;  %1749 = vrot.lane.b32.xlu0 %v408_v30, %s5658_s29  ;;  %v1498_v57 = vsub.f32 %v7094_v10, %v1173_v56  ;;  %v14579_v0 = vld [vmem:[#allocation51_spill] sm:$0xff]  ;;  %v1497_v56 = vsub.f32 %v7091_v38, %v7190_v22  ;;  %v7238_v26 = vsub.f32 %v7126_v44, %v1215_v16  ;;  %v7249_v63 = vld [vmem:[%s5873_s25 + $0x78] sm:$0xff] }
 0x117   : > { %14576 = vst [vmem:[#allocation168_spill] sm:$0xff] %v7202_v36  ;;  %14577 = vst [vmem:[#allocation169_spill] sm:$0xff] %v7207_v45  ;;  %v7225_v13 = vmul.f32 %v14579_v0, %v2119_v2  ;;  %v7228_v45 = vld [vmem:[%s5873_s25 + $0x60] sm:$0xff]  ;;  %v1640_v30 = vpop.permute.xlu1 %1639  ;;  %v1638_v10 = vpop.permute.xlu0 %1637  ;;  %v1174_v2 = vsel %vm1100_vm0, %v919_v41, %v1045_v59  ;;  %v7246_v0 = vsel %vm1100_vm0, %v1045_v59, %v919_v41  ;;  %v920_v22 = vrot.slane %v7219_v17, 7  ;;  %v7263_v41 = vld [vmem:[%s5873_s25 + $0x70] sm:$0xff] }
 0x118   : > { %14578 = vst [vmem:[#allocation170_spill] sm:$0xff] %v7215_v15  ;;  %v2121_v3 = vsub.f32 %v7228_v45, %v1630_v53  ;;  %14581 = vst [vmem:[#allocation172_spill] sm:$0xff] %v7238_v26  ;;  %v1216_v53 = vsel %vm1100_vm0, %v961_v37, %v1087_v23  ;;  %v2124_v38 = vsub.f32 %v7249_v63, %v1636_v62  ;;  %v7255_v18 = vld [vmem:[%s5873_s25 + $0x740] sm:$0xff]  ;;  %v1046_v16 = vrot.slane %v7222_v9, 7 }
 0x119   : > { %14580 = vst [vmem:[#allocation171_spill] sm:$0xff] %v7225_v13  ;;  %v1342_v44 = vsel %vm1100_vm0, %v1087_v23, %v961_v37  ;;  %v14582_v13 = vld [vmem:[#allocation52_spill] sm:$0xff]  ;;  %v2123_v59 = vsub.f32 %v7263_v41, %v1634_v50  ;;  %1755 = vrot.lane.b32.xlu1 %v411_v54, %s5658_s29  ;;  %v7268_v62 = vadd.f32 1.0, %v1498_v57  ;;  %v7271_v37 = vsub.f32 %v7109_v55, %v1341_v34  ;;  %v7274_v23 = vld [vmem:[%s5873_s25 + $0x748] sm:$0xff]  ;;  %v14586_v15 = vld [vmem:[#allocation54_spill] sm:$0xff] }
 0x11a   : > { %v7260_v26 = vmul.f32 %v2122_v46, %v14582_v13  ;;  %1753 = vrot.lane.b32.xlu0 %v410_v39, %s5658_s29  ;;  %v14588_v13 = vld [vmem:[#allocation53_spill] sm:$0xff]  ;;  %v14590_v50 = vld [vmem:[#allocation55_spill] sm:$0xff]  ;;  %v412_v57 = vld [vmem:[%s5873_s25 + $0x260] sm:$0xff]  ;;  %v7289_v34 = vsub.f32 %v7164_v24, %v1216_v53 }
 0x11b   : > { %14584 = vst [vmem:[#allocation174_spill] sm:$0xff] %v7268_v62  ;;  %14585 = vst [vmem:[#allocation175_spill] sm:$0xff] %v7271_v37  ;;  %v7280_v36 = vmul.f32 %v2121_v3, %v14588_v13  ;;  %v7283_v54 = vmul.f32 %v14590_v50, %v2121_v3  ;;  %v413_v39 = vld [vmem:[%s5873_s25 + $0x268] sm:$0xff]  ;;  %v1500_v62 = vsub.f32 %v7158_v11, %v1174_v2  ;;  %v1644_v35 = vpop.permute.xlu1 %1643  ;;  %v1642_v55 = vpop.permute.xlu0 %1641  ;;  %v962_v3 = vrot.slane %v7255_v18, 7  ;;  %v7301_v50 = vld [vmem:[%s5873_s25 + $0x4b8] sm:$0xff] }
 0x11c   : > { %14583 = vst [vmem:[#allocation173_spill] sm:$0xff] %v7260_v26  ;;  %v7277_v26 = vmul.f32 %v14586_v15, %v2122_v46  ;;  %14592 = vst [vmem:[#allocation179_spill] sm:$0xff] %v7289_v34  ;;  %v1499_v46 = vsub.f32 %v7144_v5, %v7246_v0  ;;  %v7294_v15 = vsub.f32 %v7161_v21, %v1342_v44  ;;  %v14594_v11 = vld [vmem:[#allocation56_spill] sm:$0xff]  ;;  %v7307_v24 = vld [vmem:[%s5873_s25 + $0x88] sm:$0xff]  ;;  %v1088_v0 = vrot.slane %v7274_v23, 7 }
 0x11d   : > { %14589 = vst [vmem:[#allocation177_spill] sm:$0xff] %v7280_v36  ;;  %14591 = vst [vmem:[#allocation178_spill] sm:$0xff] %v7283_v54  ;;  %v7298_v36 = vld [vmem:[%s5873_s25 + $0x4b0] sm:$0xff]  ;;  %v7304_v2 = vmul.f32 %v2124_v38, %v14594_v11  ;;  %v2126_v53 = vsub.f32 %v7307_v24, %v1640_v30  ;;  %v1175_v5 = vsel %vm1100_vm0, %v920_v22, %v1046_v16  ;;  %v14596_v44 = vld [vmem:[#allocation58_spill] sm:$0xff]  ;;  %1759 = vrot.lane.b32.xlu1 %v413_v39, %s5658_s29 }
 0x11e   : > { %14587 = vst [vmem:[#allocation176_spill] sm:$0xff] %v7277_v26  ;;  %14593 = vst [vmem:[#allocation180_spill] sm:$0xff] %v7294_v15  ;;  %v7314_v21 = vld [vmem:[%s5873_s25 + $0x750] sm:$0xff]  ;;  %v7317_v54 = vmul.f32 %v14596_v44, %v2124_v38  ;;  %v14598_v26 = vld [vmem:[#allocation57_spill] sm:$0xff]  ;;  %1757 = vrot.lane.b32.xlu0 %v412_v57, %s5658_s29  ;;  %v7328_v30 = vadd.f32 1.0, %v1497_v56 }
 0x11f   : > { %14595 = vst [vmem:[#allocation181_spill] sm:$0xff] %v7304_v2  ;;  %v7320_v13 = vmul.f32 %v2123_v59, %v14598_v26  ;;  %v7323_v2 = vld [vmem:[%s5873_s25 + $0x80] sm:$0xff]  ;;  %v7331_v15 = vld [vmem:[%s5873_s25 + $0x758] sm:$0xff]  ;;  %v14601_v34 = vld [vmem:[#allocation59_spill] sm:$0xff]  ;;  %v921_v26 = vrot.slane %v7298_v36, 7  ;;  %v1648_v56 = vpop.permute.xlu1 %1647  ;;  %v1646_v57 = vpop.permute.xlu0 %1645 }
 0x120   : > { %14597 = vst [vmem:[#allocation182_spill] sm:$0xff] %v7317_v54  ;;  %v2125_v11 = vsub.f32 %v7323_v2, %v1638_v10  ;;  %14600 = vst [vmem:[#allocation184_spill] sm:$0xff] %v7328_v30  ;;  %v7334_v37 = vmul.f32 %v14601_v34, %v2123_v59  ;;  %v415_v38 = vld [vmem:[%s5873_s25 + $0x278] sm:$0xff]  ;;  %v414_v44 = vld [vmem:[%s5873_s25 + $0x270] sm:$0xff]  ;;  %v1047_v10 = vrot.slane %v7301_v50, 7  ;;  %v7346_v30 = vadd.f32 1.0, %v1500_v62 }
 0x121   : > { %14599 = vst [vmem:[#allocation183_spill] sm:$0xff] %v7320_v13  ;;  %v1301_v13 = vsel %vm1100_vm0, %v1046_v16, %v920_v22  ;;  %v7343_v54 = vld [vmem:[%s5873_s25 + $0x98] sm:$0xff]  ;;  %v1502_v59 = vsub.f32 %v7222_v9, %v1175_v5  ;;  %v963_v34 = vrot.slane %v7314_v21, 7  ;;  %v14605_v22 = vld [vmem:[#allocation60_spill] sm:$0xff]  ;;  %v1089_v51 = vrot.slane %v7331_v15, 7  ;;  %v14607_v62 = vld [vmem:[#allocation62_spill] sm:$0xff]  ;;  %1763 = vrot.lane.b32.xlu1 %v415_v38, %s5658_s29 }
 0x122   : > { %14602 = vst [vmem:[#allocation185_spill] sm:$0xff] %v7334_v37  ;;  %14603 = vst [vmem:[#allocation186_spill] sm:$0xff] %v7343_v54  ;;  %v2128_v39 = vsub.f32 %v7343_v54, %v1644_v35  ;;  %v7351_v16 = vmul.f32 %v2126_v53, %v14605_v22  ;;  %v1217_v37 = vsel %vm1100_vm0, %v962_v3, %v1088_v0  ;;  %1761 = vrot.lane.b32.xlu0 %v414_v44, %s5658_s29  ;;  %v7370_v22 = vld [vmem:[%s5873_s25 + $0x4c0] sm:$0xff]  ;;  %v417_v38 = vld [vmem:[%s5873_s25 + $0x288] sm:$0xff] }
 0x123   : > { %14604 = vst [vmem:[#allocation187_spill] sm:$0xff] %v7346_v30  ;;  %v1343_v35 = vsel %vm1100_vm0, %v1088_v0, %v962_v3  ;;  %v7359_v30 = vmul.f32 %v14607_v62, %v2126_v53  ;;  %v7362_v9 = vmul.f32 %v2125_v11, %v14609_v42  ;;  %v7366_v5 = vadd.f32 1.0, %v1499_v46  ;;  %v14612_v3 = vld [vmem:[#allocation63_spill] sm:$0xff]  ;;  %v7379_v53 = vld [vmem:[%s5873_s25 + $0x90] sm:$0xff]  ;;  %v416_v44 = vld [vmem:[%s5873_s25 + $0x280] sm:$0xff]  ;;  %v1652_v42 = vpop.permute.xlu1 %1651 }
 0x124   : > { %14606 = vst [vmem:[#allocation188_spill] sm:$0xff] %v7351_v16  ;;  %v1501_v16 = vsub.f32 %v7219_v17, %v1301_v13  ;;  %v7376_v0 = vmul.f32 %v14612_v3, %v2125_v11  ;;  %14614 = vst [vmem:[#allocation193_spill] sm:$0xff] %v7379_v53  ;;  %v1176_v46 = vsel %vm1100_vm0, %v921_v26, %v1047_v10  ;;  %v14615_v17 = vld [vmem:[#allocation64_spill] sm:$0xff]  ;;  %v1650_v11 = vpop.permute.xlu0 %1649  ;;  %v7746_v54 = vld [vmem:[%s5873_s25 + $0x100] sm:$0xff] }
 0x125   : > { %14608 = vst [vmem:[#allocation189_spill] sm:$0xff] %v7359_v30  ;;  %14610 = vst [vmem:[#allocation190_spill] sm:$0xff] %v7362_v9  ;;  %v2127_v9 = vsub.f32 %v7379_v53, %v1642_v55  ;;  %v1302_v13 = vsel %vm1100_vm0, %v1047_v10, %v921_v26  ;;  %v7389_v62 = vmul.f32 %v2128_v39, %v14615_v17  ;;  %v7404_v10 = vld [vmem:[%s5873_s25 + $0x760] sm:$0xff]  ;;  %1767 = vrot.lane.b32.xlu1 %v417_v38, %s5658_s29  ;;  %v7422_v17 = vld [vmem:[%s5873_s25 + $0x4d0] sm:$0xff] }
 0x126   : > { %14611 = vst [vmem:[#allocation191_spill] sm:$0xff] %v7366_v5  ;;  %14613 = vst [vmem:[#allocation192_spill] sm:$0xff] %v7376_v0  ;;  %v7392_v3 = vsub.f32 %v7274_v23, %v1217_v37  ;;  %v7394_v0 = vadd.f32 1.0, %v1502_v59  ;;  %v7397_v55 = vsub.f32 %v7255_v18, %v1343_v35  ;;  %v1218_v30 = vsel %vm1100_vm0, %v963_v34, %v1089_v51  ;;  %v7412_v59 = vld [vmem:[%s5873_s25 + $0xa8] sm:$0xff]  ;;  %v4865_v53 = vld [vmem:[%s5873_s25 + $0x2f8] sm:$0xff] }
 0x127   : > { %14616 = vst [vmem:[#allocation194_spill] sm:$0xff] %v7389_v62  ;;  %v1344_v26 = vsel %vm1100_vm0, %v1089_v51, %v963_v34  ;;  %v7407_v62 = vld [vmem:[%s5873_s25 + $0x768] sm:$0xff]  ;;  %v922_v37 = vrot.slane %v7370_v22, 7  ;;  %v1048_v23 = vrot.slane %v7373_v4, 7  ;;  %14620 = vst [vmem:[#allocation198_spill] sm:$0xff] %v7412_v59  ;;  %v2130_v18 = vsub.f32 %v7412_v59, %v1648_v56  ;;  %1765 = vrot.lane.b32.xlu0 %v416_v44, %s5658_s29  ;;  %v14624_v56 = vld [vmem:[#allocation66_spill] sm:$0xff] }
 0x128   : > { %14617 = vst [vmem:[#allocation195_spill] sm:$0xff] %v7392_v3  ;;  %14618 = vst [vmem:[#allocation196_spill] sm:$0xff] %v7394_v0  ;;  %v7417_v51 = vadd.f32 1.0, %v1501_v16  ;;  %v1504_v34 = vsub.f32 %v7301_v50, %v1176_v46  ;;  %v1503_v35 = vsub.f32 %v7298_v36, %v1302_v13  ;;  %v14622_v0 = vld [vmem:[#allocation65_spill] sm:$0xff]  ;;  %v7431_v5 = vmul.f32 %v2127_v9, %v14624_v56  ;;  %v14626_v38 = vld [vmem:[#allocation67_spill] sm:$0xff]  ;;  %v1656_v13 = vpop.permute.xlu1 %1655 }
 0x129   : > { %14619 = vst [vmem:[#allocation197_spill] sm:$0xff] %v7397_v55  ;;  %v7425_v55 = vld [vmem:[%s5873_s25 + $0x4d8] sm:$0xff]  ;;  %v7428_v3 = vmul.f32 %v14622_v0, %v2128_v39  ;;  %v7434_v16 = vmul.f32 %v14626_v38, %v2127_v9  ;;  %v7437_v44 = vld [vmem:[%s5873_s25 + $0xa0] sm:$0xff]  ;;  %v418_v46 = vld [vmem:[%s5873_s25 + $0x290] sm:$0xff]  ;;  %v7443_v59 = vsub.f32 %v7331_v15, %v1218_v30  ;;  %v7446_v39 = vsub.f32 %v7314_v21, %v1344_v26 }
 0x12a   : > { %14621 = vst [vmem:[#allocation199_spill] sm:$0xff] %v7417_v51  ;;  %14625 = vst [vmem:[#allocation201_spill] sm:$0xff] %v7431_v5  ;;  %v2129_v36 = vsub.f32 %v7437_v44, %v1646_v57  ;;  %v419_v50 = vld [vmem:[%s5873_s25 + $0x298] sm:$0xff]  ;;  %v1654_v51 = vpop.permute.xlu0 %1653  ;;  %v964_v5 = vrot.slane %v7404_v10, 7  ;;  %v1090_v9 = vrot.slane %v7407_v62, 7  ;;  %v7451_v38 = vld [vmem:[%s5873_s25 + $0x770] sm:$0xff] }
 0x12b   : > { %14623 = vst [vmem:[#allocation200_spill] sm:$0xff] %v7428_v3  ;;  %14627 = vst [vmem:[#allocation202_spill] sm:$0xff] %v7434_v16  ;;  %v7454_v0 = vld [vmem:[%s5873_s25 + $0xb8] sm:$0xff]  ;;  %v1177_v16 = vsel %vm1100_vm0, %v922_v37, %v1048_v23  ;;  %v923_v15 = vrot.slane %v7422_v17, 7  ;;  %v1049_v21 = vrot.slane %v7425_v55, 7  ;;  %v14632_v30 = vld [vmem:[#allocation68_spill] sm:$0xff]  ;;  %1771 = vrot.lane.b32.xlu1 %v419_v50, %s5658_s29  ;;  %1769 = vrot.lane.b32.xlu0 %v418_v46, %s5658_s29 }
 0x12c   : > { %14628 = vst [vmem:[#allocation203_spill] sm:$0xff] %v7437_v44  ;;  %14629 = vst [vmem:[#allocation204_spill] sm:$0xff] %v7443_v59  ;;  %v2132_v57 = vsub.f32 %v7454_v0, %v1652_v42  ;;  %v7460_v56 = vld [vmem:[%s5873_s25 + $0x778] sm:$0xff]  ;;  %v7465_v26 = vmul.f32 %v2130_v18, %v14632_v30  ;;  %v7468_v3 = vld [vmem:[%s5873_s25 + $0xb0] sm:$0xff]  ;;  %v7473_v42 = vadd.f32 1.0, %v1504_v34  ;;  %v7475_v59 = vadd.f32 1.0, %v1503_v35  ;;  %v1660_v34 = vpop.permute.xlu1 %1659 }
 0x12d   : > { %14630 = vst [vmem:[#allocation205_spill] sm:$0xff] %v7446_v39  ;;  %14631 = vst [vmem:[#allocation206_spill] sm:$0xff] %v7454_v0  ;;  %v2131_v39 = vsub.f32 %v7468_v3, %v1650_v11  ;;  %v14637_v0 = vld [vmem:[#allocation69_spill] sm:$0xff]  ;;  %v7481_v12 = vmul.f32 %v2129_v36, %v14639_v25  ;;  %v965_v11 = vrot.slane %v7451_v38, 7  ;;  %v7487_v50 = vld [vmem:[%s5873_s25 + $0x4e0] sm:$0xff]  ;;  %v1219_v46 = vsel %vm1100_vm0, %v964_v5, %v1090_v9 }
 0x12e   : > { %14633 = vst [vmem:[#allocation207_spill] sm:$0xff] %v7465_v26  ;;  %14634 = vst [vmem:[#allocation208_spill] sm:$0xff] %v7468_v3  ;;  %v7478_v44 = vmul.f32 %v14637_v0, %v2130_v18  ;;  %v1303_v26 = vsel %vm1100_vm0, %v1048_v23, %v922_v37  ;;  %v1658_v35 = vpop.permute.xlu0 %1657  ;;  %v1506_v18 = vsub.f32 %v7373_v4, %v1177_v16  ;;  %v1091_v37 = vrot.slane %v7460_v56, 7  ;;  %v14641_v23 = vld [vmem:[#allocation72_spill] sm:$0xff]  ;;  %v14643_v25 = vld [vmem:[#allocation71_spill] sm:$0xff] }
 0x12f   : > { %14635 = vst [vmem:[#allocation209_spill] sm:$0xff] %v7473_v42  ;;  %14636 = vst [vmem:[#allocation210_spill] sm:$0xff] %v7475_v59  ;;  %v7496_v0 = vmul.f32 %v14641_v23, %v2129_v36  ;;  %v14645_v30 = vld [vmem:[#allocation73_spill] sm:$0xff]  ;;  %v7506_v4 = vsel %vm1100_vm0, %v923_v15, %v1049_v21  ;;  %v7509_v16 = vld [vmem:[%s5873_s25 + $0x4e8] sm:$0xff] }
 0x130   : > { %14638 = vst [vmem:[#allocation211_spill] sm:$0xff] %v7478_v44  ;;  %14640 = vst [vmem:[#allocation212_spill] sm:$0xff] %v7481_v12  ;;  %v1345_v12 = vsel %vm1100_vm0, %v1090_v9, %v964_v5  ;;  %v7499_v44 = vmul.f32 %v2132_v57, %v14643_v25  ;;  %v7502_v59 = vmul.f32 %v14645_v30, %v2132_v57  ;;  %v14647_v5 = vld [vmem:[#allocation74_spill] sm:$0xff]  ;;  %v7515_v42 = vld [vmem:[%s5873_s25 + $0xc8] sm:$0xff] }
 0x131   : > { %14642 = vst [vmem:[#allocation213_spill] sm:$0xff] %v7496_v0  ;;  %v7512_v9 = vmul.f32 %v2131_v39, %v14647_v5  ;;  %14649 = vst [vmem:[#allocation217_spill] sm:$0xff] %v7515_v42  ;;  %v2134_v36 = vsub.f32 %v7515_v42, %v1656_v13  ;;  %v4844_v23 = vld [vmem:[%s5873_s25 + $0x2a8] sm:$0xff]  ;;  %v1505_v57 = vsub.f32 %v7370_v22, %v1303_v26  ;;  %v7524_v30 = vld [vmem:[%s5873_s25 + $0x780] sm:$0xff]  ;;  %v7543_v42 = vadd.f32 1.0, %v1506_v18 }
 0x132   : > { %14644 = vst [vmem:[#allocation214_spill] sm:$0xff] %v7499_v44  ;;  %14646 = vst [vmem:[#allocation215_spill] sm:$0xff] %v7502_v59  ;;  %1775 = vrot.lane.b32.xlu1 %v4844_v23, %s5658_s29  ;;  %v4845_v44 = vld [vmem:[%s5873_s25 + $0x2a0] sm:$0xff]  ;;  %v7527_v25 = vld [vmem:[%s5873_s25 + $0x788] sm:$0xff]  ;;  %v924_v59 = vrot.slane %v7487_v50, 7  ;;  %v7538_v23 = vsub.f32 %v7407_v62, %v1219_v46  ;;  %v7541_v22 = vsub.f32 %v7404_v10, %v1345_v12  ;;  %v1662_v26 = vpop.permute.xlu0 %1661  ;;  %v966_v10 = vrot.slane %v7524_v30, 7 }
 0x133   : > { %14648 = vst [vmem:[#allocation216_spill] sm:$0xff] %v7512_v9  ;;  %1773 = vrot.lane.b32.xlu0 %v4845_v44, %s5658_s29  ;;  %v14650_v5 = vld [vmem:[#allocation75_spill] sm:$0xff]  ;;  %v7534_v0 = vld [vmem:[%s5873_s25 + $0xc0] sm:$0xff]  ;;  %v1664_v44 = vpop.permute.xlu1 %1663  ;;  %14655 = vst [vmem:[#allocation222_spill] sm:$0xff] %v7543_v42  ;;  %v7552_v62 = vsel %vm1100_vm0, %v1049_v21, %v923_v15  ;;  %v1346_v12 = vsel %vm1100_vm0, %v1091_v37, %v965_v11  ;;  %v1092_v46 = vrot.slane %v7527_v25, 7 }
 0x134   : > { %v7531_v9 = vmul.f32 %v14650_v5, %v2131_v39  ;;  %14652 = vst [vmem:[#allocation219_spill] sm:$0xff] %v7534_v0  ;;  %v2133_v13 = vsub.f32 %v7534_v0, %v1654_v51  ;;  %14653 = vst [vmem:[#allocation220_spill] sm:$0xff] %v7538_v23  ;;  %v1220_v39 = vsel %vm1100_vm0, %v965_v11, %v1091_v37  ;;  %v1050_v51 = vrot.slane %v7509_v16, 7  ;;  %v7559_v18 = vld [vmem:[%s5873_s25 + $0x4f0] sm:$0xff]  ;;  %v7568_v42 = vld [vmem:[%s5873_s25 + $0xd8] sm:$0xff] }
 0x135   : > { %14654 = vst [vmem:[#allocation221_spill] sm:$0xff] %v7541_v22  ;;  %v1508_v5 = vsub.f32 %v7425_v55, %v7506_v4  ;;  %v14658_v55 = vld [vmem:[#allocation78_spill] sm:$0xff]  ;;  %14660 = vst [vmem:[#allocation225_spill] sm:$0xff] %v7568_v42  ;;  %v2136_v15 = vsub.f32 %v7568_v42, %v1660_v34  ;;  %v4848_v21 = vld [vmem:[%s5873_s25 + $0x2b8] sm:$0xff]  ;;  %v7575_v37 = vadd.f32 1.0, %v1505_v57  ;;  %v1507_v57 = vsub.f32 %v7422_v17, %v7552_v62 }
 0x136   : > { %14651 = vst [vmem:[#allocation218_spill] sm:$0xff] %v7531_v9  ;;  %v14656_v9 = vld [vmem:[#allocation76_spill] sm:$0xff]  ;;  %v7565_v4 = vmul.f32 %v14658_v55, %v2134_v36  ;;  %1779 = vrot.lane.b32.xlu1 %v4848_v21, %s5658_s29  ;;  %v14664_v55 = vld [vmem:[#allocation79_spill] sm:$0xff]  ;;  %v7591_v21 = vsub.f32 %v7460_v56, %v1220_v39  ;;  %v1666_v42 = vpop.permute.xlu0 %1665  ;;  %v925_v56 = vrot.slane %v7559_v18, 7  ;;  %v1221_v17 = vsel %vm1100_vm0, %v966_v10, %v1092_v46 }
 0x137   : > { %v7562_v22 = vmul.f32 %v2134_v36, %v14656_v9  ;;  %v4849_v11 = vld [vmem:[%s5873_s25 + $0x2b0] sm:$0xff]  ;;  %14661 = vst [vmem:[#allocation226_spill] sm:$0xff] %v7575_v37  ;;  %v7578_v9 = vld [vmem:[%s5873_s25 + $0x4f8] sm:$0xff]  ;;  %v7608_v39 = vld [vmem:[%s5873_s25 + $0xe8] sm:$0xff] }
 0x138   : > { %14659 = vst [vmem:[#allocation224_spill] sm:$0xff] %v7565_v4  ;;  %1777 = vrot.lane.b32.xlu0 %v4849_v11, %s5658_s29  ;;  %v7584_v4 = vmul.f32 %v14664_v55, %v2133_v13  ;;  %v7587_v34 = vld [vmem:[%s5873_s25 + $0xd0] sm:$0xff]  ;;  %14667 = vst [vmem:[#allocation230_spill] sm:$0xff] %v7591_v21  ;;  %v1668_v11 = vpop.permute.xlu1 %1667  ;;  %v2138_v55 = vsub.f32 %v7608_v39, %v1664_v44  ;;  %v1051_v62 = vrot.slane %v7578_v9, 7  ;;  %v7625_v37 = vld [vmem:[%s5873_s25 + $0xe0] sm:$0xff] }
 0x139   : > { %14657 = vst [vmem:[#allocation223_spill] sm:$0xff] %v7562_v22  ;;  %v14662_v22 = vld [vmem:[#allocation77_spill] sm:$0xff]  ;;  %14666 = vst [vmem:[#allocation229_spill] sm:$0xff] %v7587_v34  ;;  %v2135_v23 = vsub.f32 %v7587_v34, %v1658_v35  ;;  %v2137_v34 = vsub.f32 %v7625_v37, %v1662_v26  ;;  %v4853_v44 = vld [vmem:[%s5873_s25 + $0x2c8] sm:$0xff] }
 0x13a   : > { %v7581_v36 = vmul.f32 %v2133_v13, %v14662_v22  ;;  %14665 = vst [vmem:[#allocation228_spill] sm:$0xff] %v7584_v4  ;;  %v7596_v22 = vsub.f32 %v7451_v38, %v1346_v12  ;;  %v1179_v13 = vsel %vm1100_vm0, %v924_v59, %v1050_v51  ;;  %v7604_v35 = vld [vmem:[%s5873_s25 + $0x798] sm:$0xff]  ;;  %14669 = vst [vmem:[#allocation232_spill] sm:$0xff] %v7608_v39  ;;  %v14670_v12 = vld [vmem:[#allocation80_spill] sm:$0xff]  ;;  %1783 = vrot.lane.b32.xlu1 %v4853_v44, %s5658_s29 }
 0x13b   : > { %v7615_v38 = vsel %vm1100_vm0, %v1050_v51, %v924_v59  ;;  %v7619_v4 = vmul.f32 %v2136_v15, %v14670_v12  ;;  %14674 = vst [vmem:[#allocation235_spill] sm:$0xff] %v7625_v37  ;;  %v4854_v39 = vld [vmem:[%s5873_s25 + $0x2c0] sm:$0xff]  ;;  %v7632_v59 = vadd.f32 1.0, %v1508_v5  ;;  %v1093_v26 = vrot.slane %v7604_v35, 7  ;;  %v14704_v37 = vld [vmem:[#allocation91_spill] sm:$0xff]  ;;  %14707 = vst [vmem:[#allocation258_spill] sm:$0xff] %v7746_v54 }
 0x13c   : > { %14663 = vst [vmem:[#allocation227_spill] sm:$0xff] %v7581_v36  ;;  %14668 = vst [vmem:[#allocation231_spill] sm:$0xff] %v7596_v22  ;;  %v7601_v36 = vld [vmem:[%s5873_s25 + $0x790] sm:$0xff]  ;;  %v14672_v22 = vld [vmem:[#allocation81_spill] sm:$0xff]  ;;  %1781 = vrot.lane.b32.xlu0 %v4854_v39, %s5658_s29  ;;  %v1670_v39 = vpop.permute.xlu0 %1669  ;;  %v7644_v5 = vsub.f32 %v7527_v25, %v1221_v17  ;;  %v7662_v17 = vsel %vm1100_vm0, %v925_v56, %v1051_v62 }
 0x13d   : > { %14671 = vst [vmem:[#allocation233_spill] sm:$0xff] %v7619_v4  ;;  %v7622_v21 = vmul.f32 %v14672_v22, %v2136_v15  ;;  %14675 = vst [vmem:[#allocation236_spill] sm:$0xff] %v7632_v59  ;;  %v14676_v51 = vld [vmem:[#allocation82_spill] sm:$0xff]  ;;  %v1510_v15 = vsub.f32 %v7509_v16, %v1179_v13  ;;  %v967_v4 = vrot.slane %v7601_v36, 7  ;;  %v14678_v22 = vld [vmem:[#allocation83_spill] sm:$0xff]  ;;  %v1509_v16 = vsub.f32 %v7487_v50, %v7615_v38 }
 0x13e   : > { %v7635_v12 = vmul.f32 %v2135_v23, %v14676_v51  ;;  %v7641_v44 = vmul.f32 %v14678_v22, %v2135_v23  ;;  %14680 = vst [vmem:[#allocation239_spill] sm:$0xff] %v7644_v5  ;;  %v14681_v13 = vld [vmem:[#allocation84_spill] sm:$0xff]  ;;  %v14683_v59 = vld [vmem:[#allocation86_spill] sm:$0xff]  ;;  %v7657_v22 = vld [vmem:[%s5873_s25 + $0xf8] sm:$0xff] }
 0x13f   : > { %14673 = vst [vmem:[#allocation234_spill] sm:$0xff] %v7622_v21  ;;  %v1672_v21 = vpop.permute.xlu1 %1671  ;;  %v7651_v51 = vmul.f32 %v2138_v55, %v14681_v13  ;;  %v7654_v23 = vmul.f32 %v14683_v59, %v2138_v55  ;;  %14685 = vst [vmem:[#allocation242_spill] sm:$0xff] %v7657_v22  ;;  %v2140_v25 = vsub.f32 %v7657_v22, %v1668_v11  ;;  %v14687_v50 = vld [vmem:[#allocation85_spill] sm:$0xff]  ;;  %v7677_v55 = vld [vmem:[%s5873_s25 + $0xf0] sm:$0xff]  ;;  %v7743_v3 = vadd.f32 1.0, %v1509_v16 }
 0x140   : > { %14677 = vst [vmem:[#allocation237_spill] sm:$0xff] %v7635_v12  ;;  %14679 = vst [vmem:[#allocation238_spill] sm:$0xff] %v7641_v44  ;;  %v1347_v12 = vsel %vm1100_vm0, %v1092_v46, %v966_v10  ;;  %v7665_v10 = vld [vmem:[%s5873_s25 + $0x500] sm:$0xff]  ;;  %v7668_v46 = vld [vmem:[%s5873_s25 + $0x508] sm:$0xff]  ;;  %v7671_v38 = vmul.f32 %v2137_v34, %v14687_v50  ;;  %v2139_v59 = vsub.f32 %v7677_v55, %v1666_v42  ;;  %v7684_v44 = vadd.f32 1.0, %v1507_v57 }
 0x141   : > { %14682 = vst [vmem:[#allocation240_spill] sm:$0xff] %v7651_v51  ;;  %14684 = vst [vmem:[#allocation241_spill] sm:$0xff] %v7654_v23  ;;  %v14689_v51 = vld [vmem:[#allocation87_spill] sm:$0xff]  ;;  %v4857_v23 = vld [vmem:[%s5873_s25 + $0x2d8] sm:$0xff]  ;;  %v1222_v42 = vsel %vm1100_vm0, %v967_v4, %v1093_v26 }
 0x142   : > { %14686 = vst [vmem:[#allocation243_spill] sm:$0xff] %v7665_v10  ;;  %14688 = vst [vmem:[#allocation244_spill] sm:$0xff] %v7671_v38  ;;  %v7674_v13 = vmul.f32 %v14689_v51, %v2137_v34  ;;  %1787 = vrot.lane.b32.xlu1 %v4857_v23, %s5658_s29  ;;  %v4858_v11 = vld [vmem:[%s5873_s25 + $0x2d0] sm:$0xff]  ;;  %v7687_v5 = vld [vmem:[%s5873_s25 + $0x7a0] sm:$0xff]  ;;  %v7692_v34 = vadd.f32 1.0, %v1510_v15  ;;  %v7695_v51 = vsub.f32 %v7524_v30, %v1347_v12  ;;  %v926_v30 = vrot.slane %v7665_v10, 7 }
 0x143   : > { %14691 = vst [vmem:[#allocation246_spill] sm:$0xff] %v7677_v55  ;;  %1785 = vrot.lane.b32.xlu0 %v4858_v11, %s5658_s29  ;;  %14692 = vst [vmem:[#allocation247_spill] sm:$0xff] %v7684_v44  ;;  %v7690_v38 = vld [vmem:[%s5873_s25 + $0x7a8] sm:$0xff]  ;;  %v7701_v23 = vsel %vm1100_vm0, %v1051_v62, %v925_v56  ;;  %v1676_v57 = vpop.permute.xlu1 %1675  ;;  %v1674_v11 = vpop.permute.xlu0 %1673  ;;  %v1348_v15 = vsel %vm1100_vm0, %v1093_v26, %v967_v4  ;;  %v1052_v12 = vrot.slane %v7668_v46, 7  ;;  %v7710_v50 = vld [vmem:[%s5873_s25 + $0x510] sm:$0xff] }
 0x144   : > { %14690 = vst [vmem:[#allocation245_spill] sm:$0xff] %v7674_v13  ;;  %14693 = vst [vmem:[#allocation248_spill] sm:$0xff] %v7692_v34  ;;  %v1512_v13 = vsub.f32 %v7578_v9, %v7662_v17  ;;  %v7716_v56 = vld [vmem:[%s5873_s25 + $0x108] sm:$0xff]  ;;  %v968_v9 = vrot.slane %v7687_v5, 7  ;;  %v1094_v17 = vrot.slane %v7690_v38, 7  ;;  %v7722_v4 = vld [vmem:[%s5873_s25 + $0x518] sm:$0xff]  ;;  %v7737_v0 = vmul.f32 %v14704_v37, %v2139_v59 }
 0x145   : > { %14694 = vst [vmem:[#allocation249_spill] sm:$0xff] %v7695_v51  ;;  %14695 = vst [vmem:[#allocation250_spill] sm:$0xff] %v7710_v50  ;;  %v14696_v51 = vld [vmem:[#allocation88_spill] sm:$0xff]  ;;  %v2142_v62 = vsub.f32 %v7716_v56, %v1672_v21  ;;  %v7728_v44 = vld [vmem:[%s5873_s25 + $0x7b8] sm:$0xff]  ;;  %v7757_v16 = vsel %vm1100_vm0, %v926_v30, %v1052_v12 }
 0x146   : > { %v7713_v34 = vmul.f32 %v2140_v25, %v14696_v51  ;;  %14698 = vst [vmem:[#allocation252_spill] sm:$0xff] %v7716_v56  ;;  %14699 = vst [vmem:[#allocation253_spill] sm:$0xff] %v7722_v4  ;;  %v7725_v26 = vld [vmem:[%s5873_s25 + $0x7b0] sm:$0xff]  ;;  %v14700_v22 = vld [vmem:[#allocation89_spill] sm:$0xff] }
 0x147   : > { %v7731_v55 = vmul.f32 %v14700_v22, %v2140_v25  ;;  %v14702_v51 = vld [vmem:[#allocation90_spill] sm:$0xff]  ;;  %14705 = vst [vmem:[#allocation256_spill] sm:$0xff] %v7737_v0  ;;  %v4860_v21 = vld [vmem:[%s5873_s25 + $0x2e8] sm:$0xff]  ;;  %14706 = vst [vmem:[#allocation257_spill] sm:$0xff] %v7743_v3  ;;  %v2141_v25 = vsub.f32 %v7746_v54, %v1670_v39  ;;  %v7750_v22 = vsub.f32 %v7604_v35, %v1222_v42  ;;  %v1678_v37 = vpop.permute.xlu0 %1677  ;;  %v1053_v39 = vrot.slane %v7722_v4, 7 }
 0x148   : > { %14697 = vst [vmem:[#allocation251_spill] sm:$0xff] %v7713_v34  ;;  %v7734_v34 = vmul.f32 %v2139_v59, %v14702_v51  ;;  %1791 = vrot.lane.b32.xlu1 %v4860_v21, %s5658_s29  ;;  %v4861_v56 = vld [vmem:[%s5873_s25 + $0x2e0] sm:$0xff]  ;;  %v927_v21 = vrot.slane %v7710_v50, 7  ;;  %14709 = vst [vmem:[#allocation260_spill] sm:$0xff] %v7757_v16  ;;  %v1095_v35 = vrot.slane %v7728_v44, 7  ;;  %v14710_v42 = vld [vmem:[#allocation92_spill] sm:$0xff] }
 0x149   : > { %14701 = vst [vmem:[#allocation254_spill] sm:$0xff] %v7731_v55  ;;  %1789 = vrot.lane.b32.xlu0 %v4861_v56, %s5658_s29  ;;  %14708 = vst [vmem:[#allocation259_spill] sm:$0xff] %v7750_v22  ;;  %v969_v56 = vrot.slane %v7725_v26, 7  ;;  %v7763_v0 = vmul.f32 %v2142_v62, %v14710_v42  ;;  %v7766_v51 = vld [vmem:[%s5873_s25 + $0x118] sm:$0xff]  ;;  %v7770_v55 = vsub.f32 %v7601_v36, %v1348_v15  ;;  %v7775_v3 = vld [vmem:[%s5873_s25 + $0x110] sm:$0xff] }
 0x14a   : > { %14703 = vst [vmem:[#allocation255_spill] sm:$0xff] %v7734_v34  ;;  %v1680_v34 = vpop.permute.xlu1 %1679  ;;  %14712 = vst [vmem:[#allocation262_spill] sm:$0xff] %v7766_v51  ;;  %v2144_v59 = vsub.f32 %v7766_v51, %v1676_v57  ;;  %v1223_v22 = vsel %vm1100_vm0, %v968_v9, %v1094_v17  ;;  %v2143_v54 = vsub.f32 %v7775_v3, %v1674_v11  ;;  %v7782_v57 = vadd.f32 1.0, %v1512_v13  ;;  %v14717_v42 = vld [vmem:[#allocation93_spill] sm:$0xff]  ;;  %v14719_v11 = vld [vmem:[#allocation94_spill] sm:$0xff] }
 0x14b   : > { %14711 = vst [vmem:[#allocation261_spill] sm:$0xff] %v7763_v0  ;;  %14713 = vst [vmem:[#allocation263_spill] sm:$0xff] %v7770_v55  ;;  %v4866_v0 = vld [vmem:[%s5873_s25 + $0x2f0] sm:$0xff]  ;;  %v7786_v36 = vsel %vm1100_vm0, %v1052_v12, %v926_v30  ;;  %v1349_v15 = vsel %vm1100_vm0, %v1094_v17, %v968_v9  ;;  %v7791_v55 = vmul.f32 %v14717_v42, %v2142_v62  ;;  %v7802_v13 = vld [vmem:[%s5873_s25 + $0x520] sm:$0xff]  ;;  %v1682_v17 = vpop.permute.xlu0 %1681 }
 0x14c   : > { %14714 = vst [vmem:[#allocation264_spill] sm:$0xff] %v7775_v3  ;;  %1795 = vrot.lane.b32.xlu1 %v4865_v53, %s5658_s29  ;;  %14715 = vst [vmem:[#allocation265_spill] sm:$0xff] %v7782_v57  ;;  %v7794_v51 = vmul.f32 %v2141_v25, %v14719_v11  ;;  %v14721_v53 = vld [vmem:[#allocation95_spill] sm:$0xff]  ;;  %v14754_v10 = vld [vmem:[#allocation106_spill] sm:$0xff] }
 0x14d   : > { %1793 = vrot.lane.b32.xlu0 %v4866_v0, %s5658_s29  ;;  %14716 = vst [vmem:[#allocation266_spill] sm:$0xff] %v7786_v36  ;;  %14718 = vst [vmem:[#allocation267_spill] sm:$0xff] %v7791_v55  ;;  %v7797_v3 = vmul.f32 %v14721_v53, %v2141_v25  ;;  %v7805_v30 = vld [vmem:[%s5873_s25 + $0x528] sm:$0xff]  ;;  %v7812_v25 = vsub.f32 %v7690_v38, %v1223_v22  ;;  %v1224_v0 = vsel %vm1100_vm0, %v969_v56, %v1095_v35  ;;  %v14726_v53 = vld [vmem:[#allocation96_spill] sm:$0xff] }
 0x14e   : > { %14720 = vst [vmem:[#allocation268_spill] sm:$0xff] %v7794_v51  ;;  %v7808_v12 = vld [vmem:[%s5873_s25 + $0x128] sm:$0xff]  ;;  %v1684_v9 = vpop.permute.xlu1 %1683  ;;  %v7816_v51 = vsel %vm1100_vm0, %v927_v21, %v1053_v39  ;;  %v7821_v42 = vmul.f32 %v2144_v59, %v14726_v53  ;;  %v7830_v22 = vsub.f32 %v7687_v5, %v1349_v15  ;;  %v7833_v38 = vld [vmem:[%s5873_s25 + $0x7c0] sm:$0xff]  ;;  %v928_v5 = vrot.slane %v7802_v13, 7  ;;  %v4873_v36 = vld [vmem:[%s5873_s25 + $0x318] sm:$0xff] }
 0x14f   : > { %14722 = vst [vmem:[#allocation269_spill] sm:$0xff] %v7797_v3  ;;  %14723 = vst [vmem:[#allocation270_spill] sm:$0xff] %v7808_v12  ;;  %v2146_v62 = vsub.f32 %v7808_v12, %v1680_v34  ;;  %v7824_v3 = vld [vmem:[%s5873_s25 + $0x120] sm:$0xff]  ;;  %v585_v55 = vld [vmem:[%s5873_s25 + $0x7c8] sm:$0xff]  ;;  %v1054_v15 = vrot.slane %v7805_v30, 7 }
 0x150   : > { %14724 = vst [vmem:[#allocation271_spill] sm:$0xff] %v7812_v25  ;;  %14725 = vst [vmem:[#allocation272_spill] sm:$0xff] %v7816_v51  ;;  %v2145_v34 = vsub.f32 %v7824_v3, %v1678_v37  ;;  %v14730_v25 = vld [vmem:[#allocation97_spill] sm:$0xff]  ;;  %v14732_v12 = vld [vmem:[#allocation98_spill] sm:$0xff] }
 0x151   : > { %14727 = vst [vmem:[#allocation273_spill] sm:$0xff] %v7821_v42  ;;  %14728 = vst [vmem:[#allocation274_spill] sm:$0xff] %v7824_v3  ;;  %v7837_v57 = vmul.f32 %v14730_v25, %v2144_v59  ;;  %v7840_v53 = vmul.f32 %v2143_v54, %v14732_v12  ;;  %v4869_v42 = vld [vmem:[%s5873_s25 + $0x308] sm:$0xff]  ;;  %v4870_v37 = vld [vmem:[%s5873_s25 + $0x300] sm:$0xff]  ;;  %v1350_v59 = vsel %vm1100_vm0, %v1095_v35, %v969_v56 }
 0x152   : > { %14729 = vst [vmem:[#allocation275_spill] sm:$0xff] %v7830_v22  ;;  %1799 = vrot.lane.b32.xlu1 %v4869_v42, %s5658_s29  ;;  %1797 = vrot.lane.b32.xlu0 %v4870_v37, %s5658_s29  ;;  %v14734_v11 = vld [vmem:[#allocation99_spill] sm:$0xff]  ;;  %v7858_v42 = vsel %vm1100_vm0, %v1053_v39, %v927_v21  ;;  %v7861_v37 = vld [vmem:[%s5873_s25 + $0x530] sm:$0xff]  ;;  %v587_v21 = vld [vmem:[%s5873_s25 + $0x7d8] sm:$0xff] }
 0x153   : > { %14731 = vst [vmem:[#allocation276_spill] sm:$0xff] %v7837_v57  ;;  %14733 = vst [vmem:[#allocation277_spill] sm:$0xff] %v7840_v53  ;;  %v7849_v22 = vmul.f32 %v14734_v11, %v2143_v54  ;;  %v7854_v53 = vsub.f32 %v7728_v44, %v1224_v0  ;;  %v14739_v25 = vld [vmem:[#allocation100_spill] sm:$0xff]  ;;  %v1688_v54 = vpop.permute.xlu1 %1687  ;;  %v1686_v11 = vpop.permute.xlu0 %1685  ;;  %v970_v44 = vrot.slane %v7833_v38, 7  ;;  %v1096_v0 = vrot.slane %v585_v55, 7  ;;  %v14741_v39 = vld [vmem:[#allocation101_spill] sm:$0xff] }
 0x154   : > { %14737 = vst [vmem:[#allocation280_spill] sm:$0xff] %v7858_v42  ;;  %14738 = vst [vmem:[#allocation281_spill] sm:$0xff] %v7861_v37  ;;  %v7864_v12 = vmul.f32 %v2146_v62, %v14739_v25  ;;  %v7873_v57 = vld [vmem:[%s5873_s25 + $0x7d0] sm:$0xff]  ;;  %v7883_v25 = vld [vmem:[%s5873_s25 + $0x138] sm:$0xff] }
 0x155   : > { %14735 = vst [vmem:[#allocation278_spill] sm:$0xff] %v7849_v22  ;;  %14736 = vst [vmem:[#allocation279_spill] sm:$0xff] %v7854_v53  ;;  %v7870_v22 = vld [vmem:[%s5873_s25 + $0x538] sm:$0xff]  ;;  %v7877_v53 = vmul.f32 %v14741_v39, %v2146_v62  ;;  %v2148_v51 = vsub.f32 %v7883_v25, %v1684_v9  ;;  %v7887_v56 = vld [vmem:[%s5873_s25 + $0x130] sm:$0xff]  ;;  %v7901_v39 = vsel %vm1100_vm0, %v928_v5, %v1054_v15  ;;  %v929_v9 = vrot.slane %v7861_v37, 7 }
 0x156   : > { %14740 = vst [vmem:[#allocation282_spill] sm:$0xff] %v7864_v12  ;;  %v7880_v12 = vmul.f32 %v2145_v34, %v6702_v43  ;;  %14744 = vst [vmem:[#allocation285_spill] sm:$0xff] %v7883_v25  ;;  %v2147_v35 = vsub.f32 %v7887_v56, %v1682_v17  ;;  %v14746_v4 = vld [vmem:[#allocation103_spill] sm:$0xff]  ;;  %1803 = vrot.lane.b32.xlu1 %v4873_v36, %s5658_s29  ;;  %v4874_v62 = vld [vmem:[%s5873_s25 + $0x310] sm:$0xff]  ;;  %v7906_v17 = vsel %vm1100_vm0, %v1054_v15, %v928_v5 }
 0x157   : > { %14742 = vst [vmem:[#allocation283_spill] sm:$0xff] %v7877_v53  ;;  %14745 = vst [vmem:[#allocation286_spill] sm:$0xff] %v7887_v56  ;;  %v7891_v3 = vmul.f32 %v14746_v4, %v2145_v34  ;;  %1801 = vrot.lane.b32.xlu0 %v4874_v62, %s5658_s29  ;;  %v971_v34 = vrot.slane %v7873_v57, 7  ;;  %v1055_v36 = vrot.slane %v7870_v22, 7  ;;  %v1097_v62 = vrot.slane %v587_v21, 7  ;;  %v7911_v4 = vld [vmem:[%s5873_s25 + $0x148] sm:$0xff]  ;;  %v1690_v43 = vpop.permute.xlu0 %1689 }
 0x158   : > { %14743 = vst [vmem:[#allocation284_spill] sm:$0xff] %v7880_v12  ;;  %14748 = vst [vmem:[#allocation288_spill] sm:$0xff] %v7911_v4  ;;  %v2150_v12 = vsub.f32 %v7911_v4, %v1688_v54  ;;  %v7915_v53 = vsub.f32 %v7725_v26, %v1350_v59  ;;  %v1225_v5 = vsel %vm1100_vm0, %v970_v44, %v1096_v0  ;;  %v14750_v42 = vld [vmem:[#allocation104_spill] sm:$0xff]  ;;  %v14752_v25 = vld [vmem:[#allocation105_spill] sm:$0xff] }
 0x159   : > { %14747 = vst [vmem:[#allocation287_spill] sm:$0xff] %v7891_v3  ;;  %v1692_v3 = vpop.permute.xlu1 %1691  ;;  %v1351_v15 = vsel %vm1100_vm0, %v1096_v0, %v970_v44  ;;  %v7922_v50 = vmul.f32 %v2148_v51, %v14750_v42  ;;  %v7925_v56 = vmul.f32 %v14752_v25, %v2148_v51  ;;  %v7928_v16 = vmul.f32 %v2147_v35, %v14754_v10  ;;  %v7931_v54 = vld [vmem:[%s5873_s25 + $0x140] sm:$0xff]  ;;  %v14756_v59 = vld [vmem:[#allocation107_spill] sm:$0xff]  ;;  %v14767_v25 = vld [vmem:[#allocation109_spill] sm:$0xff] }
 0x15a   : > { %14749 = vst [vmem:[#allocation289_spill] sm:$0xff] %v7915_v53  ;;  %v2149_v26 = vsub.f32 %v7931_v54, %v1686_v11  ;;  %v7935_v53 = vmul.f32 %v14756_v59, %v2147_v35  ;;  %v4877_v4 = vld [vmem:[%s5873_s25 + $0x328] sm:$0xff]  ;;  %v4878_v44 = vld [vmem:[%s5873_s25 + $0x320] sm:$0xff]  ;;  %v14758_v51 = vsub.f32 %v7559_v18, %v7701_v23  ;;  %v7950_v35 = vsub.f32 %v585_v55, %v1225_v5  ;;  %v14762_v23 = vld [vmem:[#allocation108_spill] sm:$0xff] }
 0x15b   : > { %14751 = vst [vmem:[#allocation290_spill] sm:$0xff] %v7922_v50  ;;  %14753 = vst [vmem:[#allocation291_spill] sm:$0xff] %v7925_v56  ;;  %1807 = vrot.lane.b32.xlu1 %v4877_v4, %s5658_s29  ;;  %1805 = vrot.lane.b32.xlu0 %v4878_v44, %s5658_s29  ;;  %v7953_v4 = vsub.f32 %v7833_v38, %v1351_v15  ;;  %v7957_v44 = vsel %vm1100_vm0, %v929_v9, %v1055_v36  ;;  %v1694_v11 = vpop.permute.xlu0 %1693  ;;  %v14765_v59 = vld [vmem:[#allocation110_spill] sm:$0xff] }
 0x15c   : > { %14755 = vst [vmem:[#allocation292_spill] sm:$0xff] %v7928_v16  ;;  %14757 = vst [vmem:[#allocation293_spill] sm:$0xff] %v7935_v53  ;;  %v7944_v0 = vadd.f32 1.0, %v14758_v51  ;;  %v1226_v18 = vsel %vm1100_vm0, %v971_v34, %v1097_v62  ;;  %v7962_v51 = vmul.f32 %v2150_v12, %v14762_v23  ;;  %v7965_v16 = vld [vmem:[%s5873_s25 + $0x158] sm:$0xff]  ;;  %v7970_v38 = vsel %vm1100_vm0, %v1055_v36, %v929_v9 }
 0x15d   : > { %14760 = vst [vmem:[#allocation295_spill] sm:$0xff] %v7950_v35  ;;  %14761 = vst [vmem:[#allocation296_spill] sm:$0xff] %v7953_v4  ;;  %v2152_v55 = vsub.f32 %v7965_v16, %v1692_v3  ;;  %v1696_v5 = vpop.permute.xlu1 %1695  ;;  %v1352_v15 = vsel %vm1100_vm0, %v1097_v62, %v971_v34  ;;  %v7975_v50 = vmul.f32 %v14765_v59, %v2150_v12  ;;  %v7984_v3 = vld [vmem:[%s5873_s25 + $0x150] sm:$0xff]  ;;  %v7988_v9 = vld [vmem:[%s5880_s12 + $0x28] sm:$0xff] }
 0x15e   : > { %14759 = vst [vmem:[#allocation294_spill] sm:$0xff] %v7944_v0  ;;  %14763 = vst [vmem:[#allocation297_spill] sm:$0xff] %v7962_v51  ;;  %v7978_v23 = vmul.f32 %v2149_v26, %v14767_v25  ;;  %v14769_v51 = vld [vmem:[#allocation111_spill] sm:$0xff]  ;;  %v2151_v10 = vsub.f32 %v7984_v3, %v1690_v43  ;;  %v4881_v36 = vld [vmem:[%s5873_s25 + $0x338] sm:$0xff]  ;;  %v7996_v62 = vsub.f32 %v587_v21, %v1226_v18  ;;  %v972_v43 = vrot.slane %v6961_v31, 7 }
 0x15f   : > { %14764 = vst [vmem:[#allocation298_spill] sm:$0xff] %v7970_v38  ;;  %14766 = vst [vmem:[#allocation299_spill] sm:$0xff] %v7975_v50  ;;  %v7981_v53 = vmul.f32 %v14769_v51, %v2149_v26  ;;  %1811 = vrot.lane.b32.xlu1 %v4881_v36, %s5658_s29  ;;  %v4882_v12 = vld [vmem:[%s5873_s25 + $0x330] sm:$0xff]  ;;  %v846_v26 = vrot.slane %v6902_v28, 7  ;;  %v8006_v36 = vsub.f32 %v7873_v57, %v1352_v15  ;;  %v8014_v28 = vld [vmem:[%s5873_s25 + $0x168] sm:$0xff]  ;;  %v1698_v15 = vpop.permute.xlu0 %1697 }
 0x160   : > { %14768 = vst [vmem:[#allocation300_spill] sm:$0xff] %v7978_v23  ;;  %14771 = vst [vmem:[#allocation302_spill] sm:$0xff] %v7988_v9  ;;  %1809 = vrot.lane.b32.xlu0 %v4882_v12, %s5658_s29  ;;  %v8001_v23 = vld [vmem:[%s5880_s12 + $0x20] sm:$0xff]  ;;  %v973_v12 = vrot.slane %v6947_v49, 7  ;;  %v2154_v31 = vsub.f32 %v8014_v28, %v1696_v5  ;;  %v8022_v25 = vld [vmem:[%s5873_s25 + $0x548] sm:$0xff] }
 0x161   : > { %14770 = vst [vmem:[#allocation301_spill] sm:$0xff] %v7981_v53  ;;  %14772 = vst [vmem:[#allocation303_spill] sm:$0xff] %v7996_v62  ;;  %v4883_v59 = vld [vmem:[%s5873_s25 + $0x10] sm:$0xff]  ;;  %v8018_v53 = vld [vmem:[%s5873_s25 + $0x160] sm:$0xff]  ;;  %v1700_v57 = vpop.permute.xlu1 %1699 }
 0x162   : > { %14773 = vst [vmem:[#allocation304_spill] sm:$0xff] %v8001_v23  ;;  %14774 = vst [vmem:[#allocation305_spill] sm:$0xff] %v8006_v36  ;;  %v847_v21 = vrot.slane %v4883_v59, 7  ;;  %v14775_v18 = vld [vmem:[#allocation112_spill] sm:$0xff]  ;;  %v2153_v51 = vsub.f32 %v8018_v53, %v1694_v11  ;;  %v14778_v50 = vld [vmem:[#allocation113_spill] sm:$0xff] }
 0x163   : > { %v8011_v34 = vmul.f32 %v2152_v55, %v14775_v18  ;;  %14777 = vst [vmem:[#allocation307_spill] sm:$0xff] %v8022_v25  ;;  %v14780_v18 = vld [vmem:[#allocation114_spill] sm:$0xff]  ;;  %v14782_v5 = vld [vmem:[#allocation115_spill] sm:$0xff]  ;;  %v1702_v25 = vpop.permute.xlu0 %1701 }
 0x164   : > { %v8030_v42 = vmul.f32 %v2151_v10, %v14780_v18  ;;  %v8033_v56 = vmul.f32 %v14782_v5, %v2151_v10  ;;  %v8036_v11 = vld [vmem:[%s5873_s25 + $0x540] sm:$0xff]  ;;  %v4888_v62 = vld [vmem:[%s5873_s25 + $0x348] sm:$0xff]  ;;  %v848_v10 = vrot.slane %v7029_v60, 7  ;;  %v974_v5 = vrot.slane %v7015_v6, 7 }
 0x165   : > { %14776 = vst [vmem:[#allocation306_spill] sm:$0xff] %v8011_v34  ;;  %v8027_v34 = vmul.f32 %v14778_v50, %v2152_v55  ;;  %14784 = vst [vmem:[#allocation311_spill] sm:$0xff] %v8036_v11  ;;  %1815 = vrot.lane.b32.xlu1 %v4888_v62, %s5658_s29  ;;  %v4889_v49 = vld [vmem:[%s5873_s25 + $0x340] sm:$0xff]  ;;  %v1101_v55 = vsel %vm1100_vm0, %v846_v26, %v972_v43  ;;  %v8051_v50 = vld [vmem:[%s5873_s25 + $0x178] sm:$0xff]  ;;  %v1102_v18 = vsel %vm1100_vm0, %v847_v21, %v973_v12 }
 0x166   : > { %14781 = vst [vmem:[#allocation309_spill] sm:$0xff] %v8030_v42  ;;  %14783 = vst [vmem:[#allocation310_spill] sm:$0xff] %v8033_v56  ;;  %1813 = vrot.lane.b32.xlu0 %v4889_v49, %s5658_s29  ;;  %v1227_v42 = vsel %vm1100_vm0, %v972_v43, %v846_v26  ;;  %v2156_v36 = vsub.f32 %v8051_v50, %v1700_v57  ;;  %v8055_v62 = vld [vmem:[%s5873_s25 + $0x558] sm:$0xff]  ;;  %v8062_v26 = vld [vmem:[%s5873_s25 + $0x550] sm:$0xff]  ;;  %v1704_v49 = vpop.permute.xlu1 %1703  ;;  %v1228_v37 = vsel %vm1100_vm0, %v973_v12, %v847_v21 }
 0x167   : > { %14779 = vst [vmem:[#allocation308_spill] sm:$0xff] %v8027_v34  ;;  %14785 = vst [vmem:[#allocation312_spill] sm:$0xff] %v8055_v62  ;;  %v14787_v56 = vld [vmem:[#allocation116_spill] sm:$0xff]  ;;  %v14789_v57 = vld [vmem:[#allocation117_spill] sm:$0xff]  ;;  %v1229_v62 = vsel %vm1100_vm0, %v974_v5, %v848_v10 }
 0x168   : > { %14786 = vst [vmem:[#allocation313_spill] sm:$0xff] %v8062_v26  ;;  %v8067_v34 = vmul.f32 %v2154_v31, %v14787_v56  ;;  %v8070_v23 = vmul.f32 %v14789_v57, %v2154_v31  ;;  %v14791_v9 = vld [vmem:[#allocation118_spill] sm:$0xff]  ;;  %v14793_v4 = vld [vmem:[#allocation119_spill] sm:$0xff]  ;;  %v8081_v43 = vld [vmem:[%s5873_s25 + $0x170] sm:$0xff] }
 0x169   : > { %v8073_v38 = vmul.f32 %v2153_v51, %v14791_v9  ;;  %v8078_v35 = vmul.f32 %v14793_v4, %v2153_v51  ;;  %v2155_v56 = vsub.f32 %v8081_v43, %v1698_v15  ;;  %v4895_v57 = vld [vmem:[%s5873_s25] sm:$0xff]  ;;  %v4897_v12 = vld [vmem:[%s5873_s25 + $0x350] sm:$0xff]  ;;  %v4898_v51 = vld [vmem:[%s5873_s25 + $0x18] sm:$0xff]  ;;  %v1103_v15 = vsel %vm1100_vm0, %v848_v10, %v974_v5 }
 0x16a   : > { %14788 = vst [vmem:[#allocation314_spill] sm:$0xff] %v8067_v34  ;;  %14790 = vst [vmem:[#allocation315_spill] sm:$0xff] %v8070_v23  ;;  %v4894_v34 = vld [vmem:[%s5873_s25 + $0x8] sm:$0xff]  ;;  %v8088_v9 = vsub.f32 %v4895_v57, %v1227_v42  ;;  %1817 = vrot.lane.b32.xlu0 %v4897_v12, %s5658_s29  ;;  %v8095_v21 = vsub.f32 %v4898_v51, %v1102_v18  ;;  %v14798_v42 = vld [vmem:[#allocation120_spill] sm:$0xff]  ;;  %v8104_v4 = vsub.f32 %v4883_v59, %v1228_v37  ;;  %v1708_v11 = vpop.permute.xlu1 %1707  ;;  %v1706_v12 = vpop.permute.xlu0 %1705 }
 0x16b   : > { %14792 = vst [vmem:[#allocation316_spill] sm:$0xff] %v8073_v38  ;;  %14794 = vst [vmem:[#allocation317_spill] sm:$0xff] %v8078_v35  ;;  %v8085_v31 = vsub.f32 %v4894_v34, %v1101_v55  ;;  %v4896_v38 = vld [vmem:[%s5873_s25 + $0x358] sm:$0xff]  ;;  %v849_v34 = vrot.slane %v7058_v29, 7  ;;  %v975_v55 = vrot.slane %v7044_v48, 7  ;;  %v8102_v57 = vmul.f32 %v2156_v36, %v14798_v42  ;;  %v8112_v18 = vld [vmem:[%s5873_s25 + $0x560] sm:$0xff] }
 0x16c   : > { %14796 = vst [vmem:[#allocation319_spill] sm:$0xff] %v8088_v9  ;;  %1819 = vrot.lane.b32.xlu1 %v4896_v38, %s5658_s29  ;;  %14797 = vst [vmem:[#allocation320_spill] sm:$0xff] %v8095_v21  ;;  %v8107_v38 = vld [vmem:[%s5873_s25 + $0x568] sm:$0xff]  ;;  %v14803_v35 = vld [vmem:[#allocation122_spill] sm:$0xff]  ;;  %v850_v10 = vrot.slane %v7118_v47, 7 }
 0x16d   : > { %14795 = vst [vmem:[#allocation318_spill] sm:$0xff] %v8085_v31  ;;  %14799 = vst [vmem:[#allocation321_spill] sm:$0xff] %v8102_v57  ;;  %v8117_v23 = vmul.f32 %v14803_v35, %v2156_v36  ;;  %v8120_v42 = vld [vmem:[%s5873_s25 + $0x188] sm:$0xff]  ;;  %v8124_v59 = vld [vmem:[%s5873_s25 + $0x180] sm:$0xff]  ;;  %v8136_v35 = vsub.f32 %v7015_v6, %v1103_v15  ;;  %v1230_v6 = vsel %vm1100_vm0, %v975_v55, %v849_v34  ;;  %v976_v15 = vrot.slane %v7103_v7, 7 }
 0x16e   : > { %14800 = vst [vmem:[#allocation322_spill] sm:$0xff] %v8104_v4  ;;  %14801 = vst [vmem:[#allocation323_spill] sm:$0xff] %v8107_v38  ;;  %v2158_v37 = vsub.f32 %v8120_v42, %v1704_v49  ;;  %v2157_v57 = vsub.f32 %v8124_v59, %v1702_v25  ;;  %v14805_v4 = vld [vmem:[#allocation121_spill] sm:$0xff]  ;;  %v14807_v26 = vld [vmem:[#allocation123_spill] sm:$0xff] }
 0x16f   : > { %14802 = vst [vmem:[#allocation324_spill] sm:$0xff] %v8112_v18  ;;  %14804 = vst [vmem:[#allocation325_spill] sm:$0xff] %v8117_v23  ;;  %v8130_v51 = vmul.f32 %v2155_v56, %v14805_v4  ;;  %v8133_v36 = vmul.f32 %v14807_v26, %v2155_v56  ;;  %v8139_v49 = vld [vmem:[%s5873_s25 + $0x578] sm:$0xff]  ;;  %v4904_v23 = vld [vmem:[%s5873_s25 + $0x368] sm:$0xff]  ;;  %v1104_v56 = vsel %vm1100_vm0, %v849_v34, %v975_v55  ;;  %v1710_v18 = vpop.permute.xlu0 %1709 }
 0x170   : > { %14809 = vst [vmem:[#allocation328_spill] sm:$0xff] %v8136_v35  ;;  %14810 = vst [vmem:[#allocation329_spill] sm:$0xff] %v8139_v49  ;;  %1823 = vrot.lane.b32.xlu1 %v4904_v23, %s5658_s29  ;;  %v4905_v5 = vld [vmem:[%s5873_s25 + $0x360] sm:$0xff]  ;;  %v8158_v23 = vsub.f32 %v7029_v60, %v1229_v62  ;;  %v8161_v26 = vld [vmem:[%s5873_s25 + $0x570] sm:$0xff]  ;;  %v8184_v21 = vmul.f32 %v6918_v61, %v2157_v57  ;;  %v8187_v34 = vsub.f32 %v7044_v48, %v1104_v56 }
 0x171   : > { %14806 = vst [vmem:[#allocation326_spill] sm:$0xff] %v8130_v51  ;;  %14808 = vst [vmem:[#allocation327_spill] sm:$0xff] %v8133_v36  ;;  %1821 = vrot.lane.b32.xlu0 %v4905_v5, %s5658_s29  ;;  %v8154_v51 = vld [vmem:[%s5873_s25 + $0x198] sm:$0xff]  ;;  %v8166_v36 = vld [vmem:[%s5873_s25 + $0x588] sm:$0xff]  ;;  %v1712_v5 = vpop.permute.xlu1 %1711  ;;  %v1105_v48 = vsel %vm1100_vm0, %v850_v10, %v976_v15  ;;  %v977_v56 = vrot.slane %v7153_v20, 7  ;;  %v978_v61 = vrot.slane %v7210_v58, 7 }
 0x172   : > { %v2160_v25 = vsub.f32 %v8154_v51, %v1708_v11  ;;  %14811 = vst [vmem:[#allocation330_spill] sm:$0xff] %v8158_v23  ;;  %14812 = vst [vmem:[#allocation331_spill] sm:$0xff] %v8161_v26  ;;  %v14814_v55 = vld [vmem:[#allocation124_spill] sm:$0xff]  ;;  %v14816_v11 = vld [vmem:[#allocation125_spill] sm:$0xff] }
 0x173   : > { %14813 = vst [vmem:[#allocation332_spill] sm:$0xff] %v8166_v36  ;;  %v8171_v4 = vmul.f32 %v2158_v37, %v14814_v55  ;;  %v8174_v38 = vmul.f32 %v14816_v11, %v2158_v37  ;;  %v14818_v60 = vld [vmem:[#allocation126_spill] sm:$0xff]  ;;  %v8180_v23 = vld [vmem:[%s5873_s25 + $0x190] sm:$0xff]  ;;  %14820 = vst [vmem:[#allocation336_spill] sm:$0xff] %v8184_v21 }
 0x174   : > { %v8177_v62 = vmul.f32 %v2157_v57, %v14818_v60  ;;  %v2159_v35 = vsub.f32 %v8180_v23, %v1706_v12  ;;  %14821 = vst [vmem:[#allocation337_spill] sm:$0xff] %v8187_v34  ;;  %v8193_v37 = vld [vmem:[%s5873_s25 + $0x580] sm:$0xff]  ;;  %v4911_v11 = vld [vmem:[%s5873_s25 + $0x378] sm:$0xff]  ;;  %v4912_v12 = vld [vmem:[%s5873_s25 + $0x370] sm:$0xff]  ;;  %v851_v57 = vrot.slane %v7170_v27, 7 }
 0x175   : > { %14815 = vst [vmem:[#allocation333_spill] sm:$0xff] %v8171_v4  ;;  %14817 = vst [vmem:[#allocation334_spill] sm:$0xff] %v8174_v38  ;;  %v8190_v4 = vsub.f32 %v7058_v29, %v1230_v6  ;;  %1827 = vrot.lane.b32.xlu1 %v4911_v11, %s5658_s29  ;;  %1825 = vrot.lane.b32.xlu0 %v4912_v12, %s5658_s29  ;;  %v1231_v29 = vsel %vm1100_vm0, %v976_v15, %v850_v10  ;;  %v852_v12 = vrot.slane %v7228_v45, 7  ;;  %v8228_v21 = vld [vmem:[%s5873_s25 + $0x1a0] sm:$0xff]  ;;  %v1716_v60 = vpop.permute.xlu1 %1715  ;;  %v1714_v38 = vpop.permute.xlu0 %1713 }
 0x176   : > { %14819 = vst [vmem:[#allocation335_spill] sm:$0xff] %v8177_v62  ;;  %14823 = vst [vmem:[#allocation339_spill] sm:$0xff] %v8193_v37  ;;  %v8208_v6 = vmul.f32 %v2160_v25, %v6921_v32  ;;  %v8211_v62 = vld [vmem:[%s5873_s25 + $0x598] sm:$0xff]  ;;  %v8218_v10 = vmul.f32 %v6930_v40, %v2160_v25  ;;  %v8221_v15 = vmul.f32 %v2159_v35, %v6924_v33  ;;  %v8224_v32 = vld [vmem:[%s5873_s25 + $0x1a8] sm:$0xff] }
 0x177   : > { %14822 = vst [vmem:[#allocation338_spill] sm:$0xff] %v8190_v4  ;;  %14825 = vst [vmem:[#allocation341_spill] sm:$0xff] %v8211_v62  ;;  %v2161_v11 = vsub.f32 %v8228_v21, %v1710_v18  ;;  %v8232_v55 = vmul.f32 %v6966_v8, %v2159_v35  ;;  %v8235_v25 = vsub.f32 %v7103_v7, %v1105_v48  ;;  %v8241_v40 = vld [vmem:[%s5873_s25 + $0x590] sm:$0xff]  ;;  %v4917_v18 = vld [vmem:[%s5873_s25 + $0x388] sm:$0xff]  ;;  %v979_v48 = vrot.slane %v7249_v63, 7 }
 0x178   : > { %14824 = vst [vmem:[#allocation340_spill] sm:$0xff] %v8208_v6  ;;  %14826 = vst [vmem:[#allocation342_spill] sm:$0xff] %v8218_v10  ;;  %v2162_v6 = vsub.f32 %v8224_v32, %v1712_v5  ;;  %v4918_v33 = vld [vmem:[%s5873_s25 + $0x380] sm:$0xff]  ;;  %v1106_v35 = vsel %vm1100_vm0, %v851_v57, %v977_v56  ;;  %v1232_v7 = vsel %vm1100_vm0, %v977_v56, %v851_v57  ;;  %v8260_v8 = vld [vmem:[%s5873_s25 + $0x5a8] sm:$0xff] }
 0x179   : > { %14827 = vst [vmem:[#allocation343_spill] sm:$0xff] %v8221_v15  ;;  %14828 = vst [vmem:[#allocation344_spill] sm:$0xff] %v8232_v55  ;;  %v8238_v15 = vsub.f32 %v7118_v47, %v1231_v29  ;;  %1831 = vrot.lane.b32.xlu1 %v4917_v18, %s5658_s29  ;;  %1829 = vrot.lane.b32.xlu0 %v4918_v33, %s5658_s29  ;;  %v853_v47 = vrot.slane %v7263_v41, 7  ;;  %v8256_v29 = vld [vmem:[%s5873_s25 + $0x1b8] sm:$0xff]  ;;  %v1107_v18 = vsel %vm1100_vm0, %v852_v12, %v978_v61  ;;  %v8267_v57 = vld [vmem:[%s5873_s25 + $0x5a0] sm:$0xff]  ;;  %v1720_v49 = vpop.permute.xlu1 %1719  ;;  %v1718_v33 = vpop.permute.xlu0 %1717 }
 0x17a   : > { %14829 = vst [vmem:[#allocation345_spill] sm:$0xff] %v8235_v25  ;;  %14831 = vst [vmem:[#allocation347_spill] sm:$0xff] %v8241_v40  ;;  %v2164_v5 = vsub.f32 %v8256_v29, %v1716_v60  ;;  %v14834_v55 = vld [vmem:[#allocation132_spill] sm:$0xff]  ;;  %v14836_v37 = vld [vmem:[#allocation137_spill] sm:$0xff]  ;;  %v1233_v62 = vsel %vm1100_vm0, %v978_v61, %v852_v12  ;;  %v980_v12 = vrot.slane %v7307_v24, 7 }
 0x17b   : > { %14830 = vst [vmem:[#allocation346_spill] sm:$0xff] %v8238_v15  ;;  %14832 = vst [vmem:[#allocation348_spill] sm:$0xff] %v8260_v8  ;;  %v8272_v10 = vmul.f32 %v2162_v6, %v14834_v55  ;;  %v8275_v60 = vmul.f32 %v14836_v37, %v2162_v6  ;;  %v14838_v36 = vld [vmem:[#allocation138_spill] sm:$0xff]  ;;  %v14840_v15 = vld [vmem:[#allocation143_spill] sm:$0xff]  ;;  %v8290_v6 = vsub.f32 %v7153_v20, %v1106_v35  ;;  %v854_v20 = vrot.slane %v7323_v2, 7 }
 0x17c   : > { %14833 = vst [vmem:[#allocation349_spill] sm:$0xff] %v8267_v57  ;;  %v8278_v26 = vmul.f32 %v2161_v11, %v14838_v36  ;;  %v8283_v25 = vmul.f32 %v14840_v15, %v2161_v11  ;;  %v8286_v4 = vld [vmem:[%s5873_s25 + $0x1b0] sm:$0xff]  ;;  %v8300_v11 = vsub.f32 %v7210_v58, %v1107_v18  ;;  %v8323_v15 = vmul.f32 %v7063_v52, %v2164_v5  ;;  %v8372_v36 = vld [vmem:[%s5873_s25 + $0x5d8] sm:$0xff]  ;;  %v14866_v8 = vld [vmem:[#allocation163_spill] sm:$0xff] }
 0x17d   : > { %14835 = vst [vmem:[#allocation350_spill] sm:$0xff] %v8272_v10  ;;  %14837 = vst [vmem:[#allocation351_spill] sm:$0xff] %v8275_v60  ;;  %v2163_v56 = vsub.f32 %v8286_v4, %v1714_v38  ;;  %v8293_v10 = vsub.f32 %v7170_v27, %v1232_v7  ;;  %v4924_v61 = vld [vmem:[%s5873_s25 + $0x390] sm:$0xff]  ;;  %v1108_v38 = vsel %vm1100_vm0, %v853_v47, %v979_v48  ;;  %v1722_v58 = vpop.permute.xlu0 %1721 }
 0x17e   : > { %14839 = vst [vmem:[#allocation352_spill] sm:$0xff] %v8278_v26  ;;  %14841 = vst [vmem:[#allocation353_spill] sm:$0xff] %v8283_v25  ;;  %v4923_v26 = vld [vmem:[%s5873_s25 + $0x398] sm:$0xff]  ;;  %1833 = vrot.lane.b32.xlu0 %v4924_v61, %s5658_s29  ;;  %v14845_v27 = vld [vmem:[#allocation140_spill] sm:$0xff]  ;;  %v8310_v7 = vsub.f32 %v7228_v45, %v1233_v62  ;;  %v1234_v25 = vsel %vm1100_vm0, %v979_v48, %v853_v47  ;;  %v8342_v52 = vsub.f32 %v7249_v63, %v1108_v38 }
 0x17f   : > { %14842 = vst [vmem:[#allocation354_spill] sm:$0xff] %v8290_v6  ;;  %14843 = vst [vmem:[#allocation355_spill] sm:$0xff] %v8293_v10  ;;  %1835 = vrot.lane.b32.xlu1 %v4923_v26, %s5658_s29  ;;  %v8307_v35 = vmul.f32 %v2164_v5, %v14845_v27  ;;  %v8313_v26 = vld [vmem:[%s5873_s25 + $0x5b8] sm:$0xff]  ;;  %v8318_v18 = vld [vmem:[%s5873_s25 + $0x5b0] sm:$0xff]  ;;  %v1724_v27 = vpop.permute.xlu1 %1723  ;;  %v8336_v61 = vmul.f32 %v2163_v56, %v7066_v19  ;;  %v8339_v5 = vmul.f32 %v7123_v1, %v2163_v56 }
 0x180   : > { %14844 = vst [vmem:[#allocation356_spill] sm:$0xff] %v8300_v11  ;;  %14847 = vst [vmem:[#allocation358_spill] sm:$0xff] %v8310_v7  ;;  %v8330_v62 = vld [vmem:[%s5873_s25 + $0x1c0] sm:$0xff]  ;;  %v1109_v48 = vsel %vm1100_vm0, %v854_v20, %v980_v12  ;;  %v1235_v63 = vsel %vm1100_vm0, %v980_v12, %v854_v20  ;;  %v14855_v56 = vld [vmem:[#allocation193_spill] sm:$0xff] }
 0x181   : > { %14846 = vst [vmem:[#allocation357_spill] sm:$0xff] %v8307_v35  ;;  %14848 = vst [vmem:[#allocation359_spill] sm:$0xff] %v8313_v26  ;;  %v8326_v35 = vld [vmem:[%s5873_s25 + $0x1c8] sm:$0xff]  ;;  %v2165_v37 = vsub.f32 %v8330_v62, %v1718_v33  ;;  %v4931_v47 = vld [vmem:[%s5873_s25 + $0x3a0] sm:$0xff]  ;;  %v855_v38 = vrot.slane %v14855_v56, 7  ;;  %v8393_v20 = vsub.f32 %v7307_v24, %v1109_v48 }
 0x182   : > { %14849 = vst [vmem:[#allocation360_spill] sm:$0xff] %v8318_v18  ;;  %14850 = vst [vmem:[#allocation361_spill] sm:$0xff] %v8323_v15  ;;  %v2166_v45 = vsub.f32 %v8326_v35, %v1720_v49  ;;  %v8345_v49 = vld [vmem:[%s5873_s25 + $0x5c8] sm:$0xff]  ;;  %1837 = vrot.lane.b32.xlu0 %v4931_v47, %s5658_s29  ;;  %v8367_v19 = vld [vmem:[%s5873_s25 + $0x5c0] sm:$0xff]  ;;  %v1726_v18 = vpop.permute.xlu0 %1725 }
 0x183   : > { %14851 = vst [vmem:[#allocation362_spill] sm:$0xff] %v8336_v61  ;;  %14852 = vst [vmem:[#allocation363_spill] sm:$0xff] %v8339_v5  ;;  %v4930_v15 = vld [vmem:[%s5873_s25 + $0x3a8] sm:$0xff]  ;;  %v14856_v61 = vld [vmem:[#allocation186_spill] sm:$0xff]  ;;  %v1728_v47 = vpop.permute.xlu1 %1727 }
 0x184   : > { %14853 = vst [vmem:[#allocation364_spill] sm:$0xff] %v8342_v52  ;;  %14854 = vst [vmem:[#allocation365_spill] sm:$0xff] %v8345_v49  ;;  %1839 = vrot.lane.b32.xlu1 %v4930_v15, %s5658_s29  ;;  %v981_v1 = vrot.slane %v14856_v61, 7  ;;  %v8360_v5 = vld [vmem:[%s5873_s25 + $0x1d8] sm:$0xff]  ;;  %v8364_v15 = vsub.f32 %v7263_v41, %v1234_v25  ;;  %v14860_v12 = vld [vmem:[#allocation151_spill] sm:$0xff] }
 0x185   : > { %v2168_v33 = vsub.f32 %v8360_v5, %v1724_v27  ;;  %14858 = vst [vmem:[#allocation186_spill] sm:$0xff] %v8367_v19  ;;  %14859 = vst [vmem:[#allocation366_spill] sm:$0xff] %v8372_v36  ;;  %v8377_v55 = vmul.f32 %v2166_v45, %v14860_v12  ;;  %v14862_v27 = vld [vmem:[#allocation158_spill] sm:$0xff]  ;;  %v14864_v41 = vld [vmem:[#allocation152_spill] sm:$0xff] }
 0x186   : > { %14857 = vst [vmem:[#allocation193_spill] sm:$0xff] %v8364_v15  ;;  %v8380_v60 = vmul.f32 %v14862_v27, %v2166_v45  ;;  %v8383_v25 = vmul.f32 %v2165_v37, %v14864_v41  ;;  %v8386_v26 = vld [vmem:[%s5873_s25 + $0x1d0] sm:$0xff]  ;;  %v8390_v15 = vmul.f32 %v14866_v8, %v2165_v37  ;;  %14868 = vst [vmem:[#allocation371_spill] sm:$0xff] %v8393_v20  ;;  %v4937_v27 = vld [vmem:[%s5873_s25 + $0x3b8] sm:$0xff]  ;;  %v1730_v40 = vpop.permute.xlu0 %1729 }
 0x187   : > { %14861 = vst [vmem:[#allocation367_spill] sm:$0xff] %v8377_v55  ;;  %v2167_v57 = vsub.f32 %v8386_v26, %v1722_v58  ;;  %v8396_v55 = vsub.f32 %v7323_v2, %v1235_v63  ;;  %v8399_v45 = vld [vmem:[%s5873_s25 + $0x5d0] sm:$0xff]  ;;  %v1110_v24 = vsel %vm1100_vm0, %v855_v38, %v981_v1  ;;  %v1236_v2 = vsel %vm1100_vm0, %v981_v1, %v855_v38  ;;  %v14871_v37 = vld [vmem:[#allocation203_spill] sm:$0xff]  ;;  %v14872_v63 = vld [vmem:[#allocation198_spill] sm:$0xff]  ;;  %v1732_v36 = vpop.permute.xlu1 %1731 }
 0x188   : > { %14863 = vst [vmem:[#allocation368_spill] sm:$0xff] %v8380_v60  ;;  %14865 = vst [vmem:[#allocation369_spill] sm:$0xff] %v8383_v25  ;;  %1843 = vrot.lane.b32.xlu1 %v4937_v27, %s5658_s29  ;;  %v4938_v58 = vld [vmem:[%s5873_s25 + $0x3b0] sm:$0xff]  ;;  %v856_v48 = vrot.slane %v14871_v37, 7  ;;  %v982_v8 = vrot.slane %v14872_v63, 7  ;;  %v8417_v41 = vld [vmem:[%s5873_s25 + $0x5e8] sm:$0xff] }
 0x189   : > { %14867 = vst [vmem:[#allocation370_spill] sm:$0xff] %v8390_v15  ;;  %14869 = vst [vmem:[#allocation372_spill] sm:$0xff] %v8396_v55  ;;  %1841 = vrot.lane.b32.xlu0 %v4938_v58, %s5658_s29  ;;  %v14873_v15 = vld [vmem:[#allocation159_spill] sm:$0xff]  ;;  %v14876_v58 = vld [vmem:[#allocation208_spill] sm:$0xff] }
 0x18a   : > { %14870 = vst [vmem:[#allocation373_spill] sm:$0xff] %v8399_v45  ;;  %v8414_v25 = vmul.f32 %v2168_v33, %v14873_v15  ;;  %14875 = vst [vmem:[#allocation198_spill] sm:$0xff] %v8417_v41  ;;  %v857_v12 = vrot.slane %v14876_v58, 7  ;;  %v14877_v60 = vld [vmem:[#allocation206_spill] sm:$0xff]  ;;  %v14878_v49 = vld [vmem:[#allocation165_spill] sm:$0xff] }
 0x18b   : > { %v983_v19 = vrot.slane %v14877_v60, 7  ;;  %v8424_v1 = vmul.f32 %v14878_v49, %v2168_v33  ;;  %v14880_v38 = vld [vmem:[#allocation168_spill] sm:$0xff]  ;;  %v8430_v15 = vld [vmem:[%s5873_s25 + $0x1e8] sm:$0xff]  ;;  %v8434_v20 = vld [vmem:[%s5873_s25 + $0x1e0] sm:$0xff]  ;;  %v8441_v33 = vsub.f32 %v14856_v61, %v1110_v24  ;;  %v1237_v61 = vsel %vm1100_vm0, %v982_v8, %v856_v48 }
 0x18c   : > { %14874 = vst [vmem:[#allocation203_spill] sm:$0xff] %v8414_v25  ;;  %v8427_v55 = vmul.f32 %v2167_v57, %v14880_v38  ;;  %14882 = vst [vmem:[#allocation374_spill] sm:$0xff] %v8430_v15  ;;  %v2170_v25 = vsub.f32 %v8430_v15, %v1728_v47  ;;  %v2169_v27 = vsub.f32 %v8434_v20, %v1726_v18  ;;  %v14884_v52 = vld [vmem:[#allocation170_spill] sm:$0xff]  ;;  %v4943_v18 = vld [vmem:[%s5873_s25 + $0x3c8] sm:$0xff]  ;;  %v1736_v15 = vpop.permute.xlu1 %1735 }
 0x18d   : > { %14879 = vst [vmem:[#allocation208_spill] sm:$0xff] %v8424_v1  ;;  %14883 = vst [vmem:[#allocation375_spill] sm:$0xff] %v8434_v20  ;;  %v8438_v7 = vmul.f32 %v14884_v52, %v2167_v57  ;;  %v8447_v49 = vld [vmem:[%s5873_s25 + $0x5e0] sm:$0xff]  ;;  %1847 = vrot.lane.b32.xlu1 %v4943_v18, %s5658_s29  ;;  %v1111_v57 = vsel %vm1100_vm0, %v856_v48, %v982_v8  ;;  %v8466_v1 = vld [vmem:[%s5873_s25 + $0x5f8] sm:$0xff]  ;;  %v1112_v18 = vsel %vm1100_vm0, %v857_v12, %v983_v19 }
 0x18e   : > { %14881 = vst [vmem:[#allocation206_spill] sm:$0xff] %v8427_v55  ;;  %14886 = vst [vmem:[#allocation377_spill] sm:$0xff] %v8441_v33  ;;  %v8444_v55 = vsub.f32 %v14855_v56, %v1236_v2  ;;  %v4944_v38 = vld [vmem:[%s5873_s25 + $0x3c0] sm:$0xff]  ;;  %v14889_v56 = vld [vmem:[#allocation219_spill] sm:$0xff]  ;;  %v1238_v41 = vsel %vm1100_vm0, %v983_v19, %v857_v12  ;;  %v8506_v12 = vsub.f32 %v14877_v60, %v1112_v18 }
 0x18f   : > { %14885 = vst [vmem:[#allocation376_spill] sm:$0xff] %v8438_v7  ;;  %14888 = vst [vmem:[#allocation379_spill] sm:$0xff] %v8447_v49  ;;  %1845 = vrot.lane.b32.xlu0 %v4944_v38, %s5658_s29  ;;  %v858_v24 = vrot.slane %v14889_v56, 7  ;;  %v14890_v2 = vld [vmem:[#allocation217_spill] sm:$0xff]  ;;  %v8473_v8 = vld [vmem:[%s5873_s25 + $0x5f0] sm:$0xff]  ;;  %v1734_v38 = vpop.permute.xlu0 %1733 }
 0x190   : > { %14887 = vst [vmem:[#allocation378_spill] sm:$0xff] %v8444_v55  ;;  %v984_v52 = vrot.slane %v14890_v2, 7  ;;  %v8462_v7 = vld [vmem:[%s5873_s25 + $0x1f8] sm:$0xff]  ;;  %14892 = vst [vmem:[#allocation217_spill] sm:$0xff] %v8466_v1  ;;  %v14894_v45 = vld [vmem:[#allocation172_spill] sm:$0xff] }
 0x191   : > { %14891 = vst [vmem:[#allocation219_spill] sm:$0xff] %v8462_v7  ;;  %v2172_v47 = vsub.f32 %v8462_v7, %v1732_v36  ;;  %14893 = vst [vmem:[#allocation380_spill] sm:$0xff] %v8473_v8  ;;  %v8478_v55 = vmul.f32 %v2170_v25, %v14894_v45  ;;  %v14896_v33 = vld [vmem:[#allocation174_spill] sm:$0xff]  ;;  %v14898_v7 = vld [vmem:[#allocation175_spill] sm:$0xff] }
 0x192   : > { %v8481_v36 = vmul.f32 %v14896_v33, %v2170_v25  ;;  %v8484_v11 = vmul.f32 %v2169_v27, %v14898_v7  ;;  %v14900_v20 = vld [vmem:[#allocation184_spill] sm:$0xff]  ;;  %v8496_v25 = vsub.f32 %v14872_v63, %v1111_v57  ;;  %14904 = vst [vmem:[#allocation387_spill] sm:$0xff] %v8506_v12  ;;  %v14906_v57 = vld [vmem:[#allocation225_spill] sm:$0xff]  ;;  %v8516_v33 = vsub.f32 %v14876_v58, %v1238_v41  ;;  %v8524_v18 = vld [vmem:[%s5873_s25 + $0x600] sm:$0xff] }
 0x193   : > { %14895 = vst [vmem:[#allocation381_spill] sm:$0xff] %v8478_v55  ;;  %v8489_v10 = vmul.f32 %v14900_v20, %v2169_v27  ;;  %v8492_v6 = vld [vmem:[%s5873_s25 + $0x1f0] sm:$0xff]  ;;  %v8499_v55 = vsub.f32 %v14871_v37, %v1237_v61  ;;  %v14905_v27 = vld [vmem:[#allocation229_spill] sm:$0xff]  ;;  %v985_v20 = vrot.slane %v14906_v57, 7  ;;  %v14907_v37 = vld [vmem:[#allocation179_spill] sm:$0xff]  ;;  %v1738_v60 = vpop.permute.xlu0 %1737  ;;  %v1239_v45 = vsel %vm1100_vm0, %v984_v52, %v858_v24 }
 0x194   : > { %14897 = vst [vmem:[#allocation382_spill] sm:$0xff] %v8481_v36  ;;  %14899 = vst [vmem:[#allocation383_spill] sm:$0xff] %v8484_v11  ;;  %v2171_v48 = vsub.f32 %v8492_v6, %v1730_v40  ;;  %v4949_v11 = vld [vmem:[%s5873_s25 + $0x3d8] sm:$0xff]  ;;  %v4950_v19 = vld [vmem:[%s5873_s25 + $0x3d0] sm:$0xff]  ;;  %v1113_v40 = vsel %vm1100_vm0, %v858_v24, %v984_v52  ;;  %v859_v63 = vrot.slane %v14905_v27, 7  ;;  %v8513_v61 = vmul.f32 %v2172_v47, %v14907_v37  ;;  %v1740_v36 = vpop.permute.xlu1 %1739 }
 0x195   : > { %14901 = vst [vmem:[#allocation384_spill] sm:$0xff] %v8489_v10  ;;  %14902 = vst [vmem:[#allocation385_spill] sm:$0xff] %v8496_v25  ;;  %1851 = vrot.lane.b32.xlu1 %v4949_v11, %s5658_s29  ;;  %1849 = vrot.lane.b32.xlu0 %v4950_v19, %s5658_s29  ;;  %v8519_v11 = vld [vmem:[%s5873_s25 + $0x608] sm:$0xff]  ;;  %v8536_v58 = vld [vmem:[%s5873_s25 + $0x200] sm:$0xff] }
 0x196   : > { %14903 = vst [vmem:[#allocation386_spill] sm:$0xff] %v8499_v55  ;;  %14908 = vst [vmem:[#allocation229_spill] sm:$0xff] %v8513_v61  ;;  %v14912_v10 = vld [vmem:[#allocation187_spill] sm:$0xff]  ;;  %v2173_v37 = vsub.f32 %v8536_v58, %v1734_v38  ;;  %v14915_v1 = vld [vmem:[#allocation180_spill] sm:$0xff]  ;;  %v1114_v24 = vsel %vm1100_vm0, %v859_v63, %v985_v20 }
 0x197   : > { %14909 = vst [vmem:[#allocation225_spill] sm:$0xff] %v8516_v33  ;;  %14910 = vst [vmem:[#allocation388_spill] sm:$0xff] %v8519_v11  ;;  %v8529_v7 = vmul.f32 %v14912_v10, %v2172_v47  ;;  %v8532_v61 = vld [vmem:[%s5873_s25 + $0x208] sm:$0xff]  ;;  %v8542_v19 = vmul.f32 %v2171_v48, %v14915_v1  ;;  %v8548_v10 = vsub.f32 %v14890_v2, %v1113_v40  ;;  %v4957_v52 = vld [vmem:[%s5873_s25 + $0x3e0] sm:$0xff] }
 0x198   : > { %14911 = vst [vmem:[#allocation389_spill] sm:$0xff] %v8524_v18  ;;  %14914 = vst [vmem:[#allocation391_spill] sm:$0xff] %v8532_v61  ;;  %v2174_v41 = vsub.f32 %v8532_v61, %v1736_v15  ;;  %v14917_v8 = vld [vmem:[#allocation191_spill] sm:$0xff]  ;;  %v8551_v15 = vld [vmem:[%s5873_s25 + $0x618] sm:$0xff]  ;;  %v1240_v2 = vsel %vm1100_vm0, %v985_v20, %v859_v63  ;;  %v1742_v18 = vpop.permute.xlu0 %1741  ;;  %v8599_v20 = vsub.f32 %v14906_v57, %v1114_v24 }
 0x199   : > { %14913 = vst [vmem:[#allocation390_spill] sm:$0xff] %v8529_v7  ;;  %14916 = vst [vmem:[#allocation392_spill] sm:$0xff] %v8542_v19  ;;  %v8545_v47 = vmul.f32 %v14917_v8, %v2171_v48  ;;  %v4956_v7 = vld [vmem:[%s5873_s25 + $0x3e8] sm:$0xff]  ;;  %1853 = vrot.lane.b32.xlu0 %v4957_v52, %s5658_s29  ;;  %v14922_v19 = vld [vmem:[#allocation232_spill] sm:$0xff]  ;;  %v1744_v52 = vpop.permute.xlu1 %1743 }
 0x19a   : > { %14919 = vst [vmem:[#allocation394_spill] sm:$0xff] %v8548_v10  ;;  %14920 = vst [vmem:[#allocation395_spill] sm:$0xff] %v8551_v15  ;;  %1855 = vrot.lane.b32.xlu1 %v4956_v7, %s5658_s29  ;;  %v14921_v48 = vld [vmem:[#allocation235_spill] sm:$0xff]  ;;  %v986_v8 = vrot.slane %v14922_v19, 7  ;;  %v8570_v7 = vsub.f32 %v14889_v56, %v1239_v45  ;;  %v8573_v1 = vld [vmem:[%s5873_s25 + $0x610] sm:$0xff] }
 0x19b   : > { %14918 = vst [vmem:[#allocation393_spill] sm:$0xff] %v8545_v47  ;;  %v860_v40 = vrot.slane %v14921_v48, 7  ;;  %v8566_v47 = vld [vmem:[%s5873_s25 + $0x218] sm:$0xff]  ;;  %14925 = vst [vmem:[#allocation396_spill] sm:$0xff] %v8573_v1  ;;  %v8578_v11 = vld [vmem:[%s5873_s25 + $0x628] sm:$0xff] }
 0x19c   : > { %14923 = vst [vmem:[#allocation235_spill] sm:$0xff] %v8566_v47  ;;  %v2176_v38 = vsub.f32 %v8566_v47, %v1740_v36  ;;  %14924 = vst [vmem:[#allocation232_spill] sm:$0xff] %v8570_v7  ;;  %v14927_v63 = vld [vmem:[#allocation195_spill] sm:$0xff]  ;;  %v14929_v36 = vld [vmem:[#allocation196_spill] sm:$0xff] }
 0x19d   : > { %14926 = vst [vmem:[#allocation397_spill] sm:$0xff] %v8578_v11  ;;  %v8583_v49 = vmul.f32 %v2174_v41, %v14927_v63  ;;  %v8586_v10 = vmul.f32 %v14929_v36, %v2174_v41  ;;  %v14931_v45 = vld [vmem:[#allocation197_spill] sm:$0xff]  ;;  %v8592_v7 = vld [vmem:[%s5873_s25 + $0x210] sm:$0xff]  ;;  %v14934_v12 = vld [vmem:[#allocation199_spill] sm:$0xff]  ;;  %v1746_v11 = vpop.permute.xlu0 %1745 }
 0x19e   : > { %v8589_v56 = vmul.f32 %v2173_v37, %v14931_v45  ;;  %14933 = vst [vmem:[#allocation401_spill] sm:$0xff] %v8592_v7  ;;  %v2175_v33 = vsub.f32 %v8592_v7, %v1738_v60  ;;  %v8596_v55 = vmul.f32 %v14934_v12, %v2173_v37  ;;  %14936 = vst [vmem:[#allocation403_spill] sm:$0xff] %v8599_v20  ;;  %v8605_v41 = vld [vmem:[%s5873_s25 + $0x620] sm:$0xff]  ;;  %v4963_v36 = vld [vmem:[%s5873_s25 + $0x3f8] sm:$0xff] }
 0x19f   : > { %14928 = vst [vmem:[#allocation398_spill] sm:$0xff] %v8583_v49  ;;  %14930 = vst [vmem:[#allocation399_spill] sm:$0xff] %v8586_v10  ;;  %v8602_v49 = vsub.f32 %v14905_v27, %v1240_v2  ;;  %1859 = vrot.lane.b32.xlu1 %v4963_v36, %s5658_s29  ;;  %v4964_v60 = vld [vmem:[%s5873_s25 + $0x3f0] sm:$0xff]  ;;  %v1115_v37 = vsel %vm1100_vm0, %v860_v40, %v986_v8  ;;  %v1241_v27 = vsel %vm1100_vm0, %v986_v8, %v860_v40  ;;  %v14939_v57 = vld [vmem:[#allocation246_spill] sm:$0xff]  ;;  %v1748_v36 = vpop.permute.xlu1 %1747 }
 0x1a0   : > { %14932 = vst [vmem:[#allocation400_spill] sm:$0xff] %v8589_v56  ;;  %14935 = vst [vmem:[#allocation402_spill] sm:$0xff] %v8596_v55  ;;  %1857 = vrot.lane.b32.xlu0 %v4964_v60, %s5658_s29  ;;  %v861_v24 = vrot.slane %v14939_v57, 7  ;;  %v14940_v2 = vld [vmem:[#allocation242_spill] sm:$0xff]  ;;  %v14941_v55 = vld [vmem:[#allocation204_spill] sm:$0xff] }
 0x1a1   : > { %14937 = vst [vmem:[#allocation404_spill] sm:$0xff] %v8602_v49  ;;  %14938 = vst [vmem:[#allocation405_spill] sm:$0xff] %v8605_v41  ;;  %v987_v12 = vrot.slane %v14940_v2, 7  ;;  %v8620_v56 = vmul.f32 %v2176_v38, %v14941_v55  ;;  %v8623_v45 = vld [vmem:[%s5873_s25 + $0x638] sm:$0xff]  ;;  %v14944_v60 = vld [vmem:[#allocation258_spill] sm:$0xff] }
 0x1a2   : > { %14943 = vst [vmem:[#allocation242_spill] sm:$0xff] %v8623_v45  ;;  %v862_v63 = vrot.slane %v14944_v60, 7  ;;  %v14945_v10 = vld [vmem:[#allocation252_spill] sm:$0xff]  ;;  %v14946_v15 = vld [vmem:[#allocation209_spill] sm:$0xff]  ;;  %v14950_v55 = vld [vmem:[#allocation210_spill] sm:$0xff] }
 0x1a3   : > { %14942 = vst [vmem:[#allocation246_spill] sm:$0xff] %v8620_v56  ;;  %v988_v1 = vrot.slane %v14945_v10, 7  ;;  %v8630_v8 = vmul.f32 %v14946_v15, %v2176_v38  ;;  %v14948_v40 = vld [vmem:[#allocation205_spill] sm:$0xff]  ;;  %v8636_v56 = vmul.f32 %v14950_v55, %v2175_v33  ;;  %v8639_v20 = vld [vmem:[%s5873_s25 + $0x228] sm:$0xff]  ;;  %v8643_v47 = vld [vmem:[%s5873_s25 + $0x220] sm:$0xff]  ;;  %v8647_v38 = vsub.f32 %v14922_v19, %v1115_v37  ;;  %v1752_v45 = vpop.permute.xlu1 %1751 }
 0x1a4   : > { %v8633_v49 = vmul.f32 %v2175_v33, %v14948_v40  ;;  %14952 = vst [vmem:[#allocation407_spill] sm:$0xff] %v8639_v20  ;;  %v2178_v25 = vsub.f32 %v8639_v20, %v1744_v52  ;;  %14953 = vst [vmem:[#allocation408_spill] sm:$0xff] %v8643_v47  ;;  %v2177_v7 = vsub.f32 %v8643_v47, %v1742_v18  ;;  %v4969_v52 = vld [vmem:[%s5873_s25 + $0x408] sm:$0xff]  ;;  %v4970_v55 = vld [vmem:[%s5873_s25 + $0x400] sm:$0xff] }
 0x1a5   : > { %14947 = vst [vmem:[#allocation258_spill] sm:$0xff] %v8630_v8  ;;  %14951 = vst [vmem:[#allocation406_spill] sm:$0xff] %v8636_v56  ;;  %v8650_v15 = vsub.f32 %v14921_v48, %v1241_v27  ;;  %1863 = vrot.lane.b32.xlu1 %v4969_v52, %s5658_s29  ;;  %1861 = vrot.lane.b32.xlu0 %v4970_v55, %s5658_s29  ;;  %v14957_v18 = vld [vmem:[#allocation260_spill] sm:$0xff]  ;;  %v1116_v48 = vsel %vm1100_vm0, %v861_v24, %v987_v12  ;;  %v8671_v27 = vld [vmem:[%s5873_s25 + $0x648] sm:$0xff] }
 0x1a6   : > { %14949 = vst [vmem:[#allocation252_spill] sm:$0xff] %v8633_v49  ;;  %14954 = vst [vmem:[#allocation409_spill] sm:$0xff] %v8647_v38  ;;  %v8653_v49 = vld [vmem:[%s5873_s25 + $0x630] sm:$0xff]  ;;  %v14958_v56 = vsub.f32 %v7668_v46, %v14957_v18  ;;  %v1242_v37 = vsel %vm1100_vm0, %v987_v12, %v861_v24  ;;  %v1117_v55 = vsel %vm1100_vm0, %v862_v63, %v988_v1  ;;  %v14962_v33 = vld [vmem:[#allocation262_spill] sm:$0xff]  ;;  %v1750_v38 = vpop.permute.xlu0 %1749 }
 0x1a7   : > { %14955 = vst [vmem:[#allocation410_spill] sm:$0xff] %v8650_v15  ;;  %14956 = vst [vmem:[#allocation411_spill] sm:$0xff] %v8653_v49  ;;  %v1243_v46 = vsel %vm1100_vm0, %v988_v1, %v862_v63  ;;  %v989_v40 = vrot.slane %v14962_v33, 7  ;;  %v14963_v8 = vld [vmem:[#allocation220_spill] sm:$0xff]  ;;  %v14965_v24 = vld [vmem:[#allocation222_spill] sm:$0xff] }
 0x1a8   : > { %v8664_v19 = vadd.f32 1.0, %v14958_v56  ;;  %14960 = vst [vmem:[#allocation412_spill] sm:$0xff] %v8671_v27  ;;  %v14961_v56 = vld [vmem:[#allocation264_spill] sm:$0xff]  ;;  %v8682_v12 = vmul.f32 %v2178_v25, %v14963_v8  ;;  %v8685_v41 = vmul.f32 %v14965_v24, %v2178_v25  ;;  %v8688_v15 = vld [vmem:[%s5873_s25 + $0x238] sm:$0xff]  ;;  %v8692_v20 = vld [vmem:[%s5873_s25 + $0x640] sm:$0xff] }
 0x1a9   : > { %v863_v18 = vrot.slane %v14961_v56, 7  ;;  %14967 = vst [vmem:[#allocation413_spill] sm:$0xff] %v8688_v15  ;;  %v2180_v52 = vsub.f32 %v8688_v15, %v1748_v36  ;;  %14968 = vst [vmem:[#allocation414_spill] sm:$0xff] %v8692_v20  ;;  %v14969_v63 = vld [vmem:[#allocation221_spill] sm:$0xff]  ;;  %v14971_v61 = vld [vmem:[#allocation226_spill] sm:$0xff]  ;;  %v8707_v36 = vsub.f32 %v14940_v2, %v1116_v48  ;;  %v8725_v2 = vsub.f32 %v14944_v60, %v1243_v46 }
 0x1aa   : > { %14959 = vst [vmem:[#allocation260_spill] sm:$0xff] %v8664_v19  ;;  %14964 = vst [vmem:[#allocation264_spill] sm:$0xff] %v8682_v12  ;;  %v8697_v47 = vmul.f32 %v2177_v7, %v14969_v63  ;;  %v8700_v8 = vmul.f32 %v14971_v61, %v2177_v7  ;;  %v8703_v12 = vld [vmem:[%s5873_s25 + $0x230] sm:$0xff]  ;;  %v4975_v24 = vld [vmem:[%s5873_s25 + $0x418] sm:$0xff]  ;;  %v8719_v61 = vsub.f32 %v14939_v57, %v1242_v37  ;;  %v1754_v46 = vpop.permute.xlu0 %1753 }
 0x1ab   : > { %14966 = vst [vmem:[#allocation262_spill] sm:$0xff] %v8685_v41  ;;  %14973 = vst [vmem:[#allocation417_spill] sm:$0xff] %v8703_v12  ;;  %v2179_v25 = vsub.f32 %v8703_v12, %v1746_v11  ;;  %1867 = vrot.lane.b32.xlu1 %v4975_v24, %s5658_s29  ;;  %v4976_v41 = vld [vmem:[%s5873_s25 + $0x410] sm:$0xff]  ;;  %v14975_v1 = vld [vmem:[#allocation243_spill] sm:$0xff]  ;;  %v8722_v11 = vsub.f32 %v14945_v10, %v1117_v55  ;;  %v1118_v48 = vsel %vm1100_vm0, %v863_v18, %v989_v40  ;;  %v1756_v55 = vpop.permute.xlu1 %1755 }
 0x1ac   : > { %14970 = vst [vmem:[#allocation415_spill] sm:$0xff] %v8697_v47  ;;  %14972 = vst [vmem:[#allocation416_spill] sm:$0xff] %v8700_v8  ;;  %1865 = vrot.lane.b32.xlu0 %v4976_v41, %s5658_s29  ;;  %v14976_v47 = vld [vmem:[#allocation266_spill] sm:$0xff]  ;;  %v1244_v41 = vsel %vm1100_vm0, %v989_v40, %v863_v18  ;;  %v8737_v10 = vld [vmem:[%s5873_s25 + $0x248] sm:$0xff] }
 0x1ad   : > { %14974 = vst [vmem:[#allocation418_spill] sm:$0xff] %v8707_v36  ;;  %v14977_v63 = vsub.f32 %v14975_v1, %v14976_v47  ;;  %14979 = vst [vmem:[#allocation266_spill] sm:$0xff] %v8719_v61  ;;  %v14982_v47 = vld [vmem:[#allocation274_spill] sm:$0xff]  ;;  %v2182_v60 = vsub.f32 %v8737_v10, %v1752_v45  ;;  %v8741_v8 = vld [vmem:[%s5873_s25 + $0x658] sm:$0xff] }
 0x1ae   : > { %14980 = vst [vmem:[#allocation419_spill] sm:$0xff] %v8722_v11  ;;  %14981 = vst [vmem:[#allocation420_spill] sm:$0xff] %v8725_v2  ;;  %v864_v24 = vrot.slane %v14982_v47, 7  ;;  %v14983_v1 = vld [vmem:[#allocation270_spill] sm:$0xff]  ;;  %v8746_v18 = vld [vmem:[%s5873_s25 + $0x650] sm:$0xff] }
 0x1af   : > { %v8716_v7 = vadd.f32 1.0, %v14977_v63  ;;  %v990_v63 = vrot.slane %v14983_v1, 7  ;;  %v14984_v57 = vld [vmem:[#allocation230_spill] sm:$0xff]  ;;  %14986 = vst [vmem:[#allocation270_spill] sm:$0xff] %v8737_v10  ;;  %14987 = vst [vmem:[#allocation421_spill] sm:$0xff] %v8741_v8  ;;  %v14991_v2 = vld [vmem:[#allocation231_spill] sm:$0xff] }
 0x1b0   : > { %v8734_v37 = vmul.f32 %v2180_v52, %v14984_v57  ;;  %14988 = vst [vmem:[#allocation422_spill] sm:$0xff] %v8746_v18  ;;  %v14989_v57 = vld [vmem:[#allocation236_spill] sm:$0xff]  ;;  %v8754_v11 = vmul.f32 %v2179_v25, %v14991_v2  ;;  %v14993_v45 = vld [vmem:[#allocation247_spill] sm:$0xff]  ;;  %v8760_v36 = vld [vmem:[%s5873_s25 + $0x240] sm:$0xff] }
 0x1b1   : > { %14978 = vst [vmem:[#allocation243_spill] sm:$0xff] %v8716_v7  ;;  %v8757_v61 = vmul.f32 %v14993_v45, %v2179_v25  ;;  %14995 = vst [vmem:[#allocation426_spill] sm:$0xff] %v8760_v36  ;;  %v2181_v10 = vsub.f32 %v8760_v36, %v1750_v38  ;;  %v4981_v40 = vld [vmem:[%s5873_s25 + $0x428] sm:$0xff]  ;;  %v4982_v27 = vld [vmem:[%s5873_s25 + $0x420] sm:$0xff]  ;;  %v8773_v25 = vsub.f32 %v14962_v33, %v1118_v48 }
 0x1b2   : > { %14985 = vst [vmem:[#allocation274_spill] sm:$0xff] %v8734_v37  ;;  %v8751_v37 = vmul.f32 %v14989_v57, %v2180_v52  ;;  %14992 = vst [vmem:[#allocation424_spill] sm:$0xff] %v8754_v11  ;;  %1871 = vrot.lane.b32.xlu1 %v4981_v40, %s5658_s29  ;;  %1869 = vrot.lane.b32.xlu0 %v4982_v27, %s5658_s29  ;;  %v14996_v52 = vld [vmem:[#allocation253_spill] sm:$0xff]  ;;  %v14997_v49 = vld [vmem:[#allocation272_spill] sm:$0xff]  ;;  %v8776_v11 = vsub.f32 %v14961_v56, %v1244_v41 }
 0x1b3   : > { %14994 = vst [vmem:[#allocation425_spill] sm:$0xff] %v8757_v61  ;;  %v14998_v57 = vsub.f32 %v14996_v52, %v14997_v49  ;;  %15000 = vst [vmem:[#allocation272_spill] sm:$0xff] %v8773_v25  ;;  %v8779_v38 = vld [vmem:[%s5873_s25 + $0x668] sm:$0xff]  ;;  %v1119_v27 = vsel %vm1100_vm0, %v864_v24, %v990_v63  ;;  %v1245_v49 = vsel %vm1100_vm0, %v990_v63, %v864_v24  ;;  %v15004_v45 = vld [vmem:[#allocation285_spill] sm:$0xff]  ;;  %v1760_v61 = vpop.permute.xlu1 %1759 }
 0x1b4   : > { %14990 = vst [vmem:[#allocation423_spill] sm:$0xff] %v8751_v37  ;;  %15001 = vst [vmem:[#allocation427_spill] sm:$0xff] %v8776_v11  ;;  %v991_v33 = vrot.slane %v15004_v45, 7  ;;  %v15005_v48 = vld [vmem:[#allocation239_spill] sm:$0xff]  ;;  %v8793_v41 = vld [vmem:[%s5873_s25 + $0x258] sm:$0xff]  ;;  %v1758_v37 = vpop.permute.xlu0 %1757 }
 0x1b5   : > { %v8770_v2 = vadd.f32 1.0, %v14998_v57  ;;  %15002 = vst [vmem:[#allocation428_spill] sm:$0xff] %v8779_v38  ;;  %v15003_v57 = vld [vmem:[#allocation286_spill] sm:$0xff]  ;;  %v8790_v56 = vmul.f32 %v2182_v60, %v15005_v48  ;;  %15007 = vst [vmem:[#allocation285_spill] sm:$0xff] %v8793_v41  ;;  %v2184_v40 = vsub.f32 %v8793_v41, %v1756_v55  ;;  %v8802_v63 = vld [vmem:[%s5873_s25 + $0x678] sm:$0xff] }
 0x1b6   : > { %v865_v52 = vrot.slane %v15003_v57, 7  ;;  %v8797_v8 = vld [vmem:[%s5873_s25 + $0x660] sm:$0xff]  ;;  %15009 = vst [vmem:[#allocation430_spill] sm:$0xff] %v8802_v63  ;;  %v15010_v48 = vld [vmem:[#allocation248_spill] sm:$0xff]  ;;  %v15012_v11 = vld [vmem:[#allocation249_spill] sm:$0xff] }
 0x1b7   : > { %14999 = vst [vmem:[#allocation253_spill] sm:$0xff] %v8770_v2  ;;  %15006 = vst [vmem:[#allocation286_spill] sm:$0xff] %v8790_v56  ;;  %v8807_v56 = vmul.f32 %v15010_v48, %v2182_v60  ;;  %v8810_v25 = vmul.f32 %v2181_v10, %v15012_v11  ;;  %v15014_v55 = vld [vmem:[#allocation257_spill] sm:$0xff]  ;;  %v8816_v36 = vld [vmem:[%s5873_s25 + $0x250] sm:$0xff]  ;;  %v867_v11 = vrot.slane %v7984_v3, 7 }
 0x1b8   : > { %15008 = vst [vmem:[#allocation429_spill] sm:$0xff] %v8797_v8  ;;  %v8813_v41 = vmul.f32 %v15014_v55, %v2181_v10  ;;  %v2183_v15 = vsub.f32 %v8816_v36, %v1754_v46  ;;  %v4988_v12 = vld [vmem:[%s5873_s25 + $0x438] sm:$0xff]  ;;  %v4989_v24 = vld [vmem:[%s5873_s25 + $0x430] sm:$0xff]  ;;  %v15016_v20 = vld [vmem:[#allocation250_spill] sm:$0xff]  ;;  %v8832_v10 = vsub.f32 %v14982_v47, %v1245_v49  ;;  %v1120_v46 = vsel %vm1100_vm0, %v865_v52, %v991_v33 }
 0x1b9   : > { %15011 = vst [vmem:[#allocation431_spill] sm:$0xff] %v8807_v56  ;;  %15013 = vst [vmem:[#allocation432_spill] sm:$0xff] %v8810_v25  ;;  %1875 = vrot.lane.b32.xlu1 %v4988_v12, %s5658_s29  ;;  %1873 = vrot.lane.b32.xlu0 %v4989_v24, %s5658_s29  ;;  %v15017_v60 = vld [vmem:[#allocation280_spill] sm:$0xff]  ;;  %v8829_v25 = vsub.f32 %v14983_v1, %v1119_v27  ;;  %v15024_v47 = vld [vmem:[#allocation259_spill] sm:$0xff]  ;;  %v1764_v24 = vpop.permute.xlu1 %1763 }
 0x1ba   : > { %15015 = vst [vmem:[#allocation433_spill] sm:$0xff] %v8813_v41  ;;  %v15018_v48 = vsub.f32 %v15016_v20, %v15017_v60  ;;  %15021 = vst [vmem:[#allocation434_spill] sm:$0xff] %v8832_v10  ;;  %v8835_v55 = vld [vmem:[%s5873_s25 + $0x670] sm:$0xff]  ;;  %v1246_v20 = vsel %vm1100_vm0, %v991_v33, %v865_v52  ;;  %v8846_v49 = vmul.f32 %v2184_v40, %v15024_v47  ;;  %v1762_v60 = vpop.permute.xlu0 %1761  ;;  %v8849_v41 = vld [vmem:[%s5873_s25 + $0x688] sm:$0xff]  ;;  %v993_v52 = vrot.slane %v7965_v16, 7 }
 0x1bb   : > { %15020 = vst [vmem:[#allocation280_spill] sm:$0xff] %v8829_v25  ;;  %15022 = vst [vmem:[#allocation435_spill] sm:$0xff] %v8835_v55  ;;  %v15023_v1 = vld [vmem:[#allocation288_spill] sm:$0xff]  ;;  %v15027_v33 = vld [vmem:[#allocation265_spill] sm:$0xff] }
 0x1bc   : > { %v8826_v56 = vadd.f32 1.0, %v15018_v48  ;;  %v866_v48 = vrot.slane %v7931_v54, 7  ;;  %v992_v27 = vrot.slane %v15023_v1, 7  ;;  %15025 = vst [vmem:[#allocation288_spill] sm:$0xff] %v8846_v49  ;;  %15026 = vst [vmem:[#allocation436_spill] sm:$0xff] %v8849_v41  ;;  %v8856_v8 = vmul.f32 %v15027_v33, %v2184_v40  ;;  %v15029_v38 = vld [vmem:[#allocation263_spill] sm:$0xff] }
 0x1bd   : > { %v8859_v18 = vmul.f32 %v2183_v15, %v15029_v38  ;;  %v8862_v49 = vmul.f32 %v7944_v0, %v2183_v15  ;;  %v8865_v47 = vld [vmem:[%s5873_s25 + $0x268] sm:$0xff]  ;;  %v8869_v12 = vld [vmem:[%s5873_s25 + $0x260] sm:$0xff]  ;;  %v8882_v0 = vsub.f32 %v15004_v45, %v1120_v46  ;;  %v1768_v45 = vpop.permute.xlu1 %1767  ;;  %v1122_v46 = vsel %vm1100_vm0, %v867_v11, %v993_v52 }
 0x1be   : > { %15019 = vst [vmem:[#allocation250_spill] sm:$0xff] %v8826_v56  ;;  %15028 = vst [vmem:[#allocation437_spill] sm:$0xff] %v8856_v8  ;;  %v2186_v10 = vsub.f32 %v8865_v47, %v1760_v61  ;;  %v2185_v63 = vsub.f32 %v8869_v12, %v1758_v37  ;;  %v4994_v25 = vld [vmem:[%s5873_s25 + $0x448] sm:$0xff]  ;;  %v4995_v40 = vld [vmem:[%s5873_s25 + $0x440] sm:$0xff]  ;;  %v8885_v61 = vsub.f32 %v15003_v57, %v1246_v20  ;;  %v1766_v57 = vpop.permute.xlu0 %1765 }
 0x1bf   : > { %15030 = vst [vmem:[#allocation438_spill] sm:$0xff] %v8859_v18  ;;  %15031 = vst [vmem:[#allocation439_spill] sm:$0xff] %v8862_v49  ;;  %1879 = vrot.lane.b32.xlu1 %v4994_v25, %s5658_s29  ;;  %1877 = vrot.lane.b32.xlu0 %v4995_v40, %s5658_s29  ;;  %v15032_v18 = vsub.f32 %v7805_v30, %v7901_v39  ;;  %v1121_v37 = vsel %vm1100_vm0, %v866_v48, %v992_v27  ;;  %v8890_v25 = vld [vmem:[%s5873_s25 + $0x680] sm:$0xff]  ;;  %v8897_v39 = vld [vmem:[%s5873_s25 + $0x698] sm:$0xff]  ;;  %v868_v40 = vrot.slane %v8018_v53, 7 }
 0x1c0   : > { %15034 = vst [vmem:[#allocation441_spill] sm:$0xff] %v8882_v0  ;;  %15035 = vst [vmem:[#allocation442_spill] sm:$0xff] %v8885_v61  ;;  %v1247_v30 = vsel %vm1100_vm0, %v992_v27, %v866_v48  ;;  %v1248_v20 = vsel %vm1100_vm0, %v993_v52, %v867_v11  ;;  %v994_v48 = vrot.slane %v8014_v28, 7  ;;  %v15038_v27 = vld [vmem:[#allocation271_spill] sm:$0xff]  ;;  %v8911_v49 = vmul.f32 %v8664_v19, %v2186_v10  ;;  %v8918_v8 = vld [vmem:[%s5873_s25 + $0x690] sm:$0xff] }
 0x1c1   : > { %v8879_v15 = vadd.f32 1.0, %v15032_v18  ;;  %15036 = vst [vmem:[#allocation443_spill] sm:$0xff] %v8890_v25  ;;  %15037 = vst [vmem:[#allocation444_spill] sm:$0xff] %v8897_v39  ;;  %v8908_v33 = vmul.f32 %v2186_v10, %v15038_v27  ;;  %v8914_v18 = vld [vmem:[%s5873_s25 + $0x278] sm:$0xff]  ;;  %v15042_v52 = vld [vmem:[#allocation275_spill] sm:$0xff]  ;;  %v8926_v55 = vmul.f32 %v8716_v7, %v2185_v63  ;;  %v995_v7 = vrot.slane %v8051_v50, 7 }
 0x1c2   : > { %15040 = vst [vmem:[#allocation446_spill] sm:$0xff] %v8911_v49  ;;  %v2188_v38 = vsub.f32 %v8914_v18, %v1764_v24  ;;  %15041 = vst [vmem:[#allocation447_spill] sm:$0xff] %v8918_v8  ;;  %v8923_v41 = vmul.f32 %v2185_v63, %v15042_v52  ;;  %v15045_v24 = vsub.f32 %v7802_v13, %v7906_v17  ;;  %v5001_v49 = vld [vmem:[%s5873_s25 + $0x458] sm:$0xff]  ;;  %v5002_v11 = vld [vmem:[%s5873_s25 + $0x450] sm:$0xff]  ;;  %v1772_v17 = vpop.permute.xlu1 %1771 }
 0x1c3   : > { %15033 = vst [vmem:[#allocation440_spill] sm:$0xff] %v8879_v15  ;;  %15039 = vst [vmem:[#allocation445_spill] sm:$0xff] %v8908_v33  ;;  %v8929_v33 = vld [vmem:[%s5873_s25 + $0x270] sm:$0xff]  ;;  %1883 = vrot.lane.b32.xlu1 %v5001_v49, %s5658_s29  ;;  %1881 = vrot.lane.b32.xlu0 %v5002_v11, %s5658_s29  ;;  %v8942_v63 = vsub.f32 %v15023_v1, %v1121_v37  ;;  %v8951_v13 = vsub.f32 %v7984_v3, %v1248_v20  ;;  %v8954_v49 = vld [vmem:[%s5873_s25 + $0x6a8] sm:$0xff]  ;;  %v869_v11 = vrot.slane %v8081_v43, 7 }
 0x1c4   : > { %15043 = vst [vmem:[#allocation448_spill] sm:$0xff] %v8923_v41  ;;  %15044 = vst [vmem:[#allocation449_spill] sm:$0xff] %v8926_v55  ;;  %v2187_v10 = vsub.f32 %v8929_v33, %v1762_v60  ;;  %v8935_v19 = vadd.f32 1.0, %v15045_v24  ;;  %v8945_v41 = vsub.f32 %v7931_v54, %v1247_v30  ;;  %v8948_v60 = vsub.f32 %v7965_v16, %v1122_v46  ;;  %v1770_v24 = vpop.permute.xlu0 %1769  ;;  %v8961_v54 = vld [vmem:[%s5873_s25 + $0x6a0] sm:$0xff]  ;;  %v15053_v37 = vld [vmem:[#allocation279_spill] sm:$0xff] }
 0x1c5   : > { %15047 = vst [vmem:[#allocation451_spill] sm:$0xff] %v8942_v63  ;;  %15050 = vst [vmem:[#allocation454_spill] sm:$0xff] %v8951_v13  ;;  %v1123_v1 = vsel %vm1100_vm0, %v868_v40, %v994_v48  ;;  %v1249_v3 = vsel %vm1100_vm0, %v994_v48, %v868_v40  ;;  %v8968_v30 = vmul.f32 %v2188_v38, %v15053_v37  ;;  %v8971_v46 = vld [vmem:[%s5873_s25 + $0x288] sm:$0xff]  ;;  %v15056_v55 = vld [vmem:[#allocation289_spill] sm:$0xff] }
 0x1c6   : > { %15046 = vst [vmem:[#allocation450_spill] sm:$0xff] %v8935_v19  ;;  %15048 = vst [vmem:[#allocation452_spill] sm:$0xff] %v8945_v41  ;;  %v2190_v20 = vsub.f32 %v8971_v46, %v1768_v45  ;;  %v8977_v52 = vmul.f32 %v8770_v2, %v2188_v38  ;;  %v8980_v16 = vmul.f32 %v2187_v10, %v15056_v55  ;;  %v8983_v40 = vld [vmem:[%s5873_s25 + $0x280] sm:$0xff]  ;;  %v5007_v37 = vld [vmem:[%s5873_s25 + $0x468] sm:$0xff] }
 0x1c7   : > { %15049 = vst [vmem:[#allocation453_spill] sm:$0xff] %v8948_v60  ;;  %15051 = vst [vmem:[#allocation455_spill] sm:$0xff] %v8954_v49  ;;  %v2189_v48 = vsub.f32 %v8983_v40, %v1766_v57  ;;  %1887 = vrot.lane.b32.xlu1 %v5007_v37, %s5658_s29  ;;  %v5008_v27 = vld [vmem:[%s5873_s25 + $0x460] sm:$0xff]  ;;  %v8996_v38 = vmul.f32 %v8826_v56, %v2187_v10  ;;  %v9002_v57 = vsub.f32 %v8018_v53, %v1249_v3  ;;  %v9005_v2 = vld [vmem:[%s5873_s25 + $0x6b8] sm:$0xff] }
 0x1c8   : > { %15052 = vst [vmem:[#allocation456_spill] sm:$0xff] %v8961_v54  ;;  %15054 = vst [vmem:[#allocation457_spill] sm:$0xff] %v8968_v30  ;;  %v15058_v30 = vsub.f32 %v7870_v22, %v7957_v44  ;;  %1885 = vrot.lane.b32.xlu0 %v5008_v27, %s5658_s29  ;;  %v1776_v44 = vpop.permute.xlu1 %1775  ;;  %v1774_v37 = vpop.permute.xlu0 %1773  ;;  %v9015_v10 = vld [vmem:[%s5873_s25 + $0x6c8] sm:$0xff]  ;;  %v9025_v56 = vld [vmem:[%s5873_s25 + $0x298] sm:$0xff]  ;;  %v1124_v27 = vsel %vm1100_vm0, %v869_v11, %v995_v7  ;;  %v1250_v53 = vsel %vm1100_vm0, %v995_v7, %v869_v11 }
 0x1c9   : > { %15055 = vst [vmem:[#allocation458_spill] sm:$0xff] %v8977_v52  ;;  %15057 = vst [vmem:[#allocation459_spill] sm:$0xff] %v8980_v16  ;;  %v8999_v16 = vsub.f32 %v8014_v28, %v1123_v1  ;;  %v870_v28 = vrot.slane %v8124_v59, 7  ;;  %v996_v1 = vrot.slane %v8120_v42, 7  ;;  %v15066_v3 = vld [vmem:[#allocation295_spill] sm:$0xff]  ;;  %v2192_v55 = vsub.f32 %v9025_v56, %v1772_v17  ;;  %v15069_v52 = vld [vmem:[#allocation296_spill] sm:$0xff] }
 0x1ca   : > { %v8989_v45 = vadd.f32 1.0, %v15058_v30  ;;  %15060 = vst [vmem:[#allocation461_spill] sm:$0xff] %v8996_v38  ;;  %15062 = vst [vmem:[#allocation463_spill] sm:$0xff] %v9002_v57  ;;  %v9010_v30 = vld [vmem:[%s5873_s25 + $0x6b0] sm:$0xff]  ;;  %v9022_v22 = vmul.f32 %v2190_v20, %v15066_v3  ;;  %v9033_v38 = vmul.f32 %v8879_v15, %v2190_v20  ;;  %v15071_v3 = vld [vmem:[#allocation281_spill] sm:$0xff]  ;;  %v9052_v7 = vmul.f32 %v8935_v19, %v2189_v48 }
 0x1cb   : > { %15061 = vst [vmem:[#allocation462_spill] sm:$0xff] %v8999_v16  ;;  %15063 = vst [vmem:[#allocation464_spill] sm:$0xff] %v9005_v2  ;;  %v9036_v2 = vmul.f32 %v2189_v48, %v15069_v52  ;;  %v9044_v8 = vld [vmem:[%s5873_s25 + $0x290] sm:$0xff]  ;;  %v5014_v39 = vld [vmem:[%s5873_s25 + $0x478] sm:$0xff]  ;;  %v9068_v48 = vsub.f32 %v8051_v50, %v1124_v27  ;;  %v871_v50 = vrot.slane %v8180_v23, 7 }
 0x1cc   : > { %15059 = vst [vmem:[#allocation460_spill] sm:$0xff] %v8989_v45  ;;  %15064 = vst [vmem:[#allocation465_spill] sm:$0xff] %v9010_v30  ;;  %v2191_v17 = vsub.f32 %v9044_v8, %v1770_v24  ;;  %1891 = vrot.lane.b32.xlu1 %v5014_v39, %s5658_s29  ;;  %v5015_v25 = vld [vmem:[%s5873_s25 + $0x470] sm:$0xff]  ;;  %v9055_v11 = vld [vmem:[%s5873_s25 + $0x2a8] sm:$0xff]  ;;  %v9088_v27 = vmul.f32 %v8989_v45, %v2192_v55 }
 0x1cd   : > { %15065 = vst [vmem:[#allocation466_spill] sm:$0xff] %v9015_v10  ;;  %15067 = vst [vmem:[#allocation467_spill] sm:$0xff] %v9022_v22  ;;  %v15072_v22 = vld [vmem:[#allocation298_spill] sm:$0xff]  ;;  %1889 = vrot.lane.b32.xlu0 %v5015_v25, %s5658_s29  ;;  %v2194_v20 = vsub.f32 %v9055_v11, %v1776_v44  ;;  %v1778_v25 = vpop.permute.xlu0 %1777  ;;  %v1125_v44 = vsel %vm1100_vm0, %v870_v28, %v996_v1  ;;  %v15079_v19 = vld [vmem:[#allocation303_spill] sm:$0xff] }
 0x1ce   : > { %15068 = vst [vmem:[#allocation468_spill] sm:$0xff] %v9033_v38  ;;  %15070 = vst [vmem:[#allocation469_spill] sm:$0xff] %v9036_v2  ;;  %v15073_v54 = vsub.f32 %v15071_v3, %v15072_v22  ;;  %v9063_v24 = vld [vmem:[%s5873_s25 + $0x6c0] sm:$0xff]  ;;  %v1780_v3 = vpop.permute.xlu1 %1779  ;;  %v9071_v2 = vsub.f32 %v8081_v43, %v1250_v53  ;;  %v9078_v15 = vmul.f32 %v2192_v55, %v15079_v19  ;;  %v9081_v39 = vld [vmem:[%s5873_s25 + $0x6d8] sm:$0xff]  ;;  %v997_v43 = vrot.slane %v8154_v51, 7 }
 0x1cf   : > { %15075 = vst [vmem:[#allocation298_spill] sm:$0xff] %v9052_v7  ;;  %15076 = vst [vmem:[#allocation470_spill] sm:$0xff] %v9063_v24  ;;  %v15083_v53 = vld [vmem:[#allocation305_spill] sm:$0xff]  ;;  %v872_v7 = vrot.slane %v8228_v21, 7  ;;  %v3118_v55 = vmul.f32 %v2194_v20, %v8085_v31  ;;  %v9128_v31 = vld [vmem:[%s5873_s25 + $0x6e8] sm:$0xff] }
 0x1d0   : > { %v9041_v49 = vadd.f32 1.0, %v15073_v54  ;;  %v9059_v54 = vld [vmem:[%s5873_s25 + $0x2a0] sm:$0xff]  ;;  %15077 = vst [vmem:[#allocation471_spill] sm:$0xff] %v9068_v48  ;;  %15078 = vst [vmem:[#allocation472_spill] sm:$0xff] %v9071_v2  ;;  %v9091_v52 = vmul.f32 %v2191_v17, %v15083_v53  ;;  %v9105_v45 = vld [vmem:[%s5873_s25 + $0x2b8] sm:$0xff] }
 0x1d1   : > { %v2193_v22 = vsub.f32 %v9059_v54, %v1774_v37  ;;  %v1251_v37 = vsel %vm1100_vm0, %v996_v1, %v870_v28  ;;  %15080 = vst [vmem:[#allocation473_spill] sm:$0xff] %v9078_v15  ;;  %15081 = vst [vmem:[#allocation474_spill] sm:$0xff] %v9081_v39  ;;  %v5020_v28 = vld [vmem:[%s5873_s25 + $0x488] sm:$0xff]  ;;  %v5021_v1 = vld [vmem:[%s5873_s25 + $0x480] sm:$0xff]  ;;  %v998_v15 = vrot.slane %v8224_v32, 7  ;;  %v1782_v38 = vpop.permute.xlu0 %1781 }
 0x1d2   : > { %15074 = vst [vmem:[#allocation281_spill] sm:$0xff] %v9041_v49  ;;  %15082 = vst [vmem:[#allocation475_spill] sm:$0xff] %v9088_v27  ;;  %1895 = vrot.lane.b32.xlu1 %v5020_v28, %s5658_s29  ;;  %1893 = vrot.lane.b32.xlu0 %v5021_v1, %s5658_s29  ;;  %v9100_v19 = vmul.f32 %v9041_v49, %v2191_v17  ;;  %v2196_v28 = vsub.f32 %v9105_v45, %v1780_v3  ;;  %v9109_v27 = vld [vmem:[%s5873_s25 + $0x2b0] sm:$0xff]  ;;  %v1784_v53 = vpop.permute.xlu1 %1783  ;;  %v5027_v30 = vld [vmem:[%s5873_s25 + $0x498] sm:$0xff] }
 0x1d3   : > { %15084 = vst [vmem:[#allocation476_spill] sm:$0xff] %v9091_v52  ;;  %v3117_v52 = vmul.f32 %v2193_v22, %v8088_v9  ;;  %15086 = vst [vmem:[#allocation478_spill] sm:$0xff] %v9105_v45  ;;  %v2195_v1 = vsub.f32 %v9109_v27, %v1778_v25  ;;  %v9113_v17 = vsub.f32 %v8120_v42, %v1125_v44  ;;  %v9119_v49 = vld [vmem:[%s5873_s25 + $0x6d0] sm:$0xff]  ;;  %v9133_v44 = vld [vmem:[%s5873_s25 + $0x6e0] sm:$0xff] }
 0x1d4   : > { %15085 = vst [vmem:[#allocation477_spill] sm:$0xff] %v9100_v19  ;;  %15087 = vst [vmem:[#allocation479_spill] sm:$0xff] %v9109_v27  ;;  %v9116_v19 = vsub.f32 %v8124_v59, %v1251_v37  ;;  %v1126_v3 = vsel %vm1100_vm0, %v871_v50, %v997_v43  ;;  %v1252_v25 = vsel %vm1100_vm0, %v997_v43, %v871_v50  ;;  %v15093_v37 = vld [vmem:[#allocation34_spill] sm:$0xff]  ;;  %v5028_v50 = vld [vmem:[%s5873_s25 + $0x490] sm:$0xff] }
 0x1d5   : > { %15088 = vst [vmem:[#allocation480_spill] sm:$0xff] %v9113_v17  ;;  %15090 = vst [vmem:[#allocation482_spill] sm:$0xff] %v9119_v49  ;;  %v9138_v10 = vmul.f32 %v2194_v20, %v15093_v37  ;;  %v15095_v9 = vld [vmem:[#allocation30_spill] sm:$0xff]  ;;  %v1127_v43 = vsel %vm1100_vm0, %v872_v7, %v998_v15  ;;  %v15097_v42 = vld [vmem:[#allocation144_spill] sm:$0xff]  ;;  %v1786_v49 = vpop.permute.xlu0 %1785 }
 0x1d6   : > { %15089 = vst [vmem:[#allocation481_spill] sm:$0xff] %v9116_v19  ;;  %15091 = vst [vmem:[#allocation483_spill] sm:$0xff] %v9128_v31  ;;  %v9141_v24 = vmul.f32 %v2193_v22, %v15095_v9  ;;  %1899 = vrot.lane.b32.xlu1 %v5027_v30, %s5658_s29  ;;  %1897 = vrot.lane.b32.xlu0 %v5028_v50, %s5658_s29  ;;  %v3286_v39 = vsub.f32 %v3118_v55, %v15097_v42  ;;  %v15098_v27 = vld [vmem:[#allocation136_spill] sm:$0xff]  ;;  %v15100_v22 = vld [vmem:[#allocation322_spill] sm:$0xff]  ;;  %v873_v42 = vrot.slane %v8286_v4, 7 }
 0x1d7   : > { %15092 = vst [vmem:[#allocation484_spill] sm:$0xff] %v9133_v44  ;;  %15094 = vst [vmem:[#allocation34_spill] sm:$0xff] %v9138_v10  ;;  %v3285_v59 = vsub.f32 %v3117_v52, %v15098_v27  ;;  %v15099_v20 = vld [vmem:[#allocation320_spill] sm:$0xff]  ;;  %v1253_v9 = vsel %vm1100_vm0, %v998_v15, %v872_v7  ;;  %v9156_v30 = vld [vmem:[%s5873_s25 + $0x2c8] sm:$0xff]  ;;  %v1788_v10 = vpop.permute.xlu1 %1787  ;;  %v9160_v55 = vsub.f32 %v8154_v51, %v1126_v3 }
 0x1d8   : > { %15096 = vst [vmem:[#allocation30_spill] sm:$0xff] %v9141_v24  ;;  %v3120_v37 = vmul.f32 %v2196_v28, %v15099_v20  ;;  %v3119_v24 = vmul.f32 %v2195_v1, %v15100_v22  ;;  %15101 = vst [vmem:[#allocation144_spill] sm:$0xff] %v9156_v30  ;;  %v2198_v50 = vsub.f32 %v9156_v30, %v1784_v53  ;;  %v9166_v27 = vld [vmem:[%s5873_s25 + $0x2c0] sm:$0xff]  ;;  %v999_v53 = vrot.slane %v8256_v29, 7  ;;  %v9175_v22 = vld [vmem:[%s5873_s25 + $0x2d8] sm:$0xff] }
 0x1d9   : > { %15102 = vst [vmem:[#allocation136_spill] sm:$0xff] %v9160_v55  ;;  %v9163_v52 = vsub.f32 %v8180_v23, %v1252_v25  ;;  %15104 = vst [vmem:[#allocation486_spill] sm:$0xff] %v9166_v27  ;;  %v2197_v15 = vsub.f32 %v9166_v27, %v1782_v38  ;;  %v9170_v7 = vsub.f32 %v8224_v32, %v1127_v43  ;;  %v5032_v51 = vld [vmem:[%s5873_s25 + $0x4a8] sm:$0xff]  ;;  %v5033_v23 = vld [vmem:[%s5873_s25 + $0x4a0] sm:$0xff] }
 0x1da   : > { %15106 = vst [vmem:[#allocation488_spill] sm:$0xff] %v9175_v22  ;;  %v9178_v20 = vsub.f32 %v9175_v22, %v1788_v10  ;;  %1903 = vrot.lane.b32.xlu1 %v5032_v51, %s5658_s29  ;;  %1901 = vrot.lane.b32.xlu0 %v5033_v23, %s5658_s29  ;;  %v9185_v32 = vsub.f32 %v8228_v21, %v1253_v9  ;;  %v9188_v38 = vld [vmem:[%s5873_s25 + $0x6f8] sm:$0xff]  ;;  %v15109_v25 = vld [vmem:[#allocation307_spill] sm:$0xff]  ;;  %v15110_v43 = vld [vmem:[#allocation302_spill] sm:$0xff] }
 0x1db   : > { %15103 = vst [vmem:[#allocation485_spill] sm:$0xff] %v9163_v52  ;;  %15105 = vst [vmem:[#allocation487_spill] sm:$0xff] %v9170_v7  ;;  %v15111_v10 = vsub.f32 %v15109_v25, %v15110_v43  ;;  %v15113_v27 = vld [vmem:[#allocation311_spill] sm:$0xff]  ;;  %v15114_v51 = vld [vmem:[#allocation304_spill] sm:$0xff] }
 0x1dc   : > { %15107 = vst [vmem:[#allocation489_spill] sm:$0xff] %v9185_v32  ;;  %15108 = vst [vmem:[#allocation490_spill] sm:$0xff] %v9188_v38  ;;  %v15115_v7 = vsub.f32 %v15113_v27, %v15114_v51  ;;  %v15117_v23 = vld [vmem:[#allocation31_spill] sm:$0xff]  ;;  %v15119_v21 = vld [vmem:[#allocation141_spill] sm:$0xff] }
 0x1dd   : > { %v9195_v22 = vmul.f32 %v3286_v39, %v15111_v10  ;;  %v9203_v52 = vmul.f32 %v2196_v28, %v15117_v23  ;;  %v3288_v9 = vsub.f32 %v3120_v37, %v15119_v21  ;;  %v15120_v32 = vld [vmem:[#allocation28_spill] sm:$0xff]  ;;  %v15122_v3 = vld [vmem:[#allocation133_spill] sm:$0xff]  ;;  %v1792_v10 = vpop.permute.xlu1 %1791  ;;  %v15125_v28 = vld [vmem:[#allocation330_spill] sm:$0xff]  ;;  %v1128_v37 = vsel %vm1100_vm0, %v873_v42, %v999_v53 }
 0x1de   : > { %v9200_v30 = vmul.f32 %v3285_v59, %v15115_v7  ;;  %v9207_v55 = vmul.f32 %v2195_v1, %v15120_v32  ;;  %v3287_v43 = vsub.f32 %v3119_v24, %v15122_v3  ;;  %v15123_v31 = vld [vmem:[#allocation328_spill] sm:$0xff]  ;;  %v3121_v7 = vmul.f32 %v2197_v15, %v15125_v28  ;;  %v9224_v24 = vld [vmem:[%s5873_s25 + $0x708] sm:$0xff]  ;;  %v5038_v23 = vld [vmem:[%s5873_s25 + $0x4b8] sm:$0xff] }
 0x1df   : > { %15112 = vst [vmem:[#allocation307_spill] sm:$0xff] %v9195_v22  ;;  %15118 = vst [vmem:[#allocation311_spill] sm:$0xff] %v9203_v52  ;;  %v3122_v39 = vmul.f32 %v2198_v50, %v15123_v31  ;;  %v1790_v22 = vpop.permute.xlu0 %1789  ;;  %v9212_v19 = vld [vmem:[%s5873_s25 + $0x6f0] sm:$0xff]  ;;  %v3124_v3 = vmul.f32 %v9178_v20, %v8187_v34  ;;  %1907 = vrot.lane.b32.xlu1 %v5038_v23, %s5658_s29  ;;  %v874_v59 = vrot.slane %v8330_v62, 7  ;;  %v1000_v28 = vrot.slane %v8326_v35, 7  ;;  %v15133_v23 = vld [vmem:[#allocation38_spill] sm:$0xff] }
 0x1e0   : > { %15116 = vst [vmem:[#allocation302_spill] sm:$0xff] %v9200_v30  ;;  %15121 = vst [vmem:[#allocation304_spill] sm:$0xff] %v9207_v55  ;;  %v9218_v51 = vld [vmem:[%s5873_s25 + $0x2d0] sm:$0xff]  ;;  %v9247_v52 = vmul.f32 %v2197_v15, %v15133_v23  ;;  %v9261_v15 = vsub.f32 %v8256_v29, %v1128_v37  ;;  %v15141_v23 = vld [vmem:[#allocation150_spill] sm:$0xff] }
 0x1e1   : > { %15124 = vst [vmem:[#allocation31_spill] sm:$0xff] %v9212_v19  ;;  %15126 = vst [vmem:[#allocation141_spill] sm:$0xff] %v9218_v51  ;;  %v2199_v1 = vsub.f32 %v9218_v51, %v1786_v49  ;;  %v5039_v21 = vld [vmem:[%s5873_s25 + $0x4b0] sm:$0xff]  ;;  %v1254_v49 = vsel %vm1100_vm0, %v999_v53, %v873_v42  ;;  %v15136_v53 = vld [vmem:[#allocation313_spill] sm:$0xff] }
 0x1e2   : > { %15127 = vst [vmem:[#allocation28_spill] sm:$0xff] %v9224_v24  ;;  %1905 = vrot.lane.b32.xlu0 %v5039_v21, %s5658_s29  ;;  %v15128_v31 = vld [vmem:[#allocation312_spill] sm:$0xff]  ;;  %v9250_v21 = vld [vmem:[%s5873_s25 + $0x2e8] sm:$0xff]  ;;  %v15137_v38 = vsub.f32 %v15136_v53, %v15113_v27  ;;  %v9266_v27 = vsub.f32 %v8286_v4, %v1254_v49  ;;  %v5044_v29 = vld [vmem:[%s5873_s25 + $0x4c0] sm:$0xff]  ;;  %v875_v49 = vrot.slane %v8386_v26, 7 }
 0x1e3   : > { %v15129_v32 = vsub.f32 %v15128_v31, %v15109_v25  ;;  %v15131_v34 = vld [vmem:[#allocation36_spill] sm:$0xff]  ;;  %15135 = vst [vmem:[#allocation38_spill] sm:$0xff] %v9250_v21  ;;  %v2202_v42 = vsub.f32 %v9250_v21, %v1792_v10  ;;  %v15142_v10 = vld [vmem:[#allocation338_spill] sm:$0xff]  ;;  %v9281_v37 = vld [vmem:[%s5873_s25 + $0x718] sm:$0xff] }
 0x1e4   : > { %v9244_v55 = vmul.f32 %v2198_v50, %v15131_v34  ;;  %15134 = vst [vmem:[#allocation36_spill] sm:$0xff] %v9247_v52  ;;  %v9256_v44 = vmul.f32 %v3287_v43, %v15137_v38  ;;  %v15139_v25 = vld [vmem:[#allocation148_spill] sm:$0xff]  ;;  %v1796_v50 = vpop.permute.xlu1 %1795  ;;  %v3289_v52 = vsub.f32 %v3121_v7, %v15141_v23  ;;  %15143 = vst [vmem:[#allocation150_spill] sm:$0xff] %v9266_v27  ;;  %v9269_v38 = vld [vmem:[%s5873_s25 + $0x700] sm:$0xff] }
 0x1e5   : > { %v9241_v30 = vmul.f32 %v3288_v9, %v15129_v32  ;;  %v3290_v9 = vsub.f32 %v3122_v39, %v15139_v25  ;;  %v5041_v32 = vld [vmem:[%s5873_s25 + $0x2e0] sm:$0xff]  ;;  %15140 = vst [vmem:[#allocation148_spill] sm:$0xff] %v9261_v15  ;;  %15144 = vst [vmem:[#allocation491_spill] sm:$0xff] %v9269_v38  ;;  %v5043_v25 = vld [vmem:[%s5873_s25 + $0x4c8] sm:$0xff]  ;;  %v1129_v7 = vsel %vm1100_vm0, %v874_v59, %v1000_v28 }
 0x1e6   : > { %15132 = vst [vmem:[#allocation312_spill] sm:$0xff] %v9244_v55  ;;  %15138 = vst [vmem:[#allocation313_spill] sm:$0xff] %v9256_v44  ;;  %v2201_v34 = vsub.f32 %v5041_v32, %v1790_v22  ;;  %v3123_v55 = vmul.f32 %v2199_v1, %v15142_v10  ;;  %v15145_v39 = vld [vmem:[#allocation154_spill] sm:$0xff]  ;;  %1911 = vrot.lane.b32.xlu1 %v5043_v25, %s5658_s29  ;;  %1909 = vrot.lane.b32.xlu0 %v5044_v29, %s5658_s29  ;;  %v15147_v32 = vld [vmem:[#allocation345_spill] sm:$0xff]  ;;  %v1001_v29 = vrot.slane %v8360_v5, 7 }
 0x1e7   : > { %15130 = vst [vmem:[#allocation133_spill] sm:$0xff] %v9241_v30  ;;  %v1794_v30 = vpop.permute.xlu0 %1793  ;;  %v3292_v22 = vsub.f32 %v3124_v3, %v15145_v39  ;;  %15146 = vst [vmem:[#allocation154_spill] sm:$0xff] %v9281_v37  ;;  %v3126_v23 = vmul.f32 %v2202_v42, %v15147_v32  ;;  %v5046_v3 = vld [vmem:[%s5873_s25 + $0x2f8] sm:$0xff]  ;;  %v1255_v25 = vsel %vm1100_vm0, %v1000_v28, %v874_v59  ;;  %v15148_v43 = vld [vmem:[#allocation323_spill] sm:$0xff] }
 0x1e8   : > { %v2204_v39 = vsub.f32 %v5046_v3, %v1796_v50  ;;  %v15149_v10 = vsub.f32 %v15148_v43, %v15128_v31  ;;  %v15151_v19 = vld [vmem:[#allocation40_spill] sm:$0xff]  ;;  %v15153_v24 = vld [vmem:[#allocation346_spill] sm:$0xff]  ;;  %v1800_v3 = vpop.permute.xlu1 %1799  ;;  %v5070_v17 = vld [vmem:[%s5873_s25 + $0x518] sm:$0xff] }
 0x1e9   : > { %v9298_v4 = vmul.f32 %v9178_v20, %v15151_v19  ;;  %v3125_v32 = vmul.f32 %v2201_v34, %v15153_v24  ;;  %v5047_v21 = vld [vmem:[%s5873_s25 + $0x2f0] sm:$0xff]  ;;  %v15157_v15 = vld [vmem:[#allocation42_spill] sm:$0xff]  ;;  %v9312_v19 = vsub.f32 %v8326_v35, %v1129_v7  ;;  %v15161_v20 = vld [vmem:[#allocation329_spill] sm:$0xff] }
 0x1ea   : > { %v9294_v44 = vmul.f32 %v3290_v9, %v15149_v10  ;;  %v2203_v50 = vsub.f32 %v5047_v21, %v1794_v30  ;;  %v15154_v59 = vld [vmem:[#allocation324_spill] sm:$0xff]  ;;  %v9308_v31 = vmul.f32 %v2199_v1, %v15157_v15  ;;  %v15162_v24 = vsub.f32 %v15161_v20, %v15148_v43  ;;  %v5048_v30 = vld [vmem:[%s5873_s25 + $0x4d8] sm:$0xff] }
 0x1eb   : > { %15152 = vst [vmem:[#allocation40_spill] sm:$0xff] %v9298_v4  ;;  %v1798_v51 = vpop.permute.xlu0 %1797  ;;  %v15155_v28 = vsub.f32 %v15154_v59, %v15136_v53  ;;  %v15159_v9 = vld [vmem:[#allocation156_spill] sm:$0xff]  ;;  %1915 = vrot.lane.b32.xlu1 %v5048_v30, %s5658_s29  ;;  %v1130_v43 = vsel %vm1100_vm0, %v875_v49, %v1001_v29 }
 0x1ec   : > { %15150 = vst [vmem:[#allocation323_spill] sm:$0xff] %v9294_v44  ;;  %15158 = vst [vmem:[#allocation42_spill] sm:$0xff] %v9308_v31  ;;  %v3291_v10 = vsub.f32 %v3123_v55, %v15159_v9  ;;  %v9317_v4 = vmul.f32 %v3292_v22, %v15162_v24  ;;  %v5049_v21 = vld [vmem:[%s5873_s25 + $0x4d0] sm:$0xff]  ;;  %v15166_v55 = vld [vmem:[#allocation161_spill] sm:$0xff]  ;;  %v1256_v22 = vsel %vm1100_vm0, %v1001_v29, %v875_v49 }
 0x1ed   : > { %v9305_v27 = vmul.f32 %v3289_v52, %v15155_v28  ;;  %15160 = vst [vmem:[#allocation156_spill] sm:$0xff] %v9312_v19  ;;  %1913 = vrot.lane.b32.xlu0 %v5049_v21, %s5658_s29  ;;  %v9324_v52 = vsub.f32 %v8330_v62, %v1255_v25  ;;  %v9327_v1 = vld [vmem:[%s5873_s25 + $0x710] sm:$0xff]  ;;  %v3294_v53 = vsub.f32 %v3126_v23, %v15166_v55  ;;  %v15167_v24 = vld [vmem:[#allocation354_spill] sm:$0xff]  ;;  %v15173_v21 = vld [vmem:[#allocation355_spill] sm:$0xff]  ;;  %v1804_v55 = vpop.permute.xlu1 %1803 }
 0x1ee   : > { %15163 = vst [vmem:[#allocation329_spill] sm:$0xff] %v9317_v4  ;;  %15165 = vst [vmem:[#allocation493_spill] sm:$0xff] %v9327_v1  ;;  %v3128_v15 = vmul.f32 %v2204_v39, %v15167_v24  ;;  %v15168_v7 = vld [vmem:[#allocation44_spill] sm:$0xff]  ;;  %v15170_v25 = vld [vmem:[#allocation46_spill] sm:$0xff]  ;;  %v3127_v23 = vmul.f32 %v2203_v50, %v15173_v21 }
 0x1ef   : > { %15156 = vst [vmem:[#allocation324_spill] sm:$0xff] %v9305_v27  ;;  %15164 = vst [vmem:[#allocation492_spill] sm:$0xff] %v9324_v52  ;;  %v9338_v62 = vmul.f32 %v2202_v42, %v15168_v7  ;;  %v9341_v28 = vmul.f32 %v2201_v34, %v15170_v25  ;;  %v15172_v9 = vld [vmem:[#allocation164_spill] sm:$0xff]  ;;  %v1802_v35 = vpop.permute.xlu0 %1801  ;;  %v15174_v24 = vld [vmem:[#allocation331_spill] sm:$0xff] }
 0x1f0   : > { %v3293_v30 = vsub.f32 %v3125_v32, %v15172_v9  ;;  %v15175_v4 = vsub.f32 %v15174_v24, %v15154_v59  ;;  %v5051_v49 = vld [vmem:[%s5873_s25 + $0x308] sm:$0xff]  ;;  %v5052_v25 = vld [vmem:[%s5873_s25 + $0x300] sm:$0xff]  ;;  %v9359_v59 = vsub.f32 %v8360_v5, %v1130_v43  ;;  %v15210_v37 = vld [vmem:[#allocation176_spill] sm:$0xff] }
 0x1f1   : > { %15169 = vst [vmem:[#allocation161_spill] sm:$0xff] %v9338_v62  ;;  %15171 = vst [vmem:[#allocation44_spill] sm:$0xff] %v9341_v28  ;;  %v2206_v29 = vsub.f32 %v5051_v49, %v1800_v3  ;;  %v15177_v42 = vld [vmem:[#allocation375_spill] sm:$0xff]  ;;  %v15178_v62 = vld [vmem:[#allocation374_spill] sm:$0xff]  ;;  %v2205_v28 = vsub.f32 %v5052_v25, %v1798_v51 }
 0x1f2   : > { %v9348_v31 = vmul.f32 %v3291_v10, %v15175_v4  ;;  %v876_v7 = vrot.slane %v15177_v42, 7  ;;  %v1002_v34 = vrot.slane %v15178_v62, 7  ;;  %v5053_v32 = vld [vmem:[%s5873_s25 + $0x4e8] sm:$0xff]  ;;  %v5054_v9 = vld [vmem:[%s5873_s25 + $0x4e0] sm:$0xff]  ;;  %15179 = vst [vmem:[#allocation164_spill] sm:$0xff] %v9359_v59  ;;  %v9362_v4 = vsub.f32 %v8386_v26, %v1256_v22  ;;  %v15181_v3 = vld [vmem:[#allocation332_spill] sm:$0xff] }
 0x1f3   : > { %1919 = vrot.lane.b32.xlu1 %v5053_v32, %s5658_s29  ;;  %1917 = vrot.lane.b32.xlu0 %v5054_v9, %s5658_s29  ;;  %v15182_v10 = vsub.f32 %v15181_v3, %v15161_v20  ;;  %v15184_v21 = vld [vmem:[#allocation167_spill] sm:$0xff]  ;;  %v5055_v25 = vld [vmem:[%s5873_s25 + $0x318] sm:$0xff]  ;;  %v15189_v20 = vld [vmem:[#allocation48_spill] sm:$0xff] }
 0x1f4   : > { %15176 = vst [vmem:[#allocation46_spill] sm:$0xff] %v9348_v31  ;;  %15180 = vst [vmem:[#allocation331_spill] sm:$0xff] %v9362_v4  ;;  %v3296_v51 = vsub.f32 %v3128_v15, %v15184_v21  ;;  %v2208_v32 = vsub.f32 %v5055_v25, %v1804_v55  ;;  %v9372_v31 = vld [vmem:[%s5873_s25 + $0x728] sm:$0xff]  ;;  %v15191_v9 = vld [vmem:[#allocation49_spill] sm:$0xff]  ;;  %v1806_v25 = vpop.permute.xlu0 %1805  ;;  %v1131_v5 = vsel %vm1100_vm0, %v876_v7, %v1002_v34 }
 0x1f5   : > { %v9367_v49 = vmul.f32 %v3294_v53, %v15182_v10  ;;  %15185 = vst [vmem:[#allocation374_spill] sm:$0xff] %v9372_v31  ;;  %v15186_v43 = vld [vmem:[#allocation339_spill] sm:$0xff]  ;;  %v9382_v53 = vmul.f32 %v2204_v39, %v15189_v20  ;;  %v9385_v15 = vmul.f32 %v2203_v50, %v15191_v9  ;;  %v1808_v10 = vpop.permute.xlu1 %1807  ;;  %v9397_v39 = vld [vmem:[%s5873_s25 + $0x738] sm:$0xff]  ;;  %v5059_v20 = vld [vmem:[%s5873_s25 + $0x310] sm:$0xff] }
 0x1f6   : > { %v15187_v26 = vsub.f32 %v15186_v43, %v15174_v24  ;;  %v15193_v21 = vld [vmem:[#allocation171_spill] sm:$0xff]  ;;  %v9392_v24 = vld [vmem:[%s5873_s25 + $0x720] sm:$0xff]  ;;  %15196 = vst [vmem:[#allocation49_spill] sm:$0xff] %v9397_v39  ;;  %v2207_v9 = vsub.f32 %v5059_v20, %v1802_v35  ;;  %v15201_v50 = vld [vmem:[#allocation364_spill] sm:$0xff] }
 0x1f7   : > { %15183 = vst [vmem:[#allocation375_spill] sm:$0xff] %v9367_v49  ;;  %15190 = vst [vmem:[#allocation167_spill] sm:$0xff] %v9382_v53  ;;  %v3295_v55 = vsub.f32 %v3127_v23, %v15193_v21  ;;  %v15194_v49 = vld [vmem:[#allocation356_spill] sm:$0xff]  ;;  %v5060_v21 = vld [vmem:[%s5873_s25 + $0x4f8] sm:$0xff]  ;;  %v3132_v44 = vmul.f32 %v2208_v32, %v15201_v50 }
 0x1f8   : > { %v9379_v22 = vmul.f32 %v3293_v30, %v15187_v26  ;;  %15192 = vst [vmem:[#allocation339_spill] sm:$0xff] %v9385_v15  ;;  %v3130_v27 = vmul.f32 %v2206_v29, %v15194_v49  ;;  %15195 = vst [vmem:[#allocation48_spill] sm:$0xff] %v9392_v24  ;;  %v15197_v26 = vld [vmem:[#allocation358_spill] sm:$0xff]  ;;  %1923 = vrot.lane.b32.xlu1 %v5060_v21, %s5658_s29  ;;  %v5061_v49 = vld [vmem:[%s5873_s25 + $0x4f0] sm:$0xff]  ;;  %v1257_v30 = vsel %vm1100_vm0, %v1002_v34, %v876_v7 }
 0x1f9   : > { %v3129_v23 = vmul.f32 %v2205_v28, %v15197_v26  ;;  %1921 = vrot.lane.b32.xlu0 %v5061_v49, %s5658_s29  ;;  %v877_v26 = vrot.slane %v8492_v6, 7  ;;  %v15202_v35 = vld [vmem:[#allocation219_spill] sm:$0xff]  ;;  %v15206_v49 = vld [vmem:[#allocation52_spill] sm:$0xff]  ;;  %v15208_v34 = vld [vmem:[#allocation53_spill] sm:$0xff]  ;;  %v1812_v50 = vpop.permute.xlu1 %1811 }
 0x1fa   : > { %15188 = vst [vmem:[#allocation332_spill] sm:$0xff] %v9379_v22  ;;  %v15198_v22 = vld [vmem:[#allocation341_spill] sm:$0xff]  ;;  %v1003_v20 = vrot.slane %v15202_v35, 7  ;;  %v15203_v21 = vld [vmem:[#allocation347_spill] sm:$0xff]  ;;  %v9423_v7 = vmul.f32 %v2206_v29, %v15206_v49  ;;  %v3298_v38 = vsub.f32 %v3130_v27, %v15210_v37  ;;  %v5063_v4 = vld [vmem:[%s5873_s25 + $0x320] sm:$0xff]  ;;  %v9435_v29 = vsub.f32 %v15177_v42, %v1257_v30 }
 0x1fb   : > { %v15199_v15 = vsub.f32 %v15198_v22, %v15181_v3  ;;  %v15204_v31 = vsub.f32 %v15203_v21, %v15186_v43  ;;  %v9426_v3 = vmul.f32 %v2205_v28, %v15208_v34  ;;  %v2209_v59 = vsub.f32 %v5063_v4, %v1806_v25  ;;  %v15213_v43 = vld [vmem:[#allocation178_spill] sm:$0xff]  ;;  %v5064_v34 = vld [vmem:[%s5873_s25 + $0x508] sm:$0xff]  ;;  %v9444_v27 = vld [vmem:[%s5873_s25 + $0x730] sm:$0xff] }
 0x1fc   : > { %15207 = vst [vmem:[#allocation219_spill] sm:$0xff] %v9423_v7  ;;  %15212 = vst [vmem:[#allocation53_spill] sm:$0xff] %v9435_v29  ;;  %v3297_v28 = vsub.f32 %v3129_v23, %v15213_v43  ;;  %1927 = vrot.lane.b32.xlu1 %v5064_v34, %s5658_s29  ;;  %v1132_v42 = vsel %vm1100_vm0, %v877_v26, %v1003_v20  ;;  %v878_v30 = vrot.slane %v8536_v58, 7  ;;  %v15218_v23 = vld [vmem:[#allocation371_spill] sm:$0xff]  ;;  %v5068_v43 = vld [vmem:[%s5873_s25 + $0x338] sm:$0xff] }
 0x1fd   : > { %v9412_v53 = vmul.f32 %v3296_v51, %v15199_v15  ;;  %v9420_v1 = vmul.f32 %v3295_v55, %v15204_v31  ;;  %15209 = vst [vmem:[#allocation347_spill] sm:$0xff] %v9426_v3  ;;  %v5062_v51 = vld [vmem:[%s5873_s25 + $0x328] sm:$0xff]  ;;  %v9432_v31 = vsub.f32 %v15178_v62, %v1131_v5  ;;  %v15214_v55 = vld [vmem:[#allocation193_spill] sm:$0xff]  ;;  %15215 = vst [vmem:[#allocation176_spill] sm:$0xff] %v9444_v27 }
 0x1fe   : > { %v2210_v15 = vsub.f32 %v5062_v51, %v1808_v10  ;;  %v3131_v49 = vmul.f32 %v2207_v9, %v15214_v55  ;;  %v5065_v10 = vld [vmem:[%s5873_s25 + $0x500] sm:$0xff]  ;;  %v9452_v5 = vld [vmem:[%s5873_s25 + $0x748] sm:$0xff]  ;;  %v2212_v34 = vsub.f32 %v5068_v43, %v1812_v50  ;;  %v15220_v3 = vld [vmem:[#allocation348_spill] sm:$0xff] }
 0x1ff   : > { %15200 = vst [vmem:[#allocation171_spill] sm:$0xff] %v9412_v53  ;;  %15205 = vst [vmem:[#allocation341_spill] sm:$0xff] %v9420_v1  ;;  %v1810_v53 = vpop.permute.xlu0 %1809  ;;  %1925 = vrot.lane.b32.xlu0 %v5065_v10, %s5658_s29  ;;  %v15216_v62 = vld [vmem:[#allocation182_spill] sm:$0xff]  ;;  %v1816_v10 = vpop.permute.xlu1 %1815  ;;  %v15221_v1 = vsub.f32 %v15220_v3, %v15198_v22  ;;  %v15223_v7 = vld [vmem:[#allocation56_spill] sm:$0xff] }
 0x200   : > { %15211 = vst [vmem:[#allocation52_spill] sm:$0xff] %v9432_v31  ;;  %v3300_v4 = vsub.f32 %v3132_v44, %v15216_v62  ;;  %15217 = vst [vmem:[#allocation178_spill] sm:$0xff] %v9452_v5  ;;  %v3134_v51 = vmul.f32 %v2210_v15, %v15218_v23  ;;  %v1258_v44 = vsel %vm1100_vm0, %v1003_v20, %v877_v26  ;;  %v15219_v62 = vld [vmem:[#allocation391_spill] sm:$0xff]  ;;  %v15225_v23 = vld [vmem:[#allocation372_spill] sm:$0xff]  ;;  %1931 = vrot.lane.b32.xlu1 %v5070_v17, %s5658_s29 }
 0x201   : > { %v1004_v55 = vrot.slane %v15219_v62, 7  ;;  %v9465_v25 = vmul.f32 %v3298_v38, %v15221_v1  ;;  %v9468_v39 = vmul.f32 %v2208_v32, %v15223_v7  ;;  %v3133_v24 = vmul.f32 %v2209_v59, %v15225_v23  ;;  %v5069_v29 = vld [vmem:[%s5873_s25 + $0x330] sm:$0xff]  ;;  %v15226_v43 = vld [vmem:[#allocation349_spill] sm:$0xff]  ;;  %v15232_v1 = vld [vmem:[#allocation359_spill] sm:$0xff] }
 0x202   : > { %v2211_v50 = vsub.f32 %v5069_v29, %v1810_v53  ;;  %v15227_v31 = vsub.f32 %v15226_v43, %v15203_v21  ;;  %v15229_v26 = vld [vmem:[#allocation57_spill] sm:$0xff]  ;;  %v5071_v38 = vld [vmem:[%s5873_s25 + $0x510] sm:$0xff]  ;;  %v15233_v32 = vsub.f32 %v15232_v1, %v15220_v3  ;;  %v9491_v21 = vsub.f32 %v15202_v35, %v1132_v42  ;;  %v15282_v5 = vld [vmem:[#allocation70_spill] sm:$0xff] }
 0x203   : > { %v1814_v37 = vpop.permute.xlu0 %1813  ;;  %15222 = vst [vmem:[#allocation182_spill] sm:$0xff] %v9465_v25  ;;  %15224 = vst [vmem:[#allocation391_spill] sm:$0xff] %v9468_v39  ;;  %v9478_v20 = vmul.f32 %v2207_v9, %v15229_v26  ;;  %v15231_v19 = vld [vmem:[#allocation185_spill] sm:$0xff]  ;;  %1929 = vrot.lane.b32.xlu0 %v5071_v38, %s5658_s29  ;;  %v9494_v9 = vsub.f32 %v8492_v6, %v1258_v44  ;;  %v1820_v3 = vpop.permute.xlu1 %1819  ;;  %v1133_v35 = vsel %vm1100_vm0, %v878_v30, %v1004_v55  ;;  %v15242_v44 = vld [vmem:[#allocation192_spill] sm:$0xff] }
 0x204   : > { %v9475_v52 = vmul.f32 %v3297_v28, %v15227_v31  ;;  %v3299_v22 = vsub.f32 %v3131_v49, %v15231_v19  ;;  %v9488_v53 = vmul.f32 %v3300_v4, %v15233_v32  ;;  %15235 = vst [vmem:[#allocation57_spill] sm:$0xff] %v9491_v21  ;;  %v9497_v19 = vld [vmem:[%s5873_s25 + $0x740] sm:$0xff]  ;;  %v15238_v7 = vld [vmem:[#allocation189_spill] sm:$0xff]  ;;  %v1259_v6 = vsel %vm1100_vm0, %v1004_v55, %v878_v30  ;;  %v15240_v4 = vld [vmem:[#allocation60_spill] sm:$0xff] }
 0x205   : > { %15230 = vst [vmem:[#allocation56_spill] sm:$0xff] %v9478_v20  ;;  %15236 = vst [vmem:[#allocation185_spill] sm:$0xff] %v9494_v9  ;;  %v3302_v31 = vsub.f32 %v3134_v51, %v15238_v7  ;;  %v15239_v29 = vld [vmem:[#allocation377_spill] sm:$0xff]  ;;  %v9508_v42 = vmul.f32 %v2210_v15, %v15240_v4  ;;  %v3301_v26 = vsub.f32 %v3133_v24, %v15242_v44  ;;  %v15243_v38 = vld [vmem:[#allocation378_spill] sm:$0xff] }
 0x206   : > { %15228 = vst [vmem:[#allocation348_spill] sm:$0xff] %v9475_v52  ;;  %15234 = vst [vmem:[#allocation349_spill] sm:$0xff] %v9488_v53  ;;  %v3136_v28 = vmul.f32 %v2212_v34, %v15239_v29  ;;  %v3135_v32 = vmul.f32 %v2211_v50, %v15243_v38  ;;  %v5073_v51 = vld [vmem:[%s5873_s25 + $0x348] sm:$0xff]  ;;  %v15244_v17 = vld [vmem:[#allocation360_spill] sm:$0xff] }
 0x207   : > { %15237 = vst [vmem:[#allocation359_spill] sm:$0xff] %v9497_v19  ;;  %v1818_v49 = vpop.permute.xlu0 %1817  ;;  %15241 = vst [vmem:[#allocation189_spill] sm:$0xff] %v9508_v42  ;;  %v2214_v7 = vsub.f32 %v5073_v51, %v1816_v10  ;;  %v15245_v29 = vsub.f32 %v15244_v17, %v15226_v43  ;;  %v15247_v53 = vld [vmem:[#allocation61_spill] sm:$0xff]  ;;  %v5074_v55 = vld [vmem:[%s5873_s25 + $0x528] sm:$0xff]  ;;  %v9529_v43 = vsub.f32 %v15219_v62, %v1133_v35 }
 0x208   : > { %v9519_v52 = vmul.f32 %v2209_v59, %v15247_v53  ;;  %1935 = vrot.lane.b32.xlu1 %v5074_v55, %s5658_s29  ;;  %v5075_v15 = vld [vmem:[%s5873_s25 + $0x520] sm:$0xff]  ;;  %v15249_v24 = vld [vmem:[#allocation401_spill] sm:$0xff]  ;;  %v15250_v4 = vld [vmem:[#allocation235_spill] sm:$0xff]  ;;  %v9532_v59 = vsub.f32 %v8536_v58, %v1259_v6 }
 0x209   : > { %v9516_v23 = vmul.f32 %v3299_v22, %v15245_v29  ;;  %1933 = vrot.lane.b32.xlu0 %v5075_v15, %s5658_s29  ;;  %v879_v30 = vrot.slane %v15249_v24, 7  ;;  %v1005_v44 = vrot.slane %v15250_v4, 7  ;;  %v5076_v10 = vld [vmem:[%s5873_s25 + $0x340] sm:$0xff]  ;;  %15251 = vst [vmem:[#allocation360_spill] sm:$0xff] %v9529_v43  ;;  %v9535_v22 = vld [vmem:[%s5873_s25 + $0x758] sm:$0xff]  ;;  %v15257_v38 = vld [vmem:[#allocation64_spill] sm:$0xff] }
 0x20a   : > { %15248 = vst [vmem:[#allocation192_spill] sm:$0xff] %v9519_v52  ;;  %v2213_v51 = vsub.f32 %v5076_v10, %v1814_v37  ;;  %15252 = vst [vmem:[#allocation61_spill] sm:$0xff] %v9532_v59  ;;  %v15254_v29 = vld [vmem:[#allocation365_spill] sm:$0xff]  ;;  %v9545_v37 = vmul.f32 %v2212_v34, %v15257_v38  ;;  %v15259_v62 = vld [vmem:[#allocation200_spill] sm:$0xff]  ;;  %v1824_v10 = vpop.permute.xlu1 %1823 }
 0x20b   : > { %15246 = vst [vmem:[#allocation60_spill] sm:$0xff] %v9516_v23  ;;  %15253 = vst [vmem:[#allocation401_spill] sm:$0xff] %v9535_v22  ;;  %v15255_v55 = vsub.f32 %v15254_v29, %v15232_v1  ;;  %v3304_v35 = vsub.f32 %v3136_v28, %v15259_v62  ;;  %v5078_v58 = vld [vmem:[%s5873_s25 + $0x358] sm:$0xff]  ;;  %v1822_v23 = vpop.permute.xlu0 %1821  ;;  %v15260_v52 = vld [vmem:[#allocation186_spill] sm:$0xff] }
 0x20c   : > { %15258 = vst [vmem:[#allocation365_spill] sm:$0xff] %v9545_v37  ;;  %v2216_v6 = vsub.f32 %v5078_v58, %v1820_v3  ;;  %v15261_v53 = vsub.f32 %v15260_v52, %v15244_v17  ;;  %v15263_v1 = vld [vmem:[#allocation66_spill] sm:$0xff]  ;;  %v15266_v34 = vld [vmem:[#allocation385_spill] sm:$0xff]  ;;  %v5080_v28 = vld [vmem:[%s5873_s25 + $0x530] sm:$0xff]  ;;  %v1134_v3 = vsel %vm1100_vm0, %v879_v30, %v1005_v44 }
 0x20d   : > { %v9542_v15 = vmul.f32 %v3302_v31, %v15255_v55  ;;  %v9555_v31 = vmul.f32 %v2211_v50, %v15263_v1  ;;  %v15265_v55 = vld [vmem:[#allocation202_spill] sm:$0xff]  ;;  %v3138_v38 = vmul.f32 %v2214_v7, %v15266_v34  ;;  %v5079_v37 = vld [vmem:[%s5873_s25 + $0x538] sm:$0xff]  ;;  %1937 = vrot.lane.b32.xlu0 %v5080_v28, %s5658_s29  ;;  %v9566_v62 = vld [vmem:[%s5873_s25 + $0x750] sm:$0xff]  ;;  %v1260_v1 = vsel %vm1100_vm0, %v1005_v44, %v879_v30 }
 0x20e   : > { %v9552_v42 = vmul.f32 %v3301_v26, %v15261_v53  ;;  %1939 = vrot.lane.b32.xlu1 %v5079_v37, %s5658_s29  ;;  %15267 = vst [vmem:[#allocation186_spill] sm:$0xff] %v9566_v62  ;;  %v9571_v50 = vld [vmem:[%s5873_s25 + $0x768] sm:$0xff]  ;;  %v5083_v37 = vld [vmem:[%s5873_s25 + $0x350] sm:$0xff]  ;;  %v1828_v25 = vpop.permute.xlu1 %1827  ;;  %v15278_v22 = vld [vmem:[#allocation373_spill] sm:$0xff] }
 0x20f   : > { %15256 = vst [vmem:[#allocation235_spill] sm:$0xff] %v9542_v15  ;;  %15264 = vst [vmem:[#allocation200_spill] sm:$0xff] %v9555_v31  ;;  %v3303_v15 = vsub.f32 %v3135_v32, %v15265_v55  ;;  %v15269_v32 = vld [vmem:[#allocation386_spill] sm:$0xff]  ;;  %v2215_v58 = vsub.f32 %v5083_v37, %v1818_v49  ;;  %v15270_v55 = vld [vmem:[#allocation408_spill] sm:$0xff]  ;;  %v1826_v39 = vpop.permute.xlu0 %1825  ;;  %v15279_v30 = vsub.f32 %v15278_v22, %v15260_v52 }
 0x210   : > { %15262 = vst [vmem:[#allocation64_spill] sm:$0xff] %v9552_v42  ;;  %15268 = vst [vmem:[#allocation66_spill] sm:$0xff] %v9571_v50  ;;  %v3137_v53 = vmul.f32 %v2213_v51, %v15269_v32  ;;  %v880_v28 = vrot.slane %v15270_v55, 7  ;;  %v15271_v31 = vld [vmem:[#allocation366_spill] sm:$0xff]  ;;  %v15274_v42 = vld [vmem:[#allocation68_spill] sm:$0xff]  ;;  %v9606_v52 = vsub.f32 %v15250_v4, %v1134_v3 }
 0x211   : > { %v15272_v17 = vsub.f32 %v15271_v31, %v15254_v29  ;;  %v9586_v20 = vmul.f32 %v2214_v7, %v15274_v42  ;;  %v15276_v26 = vld [vmem:[#allocation387_spill] sm:$0xff]  ;;  %v9593_v44 = vmul.f32 %v3303_v15, %v15279_v30  ;;  %v15286_v15 = vld [vmem:[#allocation213_spill] sm:$0xff]  ;;  %v5091_v59 = vld [vmem:[%s5873_s25 + $0x370] sm:$0xff] }
 0x212   : > { %v3140_v32 = vmul.f32 %v2216_v6, %v15276_v26  ;;  %v15277_v49 = vld [vmem:[#allocation407_spill] sm:$0xff]  ;;  %v15291_v30 = vld [vmem:[#allocation417_spill] sm:$0xff]  ;;  %v2219_v43 = vsub.f32 %v5091_v59, %v1826_v39 }
 0x213   : > { %v9583_v34 = vmul.f32 %v3304_v35, %v15272_v17  ;;  %15275 = vst [vmem:[#allocation408_spill] sm:$0xff] %v9586_v20  ;;  %v1006_v37 = vrot.slane %v15277_v49, 7  ;;  %15280 = vst [vmem:[#allocation366_spill] sm:$0xff] %v9593_v44  ;;  %v15281_v19 = vld [vmem:[#allocation211_spill] sm:$0xff]  ;;  %v9597_v35 = vmul.f32 %v2213_v51, %v15282_v5  ;;  %v5085_v17 = vld [vmem:[%s5873_s25 + $0x360] sm:$0xff]  ;;  %v3305_v5 = vsub.f32 %v3137_v53, %v15286_v15 }
 0x214   : > { %v3306_v29 = vsub.f32 %v3138_v38, %v15281_v19  ;;  %v5084_v42 = vld [vmem:[%s5873_s25 + $0x368] sm:$0xff]  ;;  %v2217_v26 = vsub.f32 %v5085_v17, %v1822_v23  ;;  %15284 = vst [vmem:[#allocation407_spill] sm:$0xff] %v9606_v52  ;;  %v9609_v19 = vsub.f32 %v15249_v24, %v1260_v1  ;;  %v15287_v51 = vld [vmem:[#allocation225_spill] sm:$0xff]  ;;  %v1832_v24 = vpop.permute.xlu1 %1831  ;;  %v1830_v1 = vpop.permute.xlu0 %1829  ;;  %v15293_v23 = vld [vmem:[#allocation198_spill] sm:$0xff] }
 0x215   : > { %15273 = vst [vmem:[#allocation202_spill] sm:$0xff] %v9583_v34  ;;  %15283 = vst [vmem:[#allocation68_spill] sm:$0xff] %v9597_v35  ;;  %v2218_v7 = vsub.f32 %v5084_v42, %v1824_v10  ;;  %v5086_v20 = vld [vmem:[%s5873_s25 + $0x548] sm:$0xff]  ;;  %v5087_v34 = vld [vmem:[%s5873_s25 + $0x540] sm:$0xff]  ;;  %v3139_v38 = vmul.f32 %v2215_v58, %v15287_v51  ;;  %v1135_v53 = vsel %vm1100_vm0, %v880_v28, %v1006_v37  ;;  %v881_v42 = vrot.slane %v15291_v30, 7 }
 0x216   : > { %1943 = vrot.lane.b32.xlu1 %v5086_v20, %s5658_s29  ;;  %1941 = vrot.lane.b32.xlu0 %v5087_v34, %s5658_s29  ;;  %15285 = vst [vmem:[#allocation373_spill] sm:$0xff] %v9609_v19  ;;  %v9614_v10 = vld [vmem:[%s5873_s25 + $0x760] sm:$0xff]  ;;  %v9619_v20 = vld [vmem:[%s5873_s25 + $0x778] sm:$0xff]  ;;  %v15290_v34 = vld [vmem:[#allocation215_spill] sm:$0xff]  ;;  %v15294_v51 = vsub.f32 %v15293_v23, %v15271_v31 }
 0x217   : > { %15288 = vst [vmem:[#allocation211_spill] sm:$0xff] %v9614_v10  ;;  %15289 = vst [vmem:[#allocation70_spill] sm:$0xff] %v9619_v20  ;;  %v3308_v3 = vsub.f32 %v3140_v32, %v15290_v34  ;;  %v15292_v17 = vld [vmem:[#allocation413_spill] sm:$0xff]  ;;  %v15296_v35 = vld [vmem:[#allocation394_spill] sm:$0xff]  ;;  %v1261_v32 = vsel %vm1100_vm0, %v1006_v37, %v880_v28 }
 0x218   : > { %v1007_v15 = vrot.slane %v15292_v17, 7  ;;  %v9631_v44 = vmul.f32 %v3306_v29, %v15294_v51  ;;  %v3142_v4 = vmul.f32 %v2218_v7, %v15296_v35  ;;  %v5090_v50 = vld [vmem:[%s5873_s25 + $0x378] sm:$0xff]  ;;  %v15297_v34 = vld [vmem:[#allocation71_spill] sm:$0xff]  ;;  %v15299_v19 = vld [vmem:[#allocation232_spill] sm:$0xff] }
 0x219   : > { %v2220_v62 = vsub.f32 %v5090_v50, %v1828_v25  ;;  %v9638_v27 = vmul.f32 %v2216_v6, %v15297_v34  ;;  %v3141_v52 = vmul.f32 %v2217_v26, %v15299_v19  ;;  %v5092_v9 = vld [vmem:[%s5873_s25 + $0x558] sm:$0xff]  ;;  %v5093_v31 = vld [vmem:[%s5873_s25 + $0x550] sm:$0xff]  ;;  %v15300_v29 = vld [vmem:[#allocation379_spill] sm:$0xff]  ;;  %v9656_v34 = vsub.f32 %v15277_v49, %v1135_v53  ;;  %v1834_v19 = vpop.permute.xlu0 %1833 }
 0x21a   : > { %15295 = vst [vmem:[#allocation213_spill] sm:$0xff] %v9631_v44  ;;  %1947 = vrot.lane.b32.xlu1 %v5092_v9, %s5658_s29  ;;  %1945 = vrot.lane.b32.xlu0 %v5093_v31, %s5658_s29  ;;  %v15301_v25 = vsub.f32 %v15300_v29, %v15278_v22  ;;  %v15303_v28 = vld [vmem:[#allocation74_spill] sm:$0xff]  ;;  %v15307_v39 = vld [vmem:[#allocation217_spill] sm:$0xff]  ;;  %v1836_v31 = vpop.permute.xlu1 %1835  ;;  %v9664_v22 = vsub.f32 %v15270_v55, %v1261_v32  ;;  %v15319_v35 = vld [vmem:[#allocation404_spill] sm:$0xff] }
 0x21b   : > { %15298 = vst [vmem:[#allocation215_spill] sm:$0xff] %v9638_v27  ;;  %v9652_v37 = vmul.f32 %v2215_v58, %v15303_v28  ;;  %v15305_v6 = vld [vmem:[#allocation218_spill] sm:$0xff]  ;;  %15306 = vst [vmem:[#allocation198_spill] sm:$0xff] %v9656_v34  ;;  %v15308_v9 = vsub.f32 %v15307_v39, %v15293_v23  ;;  %v1136_v58 = vsel %vm1100_vm0, %v881_v42, %v1007_v15  ;;  %v15316_v32 = vld [vmem:[#allocation77_spill] sm:$0xff] }
 0x21c   : > { %v9649_v50 = vmul.f32 %v3305_v5, %v15301_v25  ;;  %v3307_v51 = vsub.f32 %v3139_v38, %v15305_v6  ;;  %15310 = vst [vmem:[#allocation379_spill] sm:$0xff] %v9664_v22  ;;  %v9669_v5 = vld [vmem:[%s5873_s25 + $0x770] sm:$0xff]  ;;  %v15315_v25 = vld [vmem:[#allocation403_spill] sm:$0xff]  ;;  %v1262_v55 = vsel %vm1100_vm0, %v1007_v15, %v881_v42  ;;  %v9681_v6 = vmul.f32 %v2217_v26, %v15316_v32  ;;  %v5098_v26 = vld [vmem:[%s5873_s25 + $0x380] sm:$0xff] }
 0x21d   : > { %15304 = vst [vmem:[#allocation413_spill] sm:$0xff] %v9652_v37  ;;  %v9661_v59 = vmul.f32 %v3308_v3, %v15308_v9  ;;  %15311 = vst [vmem:[#allocation74_spill] sm:$0xff] %v9669_v5  ;;  %v15312_v38 = vld [vmem:[#allocation76_spill] sm:$0xff]  ;;  %v3144_v28 = vmul.f32 %v2220_v62, %v15315_v25  ;;  %v5095_v37 = vld [vmem:[%s5873_s25 + $0x568] sm:$0xff]  ;;  %v2221_v32 = vsub.f32 %v5098_v26, %v1830_v1  ;;  %v1838_v49 = vpop.permute.xlu0 %1837 }
 0x21e   : > { %15302 = vst [vmem:[#allocation417_spill] sm:$0xff] %v9649_v50  ;;  %v9674_v23 = vmul.f32 %v2218_v7, %v15312_v38  ;;  %v15314_v3 = vld [vmem:[#allocation224_spill] sm:$0xff]  ;;  %15317 = vst [vmem:[#allocation217_spill] sm:$0xff] %v9681_v6  ;;  %v3143_v50 = vmul.f32 %v2219_v43, %v15319_v35  ;;  %1951 = vrot.lane.b32.xlu1 %v5095_v37, %s5658_s29  ;;  %v5096_v7 = vld [vmem:[%s5873_s25 + $0x560] sm:$0xff]  ;;  %v9700_v37 = vsub.f32 %v15291_v30, %v1262_v55 }
 0x21f   : > { %15309 = vst [vmem:[#allocation71_spill] sm:$0xff] %v9661_v59  ;;  %v3310_v53 = vsub.f32 %v3142_v4, %v15314_v3  ;;  %v15318_v9 = vld [vmem:[#allocation228_spill] sm:$0xff]  ;;  %1949 = vrot.lane.b32.xlu0 %v5096_v7, %s5658_s29  ;;  %v5097_v42 = vld [vmem:[%s5873_s25 + $0x388] sm:$0xff]  ;;  %v15333_v30 = vld [vmem:[#allocation234_spill] sm:$0xff] }
 0x220   : > { %15313 = vst [vmem:[#allocation218_spill] sm:$0xff] %v9674_v23  ;;  %v3309_v59 = vsub.f32 %v3141_v52, %v15318_v9  ;;  %v15320_v4 = vld [vmem:[#allocation380_spill] sm:$0xff]  ;;  %v2222_v15 = vsub.f32 %v5097_v42, %v1832_v24  ;;  %v9697_v52 = vsub.f32 %v15292_v17, %v1136_v58  ;;  %v1840_v9 = vpop.permute.xlu1 %1839  ;;  %15324 = vst [vmem:[#allocation77_spill] sm:$0xff] %v9700_v37  ;;  %v9703_v7 = vld [vmem:[%s5873_s25 + $0x788] sm:$0xff] }
 0x221   : > { %v15321_v38 = vsub.f32 %v15320_v4, %v15300_v29  ;;  %15325 = vst [vmem:[#allocation228_spill] sm:$0xff] %v9703_v7  ;;  %v15328_v42 = vld [vmem:[#allocation388_spill] sm:$0xff]  ;;  %v3312_v55 = vsub.f32 %v3144_v28, %v15333_v30  ;;  %v15334_v6 = vld [vmem:[#allocation82_spill] sm:$0xff]  ;;  %v15336_v29 = vld [vmem:[#allocation389_spill] sm:$0xff] }
 0x222   : > { %15323 = vst [vmem:[#allocation224_spill] sm:$0xff] %v9697_v52  ;;  %v15329_v17 = vsub.f32 %v15328_v42, %v15307_v39  ;;  %v15331_v26 = vld [vmem:[#allocation80_spill] sm:$0xff]  ;;  %v9719_v25 = vmul.f32 %v2219_v43, %v15334_v6  ;;  %v15339_v27 = vld [vmem:[#allocation238_spill] sm:$0xff]  ;;  %v5100_v39 = vld [vmem:[%s5873_s25 + $0x398] sm:$0xff] }
 0x223   : > { %v9692_v3 = vmul.f32 %v3307_v51, %v15321_v38  ;;  %v15326_v51 = vld [vmem:[#allocation426_spill] sm:$0xff]  ;;  %v9715_v35 = vmul.f32 %v2220_v62, %v15331_v26  ;;  %v3311_v44 = vsub.f32 %v3143_v50, %v15339_v27  ;;  %v5102_v62 = vld [vmem:[%s5873_s25 + $0x570] sm:$0xff]  ;;  %v15340_v28 = vld [vmem:[#allocation409_spill] sm:$0xff] }
 0x224   : > { %v882_v24 = vrot.slane %v15326_v51, 7  ;;  %v15327_v38 = vld [vmem:[#allocation270_spill] sm:$0xff]  ;;  %v9712_v58 = vmul.f32 %v3310_v53, %v15329_v17  ;;  %v2224_v53 = vsub.f32 %v5100_v39, %v1836_v31  ;;  %v5101_v17 = vld [vmem:[%s5873_s25 + $0x578] sm:$0xff]  ;;  %1953 = vrot.lane.b32.xlu0 %v5102_v62, %s5658_s29  ;;  %v3146_v26 = vmul.f32 %v2222_v15, %v15340_v28  ;;  %v5105_v50 = vld [vmem:[%s5873_s25 + $0x390] sm:$0xff]  ;;  %v1842_v39 = vpop.permute.xlu0 %1841 }
 0x225   : > { %15322 = vst [vmem:[#allocation76_spill] sm:$0xff] %v9692_v3  ;;  %v1008_v1 = vrot.slane %v15327_v38, 7  ;;  %15332 = vst [vmem:[#allocation426_spill] sm:$0xff] %v9715_v35  ;;  %v15337_v3 = vsub.f32 %v15336_v29, %v15320_v4  ;;  %1955 = vrot.lane.b32.xlu1 %v5101_v17, %s5658_s29  ;;  %v15341_v30 = vld [vmem:[#allocation410_spill] sm:$0xff]  ;;  %v9740_v4 = vld [vmem:[%s5873_s25 + $0x798] sm:$0xff]  ;;  %v2223_v31 = vsub.f32 %v5105_v50, %v1834_v19 }
 0x226   : > { %15330 = vst [vmem:[#allocation380_spill] sm:$0xff] %v9712_v58  ;;  %15335 = vst [vmem:[#allocation270_spill] sm:$0xff] %v9719_v25  ;;  %v3145_v43 = vmul.f32 %v2221_v32, %v15341_v30  ;;  %v9735_v6 = vld [vmem:[%s5873_s25 + $0x780] sm:$0xff]  ;;  %v15344_v30 = vld [vmem:[#allocation395_spill] sm:$0xff] }
 0x227   : > { %v9724_v23 = vmul.f32 %v3309_v59, %v15337_v3  ;;  %15342 = vst [vmem:[#allocation80_spill] sm:$0xff] %v9735_v6  ;;  %15343 = vst [vmem:[#allocation234_spill] sm:$0xff] %v9740_v4  ;;  %v1844_v3 = vpop.permute.xlu1 %1843  ;;  %v1137_v17 = vsel %vm1100_vm0, %v882_v24, %v1008_v1  ;;  %v1263_v62 = vsel %vm1100_vm0, %v1008_v1, %v882_v24  ;;  %v883_v59 = vrot.slane %v8816_v36, 7  ;;  %v15347_v27 = vld [vmem:[#allocation84_spill] sm:$0xff]  ;;  %v15349_v19 = vld [vmem:[#allocation85_spill] sm:$0xff] }
 0x228   : > { %v15345_v28 = vsub.f32 %v15344_v30, %v15328_v42  ;;  %v9756_v25 = vmul.f32 %v2222_v15, %v15347_v27  ;;  %v9759_v50 = vmul.f32 %v2221_v32, %v15349_v19  ;;  %v15351_v35 = vld [vmem:[#allocation285_spill] sm:$0xff]  ;;  %v15352_v7 = vld [vmem:[#allocation396_spill] sm:$0xff]  ;;  %v15355_v1 = vld [vmem:[#allocation418_spill] sm:$0xff] }
 0x229   : > { %15338 = vst [vmem:[#allocation388_spill] sm:$0xff] %v9724_v23  ;;  %v1009_v58 = vrot.slane %v15351_v35, 7  ;;  %v15353_v5 = vsub.f32 %v15352_v7, %v15336_v29  ;;  %v3148_v20 = vmul.f32 %v2224_v53, %v15355_v1  ;;  %v5106_v42 = vld [vmem:[%s5873_s25 + $0x3a8] sm:$0xff]  ;;  %v5108_v15 = vld [vmem:[%s5873_s25 + $0x580] sm:$0xff]  ;;  %v15356_v32 = vld [vmem:[#allocation241_spill] sm:$0xff]  ;;  %v9776_v29 = vsub.f32 %v15327_v38, %v1137_v17 }
 0x22a   : > { %v9753_v23 = vmul.f32 %v3312_v55, %v15345_v28  ;;  %15348 = vst [vmem:[#allocation389_spill] sm:$0xff] %v9756_v25  ;;  %15350 = vst [vmem:[#allocation238_spill] sm:$0xff] %v9759_v50  ;;  %v2226_v55 = vsub.f32 %v5106_v42, %v1840_v9  ;;  %v5107_v28 = vld [vmem:[%s5873_s25 + $0x588] sm:$0xff]  ;;  %1957 = vrot.lane.b32.xlu0 %v5108_v15, %s5658_s29  ;;  %v3314_v27 = vsub.f32 %v3146_v26, %v15356_v32  ;;  %v15357_v19 = vld [vmem:[#allocation245_spill] sm:$0xff] }
 0x22b   : > { %v9765_v24 = vmul.f32 %v3311_v44, %v15353_v5  ;;  %1959 = vrot.lane.b32.xlu1 %v5107_v28, %s5658_s29  ;;  %v3313_v50 = vsub.f32 %v3145_v43, %v15357_v19  ;;  %15358 = vst [vmem:[#allocation84_spill] sm:$0xff] %v9776_v29  ;;  %v9779_v44 = vsub.f32 %v15326_v51, %v1263_v62  ;;  %v15360_v5 = vld [vmem:[#allocation266_spill] sm:$0xff]  ;;  %v1848_v28 = vpop.permute.xlu1 %1847  ;;  %v9784_v15 = vld [vmem:[%s5873_s25 + $0x790] sm:$0xff]  ;;  %v9789_v43 = vld [vmem:[%s5873_s25 + $0x7a8] sm:$0xff]  ;;  %v884_v17 = vrot.slane %v8869_v12, 7 }
 0x22c   : > { %15346 = vst [vmem:[#allocation82_spill] sm:$0xff] %v9753_v23  ;;  %v3147_v9 = vmul.f32 %v2223_v31, %v15360_v5  ;;  %v5109_v42 = vld [vmem:[%s5873_s25 + $0x3a0] sm:$0xff]  ;;  %v1138_v38 = vsel %vm1100_vm0, %v883_v59, %v1009_v58  ;;  %v1010_v62 = vrot.slane %v8865_v47, 7  ;;  %v5112_v5 = vld [vmem:[%s5873_s25 + $0x3b8] sm:$0xff]  ;;  %v5114_v51 = vld [vmem:[%s5873_s25 + $0x590] sm:$0xff] }
 0x22d   : > { %15354 = vst [vmem:[#allocation395_spill] sm:$0xff] %v9765_v24  ;;  %15359 = vst [vmem:[#allocation85_spill] sm:$0xff] %v9779_v44  ;;  %v2225_v1 = vsub.f32 %v5109_v42, %v1838_v49  ;;  %v1846_v24 = vpop.permute.xlu0 %1845  ;;  %v1264_v49 = vsel %vm1100_vm0, %v1009_v58, %v883_v59  ;;  %v15361_v32 = vld [vmem:[#allocation254_spill] sm:$0xff]  ;;  %v15362_v42 = vld [vmem:[#allocation419_spill] sm:$0xff]  ;;  %v2228_v25 = vsub.f32 %v5112_v5, %v1844_v3 }
 0x22e   : > { %v3316_v19 = vsub.f32 %v3148_v20, %v15361_v32  ;;  %v3150_v26 = vmul.f32 %v2226_v55, %v15362_v42  ;;  %v5113_v23 = vld [vmem:[%s5873_s25 + $0x598] sm:$0xff]  ;;  %1961 = vrot.lane.b32.xlu0 %v5114_v51, %s5658_s29  ;;  %v15366_v6 = vld [vmem:[#allocation88_spill] sm:$0xff]  ;;  %v15368_v20 = vld [vmem:[#allocation90_spill] sm:$0xff] }
 0x22f   : > { %1963 = vrot.lane.b32.xlu1 %v5113_v23, %s5658_s29  ;;  %v15363_v4 = vld [vmem:[#allocation397_spill] sm:$0xff]  ;;  %v9812_v10 = vmul.f32 %v2224_v53, %v15366_v6  ;;  %v9815_v32 = vmul.f32 %v2223_v31, %v15368_v20  ;;  %v5115_v42 = vld [vmem:[%s5873_s25 + $0x3b0] sm:$0xff]  ;;  %v9826_v53 = vsub.f32 %v15351_v35, %v1138_v38  ;;  %v9829_v6 = vsub.f32 %v8816_v36, %v1264_v49  ;;  %v15380_v38 = vld [vmem:[#allocation267_spill] sm:$0xff] }
 0x230   : > { %v15364_v58 = vsub.f32 %v15363_v4, %v15344_v30  ;;  %v2227_v3 = vsub.f32 %v5115_v42, %v1842_v39  ;;  %v15370_v5 = vld [vmem:[#allocation405_spill] sm:$0xff]  ;;  %v15373_v51 = vld [vmem:[#allocation256_spill] sm:$0xff]  ;;  %v1139_v31 = vsel %vm1100_vm0, %v884_v17, %v1010_v62  ;;  %v3318_v20 = vsub.f32 %v3150_v26, %v15380_v38  ;;  %v15387_v38 = vld [vmem:[#allocation411_spill] sm:$0xff] }
 0x231   : > { %15367 = vst [vmem:[#allocation396_spill] sm:$0xff] %v9812_v10  ;;  %15369 = vst [vmem:[#allocation241_spill] sm:$0xff] %v9815_v32  ;;  %v15371_v23 = vsub.f32 %v15370_v5, %v15352_v7  ;;  %v3315_v29 = vsub.f32 %v3147_v9, %v15373_v51  ;;  %v15374_v30 = vld [vmem:[#allocation420_spill] sm:$0xff]  ;;  %v9834_v7 = vld [vmem:[%s5873_s25 + $0x7a0] sm:$0xff] }
 0x232   : > { %v9809_v59 = vmul.f32 %v3314_v27, %v15364_v58  ;;  %v3149_v27 = vmul.f32 %v2225_v1, %v15374_v30  ;;  %v1852_v58 = vpop.permute.xlu1 %1851  ;;  %15375 = vst [vmem:[#allocation254_spill] sm:$0xff] %v9826_v53  ;;  %15376 = vst [vmem:[#allocation397_spill] sm:$0xff] %v9829_v6  ;;  %v15377_v9 = vld [vmem:[#allocation242_spill] sm:$0xff]  ;;  %v15381_v36 = vld [vmem:[#allocation272_spill] sm:$0xff] }
 0x233   : > { %v9821_v44 = vmul.f32 %v3313_v50, %v15371_v23  ;;  %v1265_v50 = vsel %vm1100_vm0, %v1010_v62, %v884_v17  ;;  %v15378_v42 = vsub.f32 %v15377_v9, %v15363_v4  ;;  %v3152_v49 = vmul.f32 %v2228_v25, %v15381_v36  ;;  %v5117_v23 = vld [vmem:[%s5873_s25 + $0x5a8] sm:$0xff]  ;;  %v5118_v51 = vld [vmem:[%s5873_s25 + $0x5a0] sm:$0xff]  ;;  %v15382_v39 = vld [vmem:[#allocation92_spill] sm:$0xff] }
 0x234   : > { %15365 = vst [vmem:[#allocation285_spill] sm:$0xff] %v9809_v59  ;;  %v1850_v59 = vpop.permute.xlu0 %1849  ;;  %1967 = vrot.lane.b32.xlu1 %v5117_v23, %s5658_s29  ;;  %1965 = vrot.lane.b32.xlu0 %v5118_v51, %s5658_s29  ;;  %v9852_v30 = vmul.f32 %v2226_v55, %v15382_v39  ;;  %v15384_v17 = vld [vmem:[#allocation94_spill] sm:$0xff]  ;;  %v15386_v4 = vld [vmem:[#allocation427_spill] sm:$0xff]  ;;  %v15388_v36 = vsub.f32 %v15387_v38, %v15370_v5  ;;  %v15390_v23 = vld [vmem:[#allocation269_spill] sm:$0xff]  ;;  %v885_v5 = vrot.slane %v8929_v33, 7 }
 0x235   : > { %15372 = vst [vmem:[#allocation245_spill] sm:$0xff] %v9821_v44  ;;  %v9843_v35 = vmul.f32 %v3316_v19, %v15378_v42  ;;  %v9855_v62 = vmul.f32 %v2225_v1, %v15384_v17  ;;  %v3151_v19 = vmul.f32 %v2227_v3, %v15386_v4  ;;  %v5119_v42 = vld [vmem:[%s5873_s25 + $0x3c8] sm:$0xff]  ;;  %v3317_v32 = vsub.f32 %v3149_v27, %v15390_v23  ;;  %v5120_v17 = vld [vmem:[%s5873_s25 + $0x3c0] sm:$0xff]  ;;  %v5123_v23 = vld [vmem:[%s5873_s25 + $0x5b8] sm:$0xff] }
 0x236   : > { %15383 = vst [vmem:[#allocation90_spill] sm:$0xff] %v9852_v30  ;;  %v2230_v26 = vsub.f32 %v5119_v42, %v1848_v28  ;;  %v1856_v51 = vpop.permute.xlu1 %1855  ;;  %v9866_v39 = vsub.f32 %v8865_v47, %v1139_v31  ;;  %v9869_v1 = vsub.f32 %v8869_v12, %v1265_v50  ;;  %v2229_v4 = vsub.f32 %v5120_v17, %v1846_v24  ;;  %v9873_v28 = vld [vmem:[%s5873_s25 + $0x7b8] sm:$0xff]  ;;  %v15397_v31 = vld [vmem:[#allocation276_spill] sm:$0xff]  ;;  %v15400_v30 = vld [vmem:[#allocation98_spill] sm:$0xff] }
 0x237   : > { %15379 = vst [vmem:[#allocation88_spill] sm:$0xff] %v9843_v35  ;;  %15385 = vst [vmem:[#allocation405_spill] sm:$0xff] %v9855_v62  ;;  %v9862_v35 = vmul.f32 %v3315_v29, %v15388_v36  ;;  %v1011_v27 = vrot.slane %v8914_v18, 7  ;;  %v15394_v36 = vld [vmem:[#allocation412_spill] sm:$0xff]  ;;  %v3320_v12 = vsub.f32 %v3152_v49, %v15397_v31  ;;  %v5122_v50 = vld [vmem:[%s5873_s25 + $0x3d8] sm:$0xff] }
 0x238   : > { %v1854_v55 = vpop.permute.xlu0 %1853  ;;  %15391 = vst [vmem:[#allocation242_spill] sm:$0xff] %v9866_v39  ;;  %15392 = vst [vmem:[#allocation267_spill] sm:$0xff] %v9869_v1  ;;  %v15395_v42 = vsub.f32 %v15394_v36, %v15377_v9  ;;  %v9886_v24 = vsub.f32 %v5122_v50, %v1852_v58  ;;  %1971 = vrot.lane.b32.xlu1 %v5123_v23, %s5658_s29  ;;  %v5124_v17 = vld [vmem:[%s5873_s25 + $0x5b0] sm:$0xff]  ;;  %v9896_v9 = vmul.f32 %v2227_v3, %v15400_v30  ;;  %v9912_v30 = vld [vmem:[%s5873_s25 + $0x7c8] sm:$0xff] }
 0x239   : > { %15389 = vst [vmem:[#allocation256_spill] sm:$0xff] %v9862_v35  ;;  %15393 = vst [vmem:[#allocation92_spill] sm:$0xff] %v9873_v28  ;;  %1969 = vrot.lane.b32.xlu0 %v5124_v17, %s5658_s29  ;;  %v15398_v29 = vld [vmem:[#allocation96_spill] sm:$0xff] }
 0x23a   : > { %v9882_v47 = vmul.f32 %v3318_v20, %v15395_v42  ;;  %v9893_v62 = vmul.f32 %v2228_v25, %v15398_v29  ;;  %15401 = vst [vmem:[#allocation269_spill] sm:$0xff] %v9896_v9  ;;  %v15402_v20 = vld [vmem:[#allocation278_spill] sm:$0xff]  ;;  %v15403_v49 = vld [vmem:[#allocation280_spill] sm:$0xff]  ;;  %v1860_v17 = vpop.permute.xlu1 %1859  ;;  %15408 = vst [vmem:[#allocation96_spill] sm:$0xff] %v9912_v30 }
 0x23b   : > { %v3319_v42 = vsub.f32 %v3151_v19, %v15402_v20  ;;  %v3154_v31 = vmul.f32 %v2230_v26, %v15403_v49  ;;  %v5125_v23 = vld [vmem:[%s5873_s25 + $0x3d0] sm:$0xff]  ;;  %v15409_v29 = vld [vmem:[#allocation434_spill] sm:$0xff]  ;;  %v886_v20 = vrot.slane %v8983_v40, 7  ;;  %v3156_v19 = vmul.f32 %v9886_v24, %v8882_v0 }
 0x23c   : > { %15396 = vst [vmem:[#allocation94_spill] sm:$0xff] %v9882_v47  ;;  %15399 = vst [vmem:[#allocation411_spill] sm:$0xff] %v9893_v62  ;;  %v15404_v47 = vld [vmem:[#allocation414_spill] sm:$0xff]  ;;  %v2231_v35 = vsub.f32 %v5125_v23, %v1850_v59  ;;  %v1858_v10 = vpop.permute.xlu0 %1857  ;;  %v9907_v25 = vld [vmem:[%s5873_s25 + $0x7b0] sm:$0xff]  ;;  %v1266_v59 = vsel %vm1100_vm0, %v1011_v27, %v885_v5 }
 0x23d   : > { %v15405_v58 = vsub.f32 %v15404_v47, %v15387_v38  ;;  %15407 = vst [vmem:[#allocation276_spill] sm:$0xff] %v9907_v25  ;;  %v1140_v38 = vsel %vm1100_vm0, %v885_v5, %v1011_v27  ;;  %v15413_v49 = vld [vmem:[#allocation100_spill] sm:$0xff]  ;;  %v1012_v5 = vrot.slane %v8971_v46, 7  ;;  %v15415_v27 = vld [vmem:[#allocation422_spill] sm:$0xff] }
 0x23e   : > { %v9928_v9 = vmul.f32 %v2230_v26, %v15413_v49  ;;  %v15418_v26 = vld [vmem:[#allocation283_spill] sm:$0xff]  ;;  %v1864_v44 = vpop.permute.xlu1 %1863 }
 0x23f   : > { %v9903_v50 = vmul.f32 %v3317_v32, %v15405_v58  ;;  %v3153_v32 = vmul.f32 %v2229_v4, %v15409_v29  ;;  %v15410_v58 = vld [vmem:[#allocation421_spill] sm:$0xff]  ;;  %v5128_v29 = vld [vmem:[%s5873_s25 + $0x5c8] sm:$0xff]  ;;  %v3322_v49 = vsub.f32 %v3154_v31, %v15418_v26 }
 0x240   : > { %v15411_v23 = vsub.f32 %v15410_v58, %v15394_v36  ;;  %15414 = vst [vmem:[#allocation278_spill] sm:$0xff] %v9928_v9  ;;  %1975 = vrot.lane.b32.xlu1 %v5128_v29, %s5658_s29  ;;  %v15416_v36 = vsub.f32 %v15415_v27, %v15404_v47  ;;  %v5130_v9 = vld [vmem:[%s5873_s25 + $0x3e8] sm:$0xff]  ;;  %v1862_v28 = vpop.permute.xlu0 %1861  ;;  %v9950_v47 = vsub.f32 %v8914_v18, %v1140_v38 }
 0x241   : > { %15406 = vst [vmem:[#allocation412_spill] sm:$0xff] %v9903_v50  ;;  %v5129_v50 = vld [vmem:[%s5873_s25 + $0x5c0] sm:$0xff]  ;;  %v2234_v29 = vsub.f32 %v5130_v9, %v1856_v51  ;;  %v15423_v31 = vld [vmem:[#allocation287_spill] sm:$0xff]  ;;  %v15430_v9 = vld [vmem:[#allocation104_spill] sm:$0xff] }
 0x242   : > { %v9925_v3 = vmul.f32 %v3320_v12, %v15411_v23  ;;  %1973 = vrot.lane.b32.xlu0 %v5129_v50, %s5658_s29  ;;  %v9940_v12 = vmul.f32 %v3319_v42, %v15416_v36  ;;  %v15419_v23 = vld [vmem:[#allocation102_spill] sm:$0xff]  ;;  %15421 = vst [vmem:[#allocation100_spill] sm:$0xff] %v9950_v47  ;;  %v9953_v42 = vsub.f32 %v8929_v33, %v1266_v59  ;;  %v15426_v38 = vld [vmem:[#allocation291_spill] sm:$0xff]  ;;  %v5135_v33 = vld [vmem:[%s5873_s25 + $0x5d8] sm:$0xff]  ;;  %v887_v59 = vrot.slane %v9044_v8, 7 }
 0x243   : > { %v9944_v0 = vmul.f32 %v2229_v4, %v15419_v23  ;;  %v5131_v50 = vld [vmem:[%s5873_s25 + $0x3e0] sm:$0xff]  ;;  %v3321_v36 = vsub.f32 %v3153_v32, %v15423_v31  ;;  %v5132_v4 = vld [vmem:[%s5873_s25 + $0x3f8] sm:$0xff]  ;;  %v3324_v23 = vsub.f32 %v3156_v19, %v15426_v38  ;;  %v5136_v32 = vld [vmem:[%s5873_s25 + $0x5d0] sm:$0xff]  ;;  %v3158_v19 = vmul.f32 %v2234_v29, %v8942_v63 }
 0x244   : > { %15412 = vst [vmem:[#allocation98_spill] sm:$0xff] %v9925_v3  ;;  %15417 = vst [vmem:[#allocation414_spill] sm:$0xff] %v9940_v12  ;;  %v3155_v3 = vmul.f32 %v2231_v35, %v8885_v61  ;;  %v2233_v62 = vsub.f32 %v5131_v50, %v1854_v55  ;;  %v9957_v26 = vsub.f32 %v5132_v4, %v1860_v17  ;;  %v9960_v51 = vld [vmem:[%s5873_s25 + $0x7c0] sm:$0xff]  ;;  %v9965_v55 = vld [vmem:[%s5873_s25 + $0x7d8] sm:$0xff]  ;;  %1979 = vrot.lane.b32.xlu1 %v5135_v33, %s5658_s29  ;;  %v1866_v63 = vpop.permute.xlu0 %1865 }
 0x245   : > { %15420 = vst [vmem:[#allocation421_spill] sm:$0xff] %v9944_v0  ;;  %15422 = vst [vmem:[#allocation422_spill] sm:$0xff] %v9953_v42  ;;  %v1141_v17 = vsel %vm1100_vm0, %v886_v20, %v1012_v5  ;;  %v1013_v50 = vrot.slane %v9025_v56, 7  ;;  %v15427_v31 = vld [vmem:[#allocation428_spill] sm:$0xff]  ;;  %v15434_v0 = vld [vmem:[#allocation293_spill] sm:$0xff] }
 0x246   : > { %15424 = vst [vmem:[#allocation283_spill] sm:$0xff] %v9960_v51  ;;  %15425 = vst [vmem:[#allocation102_spill] sm:$0xff] %v9965_v55  ;;  %1977 = vrot.lane.b32.xlu0 %v5136_v32, %s5658_s29  ;;  %v15428_v4 = vsub.f32 %v15427_v31, %v15410_v58  ;;  %v5137_v38 = vld [vmem:[%s5873_s25 + $0x3f0] sm:$0xff]  ;;  %v1267_v32 = vsel %vm1100_vm0, %v1012_v5, %v886_v20  ;;  %v9989_v55 = vmul.f32 %v9886_v24, %v15430_v9  ;;  %v15432_v51 = vld [vmem:[#allocation106_spill] sm:$0xff] }
 0x247   : > { %v2235_v33 = vsub.f32 %v5137_v38, %v1858_v10  ;;  %v9992_v61 = vmul.f32 %v2231_v35, %v15432_v51  ;;  %v3323_v58 = vsub.f32 %v3155_v3, %v15434_v0  ;;  %v3160_v20 = vmul.f32 %v9957_v26, %v8948_v60  ;;  %v5138_v24 = vld [vmem:[%s5873_s25 + $0x408] sm:$0xff]  ;;  %v15439_v0 = vld [vmem:[#allocation430_spill] sm:$0xff]  ;;  %v15503_v12 = vld [vmem:[#allocation465_spill] sm:$0xff] }
 0x248   : > { %v9981_v18 = vmul.f32 %v3322_v49, %v15428_v4  ;;  %15431 = vst [vmem:[#allocation291_spill] sm:$0xff] %v9989_v55  ;;  %v3157_v49 = vmul.f32 %v2233_v62, %v8945_v41  ;;  %v1868_v4 = vpop.permute.xlu1 %1867  ;;  %v2238_v5 = vsub.f32 %v5138_v24, %v1864_v44  ;;  %v10005_v35 = vsub.f32 %v8971_v46, %v1141_v17  ;;  %v5139_v9 = vld [vmem:[%s5873_s25 + $0x5e8] sm:$0xff]  ;;  %v1870_v41 = vpop.permute.xlu0 %1869  ;;  %v5161_v55 = vld [vmem:[%s5873_s25 + $0x440] sm:$0xff] }
 0x249   : > { %15433 = vst [vmem:[#allocation428_spill] sm:$0xff] %v9992_v61  ;;  %v15440_v3 = vsub.f32 %v15439_v0, %v15427_v31  ;;  %1983 = vrot.lane.b32.xlu1 %v5139_v9, %s5658_s29  ;;  %v1142_v44 = vsel %vm1100_vm0, %v887_v59, %v1013_v50  ;;  %v15443_v46 = vld [vmem:[#allocation299_spill] sm:$0xff]  ;;  %v1268_v24 = vsel %vm1100_vm0, %v1013_v50, %v887_v59  ;;  %v15452_v59 = vld [vmem:[#allocation308_spill] sm:$0xff] }
 0x24a   : > { %15429 = vst [vmem:[#allocation287_spill] sm:$0xff] %v9981_v18  ;;  %v15435_v18 = vld [vmem:[#allocation429_spill] sm:$0xff]  ;;  %15438 = vst [vmem:[#allocation106_spill] sm:$0xff] %v10005_v35  ;;  %v3326_v17 = vsub.f32 %v3158_v19, %v15443_v46  ;;  %v3328_v50 = vsub.f32 %v3160_v20, %v15452_v59  ;;  %v10057_v20 = vsub.f32 %v9044_v8, %v1268_v24 }
 0x24b   : > { %v15436_v10 = vsub.f32 %v15435_v18, %v15415_v27  ;;  %v10010_v51 = vmul.f32 %v3324_v23, %v15440_v3  ;;  %v5140_v27 = vld [vmem:[%s5873_s25 + $0x5e0] sm:$0xff]  ;;  %v10027_v3 = vld [vmem:[%s5880_s12 + $0x18] sm:$0xff] }
 0x24c   : > { %1981 = vrot.lane.b32.xlu0 %v5140_v27, %s5658_s29  ;;  %v5141_v23 = vld [vmem:[%s5873_s25 + $0x400] sm:$0xff]  ;;  %v15447_v27 = vld [vmem:[#allocation108_spill] sm:$0xff]  ;;  %v15449_v46 = vld [vmem:[#allocation109_spill] sm:$0xff]  ;;  %v1872_v60 = vpop.permute.xlu1 %1871 }
 0x24d   : > { %v9999_v38 = vmul.f32 %v3321_v36, %v15436_v10  ;;  %15441 = vst [vmem:[#allocation293_spill] sm:$0xff] %v10010_v51  ;;  %v10017_v36 = vsub.f32 %v8983_v40, %v1267_v32  ;;  %v3159_v10 = vmul.f32 %v2235_v33, %v8951_v13  ;;  %v2237_v31 = vsub.f32 %v5141_v23, %v1862_v28  ;;  %v15444_v40 = vld [vmem:[#allocation435_spill] sm:$0xff]  ;;  %v15451_v28 = vld [vmem:[#allocation301_spill] sm:$0xff] }
 0x24e   : > { %v15445_v32 = vsub.f32 %v15444_v40, %v15435_v18  ;;  %v10035_v19 = vmul.f32 %v2234_v29, %v15447_v27  ;;  %v10038_v13 = vmul.f32 %v2233_v62, %v15449_v46  ;;  %v3325_v23 = vsub.f32 %v3157_v49, %v15451_v28  ;;  %v5142_v18 = vld [vmem:[%s5873_s25 + $0x418] sm:$0xff]  ;;  %v5143_v27 = vld [vmem:[%s5873_s25 + $0x410] sm:$0xff]  ;;  %15454 = vst [vmem:[#allocation109_spill] sm:$0xff] %v10057_v20  ;;  %v15465_v20 = vld [vmem:[#allocation114_spill] sm:$0xff] }
 0x24f   : > { %15437 = vst [vmem:[#allocation104_spill] sm:$0xff] %v9999_v38  ;;  %15442 = vst [vmem:[#allocation429_spill] sm:$0xff] %v10017_v36  ;;  %v3162_v51 = vmul.f32 %v2238_v5, %v8999_v16  ;;  %v2240_v61 = vsub.f32 %v5142_v18, %v1868_v4  ;;  %v589_v29 = vld [vmem:[%s5880_s12 + $0x8] sm:$0xff]  ;;  %v2239_v62 = vsub.f32 %v5143_v27, %v1866_v63  ;;  %v5145_v49 = vld [vmem:[%s5873_s25 + $0x5f0] sm:$0xff]  ;;  %v15455_v4 = vlaneseq }
 0x250   : > { %v10032_v9 = vmul.f32 %v3323_v58, %v15445_v32  ;;  %15448 = vst [vmem:[#allocation299_spill] sm:$0xff] %v10035_v19  ;;  %15450 = vst [vmem:[#allocation435_spill] sm:$0xff] %v10038_v13  ;;  %v10045_v58 = vsub.f32 %v9025_v56, %v1142_v44  ;;  %v10049_v32 = vld [vmem:[%s5880_s12 + $0x10] sm:$0xff]  ;;  %v5144_v46 = vld [vmem:[%s5873_s25 + $0x5f8] sm:$0xff]  ;;  %1985 = vrot.lane.b32.xlu0 %v5145_v49, %s5658_s29  ;;  %v3161_v24 = vmul.f32 %v2237_v31, %v9002_v57 }
 0x251   : > { %1987 = vrot.lane.b32.xlu1 %v5144_v46, %s5658_s29  ;;  %v10062_v44 = vand.u32 127, %v15455_v4  ;;  %v15456_v28 = vld [vmem:[#allocation436_spill] sm:$0xff]  ;;  %v15461_v46 = vld [vmem:[#allocation310_spill] sm:$0xff]  ;;  %v15462_v49 = vld [vmem:[#allocation443_spill] sm:$0xff]  ;;  %v10082_v16 = vmul.f32 %v2235_v33, %v15465_v20  ;;  %v3164_v20 = vmul.f32 %v2240_v61, %v9068_v48 }
 0x252   : > { %15446 = vst [vmem:[#allocation430_spill] sm:$0xff] %v10032_v9  ;;  %15453 = vst [vmem:[#allocation108_spill] sm:$0xff] %v10045_v58  ;;  %v15457_v63 = vsub.f32 %v15456_v28, %v15439_v0  ;;  %v15459_v18 = vld [vmem:[#allocation112_spill] sm:$0xff]  ;;  %v3327_v8 = vsub.f32 %v3159_v10, %v15461_v46  ;;  %v15463_v56 = vsub.f32 %v15462_v49, %v15444_v40  ;;  %v1876_v0 = vpop.permute.xlu1 %1875  ;;  %v5147_v57 = vld [vmem:[%s5873_s25 + $0x428] sm:$0xff] }
 0x253   : > { %v10072_v27 = vmul.f32 %v9957_v26, %v15459_v18  ;;  %15466 = vst [vmem:[#allocation112_spill] sm:$0xff] %v10082_v16  ;;  %v588_v18 = vld [vmem:[%s5880_s12] sm:$0xff]  ;;  %v2242_v16 = vsub.f32 %v5147_v57, %v1872_v60  ;;  %v3163_v10 = vmul.f32 %v2239_v62, %v9071_v2  ;;  %v5152_v48 = vld [vmem:[%s5873_s25 + $0x438] sm:$0xff]  ;;  %vm4047_vm6 = vcmp.ge.s32.totalorder %v10062_v44, 1 }
 0x254   : > { %v10068_v59 = vmul.f32 %v3326_v17, %v15457_v63  ;;  %v10079_v4 = vmul.f32 %v3325_v23, %v15463_v56  ;;  %v1874_v17 = vpop.permute.xlu0 %1873  ;;  %v10085_v63 = vld [vmem:[%s5873_s25 + $0x8] sm:$0xff]  ;;  %v15467_v46 = vld [vmem:[#allocation444_spill] sm:$0xff] }
 0x255   : > { %15460 = vst [vmem:[#allocation308_spill] sm:$0xff] %v10072_v27  ;;  %v595_v26 = vsub.f32 %v10085_v63, %v589_v29  ;;  %v15468_v40 = vsub.f32 %v15467_v46, %v15456_v28  ;;  %v15470_v56 = vld [vmem:[#allocation315_spill] sm:$0xff]  ;;  %v15473_v27 = vld [vmem:[#allocation118_spill] sm:$0xff] }
 0x256   : > { %15458 = vst [vmem:[#allocation301_spill] sm:$0xff] %v10068_v59  ;;  %15464 = vst [vmem:[#allocation436_spill] sm:$0xff] %v10079_v4  ;;  %v3330_v33 = vsub.f32 %v3162_v51, %v15470_v56  ;;  %v15471_v4 = vld [vmem:[#allocation116_spill] sm:$0xff]  ;;  %v10103_v59 = vmul.f32 %v2237_v31, %v15473_v27  ;;  %v5148_v28 = vld [vmem:[%s5873_s25 + $0x608] sm:$0xff]  ;;  %v10110_v51 = vstv %s3792_s20 }
 0x257   : > { %v10094_v23 = vmul.f32 %v3328_v50, %v15468_v40  ;;  %v10100_v29 = vmul.f32 %v2238_v5, %v15471_v4  ;;  %1991 = vrot.lane.b32.xlu1 %v5148_v28, %s5658_s29  ;;  %v5149_v50 = vld [vmem:[%s5873_s25 + $0x600] sm:$0xff]  ;;  %15475 = vst [vmem:[#allocation444_spill] sm:$0xff] %v10110_v51  ;;  %v15476_v40 = vld [vmem:[#allocation447_spill] sm:$0xff]  ;;  %v15479_v5 = vld [vmem:[#allocation317_spill] sm:$0xff]  ;;  %v2244_v28 = vsub.f32 %v5152_v48, %v1876_v0  ;;  %vm3835_vm1 = vcmp.ge.s32.totalorder %v10110_v51, 1 }
 0x258   : > { %15474 = vst [vmem:[#allocation114_spill] sm:$0xff] %v10103_v59  ;;  %1989 = vrot.lane.b32.xlu0 %v5149_v50, %s5658_s29  ;;  %v15477_v60 = vsub.f32 %v15476_v40, %v15462_v49  ;;  %v3329_v4 = vsub.f32 %v3161_v24, %v15479_v5  ;;  %v5150_v31 = vld [vmem:[%s5873_s25 + $0x420] sm:$0xff]  ;;  %v1880_v59 = vpop.permute.xlu1 %1879  ;;  %v1878_v50 = vpop.permute.xlu0 %1877  ;;  %v15480_v24 = vld [vmem:[#allocation455_spill] sm:$0xff]  ;;  %v15485_v48 = vld [vmem:[#allocation325_spill] sm:$0xff]  ;;  %vm3877_vm2 = vcmp.lt.s32.totalorder %v10110_v51, 96 }
 0x259   : > { %15469 = vst [vmem:[#allocation310_spill] sm:$0xff] %v10094_v23  ;;  %15472 = vst [vmem:[#allocation443_spill] sm:$0xff] %v10100_v29  ;;  %v2241_v27 = vsub.f32 %v5150_v31, %v1870_v41  ;;  %v5151_v56 = vld [vmem:[%s5873_s25] sm:$0xff]  ;;  %v10121_v29 = vadd.f32 1.0, %v595_v26  ;;  %v15481_v41 = vsub.f32 %v15480_v24, %v15467_v46  ;;  %v3332_v0 = vsub.f32 %v3164_v20, %v15485_v48  ;;  %v15487_v23 = vld [vmem:[#allocation121_spill] sm:$0xff] }
 0x25a   : > { %v10115_v57 = vmul.f32 %v3327_v8, %v15477_v60  ;;  %v594_v2 = vsub.f32 %v5151_v56, %v588_v18  ;;  %v5153_v8 = vld [vmem:[%s5873_s25 + $0x18] sm:$0xff]  ;;  %v15483_v18 = vld [vmem:[#allocation120_spill] sm:$0xff]  ;;  %v10138_v13 = vmul.f32 %v2239_v62, %v15487_v23  ;;  %v15489_v49 = vld [vmem:[#allocation327_spill] sm:$0xff]  ;;  %v2245_v38 = vsub.f32 %v5161_v55, %v1878_v50 }
 0x25b   : > { %v597_v60 = vsub.f32 %v5153_v8, %v10085_v63  ;;  %v10130_v5 = vmul.f32 %v3330_v33, %v15481_v41  ;;  %v10133_v31 = vmul.f32 %v2240_v61, %v15483_v18  ;;  %v3331_v9 = vsub.f32 %v3163_v10, %v15489_v49  ;;  %v5154_v63 = vld [vmem:[%s5873_s25 + $0x430] sm:$0xff]  ;;  %v5155_v46 = vld [vmem:[%s5873_s25 + $0x618] sm:$0xff]  ;;  %vm10969_vm7 = vmand %vm3835_vm1, %vm3877_vm2 }
 0x25c   : > { %15478 = vst [vmem:[#allocation315_spill] sm:$0xff] %v10115_v57  ;;  %v15486_v57 = vld [vmem:[#allocation480_spill] sm:$0xff]  ;;  %15488 = vst [vmem:[#allocation447_spill] sm:$0xff] %v10138_v13  ;;  %v2243_v19 = vsub.f32 %v5154_v63, %v1874_v17  ;;  %1995 = vrot.lane.b32.xlu1 %v5155_v46, %s5658_s29  ;;  %v10147_v61 = vadd.s32 1, %v10110_v51  ;;  %v15493_v23 = vld [vmem:[#allocation481_spill] sm:$0xff]  ;;  %v10155_v17 = vadd.f32 1.0, %v594_v2  ;;  %v1882_v13 = vpop.permute.xlu0 %1881 }
 0x25d   : > { %15482 = vst [vmem:[#allocation116_spill] sm:$0xff] %v10130_v5  ;;  %15484 = vst [vmem:[#allocation118_spill] sm:$0xff] %v10133_v31  ;;  %v3166_v26 = vmul.f32 %v2242_v16, %v15486_v57  ;;  %v5156_v33 = vld [vmem:[%s5873_s25 + $0x610] sm:$0xff]  ;;  %v3165_v10 = vmul.f32 %v2241_v27, %v15493_v23  ;;  %v5158_v46 = vld [vmem:[%s5873_s25 + $0x448] sm:$0xff]  ;;  %v1884_v57 = vpop.permute.xlu1 %1883 }
 0x25e   : > { %1993 = vrot.lane.b32.xlu0 %v5156_v33, %s5658_s29  ;;  %v15490_v20 = vld [vmem:[#allocation456_spill] sm:$0xff]  ;;  %v2246_v33 = vsub.f32 %v5158_v46, %v1880_v59  ;;  %v10161_v31 = vld [vmem:[%s5873_s25 + $0x2a0] sm:$0xff]  ;;  %vm3836_vm4 = vcmp.ge.s32.totalorder %v10147_v61, 1  ;;  %vm3878_vm5 = vcmp.lt.s32.totalorder %v10147_v61, 96  ;;  %vm10996_vm10 = vmand %vm10969_vm7, %vm3961_vm3 }
 0x25f   : > { %v15491_v41 = vsub.f32 %v15490_v20, %v15476_v40  ;;  %v5157_v49 = vld [vmem:[%s5873_s25 + $0x10] sm:$0xff]  ;;  %15495 = vst [vmem:[#allocation455_spill] sm:$0xff] %v10161_v31  ;;  %v15502_v46 = vld [vmem:[#allocation334_spill] sm:$0xff]  ;;  %vm11007_vm11 = vmand %vm3836_vm4, %vm3878_vm5 }
 0x260   : > { %v596_v18 = vsub.f32 %v5157_v49, %v5151_v56  ;;  %v15494_v48 = vld [vmem:[#allocation136_spill] sm:$0xff]  ;;  %v3334_v5 = vsub.f32 %v3166_v26, %v15502_v46  ;;  %v10192_v26 = vadd.f32 1.0, %v597_v60  ;;  %v15512_v46 = vld [vmem:[#allocation342_spill] sm:$0xff]  ;;  %v5165_v60 = vld [vmem:[%s5873_s25 + $0x458] sm:$0xff] }
 0x261   : > { %v10152_v62 = vmul.f32 %v3329_v4, %v15491_v41  ;;  %v3168_v63 = vmul.f32 %v2244_v28, %v15494_v48  ;;  %v10166_v41 = vld [vmem:[%s5873_s25 + $0x28] sm:$0xff]  ;;  %v15497_v23 = vld [vmem:[#allocation464_spill] sm:$0xff]  ;;  %v15504_v4 = vsub.f32 %v15503_v12, %v15490_v20  ;;  %vm11025_vm12 = vmand %vm10969_vm7, %vm4047_vm6 }
 0x262   : > { %v599_v2 = vsub.f32 %v10166_v41, %v5153_v8  ;;  %v15498_v56 = vsub.f32 %v15497_v23, %v15480_v24  ;;  %v15500_v48 = vld [vmem:[#allocation124_spill] sm:$0xff]  ;;  %v15506_v8 = vld [vmem:[#allocation126_spill] sm:$0xff]  ;;  %v15508_v24 = vld [vmem:[#allocation485_spill] sm:$0xff] }
 0x263   : > { %15492 = vst [vmem:[#allocation317_spill] sm:$0xff] %v10152_v62  ;;  %v10175_v59 = vmul.f32 %v2242_v16, %v15500_v48  ;;  %v10182_v31 = vmul.f32 %v3331_v9, %v15504_v4  ;;  %v10185_v40 = vmul.f32 %v2241_v27, %v15506_v8  ;;  %v5163_v16 = vld [vmem:[%s5873_s25 + $0x620] sm:$0xff]  ;;  %v15509_v55 = vld [vmem:[#allocation336_spill] sm:$0xff]  ;;  %v10195_v48 = vadd.f32 1.0, %v596_v18  ;;  %v1886_v18 = vpop.permute.xlu0 %1885  ;;  %vm11037_vm13 = vmand %vm10996_vm10, %vm4047_vm6 }
 0x264   : > { %v10172_v62 = vmul.f32 %v3332_v0, %v15498_v56  ;;  %v3167_v0 = vmul.f32 %v2243_v19, %v15508_v24  ;;  %v5162_v56 = vld [vmem:[%s5873_s25 + $0x628] sm:$0xff]  ;;  %1997 = vrot.lane.b32.xlu0 %v5163_v16, %s5658_s29  ;;  %v3333_v50 = vsub.f32 %v3165_v10, %v15509_v55  ;;  %v10200_v27 = vld [vmem:[%s5873_s25 + $0x20] sm:$0xff]  ;;  %v3336_v8 = vsub.f32 %v3168_v63, %v15512_v46  ;;  %v1888_v10 = vpop.permute.xlu1 %1887  ;;  %v15520_v63 = vld [vmem:[#allocation129_spill] sm:$0xff] }
 0x265   : > { %15501 = vst [vmem:[#allocation325_spill] sm:$0xff] %v10175_v59  ;;  %15505 = vst [vmem:[#allocation121_spill] sm:$0xff] %v10182_v31  ;;  %1999 = vrot.lane.b32.xlu1 %v5162_v56, %s5658_s29  ;;  %v598_v4 = vsub.f32 %v10200_v27, %v5157_v49  ;;  %v15513_v56 = vld [vmem:[#allocation487_spill] sm:$0xff]  ;;  %v2248_v24 = vsub.f32 %v5165_v60, %v1884_v57  ;;  %v10206_v55 = vadd.f32 1.0, %v599_v2  ;;  %v15518_v59 = vld [vmem:[#allocation128_spill] sm:$0xff] }
 0x266   : > { %15499 = vst [vmem:[#allocation120_spill] sm:$0xff] %v10172_v62  ;;  %15507 = vst [vmem:[#allocation327_spill] sm:$0xff] %v10185_v40  ;;  %v3170_v16 = vmul.f32 %v2246_v33, %v15513_v56  ;;  %v15515_v40 = vld [vmem:[#allocation466_spill] sm:$0xff]  ;;  %v10214_v49 = vmul.f32 %v2244_v28, %v15518_v59  ;;  %v10217_v46 = vmul.f32 %v2243_v19, %v15520_v63  ;;  %v15522_v56 = vld [vmem:[#allocation489_spill] sm:$0xff]  ;;  %v10227_v28 = vadd.s32 2, %v10110_v51 }
 0x267   : > { %15510 = vst [vmem:[#allocation456_spill] sm:$0xff] %v10195_v48  ;;  %15514 = vst [vmem:[#allocation464_spill] sm:$0xff] %v10206_v55  ;;  %v15516_v20 = vsub.f32 %v15515_v40, %v15497_v23  ;;  %v3169_v57 = vmul.f32 %v2245_v38, %v15522_v56  ;;  %v15523_v60 = vld [vmem:[#allocation344_spill] sm:$0xff]  ;;  %v5167_v55 = vld [vmem:[%s5873_s25 + $0x638] sm:$0xff] }
 0x268   : > { %15519 = vst [vmem:[#allocation334_spill] sm:$0xff] %v10214_v49  ;;  %15521 = vst [vmem:[#allocation465_spill] sm:$0xff] %v10217_v46  ;;  %v3335_v62 = vsub.f32 %v3167_v0, %v15523_v60  ;;  %v5166_v9 = vld [vmem:[%s5873_s25 + $0x450] sm:$0xff]  ;;  %v15524_v59 = vld [vmem:[#allocation470_spill] sm:$0xff]  ;;  %vm3837_vm8 = vcmp.ge.s32.totalorder %v10227_v28, 1  ;;  %vm3879_vm9 = vcmp.lt.s32.totalorder %v10227_v28, 96 }
 0x269   : > { %v10211_v31 = vmul.f32 %v3334_v5, %v15516_v20  ;;  %v2247_v2 = vsub.f32 %v5166_v9, %v1882_v13  ;;  %2003 = vrot.lane.b32.xlu1 %v5167_v55, %s5658_s29  ;;  %v5168_v23 = vld [vmem:[%s5873_s25 + $0x630] sm:$0xff]  ;;  %v5169_v5 = vld [vmem:[%s5873_s25 + $0x38] sm:$0xff]  ;;  %v15525_v20 = vsub.f32 %v15524_v59, %v15503_v12  ;;  %v5170_v13 = vld [vmem:[%s5873_s25 + $0x468] sm:$0xff] }
 0x26a   : > { %2001 = vrot.lane.b32.xlu0 %v5168_v23, %s5658_s29  ;;  %v601_v19 = vsub.f32 %v5169_v5, %v10166_v41  ;;  %v2250_v0 = vsub.f32 %v5170_v13, %v1888_v10  ;;  %v10238_v9 = vld [vmem:[%s5873_s25 + $0x2b0] sm:$0xff]  ;;  %v10242_v23 = vadd.f32 1.0, %v598_v4  ;;  %v15530_v56 = vld [vmem:[#allocation474_spill] sm:$0xff]  ;;  %v15533_v49 = vld [vmem:[#allocation351_spill] sm:$0xff]  ;;  %v1890_v10 = vpop.permute.xlu0 %1889 }
 0x26b   : > { %15517 = vst [vmem:[#allocation124_spill] sm:$0xff] %v10211_v31  ;;  %v10234_v63 = vmul.f32 %v3333_v50, %v15525_v20  ;;  %15527 = vst [vmem:[#allocation336_spill] sm:$0xff] %v10238_v9  ;;  %v15531_v46 = vsub.f32 %v15530_v56, %v15515_v40  ;;  %v3338_v12 = vsub.f32 %v3170_v16, %v15533_v49  ;;  %v15534_v50 = vld [vmem:[#allocation148_spill] sm:$0xff]  ;;  %v10252_v13 = vld [vmem:[%s5873_s25 + $0x2c8] sm:$0xff] }
 0x26c   : > { %15529 = vst [vmem:[#allocation342_spill] sm:$0xff] %v10242_v23  ;;  %v3172_v20 = vmul.f32 %v2248_v24, %v15534_v50  ;;  %15535 = vst [vmem:[#allocation128_spill] sm:$0xff] %v10252_v13  ;;  %v15537_v4 = vld [vmem:[#allocation132_spill] sm:$0xff]  ;;  %v15539_v40 = vld [vmem:[#allocation138_spill] sm:$0xff] }
 0x26d   : > { %15526 = vst [vmem:[#allocation126_spill] sm:$0xff] %v10234_v63  ;;  %v10247_v41 = vmul.f32 %v3336_v8, %v15531_v46  ;;  %v1892_v63 = vpop.permute.xlu1 %1891  ;;  %v10257_v9 = vmul.f32 %v2246_v33, %v15537_v4  ;;  %v10260_v8 = vmul.f32 %v2245_v38, %v15539_v40  ;;  %v15541_v46 = vld [vmem:[#allocation353_spill] sm:$0xff]  ;;  %v5173_v16 = vld [vmem:[%s5873_s25 + $0x460] sm:$0xff]  ;;  %v5174_v31 = vld [vmem:[%s5873_s25 + $0x648] sm:$0xff]  ;;  %v10274_v38 = vadd.f32 1.0, %v601_v19 }
 0x26e   : > { %v2249_v49 = vsub.f32 %v5173_v16, %v1886_v18  ;;  %v15542_v50 = vld [vmem:[#allocation482_spill] sm:$0xff]  ;;  %2007 = vrot.lane.b32.xlu1 %v5174_v31, %s5658_s29  ;;  %v15547_v18 = vld [vmem:[#allocation156_spill] sm:$0xff]  ;;  %v15548_v16 = vld [vmem:[#allocation483_spill] sm:$0xff] }
 0x26f   : > { %15532 = vst [vmem:[#allocation466_spill] sm:$0xff] %v10247_v41  ;;  %15538 = vst [vmem:[#allocation129_spill] sm:$0xff] %v10257_v9  ;;  %v3337_v41 = vsub.f32 %v3169_v57, %v15541_v46  ;;  %v15543_v55 = vsub.f32 %v15542_v50, %v15524_v59  ;;  %v15545_v48 = vld [vmem:[#allocation150_spill] sm:$0xff]  ;;  %v5176_v57 = vld [vmem:[%s5873_s25 + $0x30] sm:$0xff]  ;;  %v3174_v40 = vmul.f32 %v2250_v0, %v15547_v18 }
 0x270   : > { %15540 = vst [vmem:[#allocation344_spill] sm:$0xff] %v10260_v8  ;;  %v3171_v45 = vmul.f32 %v2247_v2, %v15545_v48  ;;  %v5175_v33 = vld [vmem:[%s5873_s25 + $0x640] sm:$0xff]  ;;  %15546 = vst [vmem:[#allocation474_spill] sm:$0xff] %v10274_v38  ;;  %v600_v4 = vsub.f32 %v5176_v57, %v10200_v27  ;;  %v5177_v59 = vld [vmem:[%s5873_s25 + $0x478] sm:$0xff]  ;;  %v15549_v19 = vsub.f32 %v15548_v16, %v15530_v56 }
 0x271   : > { %v10267_v23 = vmul.f32 %v3335_v62, %v15543_v55  ;;  %2005 = vrot.lane.b32.xlu0 %v5175_v33, %s5658_s29  ;;  %v2252_v62 = vsub.f32 %v5177_v59, %v1892_v63  ;;  %v10281_v55 = vadd.s32 3, %v10110_v51  ;;  %v10284_v46 = vld [vmem:[%s5873_s25 + $0x48] sm:$0xff]  ;;  %v15551_v27 = vld [vmem:[#allocation140_spill] sm:$0xff]  ;;  %v15553_v18 = vld [vmem:[#allocation361_spill] sm:$0xff]  ;;  %v1896_v63 = vpop.permute.xlu1 %1895  ;;  %v1894_v59 = vpop.permute.xlu0 %1893 }
 0x272   : > { %v603_v31 = vsub.f32 %v10284_v46, %v5169_v5  ;;  %v10290_v33 = vmul.f32 %v3338_v12, %v15549_v19  ;;  %v10293_v48 = vmul.f32 %v2248_v24, %v15551_v27  ;;  %v3340_v8 = vsub.f32 %v3172_v20, %v15553_v18  ;;  %v10297_v9 = vld [vmem:[%s5873_s25 + $0x2c0] sm:$0xff]  ;;  %v15556_v13 = vld [vmem:[#allocation484_spill] sm:$0xff]  ;;  %v15559_v12 = vld [vmem:[#allocation147_spill] sm:$0xff] }
 0x273   : > { %15544 = vst [vmem:[#allocation470_spill] sm:$0xff] %v10267_v23  ;;  %15554 = vst [vmem:[#allocation138_spill] sm:$0xff] %v10297_v9  ;;  %v15557_v56 = vsub.f32 %v15556_v13, %v15542_v50  ;;  %v10307_v19 = vmul.f32 %v2247_v2, %v15559_v12  ;;  %v15561_v24 = vld [vmem:[#allocation492_spill] sm:$0xff]  ;;  %v5181_v38 = vld [vmem:[%s5873_s25 + $0x658] sm:$0xff]  ;;  %v10316_v50 = vadd.f32 1.0, %v600_v4  ;;  %vm3838_vm1 = vcmp.ge.s32.totalorder %v10281_v55, 1 }
 0x274   : > { %15550 = vst [vmem:[#allocation351_spill] sm:$0xff] %v10290_v33  ;;  %15552 = vst [vmem:[#allocation132_spill] sm:$0xff] %v10293_v48  ;;  %v3173_v20 = vmul.f32 %v2249_v49, %v15561_v24  ;;  %v5180_v18 = vld [vmem:[%s5873_s25 + $0x470] sm:$0xff]  ;;  %v15562_v48 = vld [vmem:[#allocation363_spill] sm:$0xff]  ;;  %2011 = vrot.lane.b32.xlu1 %v5181_v38, %s5658_s29  ;;  %vm3880_vm2 = vcmp.lt.s32.totalorder %v10281_v55, 96 }
 0x275   : > { %v10304_v60 = vmul.f32 %v3337_v41, %v15557_v56  ;;  %15560 = vst [vmem:[#allocation482_spill] sm:$0xff] %v10307_v19  ;;  %v2251_v27 = vsub.f32 %v5180_v18, %v1890_v10  ;;  %v3339_v33 = vsub.f32 %v3171_v45, %v15562_v48  ;;  %v5182_v5 = vld [vmem:[%s5873_s25 + $0x650] sm:$0xff]  ;;  %15563 = vst [vmem:[#allocation483_spill] sm:$0xff] %v10316_v50  ;;  %v10319_v41 = vld [vmem:[%s5873_s25 + $0x2d8] sm:$0xff] }
 0x276   : > { %2009 = vrot.lane.b32.xlu0 %v5182_v5, %s5658_s29  ;;  %15564 = vst [vmem:[#allocation140_spill] sm:$0xff] %v10319_v41  ;;  %v10324_v12 = vld [vmem:[%s5873_s25 + $0x40] sm:$0xff]  ;;  %v15566_v18 = vld [vmem:[#allocation368_spill] sm:$0xff]  ;;  %v5185_v38 = vld [vmem:[%s5873_s25 + $0x488] sm:$0xff]  ;;  %v10330_v5 = vadd.f32 1.0, %v603_v31 }
 0x277   : > { %15558 = vst [vmem:[#allocation353_spill] sm:$0xff] %v10304_v60  ;;  %v602_v10 = vsub.f32 %v10324_v12, %v5176_v57  ;;  %v3342_v45 = vsub.f32 %v3174_v40, %v15566_v18  ;;  %v15567_v48 = vld [vmem:[#allocation164_spill] sm:$0xff]  ;;  %v2254_v19 = vsub.f32 %v5185_v38, %v1896_v63  ;;  %v15569_v4 = vld [vmem:[#allocation490_spill] sm:$0xff]  ;;  %v15572_v56 = vld [vmem:[#allocation151_spill] sm:$0xff]  ;;  %v1900_v40 = vpop.permute.xlu1 %1899  ;;  %v1898_v18 = vpop.permute.xlu0 %1897  ;;  %v10342_v63 = vadd.s32 4, %v10110_v51 }
 0x278   : > { %v3176_v24 = vmul.f32 %v2252_v62, %v15567_v48  ;;  %15568 = vst [vmem:[#allocation361_spill] sm:$0xff] %v10330_v5  ;;  %v15570_v60 = vsub.f32 %v15569_v4, %v15548_v16  ;;  %v10338_v41 = vmul.f32 %v2250_v0, %v15572_v56  ;;  %v5186_v57 = vld [vmem:[%s5873_s25 + $0x480] sm:$0xff]  ;;  %v15575_v31 = vld [vmem:[#allocation152_spill] sm:$0xff]  ;;  %v15597_v23 = vld [vmem:[#allocation491_spill] sm:$0xff] }
 0x279   : > { %v2253_v2 = vsub.f32 %v5186_v57, %v1894_v59  ;;  %15574 = vst [vmem:[#allocation363_spill] sm:$0xff] %v10342_v63  ;;  %v10345_v38 = vmul.f32 %v2249_v49, %v15575_v31  ;;  %v15577_v16 = vld [vmem:[#allocation370_spill] sm:$0xff]  ;;  %v15579_v59 = vld [vmem:[#allocation31_spill] sm:$0xff]  ;;  %v10367_v31 = vld [vmem:[%s5873_s25 + $0x2d0] sm:$0xff] }
 0x27a   : > { %v10335_v9 = vmul.f32 %v3340_v8, %v15570_v60  ;;  %15573 = vst [vmem:[#allocation147_spill] sm:$0xff] %v10338_v41  ;;  %v3341_v48 = vsub.f32 %v3173_v20, %v15577_v16  ;;  %v15578_v60 = vld [vmem:[#allocation331_spill] sm:$0xff]  ;;  %v15580_v56 = vsub.f32 %v15579_v59, %v15556_v13  ;;  %v5188_v41 = vld [vmem:[%s5873_s25 + $0x498] sm:$0xff]  ;;  %v5190_v20 = vld [vmem:[%s5873_s25 + $0x660] sm:$0xff]  ;;  %v15598_v50 = vsub.f32 %v15597_v23, %v15579_v59 }
 0x27b   : > { %15576 = vst [vmem:[#allocation368_spill] sm:$0xff] %v10345_v38  ;;  %v3175_v8 = vmul.f32 %v2251_v27, %v15578_v60  ;;  %v10360_v5 = vsub.f32 %v5188_v41, %v1900_v40  ;;  %v5189_v49 = vld [vmem:[%s5873_s25 + $0x668] sm:$0xff]  ;;  %2013 = vrot.lane.b32.xlu0 %v5190_v20, %s5658_s29  ;;  %15582 = vst [vmem:[#allocation151_spill] sm:$0xff] %v10367_v31  ;;  %v10370_v16 = vld [vmem:[%s5873_s25 + $0x2e0] sm:$0xff] }
 0x27c   : > { %15571 = vst [vmem:[#allocation484_spill] sm:$0xff] %v10335_v9  ;;  %v10350_v9 = vld [vmem:[%s5873_s25 + $0x58] sm:$0xff]  ;;  %v10357_v57 = vmul.f32 %v3339_v33, %v15580_v56  ;;  %2015 = vrot.lane.b32.xlu1 %v5189_v49, %s5658_s29  ;;  %15583 = vst [vmem:[#allocation152_spill] sm:$0xff] %v10370_v16  ;;  %v15585_v33 = vld [vmem:[#allocation28_spill] sm:$0xff]  ;;  %v10402_v63 = vmul.f32 %v3341_v48, %v15598_v50  ;;  %v10420_v48 = vadd.s32 5, %v10110_v51 }
 0x27d   : > { %v605_v0 = vsub.f32 %v10350_v9, %v10284_v46  ;;  %v10374_v46 = vadd.f32 1.0, %v602_v10  ;;  %v15586_v41 = vsub.f32 %v15585_v33, %v15569_v4  ;;  %v15588_v56 = vld [vmem:[#allocation208_spill] sm:$0xff]  ;;  %v10384_v20 = vld [vmem:[%s5873_s25 + $0x2e8] sm:$0xff]  ;;  %vm11047_vm14 = vmand %vm11007_vm11, %vm3961_vm3 }
 0x27e   : > { %15581 = vst [vmem:[#allocation490_spill] sm:$0xff] %v10357_v57  ;;  %v3344_v49 = vsub.f32 %v3176_v24, %v15588_v56  ;;  %v15589_v60 = vld [vmem:[#allocation52_spill] sm:$0xff]  ;;  %15590 = vst [vmem:[#allocation28_spill] sm:$0xff] %v10384_v20  ;;  %v10387_v57 = vld [vmem:[%s5873_s25 + $0x2f8] sm:$0xff] }
 0x27f   : > { %15584 = vst [vmem:[#allocation370_spill] sm:$0xff] %v10374_v46  ;;  %v10379_v40 = vmul.f32 %v3342_v45, %v15586_v41  ;;  %v3178_v38 = vmul.f32 %v2254_v19, %v15589_v60  ;;  %15591 = vst [vmem:[#allocation208_spill] sm:$0xff] %v10387_v57  ;;  %v15592_v10 = vld [vmem:[#allocation159_spill] sm:$0xff]  ;;  %v15594_v4 = vld [vmem:[#allocation168_spill] sm:$0xff]  ;;  %v1902_v46 = vpop.permute.xlu0 %1901 }
 0x280   : > { %v10392_v31 = vmul.f32 %v2252_v62, %v15592_v10  ;;  %v10395_v45 = vmul.f32 %v2251_v27, %v15594_v4  ;;  %v15596_v41 = vld [vmem:[#allocation53_spill] sm:$0xff]  ;;  %v5195_v56 = vld [vmem:[%s5873_s25 + $0x490] sm:$0xff]  ;;  %15599 = vst [vmem:[#allocation491_spill] sm:$0xff] %v10402_v63  ;;  %v10405_v62 = vadd.f32 1.0, %v605_v0  ;;  %v5197_v4 = vld [vmem:[%s5873_s25 + $0x4a8] sm:$0xff] }
 0x281   : > { %15587 = vst [vmem:[#allocation31_spill] sm:$0xff] %v10379_v40  ;;  %v3177_v24 = vmul.f32 %v2253_v2, %v15596_v41  ;;  %v2255_v60 = vsub.f32 %v5195_v56, %v1898_v18  ;;  %v1904_v40 = vpop.permute.xlu1 %1903  ;;  %v15600_v13 = vld [vmem:[#allocation376_spill] sm:$0xff]  ;;  %v3180_v18 = vmul.f32 %v10360_v5, %v9491_v21  ;;  %v5198_v41 = vld [vmem:[%s5873_s25 + $0x678] sm:$0xff]  ;;  %v15602_v0 = vld [vmem:[#allocation154_spill] sm:$0xff] }
 0x282   : > { %15593 = vst [vmem:[#allocation159_spill] sm:$0xff] %v10392_v31  ;;  %15595 = vst [vmem:[#allocation168_spill] sm:$0xff] %v10395_v45  ;;  %v3343_v20 = vsub.f32 %v3175_v8, %v15600_v13  ;;  %v10408_v27 = vld [vmem:[%s5873_s25 + $0x50] sm:$0xff]  ;;  %v2258_v56 = vsub.f32 %v5197_v4, %v1904_v40  ;;  %2019 = vrot.lane.b32.xlu1 %v5198_v41, %s5658_s29  ;;  %v10423_v8 = vld [vmem:[%s5873_s25 + $0x68] sm:$0xff]  ;;  %v15603_v59 = vsub.f32 %v15602_v0, %v15585_v33 }
 0x283   : > { %15601 = vst [vmem:[#allocation376_spill] sm:$0xff] %v10405_v62  ;;  %v604_v10 = vsub.f32 %v10408_v27, %v10324_v12  ;;  %v5199_v50 = vld [vmem:[%s5873_s25 + $0x670] sm:$0xff]  ;;  %v607_v12 = vsub.f32 %v10423_v8, %v10350_v9  ;;  %v15607_v4 = vld [vmem:[#allocation382_spill] sm:$0xff]  ;;  %v15609_v63 = vld [vmem:[#allocation175_spill] sm:$0xff] }
 0x284   : > { %2017 = vrot.lane.b32.xlu0 %v5199_v50, %s5658_s29  ;;  %v10430_v13 = vmul.f32 %v3344_v49, %v15603_v59  ;;  %v15605_v40 = vld [vmem:[#allocation172_spill] sm:$0xff]  ;;  %v3346_v50 = vsub.f32 %v3178_v38, %v15607_v4  ;;  %v10442_v31 = vmul.f32 %v2253_v2, %v15609_v63  ;;  %v15612_v33 = vld [vmem:[#allocation185_spill] sm:$0xff]  ;;  %v5202_v59 = vld [vmem:[%s5873_s25 + $0x4a0] sm:$0xff] }
 0x285   : > { %v10433_v41 = vmul.f32 %v2254_v19, %v15605_v40  ;;  %v10437_v21 = vld [vmem:[%s5873_s25 + $0x2f0] sm:$0xff]  ;;  %v3179_v49 = vmul.f32 %v2255_v60, %v15612_v33  ;;  %v2257_v19 = vsub.f32 %v5202_v59, %v1902_v46  ;;  %v1908_v40 = vpop.permute.xlu1 %1907  ;;  %v15613_v38 = vld [vmem:[#allocation493_spill] sm:$0xff]  ;;  %v10452_v45 = vadd.f32 1.0, %v604_v10  ;;  %v10455_v2 = vld [vmem:[%s5873_s25 + $0x308] sm:$0xff] }
 0x286   : > { %15604 = vst [vmem:[#allocation154_spill] sm:$0xff] %v10430_v13  ;;  %15608 = vst [vmem:[#allocation382_spill] sm:$0xff] %v10437_v21  ;;  %v15611_v9 = vld [vmem:[#allocation384_spill] sm:$0xff]  ;;  %v15614_v4 = vsub.f32 %v15613_v38, %v15597_v23  ;;  %v5205_v23 = vld [vmem:[%s5873_s25 + $0x4b8] sm:$0xff]  ;;  %v10471_v63 = vadd.f32 1.0, %v607_v12 }
 0x287   : > { %15606 = vst [vmem:[#allocation172_spill] sm:$0xff] %v10433_v41  ;;  %15610 = vst [vmem:[#allocation175_spill] sm:$0xff] %v10442_v31  ;;  %v3345_v62 = vsub.f32 %v3177_v24, %v15611_v9  ;;  %v1906_v41 = vpop.permute.xlu0 %1905  ;;  %v10460_v24 = vld [vmem:[%s5873_s25 + $0x60] sm:$0xff]  ;;  %v15619_v33 = vld [vmem:[#allocation360_spill] sm:$0xff] }
 0x288   : > { %v10450_v13 = vmul.f32 %v3343_v20, %v15614_v4  ;;  %15616 = vst [vmem:[#allocation493_spill] sm:$0xff] %v10452_v45  ;;  %15617 = vst [vmem:[#allocation494_spill] sm:$0xff] %v10455_v2  ;;  %v606_v46 = vsub.f32 %v10460_v24, %v10408_v27  ;;  %v15618_v9 = vld [vmem:[#allocation390_spill] sm:$0xff]  ;;  %v3182_v31 = vmul.f32 %v2258_v56, %v15619_v33  ;;  %v5206_v4 = vld [vmem:[%s5873_s25 + $0x688] sm:$0xff] }
 0x289   : > { %v3348_v59 = vsub.f32 %v3180_v18, %v15618_v9  ;;  %v2260_v20 = vsub.f32 %v5205_v23, %v1908_v40  ;;  %2023 = vrot.lane.b32.xlu1 %v5206_v4, %s5658_s29  ;;  %v5207_v10 = vld [vmem:[%s5873_s25 + $0x680] sm:$0xff]  ;;  %15620 = vst [vmem:[#allocation390_spill] sm:$0xff] %v10471_v63  ;;  %v15624_v18 = vld [vmem:[#allocation179_spill] sm:$0xff]  ;;  %v5208_v40 = vld [vmem:[%s5873_s25 + $0x4b0] sm:$0xff]  ;;  %v10484_v4 = vadd.s32 6, %v10110_v51 }
 0x28a   : > { %15615 = vst [vmem:[#allocation384_spill] sm:$0xff] %v10450_v13  ;;  %2021 = vrot.lane.b32.xlu0 %v5207_v10, %s5658_s29  ;;  %v15621_v13 = vld [vmem:[#allocation374_spill] sm:$0xff]  ;;  %v10480_v9 = vmul.f32 %v10360_v5, %v15624_v18  ;;  %v2259_v23 = vsub.f32 %v5208_v40, %v1906_v41  ;;  %v15627_v33 = vld [vmem:[#allocation48_spill] sm:$0xff]  ;;  %v1912_v18 = vpop.permute.xlu1 %1911  ;;  %v5209_v41 = vld [vmem:[%s5873_s25 + $0x4c8] sm:$0xff]  ;;  %v10520_v21 = vadd.f32 1.0, %v606_v46 }
 0x28b   : > { %v15622_v45 = vsub.f32 %v15621_v13, %v15602_v0  ;;  %15626 = vst [vmem:[#allocation495_spill] sm:$0xff] %v10484_v4  ;;  %v15628_v12 = vsub.f32 %v15627_v33, %v15613_v38  ;;  %v15630_v63 = vld [vmem:[#allocation180_spill] sm:$0xff]  ;;  %v2262_v40 = vsub.f32 %v5209_v41, %v1912_v18  ;;  %v10498_v57 = vld [vmem:[%s5873_s25 + $0x300] sm:$0xff]  ;;  %v15639_v18 = vld [vmem:[#allocation399_spill] sm:$0xff] }
 0x28c   : > { %15625 = vst [vmem:[#allocation179_spill] sm:$0xff] %v10480_v9  ;;  %v10492_v0 = vmul.f32 %v2255_v60, %v15630_v63  ;;  %v1910_v9 = vpop.permute.xlu0 %1909  ;;  %v10505_v63 = vld [vmem:[%s5873_s25 + $0x318] sm:$0xff]  ;;  %v3350_v41 = vsub.f32 %v3182_v31, %v15639_v18  ;;  %15641 = vst [vmem:[#allocation399_spill] sm:$0xff] %v10520_v21  ;;  %v5215_v18 = vld [vmem:[%s5873_s25 + $0x4c0] sm:$0xff] }
 0x28d   : > { %v10476_v27 = vmul.f32 %v3346_v50, %v15622_v45  ;;  %v10489_v10 = vmul.f32 %v3345_v62, %v15628_v12  ;;  %v15632_v45 = vld [vmem:[#allocation393_spill] sm:$0xff]  ;;  %15635 = vst [vmem:[#allocation496_spill] sm:$0xff] %v10505_v63  ;;  %vm11067_vm15 = vmand %vm11007_vm11, %vm4047_vm6  ;;  %v5292_v28 = vld [vmem:[%s5873_s25 + $0x768] sm:$0xff] }
 0x28e   : > { %15631 = vst [vmem:[#allocation180_spill] sm:$0xff] %v10492_v0  ;;  %v3347_v50 = vsub.f32 %v3179_v49, %v15632_v45  ;;  %15634 = vst [vmem:[#allocation393_spill] sm:$0xff] %v10498_v57  ;;  %v5211_v62 = vld [vmem:[%s5873_s25 + $0x78] sm:$0xff]  ;;  %v15640_v0 = vld [vmem:[#allocation407_spill] sm:$0xff]  ;;  %v1916_v46 = vpop.permute.xlu1 %1915 }
 0x28f   : > { %15623 = vst [vmem:[#allocation374_spill] sm:$0xff] %v10476_v27  ;;  %15629 = vst [vmem:[#allocation48_spill] sm:$0xff] %v10489_v10  ;;  %v15633_v27 = vld [vmem:[#allocation61_spill] sm:$0xff]  ;;  %v609_v60 = vsub.f32 %v5211_v62, %v10423_v8  ;;  %v3184_v10 = vmul.f32 %v2260_v20, %v15640_v0  ;;  %v5214_v8 = vld [vmem:[%s5873_s25 + $0x690] sm:$0xff]  ;;  %v2261_v0 = vsub.f32 %v5215_v18, %v1910_v9 }
 0x290   : > { %v3181_v5 = vmul.f32 %v2257_v19, %v15633_v27  ;;  %v15636_v12 = vld [vmem:[#allocation49_spill] sm:$0xff]  ;;  %2025 = vrot.lane.b32.xlu0 %v5214_v8, %s5658_s29  ;;  %v15642_v49 = vld [vmem:[#allocation195_spill] sm:$0xff]  ;;  %v15650_v8 = vld [vmem:[#allocation402_spill] sm:$0xff]  ;;  %v1914_v21 = vpop.permute.xlu0 %1913 }
 0x291   : > { %v15637_v45 = vsub.f32 %v15636_v12, %v15621_v13  ;;  %v5213_v38 = vld [vmem:[%s5873_s25 + $0x698] sm:$0xff]  ;;  %v10523_v2 = vmul.f32 %v2258_v56, %v15642_v49  ;;  %v10537_v56 = vld [vmem:[%s5873_s25 + $0x70] sm:$0xff]  ;;  %v10542_v49 = vld [vmem:[%s5873_s25 + $0x88] sm:$0xff]  ;;  %v10547_v18 = vadd.f32 1.0, %v609_v60 }
 0x292   : > { %2027 = vrot.lane.b32.xlu1 %v5213_v38, %s5658_s29  ;;  %v15644_v13 = vld [vmem:[#allocation197_spill] sm:$0xff]  ;;  %v3349_v16 = vsub.f32 %v3181_v5, %v15650_v8  ;;  %v611_v9 = vsub.f32 %v10542_v49, %v5211_v62  ;;  %v10550_v5 = vld [vmem:[%s5873_s25 + $0x310] sm:$0xff]  ;;  %v15653_v8 = vld [vmem:[#allocation178_spill] sm:$0xff] }
 0x293   : > { %v10512_v27 = vmul.f32 %v3348_v59, %v15637_v45  ;;  %15643 = vst [vmem:[#allocation195_spill] sm:$0xff] %v10523_v2  ;;  %v10526_v59 = vmul.f32 %v2257_v19, %v15644_v13  ;;  %v15646_v31 = vld [vmem:[#allocation373_spill] sm:$0xff]  ;;  %v608_v19 = vsub.f32 %v10537_v56, %v10460_v24  ;;  %v3186_v13 = vmul.f32 %v2262_v40, %v9656_v34  ;;  %v15658_v62 = vld [vmem:[#allocation258_spill] sm:$0xff]  ;;  %v5234_v57 = vld [vmem:[%s5873_s25 + $0x6c8] sm:$0xff] }
 0x294   : > { %v3183_v45 = vmul.f32 %v2259_v23, %v15646_v31  ;;  %15651 = vst [vmem:[#allocation402_spill] sm:$0xff] %v10547_v18  ;;  %15652 = vst [vmem:[#allocation497_spill] sm:$0xff] %v10550_v5  ;;  %v15654_v31 = vsub.f32 %v15653_v8, %v15636_v12  ;;  %v3352_v34 = vsub.f32 %v3184_v10, %v15658_v62  ;;  %v5221_v60 = vld [vmem:[%s5873_s25 + $0x6a0] sm:$0xff]  ;;  %v15662_v62 = vld [vmem:[#allocation359_spill] sm:$0xff] }
 0x295   : > { %15638 = vst [vmem:[#allocation49_spill] sm:$0xff] %v10512_v27  ;;  %15645 = vst [vmem:[#allocation197_spill] sm:$0xff] %v10526_v59  ;;  %v15647_v27 = vld [vmem:[#allocation176_spill] sm:$0xff]  ;;  %2029 = vrot.lane.b32.xlu0 %v5221_v60, %s5658_s29  ;;  %v1920_v60 = vpop.permute.xlu1 %1919  ;;  %v15690_v63 = vld [vmem:[#allocation85_spill] sm:$0xff] }
 0x296   : > { %v15648_v38 = vsub.f32 %v15647_v27, %v15627_v33  ;;  %v5218_v33 = vld [vmem:[%s5873_s25 + $0x4d8] sm:$0xff]  ;;  %v10557_v24 = vmul.f32 %v3350_v41, %v15654_v31  ;;  %v15656_v59 = vld [vmem:[#allocation204_spill] sm:$0xff]  ;;  %v15661_v41 = vld [vmem:[#allocation406_spill] sm:$0xff] }
 0x297   : > { %v10560_v2 = vmul.f32 %v2260_v20, %v15656_v59  ;;  %v3351_v20 = vsub.f32 %v3183_v45, %v15661_v41  ;;  %v3185_v59 = vmul.f32 %v2261_v0, %v9664_v22  ;;  %v5222_v31 = vld [vmem:[%s5873_s25 + $0x4d0] sm:$0xff]  ;;  %v15669_v22 = vld [vmem:[#allocation401_spill] sm:$0xff]  ;;  %v5226_v45 = vld [vmem:[%s5873_s25 + $0x4e0] sm:$0xff] }
 0x298   : > { %v10533_v4 = vmul.f32 %v3347_v50, %v15648_v38  ;;  %v2264_v50 = vsub.f32 %v5218_v33, %v1916_v46  ;;  %15655 = vst [vmem:[#allocation178_spill] sm:$0xff] %v10557_v24  ;;  %v10568_v46 = vadd.s32 7, %v10110_v51  ;;  %v15659_v33 = vld [vmem:[#allocation205_spill] sm:$0xff]  ;;  %v2263_v10 = vsub.f32 %v5222_v31, %v1914_v21  ;;  %v15668_v21 = vld [vmem:[#allocation262_spill] sm:$0xff]  ;;  %v5224_v31 = vld [vmem:[%s5873_s25 + $0x4e8] sm:$0xff] }
 0x299   : > { %15657 = vst [vmem:[#allocation204_spill] sm:$0xff] %v10560_v2  ;;  %v10571_v12 = vmul.f32 %v2259_v23, %v15659_v33  ;;  %v1918_v2 = vpop.permute.xlu0 %1917  ;;  %v10581_v24 = vadd.f32 1.0, %v608_v19  ;;  %v10584_v23 = vld [vmem:[%s5873_s25 + $0x328] sm:$0xff]  ;;  %v10588_v33 = vadd.f32 1.0, %v611_v9  ;;  %v3354_v41 = vsub.f32 %v3186_v13, %v15668_v21  ;;  %v5227_v21 = vld [vmem:[%s5873_s25 + $0x6b8] sm:$0xff]  ;;  %vm11081_vm0 = vmand %vm11047_vm14, %vm4047_vm6 }
 0x29a   : > { %15649 = vst [vmem:[#allocation176_spill] sm:$0xff] %v10533_v4  ;;  %v5220_v4 = vld [vmem:[%s5873_s25 + $0x6a8] sm:$0xff]  ;;  %15666 = vst [vmem:[#allocation359_spill] sm:$0xff] %v10584_v23  ;;  %v2265_v13 = vsub.f32 %v5226_v45, %v1918_v2  ;;  %v15680_v2 = vld [vmem:[#allocation416_spill] sm:$0xff] }
 0x29b   : > { %2031 = vrot.lane.b32.xlu1 %v5220_v4, %s5658_s29  ;;  %15660 = vst [vmem:[#allocation258_spill] sm:$0xff] %v10571_v12  ;;  %v15663_v4 = vsub.f32 %v15662_v62, %v15647_v27  ;;  %15665 = vst [vmem:[#allocation406_spill] sm:$0xff] %v10581_v24  ;;  %v3188_v27 = vmul.f32 %v2264_v50, %v9697_v52  ;;  %v15670_v12 = vsub.f32 %v15669_v22, %v15653_v8  ;;  %v15672_v24 = vld [vmem:[#allocation220_spill] sm:$0xff]  ;;  %v15675_v8 = vld [vmem:[#allocation186_spill] sm:$0xff] }
 0x29c   : > { %15667 = vst [vmem:[#allocation498_spill] sm:$0xff] %v10588_v33  ;;  %v10604_v9 = vmul.f32 %v2262_v40, %v15672_v24  ;;  %v15678_v40 = vld [vmem:[#allocation221_spill] sm:$0xff]  ;;  %v3353_v45 = vsub.f32 %v3185_v59, %v15680_v2  ;;  %v3189_v18 = vmul.f32 %v2265_v13, %v15690_v63  ;;  %v5233_v59 = vld [vmem:[%s5873_s25 + $0x4f0] sm:$0xff]  ;;  %v5240_v63 = vld [vmem:[%s5873_s25 + $0x500] sm:$0xff] }
 0x29d   : > { %v10579_v38 = vmul.f32 %v3349_v16, %v15663_v4  ;;  %v2266_v16 = vsub.f32 %v5224_v31, %v1920_v60  ;;  %v10594_v4 = vld [vmem:[%s5873_s25 + $0x80] sm:$0xff]  ;;  %v5228_v60 = vld [vmem:[%s5873_s25 + $0x6b0] sm:$0xff]  ;;  %v10620_v24 = vmul.f32 %v2261_v0, %v15678_v40  ;;  %v3187_v31 = vmul.f32 %v2263_v10, %v9700_v37  ;;  %v5232_v33 = vld [vmem:[%s5873_s25 + $0x4f8] sm:$0xff] }
 0x29e   : > { %v610_v19 = vsub.f32 %v10594_v4, %v10537_v56  ;;  %15673 = vst [vmem:[#allocation401_spill] sm:$0xff] %v10604_v9  ;;  %2033 = vrot.lane.b32.xlu0 %v5228_v60, %s5658_s29  ;;  %v10612_v56 = vadd.s32 8, %v10110_v51  ;;  %v1924_v60 = vpop.permute.xlu1 %1923  ;;  %v1922_v9 = vpop.permute.xlu0 %1921  ;;  %v15682_v40 = vld [vmem:[#allocation66_spill] sm:$0xff]  ;;  %vm11095_vm4 = vmand %vm3837_vm8, %vm3879_vm9 }
 0x29f   : > { %15664 = vst [vmem:[#allocation205_spill] sm:$0xff] %v10579_v38  ;;  %v10601_v38 = vmul.f32 %v3352_v34, %v15670_v12  ;;  %2035 = vrot.lane.b32.xlu1 %v5227_v21, %s5658_s29  ;;  %v15676_v34 = vsub.f32 %v15675_v8, %v15662_v62  ;;  %15679 = vst [vmem:[#allocation221_spill] sm:$0xff] %v10620_v24  ;;  %v15681_v21 = vld [vmem:[#allocation84_spill] sm:$0xff]  ;;  %v5230_v62 = vld [vmem:[%s5873_s25 + $0x98] sm:$0xff]  ;;  %v15683_v2 = vsub.f32 %v15682_v40, %v15669_v22 }
 0x2a0   : > { %15674 = vst [vmem:[#allocation220_spill] sm:$0xff] %v10612_v56  ;;  %v3190_v52 = vmul.f32 %v2266_v16, %v15681_v21  ;;  %v613_v0 = vsub.f32 %v5230_v62, %v10542_v49  ;;  %v15685_v37 = vld [vmem:[#allocation230_spill] sm:$0xff]  ;;  %v2268_v5 = vsub.f32 %v5232_v33, %v1924_v60  ;;  %v15688_v49 = vld [vmem:[#allocation231_spill] sm:$0xff]  ;;  %v2267_v23 = vsub.f32 %v5233_v59, %v1922_v9  ;;  %vm11118_vm5 = vmand %vm11095_vm4, %vm3961_vm3 }
 0x2a1   : > { %15671 = vst [vmem:[#allocation262_spill] sm:$0xff] %v10601_v38  ;;  %v10617_v12 = vmul.f32 %v3351_v20, %v15676_v34  ;;  %v10626_v38 = vld [vmem:[%s5873_s25 + $0x320] sm:$0xff]  ;;  %v10633_v34 = vld [vmem:[%s5873_s25 + $0x338] sm:$0xff]  ;;  %v10640_v21 = vmul.f32 %v3354_v41, %v15683_v2  ;;  %v10643_v24 = vmul.f32 %v2264_v50, %v15685_v37  ;;  %v10648_v56 = vmul.f32 %v2263_v10, %v15688_v49  ;;  %v15691_v50 = vld [vmem:[#allocation211_spill] sm:$0xff] }
 0x2a2   : > { %v5235_v22 = vld [vmem:[%s5873_s25 + $0x6c0] sm:$0xff]  ;;  %v10656_v37 = vadd.f32 1.0, %v610_v19  ;;  %v15692_v41 = vsub.f32 %v15691_v50, %v15675_v8  ;;  %v15694_v10 = vld [vmem:[#allocation425_spill] sm:$0xff]  ;;  %v15695_v19 = vld [vmem:[#allocation431_spill] sm:$0xff]  ;;  %v3192_v8 = vmul.f32 %v2268_v5, %v9826_v53  ;;  %v1928_v2 = vpop.permute.xlu1 %1927  ;;  %v10675_v49 = vadd.f32 1.0, %v613_v0 }
 0x2a3   : > { %15677 = vst [vmem:[#allocation186_spill] sm:$0xff] %v10617_v12  ;;  %15684 = vst [vmem:[#allocation416_spill] sm:$0xff] %v10640_v21  ;;  %v15687_v12 = vld [vmem:[#allocation423_spill] sm:$0xff]  ;;  %2039 = vrot.lane.b32.xlu1 %v5234_v57, %s5658_s29  ;;  %2037 = vrot.lane.b32.xlu0 %v5235_v22, %s5658_s29  ;;  %v3358_v59 = vsub.f32 %v3190_v52, %v15695_v19  ;;  %v15702_v0 = vld [vmem:[#allocation249_spill] sm:$0xff]  ;;  %v3191_v22 = vmul.f32 %v2267_v23, %v9829_v6 }
 0x2a4   : > { %15686 = vst [vmem:[#allocation66_spill] sm:$0xff] %v10643_v24  ;;  %v3356_v20 = vsub.f32 %v3188_v27, %v15687_v12  ;;  %15689 = vst [vmem:[#allocation230_spill] sm:$0xff] %v10648_v56  ;;  %v10661_v33 = vmul.f32 %v3353_v45, %v15692_v41  ;;  %v3355_v27 = vsub.f32 %v3187_v31, %v15694_v10  ;;  %v10665_v12 = vld [vmem:[%s5873_s25 + $0x90] sm:$0xff]  ;;  %v10670_v57 = vld [vmem:[%s5873_s25 + $0xa8] sm:$0xff]  ;;  %v1926_v45 = vpop.permute.xlu0 %1925 }
 0x2a5   : > { %v612_v9 = vsub.f32 %v10665_v12, %v10594_v4  ;;  %v615_v60 = vsub.f32 %v10670_v57, %v5230_v62  ;;  %15696 = vst [vmem:[#allocation231_spill] sm:$0xff] %v10675_v49  ;;  %v10678_v31 = vld [vmem:[%s5873_s25 + $0x330] sm:$0xff]  ;;  %v15697_v4 = vld [vmem:[#allocation70_spill] sm:$0xff]  ;;  %v15700_v62 = vld [vmem:[#allocation239_spill] sm:$0xff]  ;;  %v2269_v56 = vsub.f32 %v5240_v63, %v1926_v45 }
 0x2a6   : > { %15693 = vst [vmem:[#allocation423_spill] sm:$0xff] %v10661_v33  ;;  %v15698_v41 = vsub.f32 %v15697_v4, %v15682_v40  ;;  %v10688_v52 = vmul.f32 %v2266_v16, %v15700_v62  ;;  %v5239_v19 = vld [vmem:[%s5873_s25 + $0x508] sm:$0xff]  ;;  %v10693_v33 = vmul.f32 %v2265_v13, %v15702_v0  ;;  %v15704_v24 = vld [vmem:[#allocation433_spill] sm:$0xff]  ;;  %v10702_v16 = vadd.s32 9, %v10110_v51  ;;  %v15705_v40 = vld [vmem:[#allocation74_spill] sm:$0xff] }
 0x2a7   : > { %v2270_v53 = vsub.f32 %v5239_v19, %v1928_v2  ;;  %v3357_v21 = vsub.f32 %v3189_v18, %v15704_v24  ;;  %v5241_v49 = vld [vmem:[%s5873_s25 + $0x6d8] sm:$0xff]  ;;  %v15706_v63 = vsub.f32 %v15705_v40, %v15691_v50  ;;  %v10709_v18 = vadd.f32 1.0, %v612_v9  ;;  %v10712_v24 = vld [vmem:[%s5873_s25 + $0x348] sm:$0xff]  ;;  %v1932_v9 = vpop.permute.xlu1 %1931  ;;  %vm11130_vm9 = vmand %vm11095_vm4, %vm4047_vm6 }
 0x2a8   : > { %v10685_v10 = vmul.f32 %v3356_v20, %v15698_v41  ;;  %15701 = vst [vmem:[#allocation425_spill] sm:$0xff] %v10688_v52  ;;  %15703 = vst [vmem:[#allocation431_spill] sm:$0xff] %v10693_v33  ;;  %2043 = vrot.lane.b32.xlu1 %v5241_v49, %s5658_s29  ;;  %v5242_v20 = vld [vmem:[%s5873_s25 + $0x6d0] sm:$0xff]  ;;  %v10716_v45 = vadd.f32 1.0, %v615_v60  ;;  %v15713_v19 = vld [vmem:[#allocation437_spill] sm:$0xff]  ;;  %v1930_v0 = vpop.permute.xlu0 %1929  ;;  %v3193_v2 = vmul.f32 %v2269_v56, %v9869_v1 }
 0x2a9   : > { %2041 = vrot.lane.b32.xlu0 %v5242_v20, %s5658_s29  ;;  %v10707_v13 = vmul.f32 %v3355_v27, %v15706_v63  ;;  %15708 = vst [vmem:[#allocation239_spill] sm:$0xff] %v10712_v24  ;;  %v15710_v49 = vld [vmem:[#allocation228_spill] sm:$0xff]  ;;  %v3360_v50 = vsub.f32 %v3192_v8, %v15713_v19  ;;  %v3194_v27 = vmul.f32 %v2270_v53, %v9866_v39  ;;  %v5244_v20 = vld [vmem:[%s5873_s25 + $0xa0] sm:$0xff]  ;;  %v15714_v6 = vld [vmem:[#allocation259_spill] sm:$0xff] }
 0x2aa   : > { %15699 = vst [vmem:[#allocation211_spill] sm:$0xff] %v10685_v10  ;;  %15709 = vst [vmem:[#allocation249_spill] sm:$0xff] %v10716_v45  ;;  %v15711_v41 = vsub.f32 %v15710_v49, %v15697_v4  ;;  %v614_v63 = vsub.f32 %v5244_v20, %v10665_v12  ;;  %v10728_v60 = vmul.f32 %v2268_v5, %v15714_v6  ;;  %v15716_v19 = vld [vmem:[#allocation80_spill] sm:$0xff]  ;;  %v15719_v33 = vld [vmem:[#allocation263_spill] sm:$0xff] }
 0x2ab   : > { %15707 = vst [vmem:[#allocation70_spill] sm:$0xff] %v10707_v13  ;;  %v15717_v39 = vsub.f32 %v15716_v19, %v15705_v40  ;;  %v10739_v13 = vmul.f32 %v2267_v23, %v15719_v33  ;;  %v15721_v12 = vld [vmem:[#allocation439_spill] sm:$0xff]  ;;  %v5248_v5 = vld [vmem:[%s5873_s25 + $0x6e0] sm:$0xff]  ;;  %v10776_v45 = vld [vmem:[%s5873_s25 + $0xb0] sm:$0xff] }
 0x2ac   : > { %v10721_v62 = vmul.f32 %v3358_v59, %v15711_v41  ;;  %15715 = vst [vmem:[#allocation74_spill] sm:$0xff] %v10728_v60  ;;  %v5245_v59 = vld [vmem:[%s5873_s25 + $0x518] sm:$0xff]  ;;  %v5246_v41 = vld [vmem:[%s5873_s25 + $0x510] sm:$0xff]  ;;  %v3359_v52 = vsub.f32 %v3191_v22, %v15721_v12  ;;  %v5247_v6 = vld [vmem:[%s5873_s25 + $0x6e8] sm:$0xff] }
 0x2ad   : > { %v2272_v4 = vsub.f32 %v5245_v59, %v1932_v9  ;;  %v2271_v8 = vsub.f32 %v5246_v41, %v1930_v0  ;;  %15720 = vst [vmem:[#allocation437_spill] sm:$0xff] %v10739_v13  ;;  %2047 = vrot.lane.b32.xlu1 %v5247_v6, %s5658_s29  ;;  %2045 = vrot.lane.b32.xlu0 %v5248_v5, %s5658_s29  ;;  %v10747_v9 = vadd.s32 10, %v10110_v51  ;;  %v10758_v22 = vld [vmem:[%s5873_s25 + $0x358] sm:$0xff]  ;;  %v15722_v59 = vld [vmem:[#allocation234_spill] sm:$0xff]  ;;  %v15725_v6 = vld [vmem:[#allocation271_spill] sm:$0xff]  ;;  %v1934_v13 = vpop.permute.xlu0 %1933 }
 0x2ae   : > { %15712 = vst [vmem:[#allocation433_spill] sm:$0xff] %v10721_v62  ;;  %v10736_v62 = vmul.f32 %v3357_v21, %v15717_v39  ;;  %v10751_v39 = vld [vmem:[%s5873_s25 + $0x340] sm:$0xff]  ;;  %v5250_v21 = vld [vmem:[%s5873_s25 + $0xb8] sm:$0xff]  ;;  %v15723_v41 = vsub.f32 %v15722_v59, %v15710_v49  ;;  %v10768_v5 = vmul.f32 %v2270_v53, %v15725_v6  ;;  %v5252_v40 = vld [vmem:[%s5873_s25 + $0x528] sm:$0xff]  ;;  %v15729_v53 = vsub.f32 %v9784_v15, %v15716_v19 }
 0x2af   : > { %v3196_v0 = vmul.f32 %v2272_v4, %v9950_v47  ;;  %v617_v33 = vsub.f32 %v5250_v21, %v10670_v57  ;;  %v15727_v47 = vld [vmem:[#allocation446_spill] sm:$0xff]  ;;  %v3195_v1 = vmul.f32 %v2271_v8, %v9953_v42  ;;  %v1936_v57 = vpop.permute.xlu1 %1935  ;;  %v5255_v6 = vld [vmem:[%s5873_s25 + $0x6f8] sm:$0xff]  ;;  %v5259_v42 = vld [vmem:[%s5873_s25 + $0x708] sm:$0xff] }
 0x2b0   : > { %15718 = vst [vmem:[#allocation228_spill] sm:$0xff] %v10736_v62  ;;  %v10765_v12 = vmul.f32 %v3360_v50, %v15723_v41  ;;  %15726 = vst [vmem:[#allocation80_spill] sm:$0xff] %v10768_v5  ;;  %v3362_v23 = vsub.f32 %v3194_v27, %v15727_v47  ;;  %v15728_v62 = vld [vmem:[#allocation449_spill] sm:$0xff]  ;;  %v2274_v10 = vsub.f32 %v5252_v40, %v1936_v57  ;;  %v5253_v24 = vld [vmem:[%s5873_s25 + $0x520] sm:$0xff]  ;;  %v10802_v40 = vadd.s32 11, %v10110_v51 }
 0x2b1   : > { %v3361_v60 = vsub.f32 %v3193_v2, %v15728_v62  ;;  %v2273_v49 = vsub.f32 %v5253_v24, %v1934_v13  ;;  %v616_v50 = vsub.f32 %v10776_v45, %v5244_v20  ;;  %v10782_v41 = vmul.f32 %v3359_v52, %v15729_v53  ;;  %v15731_v47 = vld [vmem:[#allocation275_spill] sm:$0xff]  ;;  %2051 = vrot.lane.b32.xlu1 %v5255_v6, %s5658_s29  ;;  %v5256_v2 = vld [vmem:[%s5873_s25 + $0x6f0] sm:$0xff]  ;;  %v15733_v20 = vld [vmem:[#allocation458_spill] sm:$0xff] }
 0x2b2   : > { %15724 = vst [vmem:[#allocation259_spill] sm:$0xff] %v10765_v12  ;;  %v10785_v27 = vmul.f32 %v2269_v56, %v15731_v47  ;;  %2049 = vrot.lane.b32.xlu0 %v5256_v2, %s5658_s29  ;;  %v10791_v13 = vadd.f32 1.0, %v614_v63  ;;  %v10794_v24 = vld [vmem:[%s5873_s25 + $0xc8] sm:$0xff]  ;;  %v3364_v19 = vsub.f32 %v3196_v0, %v15733_v20  ;;  %v3198_v52 = vmul.f32 %v2274_v10, %v10005_v35  ;;  %v1938_v2 = vpop.permute.xlu0 %1937  ;;  %v5260_v20 = vld [vmem:[%s5873_s25 + $0x700] sm:$0xff]  ;;  %vm11143_vm10 = vmand %vm11118_vm5, %vm4047_vm6 }
 0x2b3   : > { %15730 = vst [vmem:[#allocation263_spill] sm:$0xff] %v10782_v41  ;;  %v619_v62 = vsub.f32 %v10794_v24, %v5250_v21  ;;  %v10799_v56 = vadd.f32 1.0, %v617_v33  ;;  %v15734_v57 = vsub.f32 %v9789_v43, %v15722_v59  ;;  %v15736_v53 = vld [vmem:[#allocation279_spill] sm:$0xff]  ;;  %v15738_v21 = vld [vmem:[#allocation461_spill] sm:$0xff]  ;;  %v1940_v6 = vpop.permute.xlu1 %1939  ;;  %v10814_v33 = vld [vmem:[%s5873_s25 + $0x350] sm:$0xff]  ;;  %v15739_v35 = vsub.f32 %v9834_v7, %v9784_v15 }
 0x2b4   : > { %15732 = vst [vmem:[#allocation439_spill] sm:$0xff] %v10785_v27  ;;  %v10810_v47 = vmul.f32 %v2272_v4, %v15736_v53  ;;  %v3363_v0 = vsub.f32 %v3195_v1, %v15738_v21  ;;  %v10827_v4 = vmul.f32 %v2273_v49, %v10017_v36  ;;  %v10829_v1 = vadd.f32 1.0, %v616_v50  ;;  %v15744_v53 = vld [vmem:[#allocation468_spill] sm:$0xff]  ;;  %v10837_v15 = vld [vmem:[%s5873_s25 + $0x368] sm:$0xff]  ;;  %vm11176_vm11 = vmand %vm3838_vm1, %vm3880_vm2 }
 0x2b5   : > { %v10807_v63 = vmul.f32 %v3362_v23, %v15734_v57  ;;  %v10821_v59 = vmul.f32 %v3361_v60, %v15739_v35  ;;  %v15741_v23 = vld [vmem:[#allocation289_spill] sm:$0xff]  ;;  %v3366_v21 = vsub.f32 %v3198_v52, %v15744_v53  ;;  %2055 = vrot.lane.b32.xlu1 %v5259_v42, %s5658_s29  ;;  %v10841_v60 = vadd.f32 1.0, %v619_v62  ;;  %v15748_v42 = vld [vmem:[#allocation295_spill] sm:$0xff]  ;;  %vm11201_vm14 = vmand %vm11176_vm11, %vm3961_vm3 }
 0x2b6   : > { %15737 = vst [vmem:[#allocation271_spill] sm:$0xff] %v10810_v47  ;;  %v10824_v57 = vmul.f32 %v2271_v8, %v15741_v23  ;;  %15743 = vst [vmem:[#allocation275_spill] sm:$0xff] %v10827_v4  ;;  %2053 = vrot.lane.b32.xlu0 %v5260_v20, %s5658_s29  ;;  %v5262_v8 = vld [vmem:[%s5873_s25 + $0xc0] sm:$0xff]  ;;  %v15745_v23 = vld [vmem:[#allocation92_spill] sm:$0xff]  ;;  %v10851_v36 = vmul.f32 %v2274_v10, %v15748_v42  ;;  %v10857_v62 = vadd.s32 12, %v10110_v51 }
 0x2b7   : > { %15735 = vst [vmem:[#allocation234_spill] sm:$0xff] %v10807_v63  ;;  %15740 = vst [vmem:[#allocation446_spill] sm:$0xff] %v10821_v59  ;;  %v618_v50 = vsub.f32 %v5262_v8, %v10776_v45  ;;  %v15746_v52 = vsub.f32 %v15745_v23, %v9789_v43  ;;  %v5263_v20 = vld [vmem:[%s5873_s25 + $0x538] sm:$0xff]  ;;  %v15750_v43 = vsub.f32 %v9907_v25, %v9834_v7  ;;  %v5264_v10 = vld [vmem:[%s5873_s25 + $0x530] sm:$0xff] }
 0x2b8   : > { %15742 = vst [vmem:[#allocation449_spill] sm:$0xff] %v10824_v57  ;;  %15749 = vst [vmem:[#allocation279_spill] sm:$0xff] %v10851_v36  ;;  %v2276_v57 = vsub.f32 %v5263_v20, %v1940_v6  ;;  %v10868_v42 = vsub.f32 %v5264_v10, %v1938_v2  ;;  %v1944_v6 = vpop.permute.xlu1 %1943  ;;  %v1942_v20 = vpop.permute.xlu0 %1941  ;;  %v10871_v35 = vld [vmem:[%s5873_s25 + $0xd8] sm:$0xff]  ;;  %v15756_v10 = vsub.f32 %v9912_v30, %v15745_v23  ;;  %v5270_v7 = vld [vmem:[%s5873_s25 + $0x710] sm:$0xff] }
 0x2b9   : > { %v10848_v53 = vmul.f32 %v3364_v19, %v15746_v52  ;;  %v10862_v45 = vmul.f32 %v3363_v0, %v15750_v43  ;;  %v15752_v19 = vld [vmem:[#allocation296_spill] sm:$0xff]  ;;  %v621_v36 = vsub.f32 %v10871_v35, %v10794_v24  ;;  %v5266_v0 = vld [vmem:[%s5873_s25 + $0x548] sm:$0xff]  ;;  %v5267_v43 = vld [vmem:[%s5873_s25 + $0x540] sm:$0xff] }
 0x2ba   : > { %v10865_v52 = vmul.f32 %v2273_v49, %v15752_v19  ;;  %15754 = vst [vmem:[#allocation468_spill] sm:$0xff] %v10868_v42  ;;  %v2278_v49 = vsub.f32 %v5266_v0, %v1944_v6  ;;  %v2277_v19 = vsub.f32 %v5267_v43, %v1942_v20  ;;  %v5269_v24 = vld [vmem:[%s5873_s25 + $0x718] sm:$0xff]  ;;  %2057 = vrot.lane.b32.xlu0 %v5270_v7, %s5658_s29  ;;  %v10894_v6 = vadd.f32 1.0, %v618_v50  ;;  %v10902_v43 = vld [vmem:[%s5873_s25 + $0xd0] sm:$0xff]  ;;  %v15758_v23 = vld [vmem:[#allocation303_spill] sm:$0xff] }
 0x2bb   : > { %15747 = vst [vmem:[#allocation458_spill] sm:$0xff] %v10848_v53  ;;  %15751 = vst [vmem:[#allocation461_spill] sm:$0xff] %v10862_v45  ;;  %v10887_v45 = vmul.f32 %v3366_v21, %v15756_v10  ;;  %2059 = vrot.lane.b32.xlu1 %v5269_v24, %s5658_s29  ;;  %v10897_v20 = vld [vmem:[%s5873_s25 + $0x378] sm:$0xff]  ;;  %v620_v21 = vsub.f32 %v10902_v43, %v5262_v8  ;;  %v10906_v10 = vmul.f32 %v2276_v57, %v15758_v23  ;;  %v15767_v47 = vld [vmem:[#allocation319_spill] sm:$0xff] }
 0x2bc   : > { %15753 = vst [vmem:[#allocation289_spill] sm:$0xff] %v10865_v52  ;;  %v10880_v52 = vld [vmem:[%s5873_s25 + $0x360] sm:$0xff]  ;;  %v10909_v24 = vmul.f32 %v2276_v57, %v10045_v58  ;;  %v2530_v2 = vadd.f32 1.0, %v2278_v49  ;;  %v2529_v50 = vadd.f32 1.0, %v2277_v19  ;;  %v15761_v7 = vld [vmem:[#allocation305_spill] sm:$0xff]  ;;  %v1948_v8 = vpop.permute.xlu1 %1947  ;;  %v1946_v23 = vpop.permute.xlu0 %1945  ;;  %v10918_v57 = vadd.f32 1.0, %v621_v36  ;;  %vm11238_vm1 = vmand %vm11201_vm14, %vm4047_vm6 }
 0x2bd   : > { %15757 = vst [vmem:[#allocation92_spill] sm:$0xff] %v10887_v45  ;;  %15759 = vst [vmem:[#allocation295_spill] sm:$0xff] %v10906_v10  ;;  %v10915_v0 = vmul.f32 %v10868_v42, %v15761_v7  ;;  %v10921_v49 = vadd.s32 13, %v10110_v51  ;;  %v10924_v19 = vld [vmem:[%s5873_s25 + $0x370] sm:$0xff]  ;;  %v15764_v10 = vld [vmem:[#allocation35_spill] sm:$0xff]  ;;  %v10938_v30 = vadd.f32 1.0, %v620_v21 }
 0x2be   : > { %15760 = vst [vmem:[#allocation296_spill] sm:$0xff] %v10909_v24  ;;  %15763 = vst [vmem:[#allocation305_spill] sm:$0xff] %v10924_v19  ;;  %v2614_v7 = vmul.f32 %v2530_v2, %v15764_v10  ;;  %v15766_v45 = vld [vmem:[#allocation32_spill] sm:$0xff]  ;;  %v2865_v59 = vmul.f32 %v2529_v50, %v15767_v47  ;;  %v5274_v63 = vld [vmem:[%s5873_s25 + $0x558] sm:$0xff] }
 0x2bf   : > { %15762 = vst [vmem:[#allocation303_spill] sm:$0xff] %v10915_v0  ;;  %v15765_v0 = vld [vmem:[#allocation318_spill] sm:$0xff]  ;;  %v2613_v24 = vmul.f32 %v2529_v50, %v15766_v45  ;;  %v2280_v36 = vsub.f32 %v5274_v63, %v1948_v8  ;;  %v5275_v42 = vld [vmem:[%s5873_s25 + $0x550] sm:$0xff]  ;;  %v5276_v4 = vld [vmem:[%s5873_s25 + $0x728] sm:$0xff]  ;;  %v10955_v45 = vadd.s32 14, %v10110_v51 }
 0x2c0   : > { %v2866_v58 = vmul.f32 %v2530_v2, %v15765_v0  ;;  %v2279_v53 = vsub.f32 %v5275_v42, %v1946_v23  ;;  %2063 = vrot.lane.b32.xlu1 %v5276_v4, %s5658_s29  ;;  %v5277_v25 = vld [vmem:[%s5873_s25 + $0x720] sm:$0xff]  ;;  %v10941_v10 = vld [vmem:[%s5873_s25 + $0xe8] sm:$0xff]  ;;  %v1952_v41 = vpop.permute.xlu1 %1951 }
 0x2c1   : > { %2061 = vrot.lane.b32.xlu0 %v5277_v25, %s5658_s29  ;;  %v15768_v2 = vld [vmem:[#allocation34_spill] sm:$0xff]  ;;  %v2532_v27 = vadd.f32 1.0, %v2280_v36  ;;  %v1950_v25 = vpop.permute.xlu0 %1949  ;;  %v10950_v21 = vld [vmem:[%s5873_s25 + $0x388] sm:$0xff] }
 0x2c2   : > { %v2782_v47 = vsub.f32 %v2614_v7, %v15768_v2  ;;  %v15769_v0 = vld [vmem:[#allocation142_spill] sm:$0xff]  ;;  %v2531_v4 = vadd.f32 1.0, %v2279_v53  ;;  %15772 = vst [vmem:[#allocation35_spill] sm:$0xff] %v10950_v21  ;;  %v15774_v7 = vsub.f32 %v9059_v54, %v10049_v32  ;;  %v5280_v54 = vld [vmem:[%s5873_s25 + $0x738] sm:$0xff] }
 0x2c3   : > { %v3034_v63 = vsub.f32 %v2866_v58, %v15769_v0  ;;  %v15770_v50 = vld [vmem:[#allocation30_spill] sm:$0xff] }
 0x2c4   : > { %v2781_v42 = vsub.f32 %v2613_v24, %v15770_v50  ;;  %v15771_v8 = vld [vmem:[#allocation134_spill] sm:$0xff]  ;;  %v3370_v58 = vmul.f32 %v2782_v47, %v10121_v29  ;;  %v15773_v24 = vsub.f32 %v9055_v11, %v10027_v3  ;;  %v15777_v29 = vld [vmem:[#allocation33_spill] sm:$0xff]  ;;  %v15778_v3 = vld [vmem:[#allocation320_spill] sm:$0xff]  ;;  %2067 = vrot.lane.b32.xlu1 %v5280_v54, %s5658_s29  ;;  %v10989_v19 = vpop.permute.xlu1 %1955 }
 0x2c5   : > { %v3033_v23 = vsub.f32 %v2865_v59, %v15771_v8  ;;  %v2616_v47 = vmul.f32 %v2532_v27, %v15777_v29  ;;  %v2868_v0 = vmul.f32 %v2532_v27, %v15778_v3  ;;  %v5283_v29 = vld [vmem:[%s5873_s25 + $0x730] sm:$0xff]  ;;  %v15781_v27 = vld [vmem:[#allocation311_spill] sm:$0xff]  ;;  %v15784_v51 = vld [vmem:[#allocation130_spill] sm:$0xff] }
 0x2c6   : > { %v3454_v59 = vmul.f32 %v3034_v63, %v15773_v24  ;;  %v3369_v53 = vmul.f32 %v2781_v42, %v10155_v17  ;;  %v15779_v63 = vld [vmem:[#allocation29_spill] sm:$0xff]  ;;  %v15780_v17 = vld [vmem:[#allocation322_spill] sm:$0xff]  ;;  %2065 = vrot.lane.b32.xlu0 %v5283_v29, %s5658_s29 }
 0x2c7   : > { %v3453_v36 = vmul.f32 %v3033_v23, %v15774_v7  ;;  %v2615_v50 = vmul.f32 %v2531_v4, %v15779_v63  ;;  %v2867_v42 = vmul.f32 %v2531_v4, %v15780_v17  ;;  %v5281_v23 = vld [vmem:[%s5873_s25 + $0x568] sm:$0xff]  ;;  %v5282_v7 = vld [vmem:[%s5873_s25 + $0x560] sm:$0xff]  ;;  %v2784_v3 = vsub.f32 %v2616_v47, %v15781_v27  ;;  %v15783_v17 = vld [vmem:[#allocation304_spill] sm:$0xff] }
 0x2c8   : > { %v3538_v32 = vsub.f32 %v3370_v58, %v3454_v59  ;;  %v2282_v24 = vsub.f32 %v5281_v23, %v1952_v41  ;;  %v2281_v5 = vsub.f32 %v5282_v7, %v1950_v25  ;;  %v15782_v63 = vld [vmem:[#allocation139_spill] sm:$0xff]  ;;  %v15788_v25 = vld [vmem:[#allocation302_spill] sm:$0xff]  ;;  %v15807_v41 = vld [vmem:[#allocation312_spill] sm:$0xff] }
 0x2c9   : > { %v3537_v8 = vsub.f32 %v3369_v53, %v3453_v36  ;;  %v3036_v4 = vsub.f32 %v2868_v0, %v15782_v63  ;;  %v2783_v12 = vsub.f32 %v2615_v50, %v15783_v17  ;;  %v3035_v21 = vsub.f32 %v2867_v42, %v15784_v51  ;;  %v15785_v58 = vld [vmem:[#allocation307_spill] sm:$0xff]  ;;  %v11001_v0 = vpop.permute.xlu0 %1953  ;;  %v15791_v42 = vld [vmem:[#allocation478_spill] sm:$0xff] }
 0x2ca   : > { %v3706_v59 = vadd.f32 %v15785_v58, %v3538_v32  ;;  %v2534_v36 = vadd.f32 1.0, %v2282_v24  ;;  %v2533_v47 = vadd.f32 1.0, %v2281_v5  ;;  %v3372_v50 = vmul.f32 %v2784_v3, %v10192_v26  ;;  %v15794_v24 = vld [vmem:[#allocation479_spill] sm:$0xff]  ;;  %v15799_v3 = vld [vmem:[#allocation37_spill] sm:$0xff]  ;;  %v5285_v17 = vld [vmem:[%s5873_s25 + $0x740] sm:$0xff] }
 0x2cb   : > { %v3705_v53 = vadd.f32 %v15788_v25, %v3537_v8  ;;  %v15792_v54 = vsub.f32 %v15791_v42, %v9055_v11  ;;  %v15793_v8 = vld [vmem:[#allocation456_spill] sm:$0xff]  ;;  %v15795_v5 = vld [vmem:[#allocation455_spill] sm:$0xff]  ;;  %2069 = vrot.lane.b32.xlu0 %v5285_v17, %s5658_s29  ;;  %v5286_v17 = vld [vmem:[%s5873_s25 + $0x758] sm:$0xff] }
 0x2cc   : > { %v3371_v23 = vmul.f32 %v2783_v12, %v15793_v8  ;;  %v15796_v7 = vsub.f32 %v15794_v24, %v15795_v5  ;;  %v5284_v27 = vld [vmem:[%s5873_s25 + $0x748] sm:$0xff]  ;;  %v4133_v26 = vsub.f32 0.0, %v3706_v59  ;;  %v2618_v63 = vmul.f32 %v2534_v36, %v15799_v3  ;;  %v15800_v12 = vld [vmem:[#allocation328_spill] sm:$0xff]  ;;  %v15854_v24 = vld [vmem:[#allocation141_spill] sm:$0xff] }
 0x2cd   : > { %v3456_v32 = vmul.f32 %v3036_v4, %v15792_v54  ;;  %2071 = vrot.lane.b32.xlu1 %v5284_v27, %s5658_s29  ;;  %v4132_v11 = vsub.f32 0.0, %v3705_v53  ;;  %v2870_v4 = vmul.f32 %v2534_v36, %v15800_v12  ;;  %v15803_v59 = vld [vmem:[#allocation39_spill] sm:$0xff]  ;;  %v15804_v53 = vld [vmem:[#allocation330_spill] sm:$0xff]  ;;  %v1960_v12 = vpop.permute.xlu1 %1959 }
 0x2ce   : > { %v3455_v29 = vmul.f32 %v3035_v21, %v15796_v7  ;;  %v2617_v25 = vmul.f32 %v2533_v47, %v15803_v59  ;;  %v2869_v54 = vmul.f32 %v2533_v47, %v15804_v53  ;;  %v4217_v8 = vmax.f32 %v4133_v26, 0.0  ;;  %v15808_v7 = vld [vmem:[#allocation145_spill] sm:$0xff]  ;;  %v15811_v47 = vld [vmem:[#allocation36_spill] sm:$0xff] }
 0x2cf   : > { %v3540_v2 = vsub.f32 %v3372_v50, %v3456_v32  ;;  %v4216_v36 = vmax.f32 %v4132_v11, 0.0  ;;  %v2786_v5 = vsub.f32 %v2618_v63, %v15807_v41  ;;  %v3038_v50 = vsub.f32 %v2870_v4, %v15808_v7  ;;  %v15809_v32 = vld [vmem:[#allocation133_spill] sm:$0xff]  ;;  %v5287_v21 = vld [vmem:[%s5873_s25 + $0x750] sm:$0xff]  ;;  %v15820_v41 = vld [vmem:[#allocation342_spill] sm:$0xff] }
 0x2d0   : > { %v3539_v58 = vsub.f32 %v3371_v23, %v3455_v29  ;;  %v15810_v29 = vld [vmem:[#allocation313_spill] sm:$0xff]  ;;  %v2785_v26 = vsub.f32 %v2617_v25, %v15811_v47  ;;  %v4301_v59 = vsel %vm11025_vm12, %v4217_v8, 0.0  ;;  %v15816_v25 = vld [vmem:[#allocation144_spill] sm:$0xff]  ;;  %2073 = vrot.lane.b32.xlu0 %v5287_v21, %s5658_s29  ;;  %vm3840_vm12 = vcmp.ge.s32.totalorder %v10420_v48, 1 }
 0x2d1   : > { %v3708_v23 = vadd.f32 %v15809_v32, %v3540_v2  ;;  %v15812_v11 = vld [vmem:[#allocation149_spill] sm:$0xff]  ;;  %2075 = vrot.lane.b32.xlu1 %v5286_v17, %s5658_s29  ;;  %v4300_v63 = vsel %vm11037_vm13, %v4216_v36, 0.0  ;;  %v15815_v2 = vld [vmem:[#allocation464_spill] sm:$0xff]  ;;  %v15817_v53 = vsub.f32 %v15816_v25, %v15791_v42  ;;  %vm3882_vm13 = vcmp.lt.s32.totalorder %v10420_v48, 96 }
 0x2d2   : > { %v3707_v27 = vadd.f32 %v15810_v29, %v3539_v58  ;;  %v3037_v3 = vsub.f32 %v2869_v54, %v15812_v11  ;;  %v3374_v58 = vmul.f32 %v2786_v5, %v15815_v2  ;;  %v1958_v54 = vpop.permute.xlu0 %1957  ;;  %v3373_v42 = vmul.f32 %v2785_v26, %v15820_v41  ;;  %v15821_v5 = vld [vmem:[#allocation486_spill] sm:$0xff]  ;;  %v15822_v7 = vld [vmem:[#allocation336_spill] sm:$0xff]  ;;  %v5288_v29 = vld [vmem:[%s5873_s25 + $0x578] sm:$0xff] }
 0x2d3   : > { %v3458_v61 = vmul.f32 %v3038_v50, %v15817_v53  ;;  %v4135_v8 = vsub.f32 0.0, %v3708_v23  ;;  %v15823_v50 = vsub.f32 %v15821_v5, %v15822_v7  ;;  %v5289_v47 = vld [vmem:[%s5873_s25 + $0x570] sm:$0xff]  ;;  %v5290_v11 = vld [vmem:[%s5873_s25 + $0x588] sm:$0xff]  ;;  %v5291_v53 = vld [vmem:[%s5873_s25 + $0x580] sm:$0xff] }
 0x2d4   : > { %v4134_v36 = vsub.f32 0.0, %v3707_v27  ;;  %v2284_v27 = vsub.f32 %v5288_v29, %v10989_v19  ;;  %v2283_v26 = vsub.f32 %v5289_v47, %v11001_v0  ;;  %v2285_v21 = vsub.f32 %v5291_v53, %v1958_v54  ;;  %v15826_v41 = vld [vmem:[#allocation323_spill] sm:$0xff]  ;;  %v5293_v19 = vld [vmem:[%s5873_s25 + $0x760] sm:$0xff]  ;;  %v15831_v29 = vld [vmem:[#allocation41_spill] sm:$0xff] }
 0x2d5   : > { %v3457_v32 = vmul.f32 %v3037_v3, %v15823_v50  ;;  %v3542_v23 = vsub.f32 %v3374_v58, %v3458_v61  ;;  %v2286_v3 = vsub.f32 %v5290_v11, %v1960_v12  ;;  %v4219_v17 = vmax.f32 %v4135_v8, 0.0  ;;  %2079 = vrot.lane.b32.xlu1 %v5292_v28, %s5658_s29  ;;  %2077 = vrot.lane.b32.xlu0 %v5293_v19, %s5658_s29  ;;  %v15829_v8 = vld [vmem:[#allocation324_spill] sm:$0xff]  ;;  %v1964_v50 = vpop.permute.xlu1 %1963  ;;  %v15834_v11 = vld [vmem:[#allocation337_spill] sm:$0xff]  ;;  %v15844_v54 = vld [vmem:[#allocation155_spill] sm:$0xff] }
 0x2d6   : > { %v4218_v2 = vmax.f32 %v4134_v36, 0.0  ;;  %v2536_v58 = vadd.f32 1.0, %v2284_v27  ;;  %v2535_v61 = vadd.f32 1.0, %v2283_v26  ;;  %v2537_v4 = vadd.f32 1.0, %v2285_v21  ;;  %v5294_v53 = vld [vmem:[%s5873_s25 + $0x778] sm:$0xff]  ;;  %v15839_v21 = vld [vmem:[#allocation40_spill] sm:$0xff]  ;;  %v1962_v47 = vpop.permute.xlu0 %1961 }
 0x2d7   : > { %v3541_v25 = vsub.f32 %v3373_v42, %v3457_v32  ;;  %v3710_v5 = vadd.f32 %v15826_v41, %v3542_v23  ;;  %v2538_v7 = vadd.f32 1.0, %v2286_v3  ;;  %v4303_v0 = vsel %vm11067_vm15, %v4219_v17, 0.0  ;;  %v15830_v42 = vld [vmem:[#allocation363_spill] sm:$0xff]  ;;  %v15840_v41 = vld [vmem:[#allocation45_spill] sm:$0xff] }
 0x2d8   : > { %v4302_v12 = vsel %vm11081_vm0, %v4218_v2, 0.0  ;;  %vm3839_vm7 = vcmp.ge.s32.totalorder %v15830_v42, 1  ;;  %vm3881_vm8 = vcmp.lt.s32.totalorder %v15830_v42, 96  ;;  %v4427_v32 = vadd.f32 %v4303_v0, %v4301_v59  ;;  %v15835_v17 = vld [vmem:[#allocation43_spill] sm:$0xff]  ;;  %v5295_v0 = vld [vmem:[%s5873_s25 + $0x770] sm:$0xff]  ;;  %vm11225_vm0 = vmand %vm11176_vm11, %vm4047_vm6 }
 0x2d9   : > { %v3709_v36 = vadd.f32 %v15829_v8, %v3541_v25  ;;  %v4386_v51 = vadd.f32 %v4302_v12, %v4300_v63  ;;  %v4137_v23 = vsub.f32 0.0, %v3710_v5  ;;  %v2620_v27 = vmul.f32 %v2536_v58, %v15831_v29  ;;  %v15836_v25 = vld [vmem:[#allocation338_spill] sm:$0xff]  ;;  %2083 = vrot.lane.b32.xlu1 %v5294_v53, %s5658_s29  ;;  %2081 = vrot.lane.b32.xlu0 %v5295_v0, %s5658_s29  ;;  %v15842_v12 = vld [vmem:[#allocation153_spill] sm:$0xff]  ;;  %vm11214_vm15 = vmand %vm3839_vm7, %vm3881_vm8 }
 0x2da   : > { %v2872_v3 = vmul.f32 %v2536_v58, %v15834_v11  ;;  %v2619_v2 = vmul.f32 %v2535_v61, %v15835_v17  ;;  %v2871_v59 = vmul.f32 %v2535_v61, %v15836_v25  ;;  %v2622_v5 = vmul.f32 %v2538_v7, %v15840_v41  ;;  %v15841_v58 = vld [vmem:[#allocation345_spill] sm:$0xff]  ;;  %v15845_v17 = vld [vmem:[#allocation474_spill] sm:$0xff]  ;;  %vm11248_vm2 = vmand %vm11214_vm15, %vm4047_vm6 }
 0x2db   : > { %v4136_v26 = vsub.f32 0.0, %v3709_v36  ;;  %v4221_v63 = vmax.f32 %v4137_v23, 0.0  ;;  %v2788_v28 = vsub.f32 %v2620_v27, %v15839_v21  ;;  %v2874_v19 = vmul.f32 %v2538_v7, %v15841_v58  ;;  %v15843_v36 = vld [vmem:[#allocation42_spill] sm:$0xff]  ;;  %v15846_v25 = vld [vmem:[#allocation161_spill] sm:$0xff]  ;;  %v15847_v7 = vld [vmem:[#allocation160_spill] sm:$0xff] }
 0x2dc   : > { %v3040_v8 = vsub.f32 %v2872_v3, %v15842_v12  ;;  %v2787_v23 = vsub.f32 %v2619_v2, %v15843_v36  ;;  %v3039_v29 = vsub.f32 %v2871_v59, %v15844_v54  ;;  %v2790_v53 = vsub.f32 %v2622_v5, %v15846_v25  ;;  %v15848_v3 = vld [vmem:[#allocation488_spill] sm:$0xff]  ;;  %v15851_v59 = vld [vmem:[#allocation483_spill] sm:$0xff]  ;;  %v15857_v36 = vld [vmem:[#allocation361_spill] sm:$0xff] }
 0x2dd   : > { %v4220_v61 = vmax.f32 %v4136_v26, 0.0  ;;  %v4305_v11 = vsel %vm11130_vm9, %v4221_v63, 0.0  ;;  %v3376_v27 = vmul.f32 %v2788_v28, %v15845_v17  ;;  %v3042_v21 = vsub.f32 %v2874_v19, %v15847_v7  ;;  %v15849_v58 = vld [vmem:[#allocation128_spill] sm:$0xff]  ;;  %v1968_v63 = vpop.permute.xlu1 %1967  ;;  %v5296_v28 = vld [vmem:[%s5873_s25 + $0x788] sm:$0xff]  ;;  %v15855_v19 = vld [vmem:[#allocation138_spill] sm:$0xff] }
 0x2de   : > { %v11160_v41 = vadd.f32 %v4427_v32, %v4305_v11  ;;  %v15850_v2 = vsub.f32 %v15848_v3, %v15849_v58  ;;  %v3375_v12 = vmul.f32 %v2787_v23, %v15851_v59  ;;  %2087 = vrot.lane.b32.xlu1 %v5296_v28, %s5658_s29  ;;  %v3378_v23 = vmul.f32 %v2790_v53, %v15857_v36  ;;  %v15858_v54 = vld [vmem:[#allocation38_spill] sm:$0xff]  ;;  %v15859_v11 = vld [vmem:[#allocation140_spill] sm:$0xff]  ;;  %v15861_v7 = vld [vmem:[#allocation47_spill] sm:$0xff] }
 0x2df   : > { %v4304_v26 = vsel %vm11143_vm10, %v4220_v61, 0.0  ;;  %v15856_v61 = vsub.f32 %v15854_v24, %v15855_v19  ;;  %v5297_v25 = vld [vmem:[%s5873_s25 + $0x780] sm:$0xff]  ;;  %v5299_v28 = vld [vmem:[%s5873_s25 + $0x590] sm:$0xff]  ;;  %v5300_v24 = vld [vmem:[%s5873_s25 + $0x5a8] sm:$0xff]  ;;  %vm3842_vm11 = vcmp.ge.s32.totalorder %v10568_v46, 1 }
 0x2e0   : > { %v3460_v0 = vmul.f32 %v3040_v8, %v15850_v2  ;;  %v11170_v5 = vadd.f32 %v4386_v51, %v4304_v26  ;;  %v15860_v51 = vsub.f32 %v15858_v54, %v15859_v11  ;;  %2085 = vrot.lane.b32.xlu0 %v5297_v25, %s5658_s29  ;;  %v2621_v26 = vmul.f32 %v2537_v4, %v15861_v7  ;;  %v15862_v3 = vld [vmem:[#allocation346_spill] sm:$0xff]  ;;  %v15871_v11 = vld [vmem:[#allocation375_spill] sm:$0xff]  ;;  %vm11260_vm4 = vmand %vm11214_vm15, %vm3961_vm3 }
 0x2e1   : > { %v3459_v8 = vmul.f32 %v3039_v29, %v15856_v61  ;;  %v2873_v58 = vmul.f32 %v2537_v4, %v15862_v3  ;;  %v5298_v29 = vld [vmem:[%s5873_s25 + $0x598] sm:$0xff]  ;;  %v2290_v19 = vsub.f32 %v5300_v24, %v1968_v63  ;;  %vm11288_vm8 = vmand %vm11260_vm4, %vm4047_vm6 }
 0x2e2   : > { %v3462_v17 = vmul.f32 %v3042_v21, %v15860_v51  ;;  %v3544_v55 = vsub.f32 %v3376_v27, %v3460_v0  ;;  %v2288_v2 = vsub.f32 %v5298_v29, %v1964_v50  ;;  %v2287_v21 = vsub.f32 %v5299_v28, %v1962_v47  ;;  %v15863_v61 = vld [vmem:[#allocation329_spill] sm:$0xff]  ;;  %v15866_v0 = vld [vmem:[#allocation44_spill] sm:$0xff]  ;;  %v15867_v50 = vld [vmem:[#allocation162_spill] sm:$0xff] }
 0x2e3   : > { %v3543_v53 = vsub.f32 %v3375_v12, %v3459_v8  ;;  %v2789_v36 = vsub.f32 %v2621_v26, %v15866_v0  ;;  %v3041_v12 = vsub.f32 %v2873_v58, %v15867_v50  ;;  %v15868_v47 = vld [vmem:[#allocation46_spill] sm:$0xff]  ;;  %v2542_v25 = vadd.f32 1.0, %v2290_v19  ;;  %v15875_v58 = vld [vmem:[#allocation152_spill] sm:$0xff]  ;;  %v15876_v29 = vld [vmem:[#allocation151_spill] sm:$0xff] }
 0x2e4   : > { %v3546_v59 = vsub.f32 %v3378_v23, %v3462_v17  ;;  %v3712_v27 = vadd.f32 %v15863_v61, %v3544_v55  ;;  %v2540_v8 = vadd.f32 1.0, %v2288_v2  ;;  %v5301_v23 = vld [vmem:[%s5873_s25 + $0x798] sm:$0xff]  ;;  %v2539_v17 = vadd.f32 1.0, %v2287_v21  ;;  %v5302_v55 = vld [vmem:[%s5873_s25 + $0x790] sm:$0xff]  ;;  %v15874_v26 = vld [vmem:[#allocation370_spill] sm:$0xff]  ;;  %v1966_v21 = vpop.permute.xlu0 %1965 }
 0x2e5   : > { %2091 = vrot.lane.b32.xlu1 %v5301_v23, %s5658_s29  ;;  %v3711_v63 = vadd.f32 %v15868_v47, %v3543_v53  ;;  %2089 = vrot.lane.b32.xlu0 %v5302_v55, %s5658_s29  ;;  %v3377_v3 = vmul.f32 %v2789_v36, %v15874_v26  ;;  %v15877_v2 = vsub.f32 %v15875_v58, %v15876_v29  ;;  %v15881_v61 = vld [vmem:[#allocation354_spill] sm:$0xff]  ;;  %v15882_v0 = vld [vmem:[#allocation51_spill] sm:$0xff]  ;;  %v15893_v54 = vld [vmem:[#allocation169_spill] sm:$0xff] }
 0x2e6   : > { %v3714_v51 = vadd.f32 %v15871_v11, %v3546_v59  ;;  %v4139_v42 = vsub.f32 0.0, %v3712_v27  ;;  %v15878_v59 = vld [vmem:[#allocation50_spill] sm:$0xff]  ;;  %v2876_v27 = vmul.f32 %v2540_v8, %v15881_v61  ;;  %v2623_v36 = vmul.f32 %v2539_v17, %v15882_v0  ;;  %v15885_v23 = vld [vmem:[#allocation167_spill] sm:$0xff]  ;;  %v15900_v32 = vld [vmem:[#allocation493_spill] sm:$0xff] }
 0x2e7   : > { %v3461_v53 = vmul.f32 %v3041_v12, %v15877_v2  ;;  %v2624_v28 = vmul.f32 %v2540_v8, %v15878_v59  ;;  %v4138_v24 = vsub.f32 0.0, %v3711_v63  ;;  %v15886_v11 = vld [vmem:[#allocation355_spill] sm:$0xff]  ;;  %v15889_v26 = vld [vmem:[#allocation166_spill] sm:$0xff]  ;;  %v15891_v59 = vld [vmem:[#allocation332_spill] sm:$0xff] }
 0x2e8   : > { %v4141_v19 = vsub.f32 0.0, %v3714_v51  ;;  %v4223_v50 = vmax.f32 %v4139_v42, 0.0  ;;  %v2875_v63 = vmul.f32 %v2539_v17, %v15886_v11  ;;  %v5303_v55 = vld [vmem:[%s5873_s25 + $0x7a8] sm:$0xff]  ;;  %v3044_v29 = vsub.f32 %v2876_v27, %v15889_v26  ;;  %v1972_v27 = vpop.permute.xlu1 %1971  ;;  %vm11302_vm9 = vmand %vm3840_vm12, %vm3882_vm13 }
 0x2e9   : > { %v3545_v4 = vsub.f32 %v3377_v3, %v3461_v53  ;;  %v2792_v47 = vsub.f32 %v2624_v28, %v15885_v23  ;;  %2095 = vrot.lane.b32.xlu1 %v5303_v55, %s5658_s29  ;;  %v4222_v8 = vmax.f32 %v4138_v24, 0.0  ;;  %v15890_v3 = vld [vmem:[#allocation339_spill] sm:$0xff]  ;;  %v5304_v53 = vld [vmem:[%s5873_s25 + $0x7a0] sm:$0xff]  ;;  %v15892_v24 = vld [vmem:[#allocation376_spill] sm:$0xff]  ;;  %vm3884_vm12 = vcmp.lt.s32.totalorder %v10568_v46, 96 }
 0x2ea   : > { %v4225_v51 = vmax.f32 %v4141_v19, 0.0  ;;  %v2791_v2 = vsub.f32 %v2623_v36, %v15890_v3  ;;  %2093 = vrot.lane.b32.xlu0 %v5304_v53, %s5658_s29  ;;  %v4307_v17 = vsel %vm11225_vm0, %v4223_v50, 0.0  ;;  %v3043_v61 = vsub.f32 %v2875_v63, %v15893_v54  ;;  %v15894_v0 = vld [vmem:[#allocation495_spill] sm:$0xff]  ;;  %v15895_v50 = vld [vmem:[#allocation208_spill] sm:$0xff]  ;;  %v5305_v3 = vld [vmem:[%s5873_s25 + $0x7b8] sm:$0xff] }
 0x2eb   : > { %v3713_v28 = vadd.f32 %v15891_v59, %v3545_v4  ;;  %v3380_v19 = vmul.f32 %v2792_v47, %v15892_v24  ;;  %vm3841_vm5 = vcmp.ge.s32.totalorder %v15894_v0, 1  ;;  %vm3883_vm7 = vcmp.lt.s32.totalorder %v15894_v0, 96  ;;  %v15896_v4 = vld [vmem:[#allocation28_spill] sm:$0xff]  ;;  %v15905_v53 = vld [vmem:[#allocation54_spill] sm:$0xff]  ;;  %vm11322_vm10 = vmand %vm11302_vm9, %vm3961_vm3 }
 0x2ec   : > { %v4429_v36 = vadd.f32 %v11160_v41, %v4307_v17  ;;  %v4306_v23 = vsel %vm11238_vm1, %v4222_v8, 0.0  ;;  %v4309_v7 = vsel %vm11248_vm2, %v4225_v51, 0.0  ;;  %v15897_v11 = vsub.f32 %v15895_v50, %v15896_v4  ;;  %v15901_v8 = vld [vmem:[#allocation382_spill] sm:$0xff]  ;;  %vm11341_vm13 = vmand %vm11302_vm9, %vm4047_vm6  ;;  %v15932_v0 = vld [vmem:[#allocation399_spill] sm:$0xff] }
 0x2ed   : > { %v4388_v63 = vadd.f32 %v11170_v5, %v4306_v23  ;;  %v4140_v41 = vsub.f32 0.0, %v3713_v28  ;;  %v3379_v12 = vmul.f32 %v2791_v2, %v15900_v32  ;;  %v15902_v51 = vsub.f32 %v15901_v8, %v15875_v58  ;;  %2099 = vrot.lane.b32.xlu1 %v5305_v3, %s5658_s29  ;;  %v15906_v58 = vld [vmem:[#allocation356_spill] sm:$0xff]  ;;  %v5308_v23 = vld [vmem:[%s5873_s25 + $0x5b8] sm:$0xff]  ;;  %vm11352_vm14 = vmand %vm11322_vm10, %vm4047_vm6 }
 0x2ee   : > { %v3464_v47 = vmul.f32 %v3044_v29, %v15897_v11  ;;  %v1970_v29 = vpop.permute.xlu0 %1969  ;;  %v4430_v5 = vadd.f32 %v4429_v36, %v4309_v7  ;;  %v2626_v17 = vmul.f32 %v2542_v25, %v15905_v53  ;;  %v2878_v59 = vmul.f32 %v2542_v25, %v15906_v58  ;;  %v5306_v28 = vld [vmem:[%s5873_s25 + $0x7b0] sm:$0xff]  ;;  %v15907_v7 = vld [vmem:[#allocation171_spill] sm:$0xff]  ;;  %vm11368_vm15 = vmand %vm3841_vm5, %vm3883_vm7 }
 0x2ef   : > { %v3463_v26 = vmul.f32 %v3043_v61, %v15902_v51  ;;  %2097 = vrot.lane.b32.xlu0 %v5306_v28, %s5658_s29  ;;  %v4224_v24 = vmax.f32 %v4140_v41, 0.0  ;;  %v5307_v61 = vld [vmem:[%s5873_s25 + $0x5a0] sm:$0xff]  ;;  %v2292_v48 = vsub.f32 %v5308_v23, %v1972_v27  ;;  %v15908_v11 = vld [vmem:[#allocation219_spill] sm:$0xff]  ;;  %v15909_v51 = vld [vmem:[#allocation173_spill] sm:$0xff]  ;;  %vm3844_vm10 = vcmp.ge.s32.totalorder %v10702_v16, 1 }
 0x2f0   : > { %v3548_v2 = vsub.f32 %v3380_v19, %v3464_v47  ;;  %v2289_v36 = vsub.f32 %v5307_v61, %v1966_v21  ;;  %v2794_v32 = vsub.f32 %v2626_v17, %v15908_v11  ;;  %v3046_v19 = vsub.f32 %v2878_v59, %v15909_v51  ;;  %v5309_v47 = vld [vmem:[%s5873_s25 + $0x5b0] sm:$0xff]  ;;  %v15912_v27 = vld [vmem:[#allocation341_spill] sm:$0xff]  ;;  %v15913_v17 = vld [vmem:[#allocation390_spill] sm:$0xff] }
 0x2f1   : > { %v3547_v54 = vsub.f32 %v3379_v12, %v3463_v26  ;;  %v2291_v3 = vsub.f32 %v5309_v47, %v1970_v29  ;;  %v4308_v25 = vsel %vm11288_vm8, %v4224_v24, 0.0  ;;  %v2544_v26 = vadd.f32 1.0, %v2292_v48  ;;  %v1976_v29 = vpop.permute.xlu1 %1975  ;;  %v15914_v59 = vld [vmem:[#allocation494_spill] sm:$0xff]  ;;  %v15923_v51 = vld [vmem:[#allocation364_spill] sm:$0xff]  ;;  %vm11391_vm0 = vmand %vm11368_vm15, %vm4047_vm6 }
 0x2f2   : > { %v3716_v4 = vadd.f32 %v15907_v7, %v3548_v2  ;;  %v2541_v12 = vadd.f32 1.0, %v2289_v36  ;;  %v5310_v2 = vld [vmem:[%s5873_s25 + $0x7c8] sm:$0xff]  ;;  %v4389_v55 = vadd.f32 %v4388_v63, %v4308_v25  ;;  %v3382_v58 = vmul.f32 %v2794_v32, %v15913_v17  ;;  %v5311_v61 = vld [vmem:[%s5873_s25 + $0x7c0] sm:$0xff]  ;;  %vm11406_vm4 = vmand %vm11368_vm15, %vm3961_vm3 }
 0x2f3   : > { %v3715_v41 = vadd.f32 %v15912_v27, %v3547_v54  ;;  %2103 = vrot.lane.b32.xlu1 %v5310_v2, %s5658_s29  ;;  %v15915_v28 = vsub.f32 %v15914_v59, %v15895_v50  ;;  %2101 = vrot.lane.b32.xlu0 %v5311_v61, %s5658_s29  ;;  %v15918_v36 = vld [vmem:[#allocation55_spill] sm:$0xff]  ;;  %v15919_v48 = vld [vmem:[#allocation358_spill] sm:$0xff]  ;;  %v2543_v47 = vadd.f32 1.0, %v2291_v3  ;;  %vm11419_vm5 = vmand %vm3842_vm11, %vm3884_vm12  ;;  %vm3886_vm11 = vcmp.lt.s32.totalorder %v10702_v16, 96 }
 0x2f4   : > { %v4143_v53 = vsub.f32 0.0, %v3716_v4  ;;  %v2625_v23 = vmul.f32 %v2541_v12, %v15918_v36  ;;  %v2877_v7 = vmul.f32 %v2541_v12, %v15919_v48  ;;  %v15920_v4 = vld [vmem:[#allocation58_spill] sm:$0xff]  ;;  %v15924_v27 = vld [vmem:[#allocation347_spill] sm:$0xff]  ;;  %v15925_v12 = vld [vmem:[#allocation177_spill] sm:$0xff]  ;;  %vm3845_vm15 = vcmp.ge.s32.totalorder %v10747_v9, 1 }
 0x2f5   : > { %v3466_v24 = vmul.f32 %v3046_v19, %v15915_v28  ;;  %v4142_v63 = vsub.f32 0.0, %v3715_v41  ;;  %v2628_v50 = vmul.f32 %v2544_v26, %v15920_v4  ;;  %v2880_v19 = vmul.f32 %v2544_v26, %v15923_v51  ;;  %v15926_v17 = vld [vmem:[#allocation391_spill] sm:$0xff]  ;;  %v5312_v28 = vld [vmem:[%s5873_s25 + $0x7d8] sm:$0xff]  ;;  %v15929_v3 = vld [vmem:[#allocation182_spill] sm:$0xff] }
 0x2f6   : > { %v4227_v11 = vmax.f32 %v4143_v53, 0.0  ;;  %v2793_v41 = vsub.f32 %v2625_v23, %v15924_v27  ;;  %v3045_v2 = vsub.f32 %v2877_v7, %v15925_v12  ;;  %v1974_v23 = vpop.permute.xlu0 %1973  ;;  %v5313_v48 = vld [vmem:[%s5873_s25 + $0x7d0] sm:$0xff]  ;;  %v15935_v12 = vld [vmem:[#allocation402_spill] sm:$0xff]  ;;  %vm11432_vm7 = vmand %vm11406_vm4, %vm4047_vm6 }
 0x2f7   : > { %v3550_v42 = vsub.f32 %v3382_v58, %v3466_v24  ;;  %v4226_v25 = vmax.f32 %v4142_v63, 0.0  ;;  %v2796_v53 = vsub.f32 %v2628_v50, %v15926_v17  ;;  %2107 = vrot.lane.b32.xlu1 %v5312_v28, %s5658_s29  ;;  %v15930_v24 = vld [vmem:[#allocation181_spill] sm:$0xff]  ;;  %v15931_v63 = vld [vmem:[#allocation59_spill] sm:$0xff]  ;;  %2105 = vrot.lane.b32.xlu0 %v5313_v48, %s5658_s29  ;;  %v15936_v28 = vld [vmem:[#allocation496_spill] sm:$0xff] }
 0x2f8   : > { %v4311_v21 = vsel %vm11341_vm13, %v4227_v11, 0.0  ;;  %v3048_v61 = vsub.f32 %v2880_v19, %v15930_v24  ;;  %v2627_v36 = vmul.f32 %v2543_v47, %v15931_v63  ;;  %v3381_v4 = vmul.f32 %v2793_v41, %v15932_v0  ;;  %v15933_v50 = vld [vmem:[#allocation393_spill] sm:$0xff]  ;;  %vm11443_vm8 = vmand %vm11419_vm5, %vm4047_vm6  ;;  %v15969_v26 = vld [vmem:[#allocation498_spill] sm:$0xff] }
 0x2f9   : > { %v3718_v58 = vadd.f32 %v15929_v3, %v3550_v42  ;;  %v4431_v54 = vadd.f32 %v4430_v5, %v4311_v21  ;;  %v4310_v7 = vsel %vm11352_vm14, %v4226_v25, 0.0  ;;  %v15934_v11 = vsub.f32 %v15933_v50, %v15901_v8  ;;  %v1980_v42 = vpop.permute.xlu1 %1979  ;;  %v15940_v25 = vld [vmem:[#allocation56_spill] sm:$0xff]  ;;  %v5316_v48 = vld [vmem:[%s5873_s25 + $0x5d8] sm:$0xff]  ;;  %vm11453_vm9 = vmand %vm11419_vm5, %vm3961_vm3 }
 0x2fa   : > { %v4390_v19 = vadd.f32 %v4389_v55, %v4310_v7  ;;  %v3384_v17 = vmul.f32 %v2796_v53, %v15935_v12  ;;  %v15937_v3 = vsub.f32 %v15936_v28, %v15914_v59  ;;  %v2795_v41 = vsub.f32 %v2627_v36, %v15940_v25  ;;  %v15941_v55 = vld [vmem:[#allocation193_spill] sm:$0xff]  ;;  %v15942_v21 = vld [vmem:[#allocation220_spill] sm:$0xff]  ;;  %v5314_v53 = vld [vmem:[%s5873_s25 + $0x5c8] sm:$0xff] }
 0x2fb   : > { %v3465_v51 = vmul.f32 %v3045_v2, %v15934_v11  ;;  %v4145_v27 = vsub.f32 0.0, %v3718_v58  ;;  %v2879_v2 = vmul.f32 %v2543_v47, %v15941_v55  ;;  %vm3843_vm1 = vcmp.ge.s32.totalorder %v15942_v21, 1  ;;  %v15945_v47 = vld [vmem:[#allocation348_spill] sm:$0xff]  ;;  %vm11477_vm12 = vmand %vm11453_vm9, %vm4047_vm6 }
 0x2fc   : > { %v3468_v5 = vmul.f32 %v3048_v61, %v15937_v3  ;;  %vm3885_vm2 = vcmp.lt.s32.totalorder %v15942_v21, 96  ;;  %v2294_v59 = vsub.f32 %v5314_v53, %v1976_v29  ;;  %v5315_v61 = vld [vmem:[%s5873_s25 + $0x5c0] sm:$0xff]  ;;  %v2296_v7 = vsub.f32 %v5316_v48, %v1980_v42  ;;  %v15950_v42 = vld [vmem:[#allocation349_spill] sm:$0xff]  ;;  %v15958_v48 = vld [vmem:[#allocation372_spill] sm:$0xff] }
 0x2fd   : > { %v3549_v8 = vsub.f32 %v3381_v4, %v3465_v51  ;;  %v4229_v58 = vmax.f32 %v4145_v27, 0.0  ;;  %v2293_v63 = vsub.f32 %v5315_v61, %v1974_v23  ;;  %v15946_v4 = vld [vmem:[#allocation183_spill] sm:$0xff]  ;;  %v15947_v51 = vld [vmem:[#allocation406_spill] sm:$0xff]  ;;  %vm11491_vm13 = vmand %vm3843_vm1, %vm3885_vm2  ;;  %vm3846_vm5 = vcmp.ge.s32.totalorder %v10802_v40, 1 }
 0x2fe   : > { %v3552_v24 = vsub.f32 %v3384_v17, %v3468_v5  ;;  %v3047_v11 = vsub.f32 %v2879_v2, %v15946_v4  ;;  %v3383_v29 = vmul.f32 %v2795_v41, %v15947_v51  ;;  %v2546_v27 = vadd.f32 1.0, %v2294_v59  ;;  %v1978_v5 = vpop.permute.xlu0 %1977  ;;  %v15951_v41 = vld [vmem:[#allocation497_spill] sm:$0xff]  ;;  %v15953_v2 = vld [vmem:[#allocation62_spill] sm:$0xff]  ;;  %v1984_v59 = vpop.permute.xlu1 %1983  ;;  %vm11509_vm14 = vmand %vm11491_vm13, %vm3961_vm3 }
 0x2ff   : > { %v3717_v0 = vadd.f32 %v15945_v47, %v3549_v8  ;;  %v4313_v23 = vsel %vm11391_vm0, %v4229_v58, 0.0  ;;  %v2545_v17 = vadd.f32 1.0, %v2293_v63  ;;  %v2548_v3 = vadd.f32 1.0, %v2296_v7  ;;  %vm11525_vm1 = vmand %vm11491_vm13, %vm4047_vm6  ;;  %v16003_v16 = vld [vmem:[#allocation68_spill] sm:$0xff] }
 0x300   : > { %v3720_v12 = vadd.f32 %v15950_v42, %v3552_v24  ;;  %v4432_v8 = vadd.f32 %v4431_v54, %v4313_v23  ;;  %v15952_v55 = vsub.f32 %v15951_v41, %v15933_v50  ;;  %v2630_v53 = vmul.f32 %v2546_v27, %v15953_v2  ;;  %v15956_v24 = vld [vmem:[#allocation371_spill] sm:$0xff]  ;;  %v15965_v42 = vld [vmem:[#allocation188_spill] sm:$0xff]  ;;  %vm11535_vm2 = vmand %vm11509_vm14, %vm4047_vm6 }
 0x301   : > { %v4144_v25 = vsub.f32 0.0, %v3717_v0  ;;  %v2882_v61 = vmul.f32 %v2546_v27, %v15956_v24  ;;  %v15957_v54 = vld [vmem:[#allocation63_spill] sm:$0xff]  ;;  %v2881_v7 = vmul.f32 %v2545_v17, %v15958_v48  ;;  %v15961_v0 = vld [vmem:[#allocation189_spill] sm:$0xff]  ;;  %v15975_v47 = vsub.f32 %v10626_v38, %v15951_v41  ;;  %vm11546_vm4 = vmand %vm3844_vm10, %vm3886_vm11 }
 0x302   : > { %v3467_v32 = vmul.f32 %v3047_v11, %v15952_v55  ;;  %v4147_v58 = vsub.f32 0.0, %v3720_v12  ;;  %v2629_v63 = vmul.f32 %v2545_v17, %v15957_v54  ;;  %v2798_v4 = vsub.f32 %v2630_v53, %v15961_v0  ;;  %v15962_v11 = vld [vmem:[#allocation65_spill] sm:$0xff]  ;;  %v15966_v17 = vld [vmem:[#allocation192_spill] sm:$0xff]  ;;  %v15967_v55 = vld [vmem:[#allocation190_spill] sm:$0xff]  ;;  %v1982_v46 = vpop.permute.xlu0 %1981 }
 0x303   : > { %v4228_v50 = vmax.f32 %v4144_v25, 0.0  ;;  %v2632_v51 = vmul.f32 %v2548_v3, %v15962_v11  ;;  %v3050_v12 = vsub.f32 %v2882_v61, %v15965_v42  ;;  %v3049_v2 = vsub.f32 %v2881_v7, %v15967_v55  ;;  %v15970_v24 = vld [vmem:[#allocation365_spill] sm:$0xff]  ;;  %v15979_v27 = vld [vmem:[#allocation231_spill] sm:$0xff]  ;;  %vm11581_vm9 = vmand %vm11546_vm4, %vm3961_vm3 }
 0x304   : > { %v3551_v36 = vsub.f32 %v3383_v29, %v3467_v32  ;;  %v4231_v23 = vmax.f32 %v4147_v58, 0.0  ;;  %v2797_v25 = vsub.f32 %v2629_v63, %v15966_v17  ;;  %v15968_v32 = vld [vmem:[#allocation60_spill] sm:$0xff]  ;;  %v3386_v58 = vmul.f32 %v2798_v4, %v15969_v26  ;;  %v15971_v63 = vld [vmem:[#allocation359_spill] sm:$0xff]  ;;  %vm11598_vm10 = vmand %vm11581_vm9, %vm4047_vm6 }
 0x305   : > { %v4312_v29 = vsel %vm11432_vm7, %v4228_v50, 0.0  ;;  %v2800_v54 = vsub.f32 %v2632_v51, %v15970_v24  ;;  %v15972_v7 = vsub.f32 %v15971_v63, %v15936_v28  ;;  %v3469_v4 = vmul.f32 %v3049_v2, %v15975_v47  ;;  %v15976_v28 = vld [vmem:[#allocation377_spill] sm:$0xff]  ;;  %v5318_v41 = vld [vmem:[%s5873_s25 + $0x5e8] sm:$0xff]  ;;  %v15980_v2 = vld [vmem:[#allocation194_spill] sm:$0xff] }
 0x306   : > { %v3719_v53 = vadd.f32 %v15968_v32, %v3551_v36  ;;  %v4391_v48 = vadd.f32 %v4390_v19, %v4312_v29  ;;  %v4315_v61 = vsel %vm11443_vm8, %v4231_v23, 0.0  ;;  %v3385_v11 = vmul.f32 %v2797_v25, %v10656_v37  ;;  %v11485_v23 = vpop.permute.xlu1 %1987  ;;  %v5319_v32 = vld [vmem:[%s5873_s25 + $0x5e0] sm:$0xff]  ;;  %v15981_v26 = vld [vmem:[#allocation235_spill] sm:$0xff]  ;;  %v15994_v37 = vld [vmem:[#allocation200_spill] sm:$0xff] }
 0x307   : > { %v3470_v0 = vmul.f32 %v3050_v12, %v15972_v7  ;;  %v4433_v50 = vadd.f32 %v4432_v8, %v4315_v61  ;;  %v2884_v51 = vmul.f32 %v2548_v3, %v15976_v28  ;;  %v3388_v42 = vmul.f32 %v2800_v54, %v15979_v27  ;;  %v5317_v12 = vld [vmem:[%s5873_s25 + $0x5d0] sm:$0xff]  ;;  %v5320_v7 = vld [vmem:[%s5873_s25 + $0x5f8] sm:$0xff]  ;;  %v15986_v28 = vld [vmem:[#allocation67_spill] sm:$0xff] }
 0x308   : > { %v4146_v19 = vsub.f32 0.0, %v3719_v53  ;;  %v2295_v17 = vsub.f32 %v5317_v12, %v1978_v5  ;;  %v2298_v25 = vsub.f32 %v5318_v41, %v1984_v59  ;;  %v3553_v3 = vsub.f32 %v3385_v11, %v3469_v4  ;;  %v15984_v59 = vld [vmem:[#allocation64_spill] sm:$0xff]  ;;  %vm11569_vm8 = vmand %vm11546_vm4, %vm4047_vm6 }
 0x309   : > { %v3554_v8 = vsub.f32 %v3386_v58, %v3470_v0  ;;  %v3052_v29 = vsub.f32 %v2884_v51, %v15980_v2  ;;  %v2297_v53 = vsub.f32 %v5319_v32, %v1982_v46  ;;  %v2300_v47 = vsub.f32 %v5320_v7, %v11485_v23  ;;  %v15987_v51 = vld [vmem:[#allocation378_spill] sm:$0xff]  ;;  %v15995_v2 = vld [vmem:[#allocation201_spill] sm:$0xff]  ;;  %v15996_v32 = vld [vmem:[#allocation72_spill] sm:$0xff] }
 0x30a   : > { %v4230_v55 = vmax.f32 %v4146_v19, 0.0  ;;  %v2547_v24 = vadd.f32 1.0, %v2295_v17  ;;  %v2550_v61 = vadd.f32 1.0, %v2298_v25  ;;  %v3721_v54 = vadd.f32 %v15984_v59, %v3553_v3  ;;  %v15991_v17 = vld [vmem:[#allocation385_spill] sm:$0xff] }
 0x30b   : > { %v3722_v21 = vadd.f32 %v15981_v26, %v3554_v8  ;;  %v15985_v0 = vsub.f32 %v10633_v34, %v15971_v63  ;;  %v2549_v46 = vadd.f32 1.0, %v2297_v53  ;;  %vm3887_vm0 = vcmp.lt.s32.totalorder %v10747_v9, 96  ;;  %v16014_v26 = vld [vmem:[#allocation73_spill] sm:$0xff] }
 0x30c   : > { %v4314_v58 = vsel %vm11477_vm12, %v4230_v55, 0.0  ;;  %v2631_v36 = vmul.f32 %v2547_v24, %v15986_v28  ;;  %v2883_v23 = vmul.f32 %v2547_v24, %v15987_v51  ;;  %v4148_v63 = vsub.f32 0.0, %v3721_v54  ;;  %v1986_v28 = vpop.permute.xlu0 %1985  ;;  %vm11610_vm11 = vmand %vm3845_vm15, %vm3887_vm0 }
 0x30d   : > { %v3472_v11 = vmul.f32 %v3052_v29, %v15985_v0  ;;  %v4392_v19 = vadd.f32 %v4391_v48, %v4314_v58  ;;  %v4149_v4 = vsub.f32 0.0, %v3722_v21  ;;  %v15990_v48 = vld [vmem:[#allocation69_spill] sm:$0xff]  ;;  %v2886_v41 = vmul.f32 %v2550_v61, %v15991_v17  ;;  %v15999_v21 = vld [vmem:[#allocation202_spill] sm:$0xff]  ;;  %v16001_v58 = vld [vmem:[#allocation207_spill] sm:$0xff] }
 0x30e   : > { %v2634_v12 = vmul.f32 %v2550_v61, %v15990_v48  ;;  %v2799_v3 = vsub.f32 %v2631_v36, %v15994_v37  ;;  %v3051_v29 = vsub.f32 %v2883_v23, %v15995_v2  ;;  %v2633_v53 = vmul.f32 %v2549_v46, %v15996_v32  ;;  %v16000_v61 = vld [vmem:[#allocation408_spill] sm:$0xff]  ;;  %v16007_v48 = vld [vmem:[#allocation239_spill] sm:$0xff]  ;;  %v16012_v32 = vld [vmem:[#allocation366_spill] sm:$0xff] }
 0x30f   : > { %v3556_v27 = vsub.f32 %v3388_v42, %v3472_v11  ;;  %v4233_v25 = vmax.f32 %v4149_v4, 0.0  ;;  %v4232_v42 = vmax.f32 %v4148_v63, 0.0  ;;  %v3054_v5 = vsub.f32 %v2886_v41, %v16001_v58  ;;  %v16004_v63 = vld [vmem:[#allocation249_spill] sm:$0xff]  ;;  %v16009_v41 = vld [vmem:[#allocation386_spill] sm:$0xff]  ;;  %v5321_v2 = vld [vmem:[%s5873_s25 + $0x5f0] sm:$0xff] }
 0x310   : > { %v2802_v7 = vsub.f32 %v2634_v12, %v16000_v61  ;;  %v3387_v54 = vmul.f32 %v2799_v3, %v10709_v18  ;;  %v16002_v0 = vsub.f32 %v10678_v31, %v10626_v38  ;;  %v2801_v4 = vsub.f32 %v2633_v53, %v16003_v16  ;;  %v1992_v18 = vpop.permute.xlu1 %1991  ;;  %v16015_v58 = vld [vmem:[#allocation387_spill] sm:$0xff]  ;;  %vm11630_vm12 = vmand %vm11610_vm11, %vm4047_vm6 }
 0x311   : > { %v3724_v24 = vadd.f32 %v15999_v21, %v3556_v27  ;;  %v4317_v59 = vsel %vm11525_vm1, %v4233_v25, 0.0  ;;  %v4316_v51 = vsel %vm11535_vm2, %v4232_v42, 0.0  ;;  %vm3888_vm7 = vcmp.lt.s32.totalorder %v10802_v40, 96  ;;  %v16013_v42 = vld [vmem:[#allocation212_spill] sm:$0xff]  ;;  %vm11642_vm15 = vmand %vm11610_vm11, %vm3961_vm3 }
 0x312   : > { %v3471_v11 = vmul.f32 %v3051_v29, %v16002_v0  ;;  %v4434_v36 = vadd.f32 %v4433_v50, %v4317_v59  ;;  %v3390_v27 = vmul.f32 %v2802_v7, %v16004_v63  ;;  %v4393_v8 = vadd.f32 %v4392_v19, %v4316_v51  ;;  %v16018_v0 = vld [vmem:[#allocation213_spill] sm:$0xff]  ;;  %v16022_v51 = vld [vmem:[#allocation215_spill] sm:$0xff]  ;;  %v16023_v63 = vld [vmem:[#allocation214_spill] sm:$0xff] }
 0x313   : > { %v4151_v23 = vsub.f32 0.0, %v3724_v24  ;;  %v16008_v12 = vsub.f32 %v16007_v48, %v10633_v34  ;;  %v2885_v25 = vmul.f32 %v2549_v46, %v16009_v41  ;;  %v3389_v37 = vmul.f32 %v2801_v4, %v10791_v13  ;;  %v5322_v46 = vld [vmem:[%s5873_s25 + $0x608] sm:$0xff]  ;;  %vm11654_vm0 = vmand %vm3846_vm5, %vm3888_vm7  ;;  %v16038_v13 = vld [vmem:[#allocation218_spill] sm:$0xff] }
 0x314   : > { %v3555_v50 = vsub.f32 %v3387_v54, %v3471_v11  ;;  %v2552_v3 = vadd.f32 1.0, %v2300_v47  ;;  %v2299_v29 = vsub.f32 %v5321_v2, %v1986_v28  ;;  %v2302_v24 = vsub.f32 %v5322_v46, %v1992_v18  ;;  %v1990_v28 = vpop.permute.xlu0 %1989  ;;  %v16024_v18 = vld [vmem:[#allocation75_spill] sm:$0xff]  ;;  %v1996_v46 = vpop.permute.xlu1 %1995  ;;  %vm11673_vm1 = vmand %vm11642_vm15, %vm4047_vm6 }
 0x315   : > { %v3474_v17 = vmul.f32 %v3054_v5, %v16008_v12  ;;  %v4235_v55 = vmax.f32 %v4151_v23, 0.0  ;;  %v3053_v21 = vsub.f32 %v2885_v25, %v16013_v42  ;;  %v16019_v16 = vsub.f32 %v10751_v39, %v10678_v31  ;;  %vm11684_vm2 = vmand %vm11654_vm0, %vm3961_vm3 }
 0x316   : > { %v3723_v53 = vadd.f32 %v16012_v32, %v3555_v50  ;;  %v2636_v7 = vmul.f32 %v2552_v3, %v16014_v26  ;;  %v2888_v5 = vmul.f32 %v2552_v3, %v16015_v58  ;;  %v2551_v59 = vadd.f32 1.0, %v2299_v29  ;;  %v16025_v50 = vld [vmem:[#allocation225_spill] sm:$0xff]  ;;  %v16028_v29 = vld [vmem:[#allocation216_spill] sm:$0xff]  ;;  %vm11706_vm7 = vmand %vm11654_vm0, %vm4047_vm6 }
 0x317   : > { %v3558_v34 = vsub.f32 %v3390_v27, %v3474_v17  ;;  %v4319_v61 = vsel %vm11569_vm8, %v4235_v55, 0.0  ;;  %v3473_v4 = vmul.f32 %v3053_v21, %v16019_v16  ;;  %v2554_v25 = vadd.f32 1.0, %v2302_v24  ;;  %v16027_v3 = vld [vmem:[#allocation413_spill] sm:$0xff]  ;;  %vm11715_vm8 = vmand %vm11684_vm2, %vm4047_vm6 }
 0x318   : > { %v4435_v54 = vadd.f32 %v4434_v36, %v4319_v61  ;;  %v4150_v47 = vsub.f32 0.0, %v3723_v53  ;;  %v2804_v23 = vsub.f32 %v2636_v7, %v16022_v51  ;;  %v3056_v27 = vsub.f32 %v2888_v5, %v16023_v63  ;;  %v1994_v16 = vpop.permute.xlu0 %1993  ;;  %v16041_v36 = vld [vmem:[#allocation71_spill] sm:$0xff]  ;;  %v16055_v61 = vld [vmem:[#allocation81_spill] sm:$0xff] }
 0x319   : > { %v3726_v11 = vadd.f32 %v16018_v0, %v3558_v34  ;;  %v2635_v38 = vmul.f32 %v2551_v59, %v16024_v18  ;;  %v2887_v12 = vmul.f32 %v2551_v59, %v16025_v50  ;;  %v3557_v41 = vsub.f32 %v3389_v37, %v3473_v4  ;;  %v16031_v34 = vld [vmem:[#allocation417_spill] sm:$0xff]  ;;  %v16039_v0 = vld [vmem:[#allocation394_spill] sm:$0xff] }
 0x31a   : > { %v4234_v17 = vmax.f32 %v4150_v47, 0.0  ;;  %v3392_v55 = vmul.f32 %v2804_v23, %v10799_v56  ;;  %v16026_v9 = vsub.f32 %v10758_v22, %v16007_v48  ;;  %vm3847_vm13 = vcmp.ge.s32.totalorder %v10857_v62, 1  ;;  %v16032_v48 = vld [vmem:[#allocation78_spill] sm:$0xff]  ;;  %v5324_v50 = vld [vmem:[%s5873_s25 + $0x618] sm:$0xff] }
 0x31b   : > { %v4153_v31 = vsub.f32 0.0, %v3726_v11  ;;  %v2803_v2 = vsub.f32 %v2635_v38, %v16027_v3  ;;  %v3055_v32 = vsub.f32 %v2887_v12, %v16028_v29  ;;  %v3725_v42 = vadd.f32 %v16031_v34, %v3557_v41  ;;  %v5323_v23 = vld [vmem:[%s5873_s25 + $0x600] sm:$0xff]  ;;  %v2000_v29 = vpop.permute.xlu1 %1999  ;;  %v16051_v34 = vld [vmem:[#allocation79_spill] sm:$0xff] }
 0x31c   : > { %v3476_v19 = vmul.f32 %v3056_v27, %v16026_v9  ;;  %v4318_v53 = vsel %vm11598_vm10, %v4234_v17, 0.0  ;;  %vm3889_vm14 = vcmp.lt.s32.totalorder %v10857_v62, 96  ;;  %v2638_v21 = vmul.f32 %v2554_v25, %v16032_v48 }
 0x31d   : > { %v4237_v56 = vmax.f32 %v4153_v31, 0.0  ;;  %v4394_v24 = vadd.f32 %v4393_v8, %v4318_v53  ;;  %v3391_v7 = vmul.f32 %v2803_v2, %v10829_v1  ;;  %v16035_v58 = vsub.f32 %v10814_v33, %v10751_v39  ;;  %v16047_v31 = vld [vmem:[#allocation76_spill] sm:$0xff]  ;;  %vm11735_vm9 = vmand %vm3847_vm13, %vm3889_vm14 }
 0x31e   : > { %v3560_v26 = vsub.f32 %v3392_v55, %v3476_v19  ;;  %v4152_v59 = vsub.f32 0.0, %v3725_v42  ;;  %v2806_v47 = vsub.f32 %v2638_v21, %v16038_v13  ;;  %v2890_v11 = vmul.f32 %v2554_v25, %v16039_v0  ;;  %v5325_v55 = vld [vmem:[%s5873_s25 + $0x610] sm:$0xff]  ;;  %vm11765_vm13 = vmand %vm11735_vm9, %vm3961_vm3 }
 0x31f   : > { %v3475_v5 = vmul.f32 %v3055_v32, %v16035_v58  ;;  %v16040_v1 = vsub.f32 %v10941_v10, %v10871_v35  ;;  %v4321_v4 = vsel %vm11630_vm12, %v4237_v56, 0.0  ;;  %v2301_v63 = vsub.f32 %v5323_v23, %v1990_v28  ;;  %v16044_v10 = vld [vmem:[#allocation223_spill] sm:$0xff]  ;;  %v11696_v32 = vld [vmem:[%s5873_s25 + $0xe0] sm:$0xff]  ;;  %v16054_v21 = vld [vmem:[#allocation232_spill] sm:$0xff] }
 0x320   : > { %v3728_v51 = vadd.f32 %v16041_v36, %v3560_v26  ;;  %v4236_v35 = vmax.f32 %v4152_v59, 0.0  ;;  %v3058_v18 = vsub.f32 %v2890_v11, %v16044_v10  ;;  %v3394_v38 = vmul.f32 %v2806_v47, %v10841_v60  ;;  %v16057_v59 = vld [vmem:[#allocation217_spill] sm:$0xff]  ;;  %v5327_v47 = vld [vmem:[%s5873_s25 + $0x628] sm:$0xff]  ;;  %vm11757_vm12 = vmand %vm11735_vm9, %vm4047_vm6 }
 0x321   : > { %v11663_v39 = vadd.f32 1.0, %v16040_v1  ;;  %v3559_v40 = vsub.f32 %v3391_v7, %v3475_v5  ;;  %v2304_v12 = vsub.f32 %v5324_v50, %v1996_v46  ;;  %v2553_v25 = vadd.f32 1.0, %v2301_v63  ;;  %v16056_v7 = vld [vmem:[#allocation403_spill] sm:$0xff]  ;;  %vm11799_vm15 = vmand %vm11765_vm13, %vm4047_vm6 }
 0x322   : > { %v4155_v17 = vsub.f32 0.0, %v3728_v51  ;;  %vm3848_vm4 = vcmp.ge.s32.totalorder %v10921_v49, 1  ;;  %vm3890_vm5 = vcmp.lt.s32.totalorder %v10921_v49, 96  ;;  %v2303_v60 = vsub.f32 %v5325_v55, %v1994_v16  ;;  %v16058_v16 = vld [vmem:[#allocation380_spill] sm:$0xff]  ;;  %v16060_v51 = vld [vmem:[#allocation426_spill] sm:$0xff]  ;;  %v5330_v63 = vld [vmem:[%s5873_s25 + $0xe8] sm:$0xff] }
 0x323   : > { %v3727_v41 = vadd.f32 %v16047_v31, %v3559_v40  ;;  %v4436_v9 = vadd.f32 %v4435_v54, %v4321_v4  ;;  %v16048_v19 = vsub.f32 %v10837_v15, %v10758_v22  ;;  %v2556_v2 = vadd.f32 1.0, %v2304_v12  ;;  %v16059_v4 = vld [vmem:[#allocation227_spill] sm:$0xff]  ;;  %vm11777_vm14 = vmand %vm3848_vm4, %vm3890_vm5 }
 0x324   : > { %v622_v53 = vsub.f32 %v11696_v32, %v10902_v43  ;;  %v4320_v37 = vsel %vm11673_vm1, %v4236_v35, 0.0  ;;  %v4239_v22 = vmax.f32 %v4155_v17, 0.0  ;;  %v2637_v42 = vmul.f32 %v2553_v25, %v16051_v34  ;;  %v16063_v35 = vld [vmem:[#allocation233_spill] sm:$0xff]  ;;  %vm11808_vm0 = vmand %vm11777_vm14, %vm4047_vm6 }
 0x325   : > { %v3478_v3 = vmul.f32 %v3058_v18, %v16048_v19  ;;  %v4154_v56 = vsub.f32 0.0, %v3727_v41  ;;  %v2889_v46 = vmul.f32 %v2553_v25, %v16054_v21  ;;  %v2640_v26 = vmul.f32 %v2556_v2, %v16055_v61  ;;  %v16064_v18 = vld [vmem:[#allocation83_spill] sm:$0xff]  ;;  %v16067_v25 = vld [vmem:[#allocation270_spill] sm:$0xff]  ;;  %v1998_v19 = vpop.permute.xlu0 %1997  ;;  %v16078_v21 = vld [vmem:[#allocation409_spill] sm:$0xff] }
 0x326   : > { %v2892_v58 = vmul.f32 %v2556_v2, %v16056_v7  ;;  %v2805_v8 = vsub.f32 %v2637_v42, %v16057_v59  ;;  %v2555_v13 = vadd.f32 1.0, %v2303_v60  ;;  %v2306_v0 = vsub.f32 %v5327_v47, %v2000_v29  ;;  %v16068_v60 = vld [vmem:[#allocation404_spill] sm:$0xff]  ;;  %v11783_v61 = vld [vmem:[%s5873_s25 + $0x380] sm:$0xff]  ;;  %vm3989_vm1 = vmand %vm11777_vm14, %vm3961_vm3 }
 0x327   : > { %v3562_v48 = vsub.f32 %v3394_v38, %v3478_v3  ;;  %v4238_v5 = vmax.f32 %v4154_v56, 0.0  ;;  %v4323_v11 = vsel %vm11706_vm7, %v4239_v22, 0.0  ;;  %v3057_v36 = vsub.f32 %v2889_v46, %v16059_v4  ;;  %v16074_v56 = vld [vmem:[#allocation86_spill] sm:$0xff]  ;;  %v16075_v42 = vld [vmem:[#allocation388_spill] sm:$0xff]  ;;  %vm11839_vm2 = vmand %vm3989_vm1, %vm4047_vm6 }
 0x328   : > { %v2808_v40 = vsub.f32 %v2640_v26, %v16060_v51  ;;  %v3393_v27 = vmul.f32 %v2805_v8, %v10894_v6  ;;  %v3060_v10 = vsub.f32 %v2892_v58, %v16063_v35  ;;  %v2639_v38 = vmul.f32 %v2555_v13, %v16064_v18  ;;  %v16079_v26 = vld [vmem:[#allocation305_spill] sm:$0xff]  ;;  %v16085_v4 = vld [vmem:[#allocation240_spill] sm:$0xff]  ;;  %v16088_v18 = vld [vmem:[#allocation35_spill] sm:$0xff] }
 0x329   : > { %v3730_v1 = vadd.f32 %v16058_v16, %v3562_v48  ;;  %v4322_v23 = vsel %vm11715_vm8, %v4238_v5, 0.0  ;;  %v4395_v50 = vadd.f32 %v4394_v24, %v4320_v37  ;;  %v16065_v17 = vsub.f32 %v10880_v52, %v10814_v33  ;;  %v16073_v37 = vld [vmem:[#allocation237_spill] sm:$0xff]  ;;  %v16080_v5 = vld [vmem:[#allocation82_spill] sm:$0xff] }
 0x32a   : > { %v3396_v31 = vmul.f32 %v2808_v40, %v10918_v57  ;;  %v16066_v62 = vsub.f32 %v10897_v20, %v10837_v15  ;;  %v2807_v55 = vsub.f32 %v2639_v38, %v16067_v25  ;;  %v2891_v6 = vmul.f32 %v2555_v13, %v16068_v60  ;;  %v16082_v13 = vld [vmem:[#allocation389_spill] sm:$0xff]  ;;  %v16095_v15 = vld [vmem:[#allocation244_spill] sm:$0xff] }
 0x32b   : > { %v4157_v12 = vsub.f32 0.0, %v3730_v1  ;;  %v3477_v28 = vmul.f32 %v3057_v36, %v16065_v17  ;;  %vm3849_vm10 = vcmp.ge.s32.totalorder %v10955_v45, 1  ;;  %vm3891_vm11 = vcmp.lt.s32.totalorder %v10955_v45, 96  ;;  %v16100_v48 = vld [vmem:[#allocation285_spill] sm:$0xff] }
 0x32c   : > { %v3480_v41 = vmul.f32 %v3060_v10, %v16066_v62  ;;  %v2558_v24 = vadd.f32 1.0, %v2306_v0  ;;  %v4437_v33 = vadd.f32 %v4436_v9, %v4323_v11  ;;  %v4396_v3 = vadd.f32 %v4395_v50, %v4322_v23  ;;  %vm11852_vm4 = vmand %vm3849_vm10, %vm3891_vm11 }
 0x32d   : > { %v4241_v57 = vmax.f32 %v4157_v12, 0.0  ;;  %v3561_v2 = vsub.f32 %v3393_v27, %v3477_v28  ;;  %v3059_v54 = vsub.f32 %v2891_v6, %v16073_v37  ;;  %v3395_v22 = vmul.f32 %v2807_v55, %v10938_v30  ;;  %v5329_v30 = vld [vmem:[%s5873_s25 + $0x620] sm:$0xff]  ;;  %v11815_v27 = vld [vmem:[%s5873_s25 + $0xf8] sm:$0xff]  ;;  %v16090_v12 = vld [vmem:[#allocation87_spill] sm:$0xff] }
 0x32e   : > { %v3564_v9 = vsub.f32 %v3396_v31, %v3480_v41  ;;  %v2642_v34 = vmul.f32 %v2558_v24, %v16074_v56  ;;  %v2894_v46 = vmul.f32 %v2558_v24, %v16078_v21  ;;  %v706_v7 = vsub.f32 %v11783_v61, %v16079_v26  ;;  %v16092_v41 = vld [vmem:[#allocation395_spill] sm:$0xff]  ;;  %v16093_v55 = vld [vmem:[#allocation444_spill] sm:$0xff]  ;;  %vm11871_vm7 = vmand %vm11852_vm4, %vm4047_vm6 }
 0x32f   : > { %v3729_v43 = vadd.f32 %v16075_v42, %v3561_v2  ;;  %v2305_v58 = vsub.f32 %v5329_v30, %v1998_v19  ;;  %v16081_v49 = vsub.f32 %v16079_v26, %v10880_v52  ;;  %v2389_v0 = vadd.f32 1.0, %v622_v53  ;;  %v16094_v19 = vld [vmem:[#allocation238_spill] sm:$0xff]  ;;  %v2004_v2 = vpop.permute.xlu1 %2003  ;;  %v5332_v37 = vld [vmem:[%s5873_s25 + $0x388] sm:$0xff]  ;;  %vm3991_vm9 = vmand %vm11852_vm4, %vm3961_vm3 }
 0x330   : > { %v3732_v59 = vadd.f32 %v16080_v5, %v3564_v9  ;;  %v2810_v47 = vsub.f32 %v2642_v34, %v16082_v13  ;;  %v4325_v11 = vsel %vm11757_vm12, %v4241_v57, 0.0  ;;  %v3062_v36 = vsub.f32 %v2894_v46, %v16085_v4  ;;  %v2002_v34 = vpop.permute.xlu0 %2001  ;;  %v5336_v13 = vld [vmem:[%s5873_s25 + $0x630] sm:$0xff]  ;;  %v16103_v4 = vld [vmem:[#allocation245_spill] sm:$0xff]  ;;  %vm11899_vm10 = vmand %vm3991_vm9, %vm4047_vm6 }
 0x331   : > { %v3479_v8 = vmul.f32 %v3059_v54, %v16081_v49  ;;  %v4156_v1 = vsub.f32 0.0, %v3729_v43  ;;  %v2557_v51 = vadd.f32 1.0, %v2305_v58  ;;  %v625_v35 = vsub.f32 %v11815_v27, %v5330_v63  ;;  %v11845_v54 = vld [vmem:[%s5873_s25 + $0x398] sm:$0xff]  ;;  %v16105_v63 = vld [vmem:[#allocation418_spill] sm:$0xff] }
 0x332   : > { %v4159_v53 = vsub.f32 0.0, %v3732_v59  ;;  %v3398_v23 = vmul.f32 %v2810_v47, %v11663_v39  ;;  %v16089_v38 = vsub.f32 %v16088_v18, %v10897_v20  ;;  %v16091_v39 = vld [vmem:[#allocation410_spill] sm:$0xff]  ;;  %v4438_v31 = vadd.f32 %v4437_v33, %v4325_v11  ;;  %v5334_v58 = vld [vmem:[%s5873_s25 + $0x638] sm:$0xff]  ;;  %v11860_v59 = vld [vmem:[%s5873_s25 + $0xf0] sm:$0xff] }
 0x333   : > { %v3563_v40 = vsub.f32 %v3395_v22, %v3479_v8  ;;  %v4240_v10 = vmax.f32 %v4156_v1, 0.0  ;;  %v2641_v17 = vmul.f32 %v2557_v51, %v16090_v12  ;;  %v2893_v28 = vmul.f32 %v2557_v51, %v16091_v39  ;;  %v11877_v11 = vld [vmem:[%s5873_s25 + $0x390] sm:$0xff]  ;;  %v2008_v18 = vpop.permute.xlu1 %2007  ;;  %v16106_v12 = vld [vmem:[#allocation91_spill] sm:$0xff]  ;;  %v16107_v39 = vld [vmem:[#allocation266_spill] sm:$0xff] }
 0x334   : > { %v3482_v50 = vmul.f32 %v3062_v36, %v16089_v38  ;;  %v4243_v62 = vmax.f32 %v4159_v53, 0.0  ;;  %v11829_v60 = vadd.s32 15, %v16093_v55  ;;  %v709_v22 = vsub.f32 %v11845_v54, %v5332_v37  ;;  %v5340_v33 = vld [vmem:[%s5873_s25 + $0x648] sm:$0xff] }
 0x335   : > { %v3731_v25 = vadd.f32 %v16092_v41, %v3563_v40  ;;  %v4324_v6 = vsel %vm11799_vm15, %v4240_v10, 0.0  ;;  %v2809_v20 = vsub.f32 %v2641_v17, %v16094_v19  ;;  %v3061_v57 = vsub.f32 %v2893_v28, %v16095_v15  ;;  %v16104_v40 = vld [vmem:[#allocation89_spill] sm:$0xff]  ;;  %v11889_v10 = vld [vmem:[%s5873_s25 + $0x108] sm:$0xff] }
 0x336   : > { %v3566_v24 = vsub.f32 %v3398_v23, %v3482_v50  ;;  %v4327_v29 = vsel %vm11808_vm0, %v4243_v62, 0.0  ;;  %v2392_v56 = vadd.f32 1.0, %v625_v35  ;;  %v4397_v42 = vadd.f32 %v4396_v3, %v4324_v6  ;;  %v16110_v62 = vld [vmem:[#allocation396_spill] sm:$0xff]  ;;  %v16112_v15 = vld [vmem:[#allocation241_spill] sm:$0xff] }
 0x337   : > { %v4158_v9 = vsub.f32 0.0, %v3731_v25  ;;  %v3397_v46 = vmul.f32 %v2809_v20, %v2389_v0  ;;  %v3481_v26 = vmul.f32 %v3061_v57, %v706_v7  ;;  %vm3850_vm5 = vcmp.ge.s32.totalorder %v11829_v60, 1  ;;  %v16111_v25 = vld [vmem:[#allocation251_spill] sm:$0xff]  ;;  %v16118_v0 = vld [vmem:[#allocation88_spill] sm:$0xff] }
 0x338   : > { %v3734_v21 = vadd.f32 %v16100_v48, %v3566_v24  ;;  %v2308_v5 = vsub.f32 %v5334_v58, %v2004_v2  ;;  %v624_v3 = vsub.f32 %v11860_v59, %v11696_v32  ;;  %v4439_v45 = vadd.f32 %v4438_v31, %v4327_v29  ;;  %v16113_v2 = vld [vmem:[#allocation255_spill] sm:$0xff]  ;;  %v2006_v48 = vpop.permute.xlu0 %2005 }
 0x339   : > { %v4242_v30 = vmax.f32 %v4158_v9, 0.0  ;;  %v3565_v8 = vsub.f32 %v3397_v46, %v3481_v26  ;;  %v2307_v47 = vsub.f32 %v5336_v13, %v2002_v34  ;;  %vm3892_vm8 = vcmp.lt.s32.totalorder %v11829_v60, 96 }
 0x33a   : > { %v4161_v49 = vsub.f32 0.0, %v3734_v21  ;;  %v2560_v32 = vadd.f32 1.0, %v2308_v5  ;;  %v708_v16 = vsub.f32 %v11877_v11, %v11783_v61  ;;  %v2391_v51 = vadd.f32 1.0, %v624_v3  ;;  %vm11924_vm11 = vmand %vm3850_vm5, %vm3892_vm8  ;;  %v16116_v3 = vld [vmem:[#allocation93_spill] sm:$0xff] }
 0x33b   : > { %v4326_v7 = vsel %vm11839_vm2, %v4242_v30, 0.0  ;;  %v3733_v36 = vadd.f32 %v16103_v4, %v3565_v8  ;;  %v2559_v52 = vadd.f32 1.0, %v2307_v47  ;;  %v627_v61 = vsub.f32 %v11889_v10, %v11815_v27  ;;  %v11906_v27 = vld [vmem:[%s5873_s25 + $0x3a8] sm:$0xff]  ;;  %v5342_v8 = vld [vmem:[%s5873_s25 + $0x640] sm:$0xff]  ;;  %v2012_v47 = vpop.permute.xlu1 %2011  ;;  %v11945_v4 = vld [vmem:[%s5873_s25 + $0x118] sm:$0xff] }
 0x33c   : > { %v4245_v1 = vmax.f32 %v4161_v49, 0.0  ;;  %v4398_v53 = vadd.f32 %v4397_v42, %v4326_v7  ;;  %v2644_v23 = vmul.f32 %v2560_v32, %v16104_v40  ;;  %v2896_v35 = vmul.f32 %v2560_v32, %v16105_v63  ;;  %v16117_v49 = vld [vmem:[#allocation419_spill] sm:$0xff]  ;;  %vm11953_vm14 = vmand %vm11924_vm11, %vm3961_vm3  ;;  %v12005_v30 = vld [vmem:[%s5873_s25 + $0x110] sm:$0xff] }
 0x33d   : > { %v4160_v50 = vsub.f32 0.0, %v3733_v36  ;;  %v2643_v17 = vmul.f32 %v2559_v52, %v16106_v12  ;;  %v2895_v28 = vmul.f32 %v2559_v52, %v16107_v39  ;;  %v711_v24 = vsub.f32 %v11906_v27, %v11845_v54  ;;  %vm11968_vm15 = vmand %vm11924_vm11, %vm4047_vm6  ;;  %v16139_v36 = vld [vmem:[#allocation411_spill] sm:$0xff] }
 0x33e   : > { %v4329_v38 = vsel %vm11871_vm7, %v4245_v1, 0.0  ;;  %v2812_v41 = vsub.f32 %v2644_v23, %v16110_v62  ;;  %v3064_v6 = vsub.f32 %v2896_v35, %v16111_v25  ;;  %v11911_v19 = vadd.s32 16, %v16093_v55  ;;  %v16123_v23 = vld [vmem:[#allocation261_spill] sm:$0xff]  ;;  %vm11977_vm0 = vmand %vm11953_vm14, %vm4047_vm6  ;;  %v16129_v25 = vld [vmem:[#allocation420_spill] sm:$0xff] }
 0x33f   : > { %v4244_v20 = vmax.f32 %v4160_v50, 0.0  ;;  %v2811_v57 = vsub.f32 %v2643_v17, %v16112_v15  ;;  %v3063_v29 = vsub.f32 %v2895_v28, %v16113_v2  ;;  %v2310_v9 = vsub.f32 %v5340_v33, %v2008_v18  ;;  %v5345_v18 = vld [vmem:[%s5873_s25 + $0x658] sm:$0xff]  ;;  %v16126_v28 = vld [vmem:[#allocation95_spill] sm:$0xff] }
 0x340   : > { %v11916_v37 = vadd.f32 %v4439_v45, %v4329_v38  ;;  %v3400_v34 = vmul.f32 %v2812_v41, %v2392_v56  ;;  %v3484_v42 = vmul.f32 %v3064_v6, %v709_v22  ;;  %v2394_v43 = vadd.f32 1.0, %v627_v61  ;;  %v11931_v56 = vld [vmem:[%s5873_s25 + $0x100] sm:$0xff]  ;;  %v5351_v50 = vld [vmem:[%s5873_s25 + $0x668] sm:$0xff] }
 0x341   : > { %v4328_v54 = vsel %vm11899_vm10, %v4244_v20, 0.0  ;;  %v3399_v21 = vmul.f32 %v2811_v57, %v2391_v51  ;;  %v3483_v46 = vmul.f32 %v3063_v29, %v708_v16  ;;  %v2562_v26 = vadd.f32 1.0, %v2310_v9  ;;  %v11940_v16 = vld [vmem:[%s5873_s25 + $0x3a0] sm:$0xff]  ;;  %v16121_v51 = vld [vmem:[#allocation256_spill] sm:$0xff]  ;;  %v11983_v20 = vld [vmem:[%s5873_s25 + $0x3b8] sm:$0xff] }
 0x342   : > { %v3568_v22 = vsub.f32 %v3400_v34, %v3484_v42  ;;  %vm3851_vm12 = vcmp.ge.s32.totalorder %v11911_v19, 1  ;;  %vm3893_vm13 = vcmp.lt.s32.totalorder %v11911_v19, 96  ;;  %v626_v58 = vsub.f32 %v11931_v56, %v11860_v59  ;;  %v16130_v29 = vld [vmem:[#allocation405_spill] sm:$0xff]  ;;  %v16131_v42 = vld [vmem:[#allocation268_spill] sm:$0xff] }
 0x343   : > { %v3567_v5 = vsub.f32 %v3399_v21, %v3483_v46  ;;  %v2646_v45 = vmul.f32 %v2562_v26, %v16116_v3  ;;  %v2898_v60 = vmul.f32 %v2562_v26, %v16117_v49  ;;  %v2309_v13 = vsub.f32 %v5342_v8, %v2006_v48  ;;  %v2010_v48 = vpop.permute.xlu0 %2009  ;;  %vm11999_vm4 = vmand %vm3851_vm12, %vm3893_vm13  ;;  %v16134_v21 = vld [vmem:[#allocation94_spill] sm:$0xff] }
 0x344   : > { %v4399_v7 = vadd.f32 %v4398_v53, %v4328_v54  ;;  %v3736_v32 = vadd.f32 %v16118_v0, %v3568_v22  ;;  %v710_v1 = vsub.f32 %v11940_v16, %v11877_v11  ;;  %v629_v59 = vsub.f32 %v11945_v4, %v11889_v10  ;;  %v16122_v53 = vld [vmem:[#allocation90_spill] sm:$0xff]  ;;  %v5349_v0 = vld [vmem:[%s5873_s25 + $0x650] sm:$0xff]  ;;  %vm12024_vm5 = vmand %vm11999_vm4, %vm4047_vm6 }
 0x345   : > { %v3735_v52 = vadd.f32 %v16121_v51, %v3567_v5  ;;  %v2814_v40 = vsub.f32 %v2646_v45, %v16122_v53  ;;  %v3066_v11 = vsub.f32 %v2898_v60, %v16123_v23  ;;  %v2561_v63 = vadd.f32 1.0, %v2309_v13  ;;  %v16135_v5 = vld [vmem:[#allocation97_spill] sm:$0xff]  ;;  %v16136_v45 = vld [vmem:[#allocation272_spill] sm:$0xff]  ;;  %vm12042_vm7 = vmand %vm11999_vm4, %vm3961_vm3 }
 0x346   : > { %v4163_v35 = vsub.f32 0.0, %v3736_v32  ;;  %v2393_v61 = vadd.f32 1.0, %v626_v58  ;;  %v11961_v10 = vadd.s32 17, %v16093_v55  ;;  %v2312_v38 = vsub.f32 %v5345_v18, %v2012_v47  ;;  %v12012_v60 = vld [vmem:[%s5873_s25 + $0x3b0] sm:$0xff]  ;;  %v16140_v51 = vld [vmem:[#allocation273_spill] sm:$0xff]  ;;  %vm12062_vm9 = vmand %vm12042_vm7, %vm4047_vm6 }
 0x347   : > { %v4162_v12 = vsub.f32 0.0, %v3735_v52  ;;  %v3402_v17 = vmul.f32 %v2814_v40, %v2394_v43  ;;  %v3486_v39 = vmul.f32 %v3066_v11, %v711_v24  ;;  %v2645_v31 = vmul.f32 %v2561_v63, %v16126_v28  ;;  %v16145_v28 = vld [vmem:[#allocation427_spill] sm:$0xff]  ;;  %v12078_v54 = vld [vmem:[%s5873_s25 + $0x120] sm:$0xff] }
 0x348   : > { %v4247_v62 = vmax.f32 %v4163_v35, 0.0  ;;  %v2897_v6 = vmul.f32 %v2561_v63, %v16129_v25  ;;  %v713_v15 = vsub.f32 %v11983_v20, %v11906_v27  ;;  %v2396_v24 = vadd.f32 1.0, %v629_v59  ;;  %v16143_v35 = vld [vmem:[#allocation412_spill] sm:$0xff]  ;;  %v2014_v25 = vpop.permute.xlu0 %2013 }
 0x349   : > { %v4246_v57 = vmax.f32 %v4162_v12, 0.0  ;;  %v3570_v2 = vsub.f32 %v3402_v17, %v3486_v39  ;;  %v2813_v33 = vsub.f32 %v2645_v31, %v16130_v29  ;;  %v2564_v9 = vadd.f32 1.0, %v2312_v38  ;;  %v16144_v17 = vld [vmem:[#allocation99_spill] sm:$0xff]  ;;  %v16148_v29 = vld [vmem:[#allocation269_spill] sm:$0xff] }
 0x34a   : > { %v4331_v34 = vsel %vm11968_vm15, %v4247_v62, 0.0  ;;  %v3065_v43 = vsub.f32 %v2897_v6, %v16131_v42  ;;  %vm3852_vm1 = vcmp.ge.s32.totalorder %v11961_v10, 1  ;;  %vm3894_vm2 = vcmp.lt.s32.totalorder %v11961_v10, 96  ;;  %v12053_v62 = vld [vmem:[%s5873_s25 + $0x3c8] sm:$0xff] }
 0x34b   : > { %v4330_v27 = vsel %vm11977_vm0, %v4246_v57, 0.0  ;;  %v3738_v46 = vadd.f32 %v16134_v21, %v3570_v2  ;;  %v3401_v26 = vmul.f32 %v2813_v33, %v2393_v61  ;;  %v628_v22 = vsub.f32 %v12005_v30, %v11931_v56  ;;  %v2016_v56 = vpop.permute.xlu1 %2015  ;;  %vm12072_vm10 = vmand %vm3852_vm1, %vm3894_vm2 }
 0x34c   : > { %v3485_v58 = vmul.f32 %v3065_v43, %v710_v1  ;;  %v2648_v3 = vmul.f32 %v2564_v9, %v16135_v5  ;;  %v2900_v49 = vmul.f32 %v2564_v9, %v16136_v45  ;;  %v712_v19 = vsub.f32 %v12012_v60, %v11940_v16  ;;  %v16149_v9 = vld [vmem:[#allocation277_spill] sm:$0xff]  ;;  %v16154_v45 = vld [vmem:[#allocation280_spill] sm:$0xff]  ;;  %vm12097_vm12 = vmand %vm12072_vm10, %vm4047_vm6 }
 0x34d   : > { %v4441_v8 = vadd.f32 %v11916_v37, %v4331_v34  ;;  %v12017_v13 = vadd.f32 %v4399_v7, %v4330_v27  ;;  %v4165_v47 = vsub.f32 0.0, %v3738_v46  ;;  %v2311_v32 = vsub.f32 %v5349_v0, %v2010_v48  ;;  %v12031_v7 = vld [vmem:[%s5873_s25 + $0x128] sm:$0xff]  ;;  %v16152_v48 = vld [vmem:[#allocation98_spill] sm:$0xff]  ;;  %v16153_v5 = vld [vmem:[#allocation101_spill] sm:$0xff] }
 0x34e   : > { %v3569_v59 = vsub.f32 %v3401_v26, %v3485_v58  ;;  %v2816_v16 = vsub.f32 %v2648_v3, %v16139_v36  ;;  %v3068_v37 = vsub.f32 %v2900_v49, %v16140_v51  ;;  %v631_v52 = vsub.f32 %v12031_v7, %v11945_v4  ;;  %v5354_v46 = vld [vmem:[%s5873_s25 + $0x660] sm:$0xff]  ;;  %vm3997_vm13 = vmand %vm12072_vm10, %vm3961_vm3  ;;  %v16159_v51 = vld [vmem:[#allocation103_spill] sm:$0xff] }
 0x34f   : > { %v4249_v53 = vmax.f32 %v4165_v47, 0.0  ;;  %v2395_v40 = vadd.f32 1.0, %v628_v22  ;;  %v2563_v23 = vadd.f32 1.0, %v2311_v32  ;;  %v12036_v11 = vadd.s32 18, %v16093_v55  ;;  %vm12122_vm14 = vmand %vm3997_vm13, %vm4047_vm6  ;;  %v16168_v43 = vld [vmem:[#allocation287_spill] sm:$0xff] }
 0x350   : > { %v3737_v61 = vadd.f32 %v16143_v35, %v3569_v59  ;;  %v3404_v18 = vmul.f32 %v2816_v16, %v2396_v24  ;;  %v3488_v38 = vmul.f32 %v3068_v37, %v713_v15  ;;  %v2314_v4 = vsub.f32 %v5351_v50, %v2016_v56  ;;  %v16157_v56 = vld [vmem:[#allocation278_spill] sm:$0xff] }
 0x351   : > { %v4333_v12 = vsel %vm12024_vm5, %v4249_v53, 0.0  ;;  %v2647_v39 = vmul.f32 %v2563_v23, %v16144_v17  ;;  %v2899_v31 = vmul.f32 %v2563_v23, %v16145_v28  ;;  %v715_v41 = vsub.f32 %v12053_v62, %v11983_v20  ;;  %v16158_v59 = vld [vmem:[#allocation282_spill] sm:$0xff] }
 0x352   : > { %v4164_v6 = vsub.f32 0.0, %v3737_v61  ;;  %v3572_v24 = vsub.f32 %v3404_v18, %v3488_v38  ;;  %v2398_v15 = vadd.f32 1.0, %v631_v52  ;;  %vm3853_vm8 = vcmp.ge.s32.totalorder %v12036_v11, 1  ;;  %v16160_v52 = vld [vmem:[#allocation434_spill] sm:$0xff]  ;;  %v12111_v61 = vld [vmem:[%s5873_s25 + $0x138] sm:$0xff]  ;;  %v2020_v38 = vpop.permute.xlu1 %2019 }
 0x353   : > { %v4442_v57 = vadd.f32 %v4441_v8, %v4333_v12  ;;  %v2815_v33 = vsub.f32 %v2647_v39, %v16148_v29  ;;  %v3067_v20 = vsub.f32 %v2899_v31, %v16149_v9  ;;  %v2566_v34 = vadd.f32 1.0, %v2314_v4  ;;  %v12087_v8 = vld [vmem:[%s5873_s25 + $0x3c0] sm:$0xff]  ;;  %v16162_v12 = vld [vmem:[#allocation421_spill] sm:$0xff]  ;;  %v16163_v39 = vld [vmem:[#allocation284_spill] sm:$0xff] }
 0x354   : > { %v4248_v42 = vmax.f32 %v4164_v6, 0.0  ;;  %v3740_v27 = vadd.f32 %v16152_v48, %v3572_v24  ;;  %v630_v21 = vsub.f32 %v12078_v54, %v12005_v30  ;;  %v2313_v26 = vsub.f32 %v5354_v46, %v2014_v25  ;;  %v5358_v29 = vld [vmem:[%s5873_s25 + $0x678] sm:$0xff]  ;;  %v12144_v9 = vld [vmem:[%s5873_s25 + $0x130] sm:$0xff] }
 0x355   : > { %v3403_v22 = vmul.f32 %v2815_v33, %v2395_v40  ;;  %v3487_v58 = vmul.f32 %v3067_v20, %v712_v19  ;;  %v2650_v3 = vmul.f32 %v2566_v34, %v16153_v5  ;;  %v2902_v49 = vmul.f32 %v2566_v34, %v16154_v45  ;;  %v16161_v40 = vld [vmem:[#allocation414_spill] sm:$0xff]  ;;  %v2018_v20 = vpop.permute.xlu0 %2017  ;;  %v16173_v45 = vld [vmem:[#allocation104_spill] sm:$0xff] }
 0x356   : > { %v4167_v10 = vsub.f32 0.0, %v3740_v27  ;;  %vm3895_vm11 = vcmp.lt.s32.totalorder %v12036_v11, 96  ;;  %v714_v47 = vsub.f32 %v12087_v8, %v12012_v60  ;;  %v2565_v0 = vadd.f32 1.0, %v2313_v26  ;;  %v12162_v26 = vld [vmem:[%s5873_s25 + $0x3d0] sm:$0xff] }
 0x357   : > { %v4332_v30 = vsel %vm12062_vm9, %v4248_v42, 0.0  ;;  %v3571_v32 = vsub.f32 %v3403_v22, %v3487_v58  ;;  %v2818_v1 = vsub.f32 %v2650_v3, %v16157_v56  ;;  %v3070_v36 = vsub.f32 %v2902_v49, %v16158_v59  ;;  %vm12138_vm15 = vmand %vm3853_vm8, %vm3895_vm11  ;;  %v5361_v58 = vld [vmem:[%s5873_s25 + $0x670] sm:$0xff]  ;;  %v12179_v59 = vld [vmem:[%s5873_s25 + $0x148] sm:$0xff] }
 0x358   : > { %v4251_v16 = vmax.f32 %v4167_v10, 0.0  ;;  %v2397_v60 = vadd.f32 1.0, %v630_v21  ;;  %v2649_v37 = vmul.f32 %v2565_v0, %v16159_v51  ;;  %v2901_v53 = vmul.f32 %v2565_v0, %v16160_v52  ;;  %vm12157_vm2 = vmand %vm12138_vm15, %vm4047_vm6  ;;  %v16174_v10 = vld [vmem:[#allocation105_spill] sm:$0xff]  ;;  %v16183_v24 = vld [vmem:[#allocation292_spill] sm:$0xff] }
 0x359   : > { %v3739_v23 = vadd.f32 %v16161_v40, %v3571_v32  ;;  %v3406_v63 = vmul.f32 %v2818_v1, %v2398_v15  ;;  %v3490_v35 = vmul.f32 %v3070_v36, %v715_v41  ;;  %v633_v18 = vsub.f32 %v12111_v61, %v12031_v7  ;;  %v12127_v7 = vld [vmem:[%s5873_s25 + $0x3d8] sm:$0xff]  ;;  %vm12171_vm4 = vmand %vm12138_vm15, %vm3961_vm3  ;;  %v2024_v32 = vpop.permute.xlu1 %2023  ;;  %v5367_v3 = vld [vmem:[%s5873_s25 + $0x680] sm:$0xff] }
 0x35a   : > { %v4401_v50 = vadd.f32 %v12017_v13, %v4332_v30  ;;  %v4335_v4 = vsel %vm12097_vm12, %v4251_v16, 0.0  ;;  %v2817_v17 = vsub.f32 %v2649_v37, %v16162_v12  ;;  %v3069_v28 = vsub.f32 %v2901_v53, %v16163_v39  ;;  %v16175_v0 = vld [vmem:[#allocation441_spill] sm:$0xff]  ;;  %v16177_v37 = vld [vmem:[#allocation290_spill] sm:$0xff]  ;;  %vm12194_vm5 = vmand %vm12171_vm4, %vm4047_vm6 }
 0x35b   : > { %v4166_v41 = vsub.f32 0.0, %v3739_v23  ;;  %v3574_v25 = vsub.f32 %v3406_v63, %v3490_v35  ;;  %v717_v13 = vsub.f32 %v12127_v7, %v12053_v62  ;;  %v12132_v6 = vadd.s32 19, %v16093_v55  ;;  %v16180_v63 = vld [vmem:[#allocation107_spill] sm:$0xff] }
 0x35c   : > { %v3405_v15 = vmul.f32 %v2817_v17, %v2397_v60  ;;  %v3489_v2 = vmul.f32 %v3069_v28, %v714_v47  ;;  %v2316_v33 = vsub.f32 %v5358_v29, %v2020_v38  ;;  %v632_v62 = vsub.f32 %v12144_v9, %v12078_v54  ;;  %v16176_v60 = vld [vmem:[#allocation291_spill] sm:$0xff] }
 0x35d   : > { %v4443_v34 = vadd.f32 %v4442_v57, %v4335_v4  ;;  %v4250_v42 = vmax.f32 %v4166_v41, 0.0  ;;  %v3742_v11 = vadd.f32 %v16168_v43, %v3574_v25  ;;  %v2400_v48 = vadd.f32 1.0, %v633_v18  ;;  %v5363_v38 = vld [vmem:[%s5873_s25 + $0x688] sm:$0xff]  ;;  %v16182_v41 = vld [vmem:[#allocation428_spill] sm:$0xff] }
 0x35e   : > { %v3573_v27 = vsub.f32 %v3405_v15, %v3489_v2  ;;  %vm3854_vm0 = vcmp.ge.s32.totalorder %v12132_v6, 1  ;;  %vm3896_vm1 = vcmp.lt.s32.totalorder %v12132_v6, 96  ;;  %v2568_v21 = vadd.f32 1.0, %v2316_v33  ;;  %v12202_v39 = vld [vmem:[%s5873_s25 + $0x3e8] sm:$0xff] }
 0x35f   : > { %v4334_v46 = vsel %vm12122_vm14, %v4250_v42, 0.0  ;;  %v4169_v54 = vsub.f32 0.0, %v3742_v11  ;;  %v716_v22 = vsub.f32 %v12162_v26, %v12087_v8  ;;  %v2315_v5 = vsub.f32 %v5361_v58, %v2018_v20  ;;  %vm12225_vm9 = vmand %vm3854_vm0, %vm3896_vm1  ;;  %v16188_v57 = vld [vmem:[#allocation451_spill] sm:$0xff] }
 0x360   : > { %v3741_v49 = vadd.f32 %v16173_v45, %v3573_v27  ;;  %v2652_v47 = vmul.f32 %v2568_v21, %v16174_v10  ;;  %v2904_v30 = vmul.f32 %v2568_v21, %v16175_v0  ;;  %v2399_v19 = vadd.f32 1.0, %v632_v62  ;;  %v2022_v62 = vpop.permute.xlu0 %2021  ;;  %v16187_v21 = vld [vmem:[#allocation110_spill] sm:$0xff]  ;;  %v12239_v45 = vld [vmem:[%s5873_s25 + $0x158] sm:$0xff]  ;;  %vm12252_vm10 = vmand %vm12225_vm9, %vm4047_vm6 }
 0x361   : > { %v4402_v8 = vadd.f32 %v4401_v50, %v4334_v46  ;;  %v4253_v56 = vmax.f32 %v4169_v54, 0.0  ;;  %v2567_v1 = vadd.f32 1.0, %v2315_v5  ;;  %v635_v36 = vsub.f32 %v12179_v59, %v12111_v61  ;;  %v16181_v61 = vld [vmem:[#allocation442_spill] sm:$0xff]  ;;  %vm4001_vm11 = vmand %vm12225_vm9, %vm3961_vm3 }
 0x362   : > { %v4168_v16 = vsub.f32 0.0, %v3741_v49  ;;  %v2820_v51 = vsub.f32 %v2652_v47, %v16176_v60  ;;  %v3072_v52 = vsub.f32 %v2904_v30, %v16177_v37  ;;  %v12186_v53 = vadd.s32 20, %v16093_v55  ;;  %v16189_v47 = vld [vmem:[#allocation299_spill] sm:$0xff]  ;;  %v16190_v30 = vld [vmem:[#allocation297_spill] sm:$0xff]  ;;  %vm12274_vm13 = vmand %vm4001_vm11, %vm4047_vm6 }
 0x363   : > { %v4337_v40 = vsel %vm12157_vm2, %v4253_v56, 0.0  ;;  %v2651_v35 = vmul.f32 %v2567_v1, %v16180_v63  ;;  %v2903_v18 = vmul.f32 %v2567_v1, %v16181_v61  ;;  %v2318_v50 = vsub.f32 %v5363_v38, %v2024_v32  ;;  %v16194_v63 = vld [vmem:[#allocation111_spill] sm:$0xff]  ;;  %v16195_v61 = vld [vmem:[#allocation452_spill] sm:$0xff] }
 0x364   : > { %v4252_v4 = vmax.f32 %v4168_v16, 0.0  ;;  %v3408_v12 = vmul.f32 %v2820_v51, %v2400_v48  ;;  %v3492_v17 = vmul.f32 %v3072_v52, %v717_v13  ;;  %v719_v28 = vsub.f32 %v12202_v39, %v12127_v7  ;;  %v16186_v48 = vld [vmem:[#allocation293_spill] sm:$0xff]  ;;  %v2026_v11 = vpop.permute.xlu0 %2025 }
 0x365   : > { %v12206_v31 = vadd.f32 %v4443_v34, %v4337_v40  ;;  %v2819_v25 = vsub.f32 %v2651_v35, %v16182_v41  ;;  %v3071_v15 = vsub.f32 %v2903_v18, %v16183_v24  ;;  %v2402_v2 = vadd.f32 1.0, %v635_v36  ;;  %v12215_v34 = vld [vmem:[%s5873_s25 + $0x140] sm:$0xff]  ;;  %v5369_v36 = vld [vmem:[%s5873_s25 + $0x698] sm:$0xff] }
 0x366   : > { %v4336_v29 = vsel %vm12194_vm5, %v4252_v4, 0.0  ;;  %v3576_v33 = vsub.f32 %v3408_v12, %v3492_v17  ;;  %vm3855_vm7 = vcmp.ge.s32.totalorder %v12186_v53, 1  ;;  %v2570_v13 = vadd.f32 1.0, %v2318_v50  ;;  %v12263_v52 = vld [vmem:[%s5873_s25 + $0x3f8] sm:$0xff] }
 0x367   : > { %v3407_v20 = vmul.f32 %v2819_v25, %v2399_v19  ;;  %v3491_v7 = vmul.f32 %v3071_v15, %v716_v22  ;;  %vm3897_vm8 = vcmp.lt.s32.totalorder %v12186_v53, 96  ;;  %v634_v42 = vsub.f32 %v12215_v34, %v12144_v9  ;;  %v2028_v22 = vpop.permute.xlu1 %2027  ;;  %v12233_v9 = vld [vmem:[%s5873_s25 + $0x3e0] sm:$0xff]  ;;  %v16199_v25 = vld [vmem:[#allocation300_spill] sm:$0xff] }
 0x368   : > { %v12219_v43 = vadd.f32 %v4402_v8, %v4336_v29  ;;  %v3744_v27 = vadd.f32 %v16186_v48, %v3576_v33  ;;  %v2654_v46 = vmul.f32 %v2570_v13, %v16187_v21  ;;  %v2906_v54 = vmul.f32 %v2570_v13, %v16188_v57  ;;  %v16193_v8 = vld [vmem:[#allocation430_spill] sm:$0xff]  ;;  %v12281_v15 = vld [vmem:[%s5873_s25 + $0x150] sm:$0xff]  ;;  %vm12289_vm14 = vmand %vm3855_vm7, %vm3897_vm8 }
 0x369   : > { %v3575_v58 = vsub.f32 %v3407_v20, %v3491_v7  ;;  %v718_v5 = vsub.f32 %v12233_v9, %v12162_v26  ;;  %v2317_v6 = vsub.f32 %v5367_v3, %v2022_v62  ;;  %v637_v49 = vsub.f32 %v12239_v45, %v12179_v59  ;;  %v16202_v33 = vld [vmem:[#allocation301_spill] sm:$0xff]  ;;  %v12299_v53 = vld [vmem:[%s5873_s25 + $0x3f0] sm:$0xff]  ;;  %vm12311_vm0 = vmand %vm12289_vm14, %vm4047_vm6 }
 0x36a   : > { %v4171_v10 = vsub.f32 0.0, %v3744_v27  ;;  %v2822_v0 = vsub.f32 %v2654_v46, %v16189_v47  ;;  %v3074_v19 = vsub.f32 %v2906_v54, %v16190_v30  ;;  %v12246_v32 = vadd.s32 21, %v16093_v55  ;;  %v16203_v62 = vld [vmem:[#allocation113_spill] sm:$0xff]  ;;  %v16205_v54 = vld [vmem:[#allocation308_spill] sm:$0xff]  ;;  %v12317_v47 = vld [vmem:[%s5873_s25 + $0x168] sm:$0xff] }
 0x36b   : > { %v3743_v56 = vadd.f32 %v16193_v8, %v3575_v58  ;;  %v2401_v1 = vadd.f32 1.0, %v634_v42  ;;  %v2569_v59 = vadd.f32 1.0, %v2317_v6  ;;  %v2320_v16 = vsub.f32 %v5369_v36, %v2028_v22  ;;  %v16204_v7 = vld [vmem:[#allocation453_spill] sm:$0xff]  ;;  %v16206_v58 = vld [vmem:[#allocation306_spill] sm:$0xff]  ;;  %v2032_v6 = vpop.permute.xlu1 %2031  ;;  %vm12329_vm1 = vmand %vm12289_vm14, %vm3961_vm3 }
 0x36c   : > { %v4255_v60 = vmax.f32 %v4171_v10, 0.0  ;;  %v3410_v51 = vmul.f32 %v2822_v0, %v2402_v2  ;;  %v3494_v37 = vmul.f32 %v3074_v19, %v719_v28  ;;  %v721_v40 = vsub.f32 %v12263_v52, %v12202_v39  ;;  %v16198_v28 = vld [vmem:[#allocation435_spill] sm:$0xff]  ;;  %vm12349_vm4 = vmand %vm12329_vm1, %vm4047_vm6  ;;  %v16220_v29 = vld [vmem:[#allocation309_spill] sm:$0xff] }
 0x36d   : > { %v4170_v23 = vsub.f32 0.0, %v3743_v56  ;;  %v2653_v35 = vmul.f32 %v2569_v59, %v16194_v63  ;;  %v2905_v18 = vmul.f32 %v2569_v59, %v16195_v61  ;;  %v2404_v38 = vadd.f32 1.0, %v637_v49  ;;  %v5373_v49 = vld [vmem:[%s5873_s25 + $0x690] sm:$0xff]  ;;  %v2030_v63 = vpop.permute.xlu0 %2029  ;;  %v16212_v61 = vld [vmem:[#allocation115_spill] sm:$0xff] }
 0x36e   : > { %v4339_v50 = vsel %vm12252_vm10, %v4255_v60, 0.0  ;;  %v3578_v4 = vsub.f32 %v3410_v51, %v3494_v37  ;;  %vm3856_vm12 = vcmp.ge.s32.totalorder %v12246_v32, 1  ;;  %v2572_v12 = vadd.f32 1.0, %v2320_v16  ;;  %v16211_v59 = vld [vmem:[#allocation436_spill] sm:$0xff] }
 0x36f   : > { %v4254_v39 = vmax.f32 %v4170_v23, 0.0  ;;  %v2821_v41 = vsub.f32 %v2653_v35, %v16198_v28  ;;  %v3073_v24 = vsub.f32 %v2905_v18, %v16199_v25  ;;  %v636_v2 = vsub.f32 %v12281_v15, %v12215_v34  ;;  %v16238_v25 = vld [vmem:[#allocation116_spill] sm:$0xff] }
 0x370   : > { %v3746_v13 = vadd.f32 %v16202_v33, %v3578_v4  ;;  %vm3898_vm15 = vcmp.lt.s32.totalorder %v12246_v32, 96  ;;  %v2656_v20 = vmul.f32 %v2572_v12, %v16203_v62  ;;  %v2908_v42 = vmul.f32 %v2572_v12, %v16204_v7  ;;  %v16216_v12 = vld [vmem:[#allocation310_spill] sm:$0xff] }
 0x371   : > { %v4445_v34 = vadd.f32 %v12206_v31, %v4339_v50  ;;  %v3409_v48 = vmul.f32 %v2821_v41, %v2401_v1  ;;  %v3493_v27 = vmul.f32 %v3073_v24, %v718_v5  ;;  %v720_v21 = vsub.f32 %v12299_v53, %v12233_v9  ;;  %vm12364_vm7 = vmand %vm3856_vm12, %vm3898_vm15  ;;  %v16219_v24 = vld [vmem:[#allocation112_spill] sm:$0xff]  ;;  %v12386_v31 = vld [vmem:[%s5873_s25 + $0x400] sm:$0xff] }
 0x372   : > { %v4338_v46 = vsel %vm12274_vm13, %v4254_v39, 0.0  ;;  %v4173_v57 = vsub.f32 0.0, %v3746_v13  ;;  %v2824_v22 = vsub.f32 %v2656_v20, %v16205_v54  ;;  %v3076_v3 = vsub.f32 %v2908_v42, %v16206_v58  ;;  %v12356_v39 = vld [vmem:[%s5873_s25 + $0x160] sm:$0xff]  ;;  %v16221_v42 = vld [vmem:[#allocation117_spill] sm:$0xff]  ;;  %vm12379_vm8 = vmand %vm12364_vm7, %vm4047_vm6 }
 0x373   : > { %v3577_v5 = vsub.f32 %v3409_v48, %v3493_v27  ;;  %v2403_v9 = vadd.f32 1.0, %v636_v2  ;;  %v2319_v10 = vsub.f32 %v5373_v49, %v2026_v11  ;;  %v639_v0 = vsub.f32 %v12317_v47, %v12239_v45  ;;  %v5375_v45 = vld [vmem:[%s5873_s25 + $0x6a8] sm:$0xff]  ;;  %v5378_v13 = vld [vmem:[%s5873_s25 + $0x6a0] sm:$0xff]  ;;  %vm12403_vm9 = vmand %vm12364_vm7, %vm3961_vm3 }
 0x374   : > { %v4257_v30 = vmax.f32 %v4173_v57, 0.0  ;;  %v3412_v19 = vmul.f32 %v2824_v22, %v2404_v38  ;;  %v3496_v26 = vmul.f32 %v3076_v3, %v721_v40  ;;  %v12322_v8 = vadd.s32 22, %v16093_v55  ;;  %v12338_v40 = vld [vmem:[%s5873_s25 + $0x408] sm:$0xff]  ;;  %v16213_v38 = vld [vmem:[#allocation454_spill] sm:$0xff]  ;;  %vm12434_vm11 = vmand %vm12403_vm9, %vm4047_vm6 }
 0x375   : > { %v4404_v56 = vadd.f32 %v12219_v43, %v4338_v46  ;;  %v3745_v36 = vadd.f32 %v16211_v59, %v3577_v5  ;;  %v2571_v16 = vadd.f32 1.0, %v2319_v10  ;;  %v2322_v60 = vsub.f32 %v5375_v45, %v2032_v6  ;;  %v16222_v11 = vld [vmem:[#allocation462_spill] sm:$0xff]  ;;  %v16225_v22 = vld [vmem:[#allocation443_spill] sm:$0xff]  ;;  %v12462_v54 = vld [vmem:[%s5873_s25 + $0x410] sm:$0xff] }
 0x376   : > { %v4341_v51 = vsel %vm12311_vm0, %v4257_v30, 0.0  ;;  %v3580_v37 = vsub.f32 %v3412_v19, %v3496_v26  ;;  %v723_v43 = vsub.f32 %v12338_v40, %v12263_v52  ;;  %v2406_v23 = vadd.f32 1.0, %v639_v0  ;;  %v16226_v3 = vld [vmem:[#allocation314_spill] sm:$0xff]  ;;  %v16227_v49 = vld [vmem:[#allocation119_spill] sm:$0xff]  ;;  %v2036_v19 = vpop.permute.xlu1 %2035 }
 0x377   : > { %v4172_v35 = vsub.f32 0.0, %v3745_v36  ;;  %v2655_v18 = vmul.f32 %v2571_v16, %v16212_v61  ;;  %v2907_v50 = vmul.f32 %v2571_v16, %v16213_v38  ;;  %vm3857_vm2 = vcmp.ge.s32.totalorder %v12322_v8, 1  ;;  %v16228_v0 = vld [vmem:[#allocation463_spill] sm:$0xff]  ;;  %v12393_v36 = vld [vmem:[%s5873_s25 + $0x178] sm:$0xff] }
 0x378   : > { %v3748_v52 = vadd.f32 %v16216_v12, %v3580_v37  ;;  %vm3899_vm5 = vcmp.lt.s32.totalorder %v12322_v8, 96  ;;  %v2574_v17 = vadd.f32 1.0, %v2322_v60  ;;  %v638_v28 = vsub.f32 %v12356_v39, %v12281_v15  ;;  %v5388_v45 = vld [vmem:[%s5873_s25 + $0x6c8] sm:$0xff] }
 0x379   : > { %v4256_v41 = vmax.f32 %v4172_v35, 0.0  ;;  %v2823_v2 = vsub.f32 %v2655_v18, %v16219_v24  ;;  %v3075_v33 = vsub.f32 %v2907_v50, %v16220_v29  ;;  %v2321_v62 = vsub.f32 %v5378_v13, %v2030_v63  ;;  %v5382_v18 = vld [vmem:[%s5873_s25 + $0x6b8] sm:$0xff]  ;;  %vm12421_vm10 = vmand %vm3857_vm2, %vm3899_vm5 }
 0x37a   : > { %v4446_v20 = vadd.f32 %v4445_v34, %v4341_v51  ;;  %v4175_v7 = vsub.f32 0.0, %v3748_v52  ;;  %v2658_v15 = vmul.f32 %v2574_v17, %v16221_v42  ;;  %v2910_v48 = vmul.f32 %v2574_v17, %v16222_v11  ;;  %v16232_v51 = vld [vmem:[#allocation114_spill] sm:$0xff]  ;;  %v12426_v17 = vld [vmem:[%s5873_s25 + $0x170] sm:$0xff]  ;;  %vm12443_vm14 = vmand %vm12421_vm10, %vm4047_vm6 }
 0x37b   : > { %v4340_v32 = vsel %vm12349_vm4, %v4256_v41, 0.0  ;;  %v3411_v27 = vmul.f32 %v2823_v2, %v2403_v9  ;;  %v3495_v46 = vmul.f32 %v3075_v33, %v720_v21  ;;  %v2573_v57 = vadd.f32 1.0, %v2321_v62  ;;  %v16242_v42 = vld [vmem:[#allocation471_spill] sm:$0xff]  ;;  %v5384_v11 = vld [vmem:[%s5873_s25 + $0x6b0] sm:$0xff]  ;;  %vm12456_vm15 = vmand %vm12421_vm10, %vm3961_vm3 }
 0x37c   : > { %v4259_v34 = vmax.f32 %v4175_v7, 0.0  ;;  %v2826_v58 = vsub.f32 %v2658_v15, %v16225_v22  ;;  %v3078_v6 = vsub.f32 %v2910_v48, %v16226_v3  ;;  %v722_v21 = vsub.f32 %v12386_v31, %v12299_v53  ;;  %vm12484_vm0 = vmand %vm12456_vm15, %vm4047_vm6 }
 0x37d   : > { %v3579_v5 = vsub.f32 %v3411_v27, %v3495_v46  ;;  %v2405_v9 = vadd.f32 1.0, %v638_v28  ;;  %v2657_v10 = vmul.f32 %v2573_v57, %v16227_v49  ;;  %v2909_v30 = vmul.f32 %v2573_v57, %v16228_v0  ;;  %v2034_v28 = vpop.permute.xlu0 %2033  ;;  %v16245_v46 = vld [vmem:[#allocation317_spill] sm:$0xff]  ;;  %v5386_v49 = vld [vmem:[%s5873_s25 + $0x188] sm:$0xff] }
 0x37e   : > { %v4405_v26 = vadd.f32 %v4404_v56, %v4340_v32  ;;  %v3414_v1 = vmul.f32 %v2826_v58, %v2406_v23  ;;  %v3498_v59 = vmul.f32 %v3078_v6, %v723_v43  ;;  %v641_v16 = vsub.f32 %v12393_v36, %v12317_v47  ;;  %v16231_v56 = vld [vmem:[#allocation315_spill] sm:$0xff]  ;;  %v16233_v43 = vld [vmem:[#allocation316_spill] sm:$0xff]  ;;  %v12411_v47 = vld [vmem:[%s5873_s25 + $0x418] sm:$0xff]  ;;  %v2040_v58 = vpop.permute.xlu1 %2039 }
 0x37f   : > { %v4343_v53 = vsel %vm12379_vm8, %v4259_v34, 0.0  ;;  %v3747_v60 = vadd.f32 %v16231_v56, %v3579_v5  ;;  %v2825_v37 = vsub.f32 %v2657_v10, %v16232_v51  ;;  %v3077_v23 = vsub.f32 %v2909_v30, %v16233_v43  ;;  %v16246_v6 = vld [vmem:[#allocation118_spill] sm:$0xff]  ;;  %v16247_v5 = vld [vmem:[#allocation321_spill] sm:$0xff] }
 0x380   : > { %v3582_v63 = vsub.f32 %v3414_v1, %v3498_v59  ;;  %v725_v35 = vsub.f32 %v12411_v47, %v12338_v40  ;;  %v3816_v61 = vadd.s32 23, %v16093_v55  ;;  %v2324_v38 = vsub.f32 %v5382_v18, %v2036_v19  ;;  %v12471_v19 = vld [vmem:[%s5873_s25 + $0x428] sm:$0xff] }
 0x381   : > { %v4174_v50 = vsub.f32 0.0, %v3747_v60  ;;  %v3413_v12 = vmul.f32 %v2825_v37, %v2405_v9  ;;  %v3497_v52 = vmul.f32 %v3077_v23, %v722_v21  ;;  %v640_v40 = vsub.f32 %v12426_v17, %v12356_v39  ;;  %v16250_v37 = vld [vmem:[#allocation123_spill] sm:$0xff]  ;;  %v16251_v23 = vld [vmem:[#allocation472_spill] sm:$0xff] }
 0x382   : > { %v4447_v41 = vadd.f32 %v4446_v20, %v4343_v53  ;;  %v3750_v24 = vadd.f32 %v16238_v25, %v3582_v63  ;;  %v2408_v2 = vadd.f32 1.0, %v641_v16  ;;  %v2576_v29 = vadd.f32 1.0, %v2324_v38  ;;  %v16241_v20 = vld [vmem:[#allocation122_spill] sm:$0xff]  ;;  %v16257_v25 = vld [vmem:[#allocation125_spill] sm:$0xff] }
 0x383   : > { %v4258_v33 = vmax.f32 %v4174_v50, 0.0  ;;  %v3581_v13 = vsub.f32 %v3413_v12, %v3497_v52  ;;  %vm3858_vm12 = vcmp.ge.s32.totalorder %v3816_v61, 1  ;;  %vm3900_vm13 = vcmp.lt.s32.totalorder %v3816_v61, 96  ;;  %v16252_v12 = vld [vmem:[#allocation447_spill] sm:$0xff] }
 0x384   : > { %v4177_v62 = vsub.f32 0.0, %v3750_v24  ;;  %v2660_v7 = vmul.f32 %v2576_v29, %v16241_v20  ;;  %v2912_v15 = vmul.f32 %v2576_v29, %v16242_v42  ;;  %v2323_v48 = vsub.f32 %v5384_v11, %v2034_v28  ;;  %vm12498_vm2 = vmand %vm3858_vm12, %vm3900_vm13 }
 0x385   : > { %v4342_v32 = vsel %vm12434_vm11, %v4258_v33, 0.0  ;;  %v3749_v57 = vadd.f32 %v16245_v46, %v3581_v13  ;;  %v724_v34 = vsub.f32 %v12462_v54, %v12386_v31  ;;  %v2407_v22 = vadd.f32 1.0, %v640_v40  ;;  %v16253_v40 = vld [vmem:[#allocation326_spill] sm:$0xff]  ;;  %vm12517_vm5 = vmand %vm12498_vm2, %vm4047_vm6 }
 0x386   : > { %v4261_v3 = vmax.f32 %v4177_v62, 0.0  ;;  %v2828_v21 = vsub.f32 %v2660_v7, %v16246_v6  ;;  %v3080_v9 = vsub.f32 %v2912_v15, %v16247_v5  ;;  %v643_v10 = vsub.f32 %v5386_v49, %v12393_v36  ;;  %v5389_v62 = vld [vmem:[%s5873_s25 + $0x180] sm:$0xff]  ;;  %v16259_v7 = vld [vmem:[#allocation325_spill] sm:$0xff]  ;;  %vm12537_vm7 = vmand %vm12498_vm2, %vm3961_vm3 }
 0x387   : > { %v4176_v0 = vsub.f32 0.0, %v3749_v57  ;;  %v2575_v30 = vadd.f32 1.0, %v2323_v48  ;;  %v727_v1 = vsub.f32 %v12471_v19, %v12411_v47  ;;  %v12476_v31 = vadd.s32 24, %v16093_v55  ;;  %v16260_v15 = vld [vmem:[#allocation333_spill] sm:$0xff]  ;;  %v5390_v48 = vld [vmem:[%s5873_s25 + $0x6c0] sm:$0xff]  ;;  %vm12555_vm8 = vmand %vm12537_vm7, %vm4047_vm6 }
 0x388   : > { %v4345_v59 = vsel %vm12443_vm14, %v4261_v3, 0.0  ;;  %v3416_v36 = vmul.f32 %v2828_v21, %v2408_v2  ;;  %v3500_v53 = vmul.f32 %v3080_v9, %v725_v35  ;;  %v2326_v56 = vsub.f32 %v5388_v45, %v2040_v58  ;;  %v16258_v2 = vld [vmem:[#allocation480_spill] sm:$0xff]  ;;  %v12522_v57 = vld [vmem:[%s5873_s25 + $0x420] sm:$0xff]  ;;  %v16266_v45 = vld [vmem:[#allocation127_spill] sm:$0xff] }
 0x389   : > { %v4406_v60 = vadd.f32 %v4405_v26, %v4342_v32  ;;  %v4260_v51 = vmax.f32 %v4176_v0, 0.0  ;;  %v2659_v43 = vmul.f32 %v2575_v30, %v16250_v37  ;;  %v2911_v63 = vmul.f32 %v2575_v30, %v16251_v23  ;;  %v2038_v26 = vpop.permute.xlu0 %2037  ;;  %v12543_v30 = vld [vmem:[%s5873_s25 + $0x438] sm:$0xff] }
 0x38a   : > { %v4448_v47 = vadd.f32 %v4447_v41, %v4345_v59  ;;  %v3584_v18 = vsub.f32 %v3416_v36, %v3500_v53  ;;  %v2410_v38 = vadd.f32 1.0, %v643_v10  ;;  %v2578_v50 = vadd.f32 1.0, %v2326_v56  ;;  %v16256_v41 = vld [vmem:[#allocation120_spill] sm:$0xff]  ;;  %v16265_v10 = vld [vmem:[#allocation121_spill] sm:$0xff] }
 0x38b   : > { %v4344_v4 = vsel %vm12484_vm0, %v4260_v51, 0.0  ;;  %v2827_v52 = vsub.f32 %v2659_v43, %v16252_v12  ;;  %v3079_v35 = vsub.f32 %v2911_v63, %v16253_v40  ;;  %vm3859_vm1 = vcmp.ge.s32.totalorder %v12476_v31, 1  ;;  %v5394_v43 = vld [vmem:[%s5873_s25 + $0x6d8] sm:$0xff]  ;;  %v16274_v12 = vld [vmem:[#allocation335_spill] sm:$0xff]  ;;  %v5395_v40 = vld [vmem:[%s5873_s25 + $0x190] sm:$0xff] }
 0x38c   : > { %v3752_v8 = vadd.f32 %v16256_v41, %v3584_v18  ;;  %vm3901_vm4 = vcmp.lt.s32.totalorder %v12476_v31, 96  ;;  %v2662_v24 = vmul.f32 %v2578_v50, %v16257_v25  ;;  %v2914_v29 = vmul.f32 %v2578_v50, %v16258_v2  ;;  %v16272_v18 = vld [vmem:[#allocation124_spill] sm:$0xff]  ;;  %v16273_v50 = vld [vmem:[#allocation327_spill] sm:$0xff] }
 0x38d   : > { %v12506_v33 = vadd.f32 %v4406_v60, %v4344_v4  ;;  %v3415_v13 = vmul.f32 %v2827_v52, %v2407_v22  ;;  %v3499_v39 = vmul.f32 %v3079_v35, %v724_v34  ;;  %v642_v61 = vsub.f32 %v5389_v62, %v12426_v17  ;;  %v12527_v34 = vld [vmem:[%s5873_s25 + $0x198] sm:$0xff]  ;;  %v2042_v51 = vpop.permute.xlu0 %2041  ;;  %vm12566_vm11 = vmand %vm3859_vm1, %vm3901_vm4 }
 0x38e   : > { %v4179_v20 = vsub.f32 0.0, %v3752_v8  ;;  %v2830_v42 = vsub.f32 %v2662_v24, %v16259_v7  ;;  %v3082_v11 = vsub.f32 %v2914_v29, %v16260_v15  ;;  %v2325_v32 = vsub.f32 %v5390_v48, %v2038_v26  ;;  %v5396_v8 = vld [vmem:[%s5873_s25 + $0x6d0] sm:$0xff]  ;;  %vm12586_vm12 = vmand %vm12566_vm11, %vm4047_vm6 }
 0x38f   : > { %v3583_v46 = vsub.f32 %v3415_v13, %v3499_v39  ;;  %v726_v17 = vsub.f32 %v12522_v57, %v12462_v54  ;;  %v645_v22 = vsub.f32 %v12527_v34, %v5386_v49  ;;  %v12531_v58 = vadd.s32 25, %v16093_v55  ;;  %v2044_v54 = vpop.permute.xlu1 %2043  ;;  %v12576_v29 = vld [vmem:[%s5873_s25 + $0x430] sm:$0xff]  ;;  %vm4011_vm13 = vmand %vm12566_vm11, %vm3961_vm3 }
 0x390   : > { %v4263_v3 = vmax.f32 %v4179_v20, 0.0  ;;  %v3418_v21 = vmul.f32 %v2830_v42, %v2410_v38  ;;  %v3502_v5 = vmul.f32 %v3082_v11, %v727_v1  ;;  %v2577_v9 = vadd.f32 1.0, %v2325_v32  ;;  %v16267_v1 = vld [vmem:[#allocation481_spill] sm:$0xff]  ;;  %v16278_v20 = vld [vmem:[#allocation136_spill] sm:$0xff]  ;;  %v12593_v32 = vld [vmem:[%s5873_s25 + $0x1a8] sm:$0xff] }
 0x391   : > { %v3751_v0 = vadd.f32 %v16265_v10, %v3583_v46  ;;  %v2409_v49 = vadd.f32 1.0, %v642_v61  ;;  %v729_v59 = vsub.f32 %v12543_v30, %v12471_v19  ;;  %v2412_v16 = vadd.f32 1.0, %v645_v22  ;;  %v16279_v46 = vld [vmem:[#allocation334_spill] sm:$0xff]  ;;  %vm12621_vm14 = vmand %vm4011_vm13, %vm4047_vm6 }
 0x392   : > { %v4347_v36 = vsel %vm12517_vm5, %v4263_v3, 0.0  ;;  %v3586_v53 = vsub.f32 %v3418_v21, %v3502_v5  ;;  %v2661_v56 = vmul.f32 %v2577_v9, %v16266_v45  ;;  %v2913_v60 = vmul.f32 %v2577_v9, %v16267_v1  ;;  %v16281_v3 = vld [vmem:[#allocation135_spill] sm:$0xff]  ;;  %v16282_v21 = vld [vmem:[#allocation485_spill] sm:$0xff]  ;;  %v16283_v10 = vld [vmem:[#allocation126_spill] sm:$0xff] }
 0x393   : > { %v4178_v19 = vsub.f32 0.0, %v3751_v0  ;;  %vm3860_vm9 = vcmp.ge.s32.totalorder %v12531_v58, 1  ;;  %vm3902_vm10 = vcmp.lt.s32.totalorder %v12531_v58, 96  ;;  %v2328_v23 = vsub.f32 %v5394_v43, %v2044_v54  ;;  %v16284_v45 = vld [vmem:[#allocation465_spill] sm:$0xff] }
 0x394   : > { %v3754_v38 = vadd.f32 %v16272_v18, %v3586_v53  ;;  %v2829_v4 = vsub.f32 %v2661_v56, %v16273_v50  ;;  %v3081_v52 = vsub.f32 %v2913_v60, %v16274_v12  ;;  %v644_v35 = vsub.f32 %v5395_v40, %v5389_v62  ;;  %v16277_v62 = vld [vmem:[#allocation131_spill] sm:$0xff]  ;;  %v2046_v60 = vpop.permute.xlu0 %2045  ;;  %v12627_v50 = vld [vmem:[%s5873_s25 + $0x1a0] sm:$0xff]  ;;  %vm12634_vm15 = vmand %vm3860_vm9, %vm3902_vm10 }
 0x395   : > { %v4449_v26 = vadd.f32 %v4448_v47, %v4347_v36  ;;  %v4262_v28 = vmax.f32 %v4178_v19, 0.0  ;;  %v2580_v41 = vadd.f32 1.0, %v2328_v23  ;;  %v2327_v25 = vsub.f32 %v5396_v8, %v2042_v51  ;;  %v12614_v56 = vld [vmem:[%s5873_s25 + $0x448] sm:$0xff]  ;;  %vm12658_vm2 = vmand %vm12634_vm15, %vm4047_vm6  ;;  %v12729_v47 = vld [vmem:[%s5873_s25 + $0x450] sm:$0xff] }
 0x396   : > { %v4181_v24 = vsub.f32 0.0, %v3754_v38  ;;  %v3417_v31 = vmul.f32 %v2829_v4, %v2409_v49  ;;  %v3501_v2 = vmul.f32 %v3081_v52, %v726_v17  ;;  %v728_v13 = vsub.f32 %v12576_v29, %v12522_v57  ;;  %v16280_v17 = vld [vmem:[#allocation340_spill] sm:$0xff]  ;;  %v2048_v49 = vpop.permute.xlu1 %2047  ;;  %v16285_v19 = vld [vmem:[#allocation343_spill] sm:$0xff]  ;;  %vm12668_vm4 = vmand %vm12634_vm15, %vm3961_vm3 }
 0x397   : > { %v4346_v39 = vsel %vm12555_vm8, %v4262_v28, 0.0  ;;  %v2664_v61 = vmul.f32 %v2580_v41, %v16277_v62  ;;  %v2916_v7 = vmul.f32 %v2580_v41, %v16278_v20  ;;  %v2579_v42 = vadd.f32 1.0, %v2327_v25  ;;  %v5400_v18 = vld [vmem:[%s5873_s25 + $0x6e8] sm:$0xff]  ;;  %v16290_v28 = vld [vmem:[#allocation466_spill] sm:$0xff]  ;;  %v16293_v62 = vld [vmem:[#allocation137_spill] sm:$0xff] }
 0x398   : > { %v4265_v15 = vmax.f32 %v4181_v24, 0.0  ;;  %v3585_v11 = vsub.f32 %v3417_v31, %v3501_v2  ;;  %v2411_v48 = vadd.f32 1.0, %v644_v35  ;;  %v647_v27 = vsub.f32 %v12593_v32, %v12527_v34  ;;  %v5402_v35 = vld [vmem:[%s5873_s25 + $0x6e0] sm:$0xff]  ;;  %v12648_v2 = vld [vmem:[%s5873_s25 + $0x1b8] sm:$0xff]  ;;  %v16294_v20 = vld [vmem:[#allocation487_spill] sm:$0xff] }
 0x399   : > { %v2832_v57 = vsub.f32 %v2664_v61, %v16279_v46  ;;  %v3084_v22 = vsub.f32 %v2916_v7, %v16280_v17  ;;  %v2663_v6 = vmul.f32 %v2579_v42, %v16281_v3  ;;  %v2915_v5 = vmul.f32 %v2579_v42, %v16282_v21  ;;  %v16299_v46 = vld [vmem:[#allocation489_spill] sm:$0xff]  ;;  %vm12694_vm5 = vmand %vm12668_vm4, %vm4047_vm6 }
 0x39a   : > { %v4408_v9 = vadd.f32 %v12506_v33, %v4346_v39  ;;  %v4349_v54 = vsel %vm12586_vm12, %v4265_v15, 0.0  ;;  %v3753_v34 = vadd.f32 %v16283_v10, %v3585_v11  ;;  %v12610_v0 = vadd.s32 26, %v16093_v55  ;;  %v2052_v42 = vpop.permute.xlu1 %2051  ;;  %v16297_v11 = vld [vmem:[#allocation470_spill] sm:$0xff]  ;;  %v12676_v17 = vld [vmem:[%s5873_s25 + $0x458] sm:$0xff] }
 0x39b   : > { %v3420_v36 = vmul.f32 %v2832_v57, %v2412_v16  ;;  %v3504_v53 = vmul.f32 %v3084_v22, %v729_v59  ;;  %v2831_v33 = vsub.f32 %v2663_v6, %v16284_v45  ;;  %v731_v1 = vsub.f32 %v12614_v56, %v12543_v30  ;;  %v16300_v6 = vld [vmem:[#allocation129_spill] sm:$0xff] }
 0x39c   : > { %v4450_v51 = vadd.f32 %v4449_v26, %v4349_v54  ;;  %v4180_v37 = vsub.f32 0.0, %v3753_v34  ;;  %v3083_v43 = vsub.f32 %v2915_v5, %v16285_v19  ;;  %v2414_v23 = vadd.f32 1.0, %v647_v27  ;;  %v16301_v5 = vld [vmem:[#allocation350_spill] sm:$0xff] }
 0x39d   : > { %v3588_v59 = vsub.f32 %v3420_v36, %v3504_v53  ;;  %v3419_v16 = vmul.f32 %v2831_v33, %v2411_v48  ;;  %v2330_v38 = vsub.f32 %v5400_v18, %v2048_v49  ;;  %v646_v30 = vsub.f32 %v12627_v50, %v5395_v40  ;;  %v12643_v40 = vld [vmem:[%s5873_s25 + $0x440] sm:$0xff]  ;;  %v16302_v49 = vld [vmem:[#allocation344_spill] sm:$0xff]  ;;  %v5406_v33 = vld [vmem:[%s5873_s25 + $0x6f8] sm:$0xff] }
 0x39e   : > { %v4264_v4 = vmax.f32 %v4180_v37, 0.0  ;;  %v3503_v52 = vmul.f32 %v3083_v43, %v728_v13  ;;  %vm3861_vm0 = vcmp.ge.s32.totalorder %v12610_v0, 1  ;;  %v2329_v26 = vsub.f32 %v5402_v35, %v2046_v60  ;;  %v16303_v53 = vld [vmem:[#allocation352_spill] sm:$0xff] }
 0x39f   : > { %v3756_v41 = vadd.f32 %v16290_v28, %v3588_v59  ;;  %vm3903_vm1 = vcmp.lt.s32.totalorder %v12610_v0, 96  ;;  %v2582_v8 = vadd.f32 1.0, %v2330_v38  ;;  %v730_v25 = vsub.f32 %v12643_v40, %v12576_v29  ;;  %v2050_v59 = vpop.permute.xlu0 %2049  ;;  %v12710_v35 = vld [vmem:[%s5873_s25 + $0x1b0] sm:$0xff]  ;;  %v16308_v28 = vld [vmem:[#allocation351_spill] sm:$0xff] }
 0x3a0   : > { %v3587_v58 = vsub.f32 %v3419_v16, %v3503_v52  ;;  %v2413_v24 = vadd.f32 1.0, %v646_v30  ;;  %v2581_v31 = vadd.f32 1.0, %v2329_v26  ;;  %v649_v13 = vsub.f32 %v12648_v2, %v12593_v32  ;;  %v16298_v32 = vld [vmem:[#allocation143_spill] sm:$0xff]  ;;  %vm12702_vm7 = vmand %vm3861_vm0, %vm3903_vm1  ;;  %v5408_v0 = vld [vmem:[%s5873_s25 + $0x6f0] sm:$0xff] }
 0x3a1   : > { %v4348_v39 = vsel %vm12621_vm14, %v4264_v4, 0.0  ;;  %v4183_v29 = vsub.f32 0.0, %v3756_v41  ;;  %v2666_v61 = vmul.f32 %v2582_v8, %v16293_v62  ;;  %v2918_v7 = vmul.f32 %v2582_v8, %v16294_v20  ;;  %v16309_v8 = vld [vmem:[#allocation146_spill] sm:$0xff]  ;;  %vm12723_vm10 = vmand %vm12702_vm7, %vm3961_vm3  ;;  %v16314_v20 = vld [vmem:[#allocation132_spill] sm:$0xff] }
 0x3a2   : > { %v3755_v48 = vadd.f32 %v16297_v11, %v3587_v58  ;;  %v2665_v27 = vmul.f32 %v2581_v31, %v16298_v32  ;;  %v2917_v57 = vmul.f32 %v2581_v31, %v16299_v46  ;;  %v733_v22 = vsub.f32 %v12676_v17, %v12614_v56  ;;  %v16310_v58 = vld [vmem:[#allocation148_spill] sm:$0xff]  ;;  %v12736_v11 = vld [vmem:[%s5873_s25 + $0x1c8] sm:$0xff]  ;;  %v2056_v32 = vpop.permute.xlu1 %2055  ;;  %vm12744_vm11 = vmand %vm12702_vm7, %vm4047_vm6 }
 0x3a3   : > { %v4267_v3 = vmax.f32 %v4183_v29, 0.0  ;;  %v2834_v21 = vsub.f32 %v2666_v61, %v16300_v6  ;;  %v3086_v54 = vsub.f32 %v2918_v7, %v16301_v5  ;;  %v12683_v10 = vadd.s32 27, %v16093_v55  ;;  %v16319_v6 = vld [vmem:[#allocation150_spill] sm:$0xff]  ;;  %vm12754_vm12 = vmand %vm12723_vm10, %vm4047_vm6 }
 0x3a4   : > { %v4182_v34 = vsub.f32 0.0, %v3755_v48  ;;  %v2833_v36 = vsub.f32 %v2665_v27, %v16302_v49  ;;  %v3085_v45 = vsub.f32 %v2917_v57, %v16303_v53  ;;  %v2332_v60 = vsub.f32 %v5406_v33, %v2052_v42  ;;  %v16315_v42 = vld [vmem:[#allocation357_spill] sm:$0xff]  ;;  %v16322_v53 = vld [vmem:[#allocation482_spill] sm:$0xff] }
 0x3a5   : > { %v4409_v37 = vadd.f32 %v4408_v9, %v4348_v39  ;;  %v4351_v19 = vsel %vm12658_vm2, %v4267_v3, 0.0  ;;  %v3422_v43 = vmul.f32 %v2834_v21, %v2414_v23  ;;  %v3506_v63 = vmul.f32 %v3086_v54, %v731_v1  ;;  %v16318_v57 = vld [vmem:[#allocation157_spill] sm:$0xff]  ;;  %v16323_v33 = vld [vmem:[#allocation362_spill] sm:$0xff] }
 0x3a6   : > { %v4266_v16 = vmax.f32 %v4182_v34, 0.0  ;;  %v3421_v18 = vmul.f32 %v2833_v36, %v2413_v24  ;;  %v3505_v38 = vmul.f32 %v3085_v45, %v730_v25  ;;  %v2416_v9 = vadd.f32 1.0, %v649_v13 }
 0x3a7   : > { %v4451_v30 = vadd.f32 %v4450_v51, %v4351_v19  ;;  %v3590_v12 = vsub.f32 %v3422_v43, %v3506_v63  ;;  %vm3862_vm8 = vcmp.ge.s32.totalorder %v12683_v10, 1  ;;  %v2584_v23 = vadd.f32 1.0, %v2332_v60  ;;  %v12767_v63 = vld [vmem:[%s5873_s25 + $0x468] sm:$0xff] }
 0x3a8   : > { %v4350_v1 = vsel %vm12694_vm5, %v4266_v16, 0.0  ;;  %v3589_v52 = vsub.f32 %v3421_v18, %v3505_v38  ;;  %v648_v51 = vsub.f32 %v12710_v35, %v12627_v50  ;;  %v2331_v26 = vsub.f32 %v5408_v0, %v2050_v59  ;;  %v16313_v50 = vld [vmem:[#allocation353_spill] sm:$0xff]  ;;  %v2054_v16 = vpop.permute.xlu0 %2053 }
 0x3a9   : > { %v3758_v41 = vadd.f32 %v16308_v28, %v3590_v12  ;;  %vm3904_vm9 = vcmp.lt.s32.totalorder %v12683_v10, 96  ;;  %v2668_v25 = vmul.f32 %v2584_v23, %v16309_v8  ;;  %v2920_v24 = vmul.f32 %v2584_v23, %v16310_v58 }
 0x3aa   : > { %v4410_v31 = vadd.f32 %v4409_v37, %v4350_v1  ;;  %v3757_v39 = vadd.f32 %v16313_v50, %v3589_v52  ;;  %v732_v29 = vsub.f32 %v12729_v47, %v12643_v40  ;;  %v2583_v62 = vadd.f32 1.0, %v2331_v26  ;;  %v5411_v37 = vld [vmem:[%s5873_s25 + $0x708] sm:$0xff]  ;;  %vm12777_vm13 = vmand %vm3862_vm8, %vm3904_vm9  ;;  %v12785_v1 = vld [vmem:[%s5873_s25 + $0x1c0] sm:$0xff] }
 0x3ab   : > { %v4185_v61 = vsub.f32 0.0, %v3758_v41  ;;  %v2836_v7 = vsub.f32 %v2668_v25, %v16314_v20  ;;  %v3088_v15 = vsub.f32 %v2920_v24, %v16315_v42  ;;  %v651_v48 = vsub.f32 %v12736_v11, %v12648_v2  ;;  %v5414_v26 = vld [vmem:[%s5873_s25 + $0x700] sm:$0xff]  ;;  %vm12794_vm0 = vmand %vm12777_vm13, %vm4047_vm6  ;;  %v16330_v24 = vld [vmem:[#allocation156_spill] sm:$0xff] }
 0x3ac   : > { %v4184_v40 = vsub.f32 0.0, %v3757_v39  ;;  %v2415_v46 = vadd.f32 1.0, %v648_v51  ;;  %v2667_v3 = vmul.f32 %v2583_v62, %v16318_v57  ;;  %v2919_v21 = vmul.f32 %v2583_v62, %v16319_v6  ;;  %v16329_v25 = vld [vmem:[#allocation158_spill] sm:$0xff]  ;;  %vm12809_vm1 = vmand %vm12777_vm13, %vm3961_vm3  ;;  %v12815_v20 = vld [vmem:[%s5873_s25 + $0x1d8] sm:$0xff] }
 0x3ad   : > { %v4269_v5 = vmax.f32 %v4185_v61, 0.0  ;;  %v3424_v54 = vmul.f32 %v2836_v7, %v2416_v9  ;;  %v3508_v34 = vmul.f32 %v3088_v15, %v733_v22  ;;  %v12759_v49 = vadd.s32 28, %v16093_v55  ;;  %v16333_v39 = vld [vmem:[#allocation490_spill] sm:$0xff]  ;;  %v16334_v42 = vld [vmem:[#allocation147_spill] sm:$0xff]  ;;  %vm12833_vm2 = vmand %vm12809_vm1, %vm4047_vm6 }
 0x3ae   : > { %v4268_v36 = vmax.f32 %v4184_v40, 0.0  ;;  %v2835_v45 = vsub.f32 %v2667_v3, %v16322_v53  ;;  %v3087_v60 = vsub.f32 %v2919_v21, %v16323_v33  ;;  %v2334_v19 = vsub.f32 %v5411_v37, %v2056_v32  ;;  %v16337_v3 = vld [vmem:[#allocation492_spill] sm:$0xff]  ;;  %v5417_v21 = vld [vmem:[%s5873_s25 + $0x718] sm:$0xff] }
 0x3af   : > { %v4353_v56 = vsel %vm12744_vm11, %v4269_v5, 0.0  ;;  %v3592_v43 = vsub.f32 %v3424_v54, %v3508_v34  ;;  %v735_v22 = vsub.f32 %v12767_v63, %v12676_v17  ;;  %v2418_v59 = vadd.f32 1.0, %v651_v48  ;;  %v16326_v17 = vld [vmem:[#allocation484_spill] sm:$0xff]  ;;  %v16335_v48 = vld [vmem:[#allocation367_spill] sm:$0xff]  ;;  %v16341_v37 = vld [vmem:[#allocation369_spill] sm:$0xff] }
 0x3b0   : > { %v4352_v18 = vsel %vm12754_vm12, %v4268_v36, 0.0  ;;  %v3423_v9 = vmul.f32 %v2835_v45, %v2415_v46  ;;  %v3507_v4 = vmul.f32 %v3087_v60, %v732_v29  ;;  %vm3863_vm14 = vcmp.ge.s32.totalorder %v12759_v49, 1  ;;  %v16336_v46 = vld [vmem:[#allocation163_spill] sm:$0xff]  ;;  %v12838_v36 = vld [vmem:[%s5873_s25 + $0x478] sm:$0xff]  ;;  %v16340_v33 = vld [vmem:[#allocation368_spill] sm:$0xff] }
 0x3b1   : > { %v3760_v12 = vadd.f32 %v16326_v17, %v3592_v43  ;;  %vm3905_vm15 = vcmp.lt.s32.totalorder %v12759_v49, 96  ;;  %v2586_v23 = vadd.f32 1.0, %v2334_v19  ;;  %v650_v52 = vsub.f32 %v12785_v1, %v12710_v35  ;;  %v12801_v35 = vld [vmem:[%s5873_s25 + $0x460] sm:$0xff] }
 0x3b2   : > { %v4452_v10 = vadd.f32 %v4451_v30, %v4353_v56  ;;  %v4411_v51 = vadd.f32 %v4410_v31, %v4352_v18  ;;  %v3591_v0 = vsub.f32 %v3423_v9, %v3507_v4  ;;  %v2333_v28 = vsub.f32 %v5414_v26, %v2054_v16  ;;  %v2060_v31 = vpop.permute.xlu1 %2059  ;;  %v12850_v9 = vld [vmem:[%s5873_s25 + $0x1d0] sm:$0xff]  ;;  %vm12858_vm5 = vmand %vm3863_vm14, %vm3905_vm15 }
 0x3b3   : > { %v4187_v8 = vsub.f32 0.0, %v3760_v12  ;;  %v2670_v58 = vmul.f32 %v2586_v23, %v16329_v25  ;;  %v2922_v13 = vmul.f32 %v2586_v23, %v16330_v24  ;;  %v734_v30 = vsub.f32 %v12801_v35, %v12729_v47  ;;  %v16344_v12 = vld [vmem:[#allocation31_spill] sm:$0xff]  ;;  %vm12883_vm8 = vmand %vm12858_vm5, %vm3961_vm3 }
 0x3b4   : > { %v3759_v29 = vadd.f32 %v16333_v39, %v3591_v0  ;;  %v2417_v62 = vadd.f32 1.0, %v650_v52  ;;  %v2585_v61 = vadd.f32 1.0, %v2333_v28  ;;  %v653_v7 = vsub.f32 %v12815_v20, %v12736_v11  ;;  %v16345_v52 = vld [vmem:[#allocation165_spill] sm:$0xff]  ;;  %v16346_v0 = vld [vmem:[#allocation164_spill] sm:$0xff]  ;;  %v12875_v39 = vld [vmem:[%s5873_s25 + $0x1e8] sm:$0xff] }
 0x3b5   : > { %v4271_v47 = vmax.f32 %v4187_v8, 0.0  ;;  %v2838_v15 = vsub.f32 %v2670_v58, %v16334_v42  ;;  %v3090_v32 = vsub.f32 %v2922_v13, %v16335_v48  ;;  %v12822_v27 = vadd.s32 29, %v16093_v55  ;;  %v5421_v8 = vld [vmem:[%s5873_s25 + $0x710] sm:$0xff]  ;;  %v16347_v13 = vld [vmem:[#allocation159_spill] sm:$0xff]  ;;  %vm12895_vm9 = vmand %vm12858_vm5, %vm4047_vm6 }
 0x3b6   : > { %v4186_v40 = vsub.f32 0.0, %v3759_v29  ;;  %v2669_v57 = vmul.f32 %v2585_v61, %v16336_v46  ;;  %v2921_v6 = vmul.f32 %v2585_v61, %v16337_v3  ;;  %v2336_v5 = vsub.f32 %v5417_v21, %v2060_v31  ;;  %v2064_v58 = vpop.permute.xlu1 %2063  ;;  %v16348_v31 = vld [vmem:[#allocation203_spill] sm:$0xff]  ;;  %vm12911_vm10 = vmand %vm12883_vm8, %vm4047_vm6 }
 0x3b7   : > { %v4355_v2 = vsel %vm12794_vm0, %v4271_v47, 0.0  ;;  %v3426_v54 = vmul.f32 %v2838_v15, %v2418_v59  ;;  %v3510_v34 = vmul.f32 %v3090_v32, %v735_v22  ;;  %v737_v53 = vsub.f32 %v12838_v36, %v12767_v63  ;;  %v2058_v22 = vpop.permute.xlu0 %2057  ;;  %v16351_v29 = vld [vmem:[#allocation491_spill] sm:$0xff] }
 0x3b8   : > { %v4270_v45 = vmax.f32 %v4186_v40, 0.0  ;;  %v2837_v60 = vsub.f32 %v2669_v57, %v16340_v33  ;;  %v3089_v19 = vsub.f32 %v2921_v6, %v16341_v37  ;;  %v2420_v56 = vadd.f32 1.0, %v653_v7  ;;  %v5423_v32 = vld [vmem:[%s5873_s25 + $0x728] sm:$0xff]  ;;  %v16354_v57 = vld [vmem:[#allocation170_spill] sm:$0xff] }
 0x3b9   : > { %v12844_v43 = vadd.f32 %v4452_v10, %v4355_v2  ;;  %v3594_v16 = vsub.f32 %v3426_v54, %v3510_v34  ;;  %vm3864_vm4 = vcmp.ge.s32.totalorder %v12822_v27, 1  ;;  %v2588_v59 = vadd.f32 1.0, %v2336_v5  ;;  %v16355_v6 = vld [vmem:[#allocation331_spill] sm:$0xff]  ;;  %v16359_v37 = vld [vmem:[#allocation206_spill] sm:$0xff] }
 0x3ba   : > { %v4354_v18 = vsel %vm12833_vm2, %v4270_v45, 0.0  ;;  %v3425_v38 = vmul.f32 %v2837_v60, %v2417_v62  ;;  %v3509_v63 = vmul.f32 %v3089_v19, %v734_v30  ;;  %v652_v4 = vsub.f32 %v12850_v9, %v12785_v1  ;;  %v12867_v1 = vld [vmem:[%s5873_s25 + $0x470] sm:$0xff]  ;;  %v12903_v5 = vld [vmem:[%s5873_s25 + $0x488] sm:$0xff] }
 0x3bb   : > { %v3762_v23 = vadd.f32 %v16344_v12, %v3594_v16  ;;  %vm3906_vm7 = vcmp.lt.s32.totalorder %v12822_v27, 96  ;;  %v2672_v10 = vmul.f32 %v2588_v59, %v16345_v52  ;;  %v2924_v26 = vmul.f32 %v2588_v59, %v16346_v0  ;;  %v16358_v60 = vld [vmem:[#allocation168_spill] sm:$0xff]  ;;  %v16362_v16 = vld [vmem:[#allocation154_spill] sm:$0xff] }
 0x3bc   : > { %v4412_v28 = vadd.f32 %v4411_v51, %v4354_v18  ;;  %v3593_v41 = vsub.f32 %v3425_v38, %v3509_v63  ;;  %v736_v49 = vsub.f32 %v12867_v1, %v12801_v35  ;;  %v2335_v25 = vsub.f32 %v5421_v8, %v2058_v22  ;;  %vm12924_vm12 = vmand %vm3864_vm4, %vm3906_vm7  ;;  %v16363_v22 = vld [vmem:[#allocation174_spill] sm:$0xff]  ;;  %v16364_v38 = vld [vmem:[#allocation52_spill] sm:$0xff] }
 0x3bd   : > { %v4189_v24 = vsub.f32 0.0, %v3762_v23  ;;  %v2840_v30 = vsub.f32 %v2672_v10, %v16347_v13  ;;  %v3092_v50 = vsub.f32 %v2924_v26, %v16348_v31  ;;  %v655_v51 = vsub.f32 %v12875_v39, %v12815_v20  ;;  %v5425_v23 = vld [vmem:[%s5873_s25 + $0x1e0] sm:$0xff]  ;;  %v16365_v26 = vld [vmem:[#allocation172_spill] sm:$0xff]  ;;  %v16366_v8 = vld [vmem:[#allocation381_spill] sm:$0xff] }
 0x3be   : > { %v3761_v62 = vadd.f32 %v16351_v29, %v3593_v41  ;;  %v2419_v61 = vadd.f32 1.0, %v652_v4  ;;  %v2587_v7 = vadd.f32 1.0, %v2335_v25  ;;  %v12889_v47 = vadd.s32 30, %v16093_v55  ;;  %v2062_v4 = vpop.permute.xlu0 %2061  ;;  %vm12943_vm14 = vmand %vm12924_vm12, %vm4047_vm6 }
 0x3bf   : > { %v4273_v42 = vmax.f32 %v4189_v24, 0.0  ;;  %v3428_v15 = vmul.f32 %v2840_v30, %v2420_v56  ;;  %v3512_v48 = vmul.f32 %v3092_v50, %v737_v53  ;;  %v2338_v40 = vsub.f32 %v5423_v32, %v2064_v58  ;;  %v12954_v30 = vld [vmem:[%s5873_s25 + $0x1f8] sm:$0xff]  ;;  %v2068_v50 = vpop.permute.xlu1 %2067  ;;  %vm12968_vm15 = vmand %vm12924_vm12, %vm3961_vm3 }
 0x3c0   : > { %v4188_v46 = vsub.f32 0.0, %v3761_v62  ;;  %v2671_v3 = vmul.f32 %v2587_v7, %v16354_v57  ;;  %v2923_v21 = vmul.f32 %v2587_v7, %v16355_v6  ;;  %v739_v2 = vsub.f32 %v12903_v5, %v12838_v36  ;;  %vm12997_vm1 = vmand %vm12968_vm15, %vm4047_vm6  ;;  %v16386_v58 = vld [vmem:[#allocation229_spill] sm:$0xff] }
 0x3c1   : > { %v3596_v54 = vsub.f32 %v3428_v15, %v3512_v48  ;;  %v2422_v34 = vadd.f32 1.0, %v655_v51  ;;  %vm3865_vm11 = vcmp.ge.s32.totalorder %v12889_v47, 1  ;;  %v2590_v53 = vadd.f32 1.0, %v2338_v40  ;;  %v12973_v48 = vld [vmem:[%s5873_s25 + $0x498] sm:$0xff] }
 0x3c2   : > { %v4357_v45 = vsel %vm12895_vm9, %v4273_v42, 0.0  ;;  %v4272_v33 = vmax.f32 %v4188_v46, 0.0  ;;  %v2839_v36 = vsub.f32 %v2671_v3, %v16358_v60  ;;  %v3091_v19 = vsub.f32 %v2923_v21, %v16359_v37  ;;  %v5430_v40 = vld [vmem:[%s5873_s25 + $0x738] sm:$0xff]  ;;  %v16372_v3 = vld [vmem:[#allocation184_spill] sm:$0xff] }
 0x3c3   : > { %v3764_v59 = vadd.f32 %v16362_v16, %v3596_v54  ;;  %vm3907_vm13 = vcmp.lt.s32.totalorder %v12889_v47, 96  ;;  %v2674_v18 = vmul.f32 %v2590_v53, %v16363_v22  ;;  %v2926_v63 = vmul.f32 %v2590_v53, %v16364_v38  ;;  %v16373_v21 = vld [vmem:[#allocation53_spill] sm:$0xff]  ;;  %v16376_v53 = vld [vmem:[#allocation374_spill] sm:$0xff]  ;;  %v16380_v16 = vld [vmem:[#allocation383_spill] sm:$0xff] }
 0x3c4   : > { %v4356_v17 = vsel %vm12911_vm10, %v4272_v33, 0.0  ;;  %v3427_v27 = vmul.f32 %v2839_v36, %v2419_v61  ;;  %v3511_v12 = vmul.f32 %v3091_v19, %v736_v49  ;;  %v654_v52 = vsub.f32 %v5425_v23, %v12850_v9  ;;  %v12948_v49 = vld [vmem:[%s5873_s25 + $0x480] sm:$0xff]  ;;  %v16369_v61 = vld [vmem:[#allocation384_spill] sm:$0xff]  ;;  %vm12984_vm0 = vmand %vm3865_vm11, %vm3907_vm13  ;;  %v2066_v36 = vpop.permute.xlu0 %2065 }
 0x3c5   : > { %v4454_v10 = vadd.f32 %v12844_v43, %v4357_v45  ;;  %v4191_v0 = vsub.f32 0.0, %v3764_v59  ;;  %v2842_v41 = vsub.f32 %v2674_v18, %v16365_v26  ;;  %v3094_v25 = vsub.f32 %v2926_v63, %v16366_v8  ;;  %v5427_v43 = vld [vmem:[%s5873_s25 + $0x720] sm:$0xff]  ;;  %v12990_v33 = vld [vmem:[%s5873_s25 + $0x1f0] sm:$0xff]  ;;  %v16379_v19 = vld [vmem:[#allocation175_spill] sm:$0xff] }
 0x3c6   : > { %v3595_v24 = vsub.f32 %v3427_v27, %v3511_v12  ;;  %v738_v9 = vsub.f32 %v12948_v49, %v12867_v1  ;;  %v2337_v13 = vsub.f32 %v5427_v43, %v2062_v4  ;;  %v657_v31 = vsub.f32 %v12954_v30, %v12875_v39  ;;  %v16381_v18 = vld [vmem:[#allocation187_spill] sm:$0xff]  ;;  %v16382_v63 = vld [vmem:[#allocation57_spill] sm:$0xff]  ;;  %vm13011_vm5 = vmand %vm12984_vm0, %vm4047_vm6 }
 0x3c7   : > { %v4413_v51 = vadd.f32 %v4412_v28, %v4356_v17  ;;  %v4275_v35 = vmax.f32 %v4191_v0, 0.0  ;;  %v3430_v29 = vmul.f32 %v2842_v41, %v2422_v34  ;;  %v3514_v62 = vmul.f32 %v3094_v25, %v739_v2  ;;  %v16385_v8 = vld [vmem:[#allocation179_spill] sm:$0xff]  ;;  %vm13039_vm7 = vmand %vm12984_vm0, %vm3961_vm3  ;;  %v16393_v34 = vld [vmem:[#allocation392_spill] sm:$0xff] }
 0x3c8   : > { %v3763_v7 = vadd.f32 %v16369_v61, %v3595_v24  ;;  %v2421_v20 = vadd.f32 1.0, %v654_v52  ;;  %v2589_v42 = vadd.f32 1.0, %v2337_v13  ;;  %v12960_v1 = vadd.s32 31, %v16093_v55  ;;  %v2072_v61 = vpop.permute.xlu1 %2071  ;;  %vm13060_vm8 = vmand %vm13039_vm7, %vm4047_vm6 }
 0x3c9   : > { %v4359_v15 = vsel %vm12943_vm14, %v4275_v35, 0.0  ;;  %v3598_v39 = vsub.f32 %v3430_v29, %v3514_v62  ;;  %v741_v32 = vsub.f32 %v12973_v48, %v12903_v5  ;;  %v2340_v46 = vsub.f32 %v5430_v40, %v2068_v50  ;;  %v2070_v40 = vpop.permute.xlu0 %2069 }
 0x3ca   : > { %v4190_v57 = vsub.f32 0.0, %v3763_v7  ;;  %v2673_v6 = vmul.f32 %v2589_v42, %v16372_v3  ;;  %v2925_v2 = vmul.f32 %v2589_v42, %v16373_v21  ;;  %v2424_v11 = vadd.f32 1.0, %v657_v31 }
 0x3cb   : > { %v4455_v54 = vadd.f32 %v4454_v10, %v4359_v15  ;;  %v3766_v45 = vadd.f32 %v16376_v53, %v3598_v39  ;;  %v2592_v5 = vadd.f32 1.0, %v2340_v46  ;;  %v656_v60 = vsub.f32 %v12990_v33, %v5425_v23  ;;  %v13016_v23 = vld [vmem:[%s5873_s25 + $0x490] sm:$0xff]  ;;  %v16390_v15 = vld [vmem:[#allocation191_spill] sm:$0xff]  ;;  %v16391_v39 = vld [vmem:[#allocation185_spill] sm:$0xff] }
 0x3cc   : > { %v4274_v37 = vmax.f32 %v4190_v57, 0.0  ;;  %v2841_v56 = vsub.f32 %v2673_v6, %v16379_v19  ;;  %v3093_v59 = vsub.f32 %v2925_v2, %v16380_v16  ;;  %vm3866_vm2 = vcmp.ge.s32.totalorder %v12960_v1, 1  ;;  %v5433_v10 = vld [vmem:[%s5873_s25 + $0x730] sm:$0xff]  ;;  %v13049_v57 = vld [vmem:[%s5873_s25 + $0x4a8] sm:$0xff] }
 0x3cd   : > { %v4193_v22 = vsub.f32 0.0, %v3766_v45  ;;  %vm3908_vm4 = vcmp.lt.s32.totalorder %v12960_v1, 96  ;;  %v2676_v38 = vmul.f32 %v2592_v5, %v16381_v18  ;;  %v2928_v4 = vmul.f32 %v2592_v5, %v16382_v63  ;;  %v16392_v2 = vld [vmem:[#allocation180_spill] sm:$0xff]  ;;  %v5436_v45 = vld [vmem:[%s5873_s25 + $0x748] sm:$0xff]  ;;  %v13082_v63 = vld [vmem:[%s5873_s25 + $0x4a0] sm:$0xff] }
 0x3ce   : > { %v3429_v27 = vmul.f32 %v2841_v56, %v2421_v20  ;;  %v3513_v12 = vmul.f32 %v3093_v59, %v738_v9  ;;  %v740_v52 = vsub.f32 %v13016_v23, %v12948_v49  ;;  %v2339_v0 = vsub.f32 %v5433_v10, %v2066_v36  ;;  %v13026_v9 = vld [vmem:[%s5873_s25 + $0x208] sm:$0xff]  ;;  %vm13076_vm10 = vmand %vm3866_vm2, %vm3908_vm4  ;;  %v16400_v10 = vld [vmem:[#allocation360_spill] sm:$0xff]  ;;  %v2076_v20 = vpop.permute.xlu1 %2075 }
 0x3cf   : > { %v4358_v26 = vsel %vm12997_vm1, %v4274_v37, 0.0  ;;  %v4277_v41 = vmax.f32 %v4193_v22, 0.0  ;;  %v2844_v25 = vsub.f32 %v2676_v38, %v16385_v8  ;;  %v3096_v24 = vsub.f32 %v2928_v4, %v16386_v58  ;;  %v5438_v37 = vld [vmem:[%s5873_s25 + $0x740] sm:$0xff]  ;;  %vm13094_vm12 = vmand %vm13076_vm10, %vm4047_vm6  ;;  %v13150_v16 = vld [vmem:[%s5873_s25 + $0x4b0] sm:$0xff] }
 0x3d0   : > { %v3597_v43 = vsub.f32 %v3429_v27, %v3513_v12  ;;  %v2423_v13 = vadd.f32 1.0, %v656_v60  ;;  %v2591_v31 = vadd.f32 1.0, %v2339_v0  ;;  %v659_v50 = vsub.f32 %v13026_v9, %v12954_v30  ;;  %v16389_v30 = vld [vmem:[#allocation48_spill] sm:$0xff]  ;;  %v16396_v60 = vld [vmem:[#allocation49_spill] sm:$0xff]  ;;  %vm13104_vm13 = vmand %vm13076_vm10, %vm3961_vm3 }
 0x3d1   : > { %v4361_v49 = vsel %vm13011_vm5, %v4277_v41, 0.0  ;;  %v3432_v35 = vmul.f32 %v2844_v25, %v2424_v11  ;;  %v3516_v29 = vmul.f32 %v3096_v24, %v741_v32  ;;  %v13033_v62 = vadd.s32 32, %v16093_v55  ;;  %v16399_v27 = vld [vmem:[#allocation196_spill] sm:$0xff]  ;;  %v16403_v41 = vld [vmem:[#allocation199_spill] sm:$0xff]  ;;  %v16404_v25 = vld [vmem:[#allocation61_spill] sm:$0xff] }
 0x3d2   : > { %v4414_v7 = vadd.f32 %v4413_v51, %v4358_v26  ;;  %v3765_v42 = vadd.f32 %v16389_v30, %v3597_v43  ;;  %v2675_v28 = vmul.f32 %v2591_v31, %v16390_v15  ;;  %v2927_v32 = vmul.f32 %v2591_v31, %v16391_v39  ;;  %v16407_v43 = vld [vmem:[#allocation176_spill] sm:$0xff]  ;;  %v16408_v31 = vld [vmem:[#allocation195_spill] sm:$0xff]  ;;  %vm13129_vm14 = vmand %vm13104_vm13, %vm4047_vm6 }
 0x3d3   : > { %v13046_v46 = vadd.f32 %v4455_v54, %v4361_v49  ;;  %v3600_v51 = vsub.f32 %v3432_v35, %v3516_v29  ;;  %v743_v3 = vsub.f32 %v13049_v57, %v12973_v48  ;;  %v2426_v6 = vadd.f32 1.0, %v659_v50  ;;  %v13067_v48 = vld [vmem:[%s5873_s25 + $0x200] sm:$0xff]  ;;  %v13112_v29 = vld [vmem:[%s5873_s25 + $0x218] sm:$0xff] }
 0x3d4   : > { %v4192_v21 = vsub.f32 0.0, %v3765_v42  ;;  %v2843_v11 = vsub.f32 %v2675_v28, %v16392_v2  ;;  %v3095_v53 = vsub.f32 %v2927_v32, %v16393_v34  ;;  %v2342_v5 = vsub.f32 %v5436_v45, %v2072_v61  ;;  %v16409_v49 = vld [vmem:[#allocation398_spill] sm:$0xff]  ;;  %v16410_v42 = vld [vmem:[#allocation197_spill] sm:$0xff]  ;;  %v16411_v28 = vld [vmem:[#allocation400_spill] sm:$0xff] }
 0x3d5   : > { %v3768_v36 = vadd.f32 %v16396_v60, %v3600_v51  ;;  %vm3867_vm9 = vcmp.ge.s32.totalorder %v13033_v62, 1  ;;  %v658_v47 = vsub.f32 %v13067_v48, %v12990_v33  ;;  %v2341_v19 = vsub.f32 %v5438_v37, %v2070_v40  ;;  %v13119_v32 = vld [vmem:[%s5873_s25 + $0x4b8] sm:$0xff] }
 0x3d6   : > { %v4276_v56 = vmax.f32 %v4192_v21, 0.0  ;;  %v3431_v59 = vmul.f32 %v2843_v11, %v2423_v13  ;;  %v3515_v22 = vmul.f32 %v3095_v53, %v740_v52  ;;  %v2594_v18 = vadd.f32 1.0, %v2342_v5  ;;  %v5442_v53 = vld [vmem:[%s5873_s25 + $0x758] sm:$0xff]  ;;  %v2074_v5 = vpop.permute.xlu0 %2073  ;;  %v13170_v52 = vld [vmem:[%s5873_s25 + $0x228] sm:$0xff] }
 0x3d7   : > { %v4195_v38 = vsub.f32 0.0, %v3768_v36  ;;  %vm3909_vm11 = vcmp.lt.s32.totalorder %v13033_v62, 96  ;;  %v742_v33 = vsub.f32 %v13082_v63, %v13016_v23  ;;  %v2593_v4 = vadd.f32 1.0, %v2341_v19  ;;  %v13144_v36 = vld [vmem:[%s5873_s25 + $0x210] sm:$0xff] }
 0x3d8   : > { %v4360_v1 = vsel %vm13060_vm8, %v4276_v56, 0.0  ;;  %v3599_v17 = vsub.f32 %v3431_v59, %v3515_v22  ;;  %v2678_v12 = vmul.f32 %v2594_v18, %v16399_v27  ;;  %v2930_v0 = vmul.f32 %v2594_v18, %v16400_v10  ;;  %vm13139_vm15 = vmand %vm3867_vm9, %vm3909_vm11  ;;  %v16416_v59 = vld [vmem:[#allocation178_spill] sm:$0xff]  ;;  %v5445_v18 = vld [vmem:[%s5873_s25 + $0x750] sm:$0xff] }
 0x3d9   : > { %v4279_v26 = vmax.f32 %v4195_v38, 0.0  ;;  %v2425_v23 = vadd.f32 1.0, %v658_v47  ;;  %v2677_v8 = vmul.f32 %v2593_v4, %v16403_v41  ;;  %v2929_v58 = vmul.f32 %v2593_v4, %v16404_v25  ;;  %vm13162_vm2 = vmand %vm13139_vm15, %vm3961_vm3 }
 0x3da   : > { %v3767_v13 = vadd.f32 %v16407_v43, %v3599_v17  ;;  %v2846_v50 = vsub.f32 %v2678_v12, %v16408_v31  ;;  %v3098_v35 = vsub.f32 %v2930_v0, %v16409_v49  ;;  %v661_v61 = vsub.f32 %v13112_v29, %v13026_v9  ;;  %v16421_v17 = vld [vmem:[#allocation407_spill] sm:$0xff]  ;;  %vm13178_vm4 = vmand %vm13139_vm15, %vm4047_vm6 }
 0x3db   : > { %v4415_v30 = vadd.f32 %v4414_v7, %v4360_v1  ;;  %v2845_v15 = vsub.f32 %v2677_v8, %v16410_v42  ;;  %v3097_v39 = vsub.f32 %v2929_v58, %v16411_v28  ;;  %v745_v40 = vsub.f32 %v13119_v32, %v13049_v57  ;;  %v16424_v8 = vld [vmem:[#allocation204_spill] sm:$0xff]  ;;  %v16425_v58 = vld [vmem:[#allocation246_spill] sm:$0xff]  ;;  %vm13191_vm5 = vmand %vm13162_vm2, %vm4047_vm6 }
 0x3dc   : > { %v4363_v51 = vsel %vm13094_vm12, %v4279_v26, 0.0  ;;  %v4194_v21 = vsub.f32 0.0, %v3767_v13  ;;  %v3434_v2 = vmul.f32 %v2846_v50, %v2426_v6  ;;  %v3518_v11 = vmul.f32 %v3098_v35, %v743_v3  ;;  %v2080_v13 = vpop.permute.xlu1 %2079  ;;  %v16428_v35 = vld [vmem:[#allocation210_spill] sm:$0xff] }
 0x3dd   : > { %v3433_v7 = vmul.f32 %v2845_v15, %v2425_v23  ;;  %v3517_v34 = vmul.f32 %v3097_v39, %v742_v33  ;;  %v3826_v57 = vadd.s32 33, %v16093_v55  ;;  %v2344_v45 = vsub.f32 %v5442_v53, %v2076_v20  ;;  %v13198_v39 = vld [vmem:[%s5873_s25 + $0x4c8] sm:$0xff]  ;;  %v13212_v3 = vld [vmem:[%s5873_s25 + $0x220] sm:$0xff] }
 0x3de   : > { %v4278_v54 = vmax.f32 %v4194_v21, 0.0  ;;  %v3602_v6 = vsub.f32 %v3434_v2, %v3518_v11  ;;  %v2428_v60 = vadd.f32 1.0, %v661_v61  ;;  %v660_v47 = vsub.f32 %v13144_v36, %v13067_v48  ;;  %v16419_v48 = vld [vmem:[#allocation205_spill] sm:$0xff]  ;;  %v16430_v21 = vld [vmem:[#allocation258_spill] sm:$0xff]  ;;  %v16431_v11 = vld [vmem:[#allocation252_spill] sm:$0xff] }
 0x3df   : > { %v4457_v37 = vadd.f32 %v13046_v46, %v4363_v51  ;;  %v3601_v19 = vsub.f32 %v3433_v7, %v3517_v34  ;;  %v2596_v56 = vadd.f32 1.0, %v2344_v45  ;;  %v744_v62 = vsub.f32 %v13150_v16, %v13082_v63  ;;  %v16420_v63 = vld [vmem:[#allocation209_spill] sm:$0xff]  ;;  %v2078_v34 = vpop.permute.xlu0 %2077  ;;  %v5448_v45 = vld [vmem:[%s5873_s25 + $0x768] sm:$0xff]  ;;  %v13225_v46 = vld [vmem:[%s5873_s25 + $0x4c0] sm:$0xff] }
 0x3e0   : > { %v3770_v22 = vadd.f32 %v16416_v59, %v3602_v6  ;;  %vm3868_vm0 = vcmp.ge.s32.totalorder %v3826_v57, 1  ;;  %vm3910_vm1 = vcmp.lt.s32.totalorder %v3826_v57, 96  ;;  %v2343_v38 = vsub.f32 %v5445_v18, %v2074_v5  ;;  %v16429_v61 = vld [vmem:[#allocation373_spill] sm:$0xff] }
 0x3e1   : > { %v4362_v33 = vsel %vm13129_vm14, %v4278_v54, 0.0  ;;  %v3769_v4 = vadd.f32 %v16419_v48, %v3601_v19  ;;  %v2680_v1 = vmul.f32 %v2596_v56, %v16420_v63  ;;  %v2932_v27 = vmul.f32 %v2596_v56, %v16421_v17  ;;  %vm13218_vm9 = vmand %vm3868_vm0, %vm3910_vm1  ;;  %v16434_v19 = vld [vmem:[#allocation262_spill] sm:$0xff] }
 0x3e2   : > { %v4197_v12 = vsub.f32 0.0, %v3770_v22  ;;  %v2427_v10 = vadd.f32 1.0, %v660_v47  ;;  %v2595_v0 = vadd.f32 1.0, %v2343_v38  ;;  %v663_v26 = vsub.f32 %v13170_v52, %v13112_v29  ;;  %v5450_v22 = vld [vmem:[%s5873_s25 + $0x760] sm:$0xff]  ;;  %vm13240_vm10 = vmand %vm13218_vm9, %vm3961_vm3  ;;  %v16452_v47 = vld [vmem:[#allocation236_spill] sm:$0xff] }
 0x3e3   : > { %v4196_v41 = vsub.f32 0.0, %v3769_v4  ;;  %v2848_v25 = vsub.f32 %v2680_v1, %v16424_v8  ;;  %v3100_v24 = vsub.f32 %v2932_v27, %v16425_v58  ;;  %v13185_v43 = vadd.s32 34, %v16093_v55  ;;  %v16435_v4 = vld [vmem:[#allocation222_spill] sm:$0xff]  ;;  %vm13253_vm11 = vmand %vm13218_vm9, %vm4047_vm6 }
 0x3e4   : > { %v4416_v31 = vadd.f32 %v4415_v30, %v4362_v33  ;;  %v4281_v50 = vmax.f32 %v4197_v12, 0.0  ;;  %v2679_v29 = vmul.f32 %v2595_v0, %v16428_v35  ;;  %v2931_v20 = vmul.f32 %v2595_v0, %v16429_v61  ;;  %v16436_v1 = vld [vmem:[#allocation198_spill] sm:$0xff]  ;;  %v16445_v35 = vld [vmem:[#allocation379_spill] sm:$0xff]  ;;  %v13262_v61 = vld [vmem:[%s5873_s25 + $0x4d8] sm:$0xff] }
 0x3e5   : > { %v4280_v42 = vmax.f32 %v4196_v41, 0.0  ;;  %v3436_v15 = vmul.f32 %v2848_v25, %v2428_v60  ;;  %v3520_v28 = vmul.f32 %v3100_v24, %v745_v40  ;;  %v747_v30 = vsub.f32 %v13198_v39, %v13119_v32  ;;  %v16442_v25 = vld [vmem:[#allocation401_spill] sm:$0xff]  ;;  %v16443_v24 = vld [vmem:[#allocation264_spill] sm:$0xff]  ;;  %vm13270_vm12 = vmand %vm13240_vm10, %vm4047_vm6 }
 0x3e6   : > { %v4365_v51 = vsel %vm13178_vm4, %v4281_v50, 0.0  ;;  %v2847_v2 = vsub.f32 %v2679_v29, %v16430_v21  ;;  %v3099_v9 = vsub.f32 %v2931_v20, %v16431_v11  ;;  %v2430_v7 = vadd.f32 1.0, %v663_v26  ;;  %v5453_v26 = vld [vmem:[%s5873_s25 + $0x778] sm:$0xff] }
 0x3e7   : > { %v4364_v53 = vsel %vm13191_vm5, %v4280_v42, 0.0  ;;  %v3604_v40 = vsub.f32 %v3436_v15, %v3520_v28  ;;  %vm3869_vm7 = vcmp.ge.s32.totalorder %v13185_v43, 1  ;;  %v2346_v5 = vsub.f32 %v5448_v45, %v2080_v13  ;;  %v16448_v21 = vld [vmem:[#allocation221_spill] sm:$0xff] }
 0x3e8   : > { %v3435_v32 = vmul.f32 %v2847_v2, %v2427_v10  ;;  %v3519_v54 = vmul.f32 %v3099_v9, %v744_v62  ;;  %vm3911_vm8 = vcmp.lt.s32.totalorder %v13185_v43, 96  ;;  %v662_v6 = vsub.f32 %v13212_v3, %v13144_v36  ;;  %v2084_v62 = vpop.permute.xlu1 %2083 }
 0x3e9   : > { %v4458_v60 = vadd.f32 %v4457_v37, %v4365_v51  ;;  %v3772_v56 = vadd.f32 %v16434_v19, %v3604_v40  ;;  %v2598_v59 = vadd.f32 1.0, %v2346_v5  ;;  %v2345_v18 = vsub.f32 %v5450_v22, %v2078_v34  ;;  %v13230_v37 = vld [vmem:[%s5873_s25 + $0x238] sm:$0xff]  ;;  %v2082_v40 = vpop.permute.xlu0 %2081  ;;  %vm13291_vm15 = vmand %vm3869_vm7, %vm3911_vm8 }
 0x3ea   : > { %v4417_v38 = vadd.f32 %v4416_v31, %v4364_v53  ;;  %v3603_v33 = vsub.f32 %v3435_v32, %v3519_v54  ;;  %v746_v36 = vsub.f32 %v13225_v46, %v13150_v16  ;;  %v665_v57 = vsub.f32 %v13230_v37, %v13170_v52  ;;  %v16439_v16 = vld [vmem:[#allocation186_spill] sm:$0xff]  ;;  %vm13315_vm0 = vmand %vm13291_vm15, %vm4047_vm6 }
 0x3eb   : > { %v4199_v48 = vsub.f32 0.0, %v3772_v56  ;;  %v2682_v63 = vmul.f32 %v2598_v59, %v16435_v4  ;;  %v2934_v17 = vmul.f32 %v2598_v59, %v16436_v1  ;;  %v2597_v27 = vadd.f32 1.0, %v2345_v18  ;;  %v16444_v31 = vld [vmem:[#allocation226_spill] sm:$0xff]  ;;  %v16453_v56 = vld [vmem:[#allocation224_spill] sm:$0xff]  ;;  %vm13326_vm1 = vmand %vm13291_vm15, %vm3961_vm3 }
 0x3ec   : > { %v3771_v10 = vadd.f32 %v16439_v16, %v3603_v33  ;;  %v2429_v0 = vadd.f32 1.0, %v662_v6  ;;  %v13246_v52 = vadd.s32 35, %v16093_v55  ;;  %v2348_v23 = vsub.f32 %v5453_v26, %v2084_v62  ;;  %v16454_v18 = vld [vmem:[#allocation416_spill] sm:$0xff]  ;;  %v16455_v4 = vld [vmem:[#allocation66_spill] sm:$0xff]  ;;  %vm13345_vm2 = vmand %vm13326_vm1, %vm4047_vm6 }
 0x3ed   : > { %v4283_v8 = vmax.f32 %v4199_v48, 0.0  ;;  %v2850_v58 = vsub.f32 %v2682_v63, %v16442_v25  ;;  %v3102_v13 = vsub.f32 %v2934_v17, %v16443_v24  ;;  %v2681_v50 = vmul.f32 %v2597_v27, %v16444_v31  ;;  %v16456_v1 = vld [vmem:[#allocation274_spill] sm:$0xff] }
 0x3ee   : > { %v4198_v49 = vsub.f32 0.0, %v3771_v10  ;;  %v2933_v29 = vmul.f32 %v2597_v27, %v16445_v35  ;;  %v749_v20 = vsub.f32 %v13262_v61, %v13198_v39  ;;  %v2432_v42 = vadd.f32 1.0, %v665_v57  ;;  %v16449_v39 = vld [vmem:[#allocation415_spill] sm:$0xff]  ;;  %v5457_v57 = vld [vmem:[%s5873_s25 + $0x770] sm:$0xff] }
 0x3ef   : > { %v3438_v28 = vmul.f32 %v2850_v58, %v2430_v7  ;;  %v3522_v51 = vmul.f32 %v3102_v13, %v747_v30  ;;  %v2849_v2 = vsub.f32 %v2681_v50, %v16448_v21  ;;  %vm3870_vm13 = vcmp.ge.s32.totalorder %v13246_v52, 1  ;;  %v13281_v7 = vld [vmem:[%s5873_s25 + $0x230] sm:$0xff]  ;;  %v16462_v58 = vld [vmem:[#allocation247_spill] sm:$0xff]  ;;  %v16463_v13 = vld [vmem:[#allocation77_spill] sm:$0xff] }
 0x3f0   : > { %v4367_v11 = vsel %vm13253_vm11, %v4283_v8, 0.0  ;;  %v4282_v9 = vmax.f32 %v4198_v49, 0.0  ;;  %v3101_v34 = vsub.f32 %v2933_v29, %v16449_v39  ;;  %v2600_v53 = vadd.f32 1.0, %v2348_v23  ;;  %v13334_v50 = vld [vmem:[%s5873_s25 + $0x4e8] sm:$0xff]  ;;  %v16466_v21 = vld [vmem:[#allocation230_spill] sm:$0xff] }
 0x3f1   : > { %v3606_v45 = vsub.f32 %v3438_v28, %v3522_v51  ;;  %v3437_v5 = vmul.f32 %v2849_v2, %v2429_v0  ;;  %vm3912_vm14 = vcmp.lt.s32.totalorder %v13246_v52, 96  ;;  %v664_v30 = vsub.f32 %v13281_v7, %v13212_v3  ;;  %v13299_v3 = vld [vmem:[%s5873_s25 + $0x4d0] sm:$0xff]  ;;  %v2088_v0 = vpop.permute.xlu1 %2087  ;;  %v5460_v28 = vld [vmem:[%s5873_s25 + $0x788] sm:$0xff] }
 0x3f2   : > { %v4366_v32 = vsel %vm13270_vm12, %v4282_v9, 0.0  ;;  %v3521_v6 = vmul.f32 %v3101_v34, %v746_v36  ;;  %v2684_v19 = vmul.f32 %v2600_v53, %v16452_v47  ;;  %v2936_v59 = vmul.f32 %v2600_v53, %v16453_v56  ;;  %v13307_v36 = vld [vmem:[%s5873_s25 + $0x248] sm:$0xff]  ;;  %v13353_v9 = vld [vmem:[%s5873_s25 + $0x240] sm:$0xff]  ;;  %vm13361_vm5 = vmand %vm3870_vm13, %vm3912_vm14 }
 0x3f3   : > { %v4459_v22 = vadd.f32 %v4458_v60, %v4367_v11  ;;  %v3774_v62 = vadd.f32 %v16454_v18, %v3606_v45  ;;  %v748_v33 = vsub.f32 %v13299_v3, %v13225_v46  ;;  %v2347_v48 = vsub.f32 %v5457_v57, %v2082_v40  ;;  %v16470_v40 = vld [vmem:[#allocation211_spill] sm:$0xff]  ;;  %v16471_v56 = vld [vmem:[#allocation248_spill] sm:$0xff]  ;;  %vm13380_vm8 = vmand %vm13361_vm5, %vm4047_vm6 }
 0x3f4   : > { %v3605_v43 = vsub.f32 %v3437_v5, %v3521_v6  ;;  %v2852_v63 = vsub.f32 %v2684_v19, %v16455_v4  ;;  %v3104_v17 = vsub.f32 %v2936_v59, %v16456_v1  ;;  %v667_v60 = vsub.f32 %v13307_v36, %v13230_v37  ;;  %v16461_v37 = vld [vmem:[#allocation423_spill] sm:$0xff]  ;;  %v16472_v18 = vld [vmem:[#allocation84_spill] sm:$0xff]  ;;  %v16475_v1 = vld [vmem:[#allocation425_spill] sm:$0xff] }
 0x3f5   : > { %v4418_v27 = vadd.f32 %v4417_v38, %v4366_v32  ;;  %v4201_v12 = vsub.f32 0.0, %v3774_v62  ;;  %v2599_v16 = vadd.f32 1.0, %v2347_v48  ;;  %v13320_v10 = vadd.s32 36, %v16093_v55  ;;  %v5463_v48 = vld [vmem:[%s5873_s25 + $0x780] sm:$0xff]  ;;  %v2092_v4 = vpop.permute.xlu1 %2091  ;;  %vm13396_vm9 = vmand %vm13361_vm5, %vm3961_vm3 }
 0x3f6   : > { %v3773_v26 = vadd.f32 %v16461_v37, %v3605_v43  ;;  %v3440_v23 = vmul.f32 %v2852_v63, %v2432_v42  ;;  %v3524_v41 = vmul.f32 %v3104_v17, %v749_v20  ;;  %v2431_v8 = vadd.f32 1.0, %v664_v30  ;;  %v2086_v30 = vpop.permute.xlu0 %2085  ;;  %vm13418_vm10 = vmand %vm13396_vm9, %vm4047_vm6  ;;  %v16506_v53 = vld [vmem:[#allocation438_spill] sm:$0xff] }
 0x3f7   : > { %v4285_v25 = vmax.f32 %v4201_v12, 0.0  ;;  %v2683_v24 = vmul.f32 %v2599_v16, %v16462_v58  ;;  %v2935_v31 = vmul.f32 %v2599_v16, %v16463_v13  ;;  %v751_v49 = vsub.f32 %v13334_v50, %v13262_v61  ;;  %v16467_v61 = vld [vmem:[#allocation424_spill] sm:$0xff]  ;;  %v5466_v58 = vld [vmem:[%s5873_s25 + $0x798] sm:$0xff] }
 0x3f8   : > { %v4200_v35 = vsub.f32 0.0, %v3773_v26  ;;  %v3608_v29 = vsub.f32 %v3440_v23, %v3524_v41  ;;  %v2434_v15 = vadd.f32 1.0, %v667_v60  ;;  %v2350_v51 = vsub.f32 %v5460_v28, %v2088_v0  ;;  %v16476_v60 = vld [vmem:[#allocation286_spill] sm:$0xff]  ;;  %v13402_v26 = vld [vmem:[%s5873_s25 + $0x4f8] sm:$0xff] }
 0x3f9   : > { %v4369_v20 = vsel %vm13315_vm0, %v4285_v25, 0.0  ;;  %v2851_v2 = vsub.f32 %v2683_v24, %v16466_v21  ;;  %v3103_v11 = vsub.f32 %v2935_v31, %v16467_v61  ;;  %vm3871_vm4 = vcmp.ge.s32.totalorder %v13320_v10, 1  ;;  %v16479_v0 = vld [vmem:[#allocation70_spill] sm:$0xff]  ;;  %v16481_v28 = vld [vmem:[#allocation85_spill] sm:$0xff]  ;;  %v16484_v21 = vld [vmem:[#allocation431_spill] sm:$0xff] }
 0x3fa   : > { %v666_v39 = vsub.f32 %v13353_v9, %v13281_v7  ;;  %v4284_v34 = vmax.f32 %v4200_v35, 0.0  ;;  %v3776_v45 = vadd.f32 %v16470_v40, %v3608_v29  ;;  %vm3913_vm7 = vcmp.lt.s32.totalorder %v13320_v10, 96  ;;  %v13368_v7 = vld [vmem:[%s5873_s25 + $0x4e0] sm:$0xff]  ;;  %v16480_v35 = vld [vmem:[#allocation257_spill] sm:$0xff]  ;;  %v16485_v61 = vld [vmem:[#allocation432_spill] sm:$0xff] }
 0x3fb   : > { %v2602_v5 = vadd.f32 1.0, %v2350_v51  ;;  %v4460_v32 = vadd.f32 %v4459_v22, %v4369_v20  ;;  %v3439_v54 = vmul.f32 %v2851_v2, %v2431_v8  ;;  %v3523_v6 = vmul.f32 %v3103_v11, %v748_v33  ;;  %vm13434_vm12 = vmand %vm3871_vm4, %vm3913_vm7  ;;  %v16488_v40 = vld [vmem:[#allocation433_spill] sm:$0xff] }
 0x3fc   : > { %v750_v52 = vsub.f32 %v13368_v7, %v13299_v3  ;;  %v4368_v47 = vsel %vm13345_vm2, %v4284_v34, 0.0  ;;  %v4203_v19 = vsub.f32 0.0, %v3776_v45  ;;  %v2433_v3 = vadd.f32 1.0, %v666_v39  ;;  %v13426_v39 = vld [vmem:[%s5873_s25 + $0x250] sm:$0xff]  ;;  %vm13455_vm14 = vmand %vm13434_vm12, %vm4047_vm6 }
 0x3fd   : > { %v2686_v59 = vmul.f32 %v2602_v5, %v16471_v56  ;;  %v2938_v62 = vmul.f32 %v2602_v5, %v16472_v18  ;;  %v4419_v57 = vadd.f32 %v4418_v27, %v4368_v47  ;;  %v3607_v33 = vsub.f32 %v3439_v54, %v3523_v6  ;;  %v13388_v27 = vld [vmem:[%s5873_s25 + $0x258] sm:$0xff]  ;;  %v2090_v6 = vpop.permute.xlu0 %2089  ;;  %vm13469_vm15 = vmand %vm13434_vm12, %vm3961_vm3 }
 0x3fe   : > { %v2349_v43 = vsub.f32 %v5463_v48, %v2086_v30  ;;  %v4287_v63 = vmax.f32 %v4203_v19, 0.0  ;;  %v669_v12 = vsub.f32 %v13388_v27, %v13307_v36  ;;  %v753_v23 = vsub.f32 %v13402_v26, %v13334_v50  ;;  %v16489_v5 = vld [vmem:[#allocation265_spill] sm:$0xff]  ;;  %v13445_v19 = vld [vmem:[%s5873_s25 + $0x4f0] sm:$0xff]  ;;  %vm13490_vm1 = vmand %vm13469_vm15, %vm4047_vm6 }
 0x3ff   : > { %v2854_v17 = vsub.f32 %v2686_v59, %v16475_v1  ;;  %v3106_v46 = vsub.f32 %v2938_v62, %v16476_v60  ;;  %v3775_v38 = vadd.f32 %v16479_v0, %v3607_v33  ;;  %v13407_v41 = vadd.s32 37, %v16093_v55  ;;  %v16491_v62 = vld [vmem:[#allocation74_spill] sm:$0xff]  ;;  %v16492_v33 = vld [vmem:[#allocation288_spill] sm:$0xff]  ;;  %v16501_v50 = vld [vmem:[#allocation397_spill] sm:$0xff] }
 0x400   : > { %v2601_v37 = vadd.f32 1.0, %v2349_v43  ;;  %v4371_v36 = vsel %vm13380_vm8, %v4287_v63, 0.0  ;;  %v2352_v24 = vsub.f32 %v5466_v58, %v2092_v4  ;;  %v668_v34 = vsub.f32 %v13426_v39, %v13353_v9  ;;  %v2096_v43 = vpop.permute.xlu1 %2095  ;;  %v13461_v63 = vld [vmem:[%s5873_s25 + $0x268] sm:$0xff]  ;;  %v16497_v0 = vld [vmem:[#allocation228_spill] sm:$0xff] }
 0x401   : > { %v3442_v8 = vmul.f32 %v2854_v17, %v2434_v15  ;;  %v3526_v25 = vmul.f32 %v3106_v46, %v751_v49  ;;  %v4461_v13 = vadd.f32 %v4460_v32, %v4371_v36  ;;  %v4202_v31 = vsub.f32 0.0, %v3775_v38  ;;  %v16490_v32 = vld [vmem:[#allocation254_spill] sm:$0xff]  ;;  %v13478_v36 = vld [vmem:[%s5873_s25 + $0x508] sm:$0xff] }
 0x402   : > { %v2685_v29 = vmul.f32 %v2601_v37, %v16480_v35  ;;  %v2937_v51 = vmul.f32 %v2601_v37, %v16481_v28  ;;  %v2436_v15 = vadd.f32 1.0, %v669_v12  ;;  %vm3872_vm11 = vcmp.ge.s32.totalorder %v13407_v41, 1  ;;  %v16500_v28 = vld [vmem:[#allocation294_spill] sm:$0xff]  ;;  %v16514_v60 = vld [vmem:[#allocation267_spill] sm:$0xff] }
 0x403   : > { %v3610_v20 = vsub.f32 %v3442_v8, %v3526_v25  ;;  %v2604_v49 = vadd.f32 1.0, %v2352_v24  ;;  %v4286_v42 = vmax.f32 %v4202_v31, 0.0  ;;  %vm3914_vm13 = vcmp.lt.s32.totalorder %v13407_v41, 96  ;;  %v5472_v8 = vld [vmem:[%s5873_s25 + $0x7a8] sm:$0xff]  ;;  %v5474_v41 = vld [vmem:[%s5873_s25 + $0x7a0] sm:$0xff] }
 0x404   : > { %v2853_v2 = vsub.f32 %v2685_v29, %v16484_v21  ;;  %v3105_v11 = vsub.f32 %v2937_v51, %v16485_v61  ;;  %v752_v56 = vsub.f32 %v13445_v19, %v13368_v7  ;;  %v2435_v4 = vadd.f32 1.0, %v668_v34  ;;  %v5469_v7 = vld [vmem:[%s5873_s25 + $0x790] sm:$0xff]  ;;  %vm13500_vm2 = vmand %vm3872_vm11, %vm3914_vm13  ;;  %v13507_v21 = vld [vmem:[%s5873_s25 + $0x260] sm:$0xff] }
 0x405   : > { %v3778_v45 = vadd.f32 %v16488_v40, %v3610_v20  ;;  %v2688_v30 = vmul.f32 %v2604_v49, %v16489_v5  ;;  %v2940_v54 = vmul.f32 %v2604_v49, %v16490_v32  ;;  %v4370_v9 = vsel %vm13418_vm10, %v4286_v42, 0.0  ;;  %vm13527_vm5 = vmand %vm13500_vm2, %vm4047_vm6  ;;  %v16520_v29 = vld [vmem:[#allocation283_spill] sm:$0xff] }
 0x406   : > { %v3441_v47 = vmul.f32 %v2853_v2, %v2433_v3  ;;  %v3525_v10 = vmul.f32 %v3105_v11, %v750_v52  ;;  %v4420_v59 = vadd.f32 %v4419_v57, %v4370_v9  ;;  %v2351_v57 = vsub.f32 %v5469_v7, %v2090_v6  ;;  %v16505_v11 = vld [vmem:[#allocation437_spill] sm:$0xff]  ;;  %v13517_v9 = vld [vmem:[%s5873_s25 + $0x500] sm:$0xff]  ;;  %vm13546_vm7 = vmand %vm13500_vm2, %vm3961_vm3 }
 0x407   : > { %v4205_v18 = vsub.f32 0.0, %v3778_v45  ;;  %v2856_v22 = vsub.f32 %v2688_v30, %v16491_v62  ;;  %v3108_v48 = vsub.f32 %v2940_v54, %v16492_v33  ;;  %v671_v1 = vsub.f32 %v13461_v63, %v13388_v27  ;;  %v16507_v30 = vld [vmem:[#allocation260_spill] sm:$0xff]  ;;  %v16508_v54 = vld [vmem:[#allocation242_spill] sm:$0xff]  ;;  %vm13581_vm9 = vmand %vm13546_vm7, %vm4047_vm6 }
 0x408   : > { %v3609_v52 = vsub.f32 %v3441_v47, %v3525_v10  ;;  %v13474_v16 = vadd.s32 38, %v16093_v55  ;;  %v2603_v37 = vadd.f32 1.0, %v2351_v57  ;;  %v755_v27 = vsub.f32 %v13478_v36, %v13402_v26  ;;  %v13593_v10 = vld [vmem:[%s5873_s25 + $0x270] sm:$0xff] }
 0x409   : > { %v4289_v17 = vmax.f32 %v4205_v18, 0.0  ;;  %v3444_v46 = vmul.f32 %v2856_v22, %v2436_v15  ;;  %v3528_v12 = vmul.f32 %v3108_v48, %v753_v23  ;;  %v2354_v25 = vsub.f32 %v5472_v8, %v2096_v43  ;;  %v2094_v23 = vpop.permute.xlu0 %2093  ;;  %v16504_v15 = vld [vmem:[#allocation259_spill] sm:$0xff]  ;;  %v16511_v43 = vld [vmem:[#allocation80_spill] sm:$0xff] }
 0x40a   : > { %v3777_v38 = vadd.f32 %v16497_v0, %v3609_v52  ;;  %v2438_v31 = vadd.f32 1.0, %v671_v1  ;;  %vm3873_vm0 = vcmp.ge.s32.totalorder %v13474_v16, 1  ;;  %v2687_v51 = vmul.f32 %v2603_v37, %v16500_v28  ;;  %v16513_v1 = vld [vmem:[#allocation243_spill] sm:$0xff] }
 0x40b   : > { %v4373_v58 = vsel %vm13455_vm14, %v4289_v17, 0.0  ;;  %v3612_v24 = vsub.f32 %v3444_v46, %v3528_v12  ;;  %v2939_v20 = vmul.f32 %v2603_v37, %v16501_v50  ;;  %vm3915_vm4 = vcmp.lt.s32.totalorder %v13474_v16, 96  ;;  %v2100_v12 = vpop.permute.xlu1 %2099 }
 0x40c   : > { %v4462_v35 = vadd.f32 %v4461_v13, %v4373_v58  ;;  %v4204_v26 = vsub.f32 0.0, %v3777_v38  ;;  %v2606_v42 = vadd.f32 1.0, %v2354_v25  ;;  %v670_v2 = vsub.f32 %v13507_v21, %v13426_v39  ;;  %v13538_v38 = vld [vmem:[%s5873_s25 + $0x278] sm:$0xff]  ;;  %v16517_v25 = vld [vmem:[#allocation263_spill] sm:$0xff]  ;;  %vm13573_vm8 = vmand %vm3873_vm0, %vm3915_vm4 }
 0x40d   : > { %v3780_v49 = vadd.f32 %v16504_v15, %v3612_v24  ;;  %v2855_v34 = vsub.f32 %v2687_v51, %v16505_v11  ;;  %v3107_v40 = vsub.f32 %v2939_v20, %v16506_v53  ;;  %v2353_v45 = vsub.f32 %v5474_v41, %v2094_v23  ;;  %v16518_v24 = vld [vmem:[#allocation439_spill] sm:$0xff]  ;;  %v5477_v15 = vld [vmem:[%s5873_s25 + $0x7b8] sm:$0xff]  ;;  %v2098_v41 = vpop.permute.xlu0 %2097  ;;  %vm13601_vm11 = vmand %vm13573_vm8, %vm4047_vm6 }
 0x40e   : > { %v4288_v61 = vmax.f32 %v4204_v26, 0.0  ;;  %v2690_v32 = vmul.f32 %v2606_v42, %v16507_v30  ;;  %v2942_v6 = vmul.f32 %v2606_v42, %v16508_v54  ;;  %v754_v47 = vsub.f32 %v13517_v9, %v13445_v19  ;;  %v16512_v19 = vld [vmem:[#allocation445_spill] sm:$0xff]  ;;  %v16521_v26 = vld [vmem:[#allocation276_spill] sm:$0xff]  ;;  %vm13614_vm12 = vmand %vm13573_vm8, %vm3961_vm3 }
 0x40f   : > { %v4207_v5 = vsub.f32 0.0, %v3780_v49  ;;  %v3443_v18 = vmul.f32 %v2855_v34, %v2435_v4  ;;  %v3527_v62 = vmul.f32 %v3107_v40, %v752_v56  ;;  %v2605_v22 = vadd.f32 1.0, %v2353_v45  ;;  %v16526_v42 = vld [vmem:[#allocation109_spill] sm:$0xff]  ;;  %vm13638_vm14 = vmand %vm13614_vm12, %vm4047_vm6 }
 0x410   : > { %v4372_v39 = vsel %vm13490_vm1, %v4288_v61, 0.0  ;;  %v2858_v3 = vsub.f32 %v2690_v32, %v16511_v43  ;;  %v3110_v52 = vsub.f32 %v2942_v6, %v16512_v19  ;;  %v2437_v57 = vadd.f32 1.0, %v670_v2  ;;  %v16527_v2 = vld [vmem:[#allocation468_spill] sm:$0xff]  ;;  %v13587_v32 = vld [vmem:[%s5873_s25 + $0x518] sm:$0xff] }
 0x411   : > { %v4421_v33 = vadd.f32 %v4420_v59, %v4372_v39  ;;  %v4291_v48 = vmax.f32 %v4207_v5, 0.0  ;;  %v3611_v7 = vsub.f32 %v3443_v18, %v3527_v62  ;;  %v2689_v17 = vmul.f32 %v2605_v22, %v16513_v1  ;;  %v16532_v5 = vld [vmem:[#allocation234_spill] sm:$0xff]  ;;  %v16536_v43 = vld [vmem:[#allocation100_spill] sm:$0xff] }
 0x412   : > { %v2941_v46 = vmul.f32 %v2605_v22, %v16514_v60  ;;  %v3446_v4 = vmul.f32 %v2858_v3, %v2438_v31  ;;  %v3530_v56 = vmul.f32 %v3110_v52, %v755_v27  ;;  %v673_v59 = vsub.f32 %v13538_v38, %v13461_v63  ;;  %v16519_v27 = vld [vmem:[#allocation448_spill] sm:$0xff]  ;;  %v16523_v63 = vld [vmem:[#allocation275_spill] sm:$0xff]  ;;  %v16535_v22 = vld [vmem:[#allocation253_spill] sm:$0xff] }
 0x413   : > { %v4375_v0 = vsel %vm13527_vm5, %v4291_v48, 0.0  ;;  %v3779_v58 = vadd.f32 %v16517_v25, %v3611_v7  ;;  %v2857_v31 = vsub.f32 %v2689_v17, %v16518_v24  ;;  %v16522_v28 = vsub.f32 %v16520_v29, %v16521_v26  ;;  %v5480_v19 = vld [vmem:[%s5873_s25 + $0x7b0] sm:$0xff]  ;;  %v13621_v17 = vld [vmem:[%s5873_s25 + $0x288] sm:$0xff]  ;;  %v16552_v62 = vld [vmem:[#allocation106_spill] sm:$0xff] }
 0x414   : > { %v4463_v37 = vadd.f32 %v4462_v35, %v4375_v0  ;;  %v3109_v23 = vsub.f32 %v2941_v46, %v16519_v27  ;;  %v16524_v35 = vld [vmem:[#allocation298_spill] sm:$0xff]  ;;  %v3614_v20 = vsub.f32 %v3446_v4, %v3530_v56  ;;  %v13562_v13 = vadd.s32 39, %v16093_v55  ;;  %v2104_v46 = vpop.permute.xlu1 %2103  ;;  %v16540_v4 = vld [vmem:[#allocation271_spill] sm:$0xff] }
 0x415   : > { %v16525_v51 = vsub.f32 %v16523_v63, %v16524_v35  ;;  %v2356_v49 = vsub.f32 %v5477_v15, %v2100_v12  ;;  %v13567_v61 = vmul.f32 %v16527_v2, %v16526_v42  ;;  %v4206_v11 = vsub.f32 0.0, %v3779_v58  ;;  %v13628_v58 = vld [vmem:[%s5873_s25 + $0x510] sm:$0xff]  ;;  %v5483_v26 = vld [vmem:[%s5873_s25 + $0x7c8] sm:$0xff] }
 0x416   : > { %v3445_v53 = vmul.f32 %v2857_v31, %v2437_v57  ;;  %v3529_v40 = vmul.f32 %v3109_v23, %v754_v47  ;;  %v3782_v30 = vadd.f32 %v16532_v5, %v3614_v20  ;;  %v757_v16 = vsub.f32 %v13587_v32, %v13478_v36  ;;  %v16539_v57 = vld [vmem:[#allocation446_spill] sm:$0xff]  ;;  %v13646_v2 = vld [vmem:[%s5873_s25 + $0x528] sm:$0xff] }
 0x417   : > { %v13559_v50 = vmul.f32 %v16525_v51, %v16522_v28  ;;  %v2440_v54 = vadd.f32 1.0, %v673_v59  ;;  %v2608_v6 = vadd.f32 1.0, %v2356_v49  ;;  %v4290_v47 = vmax.f32 %v4206_v11, 0.0  ;;  %v16541_v59 = vld [vmem:[#allocation457_spill] sm:$0xff]  ;;  %v16545_v20 = vld [vmem:[#allocation422_spill] sm:$0xff] }
 0x418   : > { %v3613_v39 = vsub.f32 %v3445_v53, %v3529_v40  ;;  %vm3874_vm10 = vcmp.ge.s32.totalorder %v13562_v13, 1  ;;  %v672_v18 = vsub.f32 %v13593_v10, %v13507_v21  ;;  %v4209_v36 = vsub.f32 0.0, %v3782_v30  ;;  %v16555_v21 = vld [vmem:[#allocation279_spill] sm:$0xff] }
 0x419   : > { %v2692_v48 = vmul.f32 %v2608_v6, %v16535_v22  ;;  %v2944_v3 = vmul.f32 %v2608_v6, %v16536_v43  ;;  %v2355_v52 = vsub.f32 %v5480_v19, %v2098_v41  ;;  %v4374_v7 = vsel %vm13581_vm9, %v4290_v47, 0.0  ;;  %v16546_v41 = vld [vmem:[#allocation449_spill] sm:$0xff]  ;;  %v16550_v6 = vld [vmem:[#allocation458_spill] sm:$0xff]  ;;  %v16553_v22 = vld [vmem:[#allocation475_spill] sm:$0xff] }
 0x41a   : > { %v3781_v1 = vadd.f32 %v16539_v57, %v3613_v39  ;;  %vm3916_vm13 = vcmp.lt.s32.totalorder %v13562_v13, 96  ;;  %v675_v60 = vsub.f32 %v13621_v17, %v13538_v38  ;;  %v4422_v12 = vadd.f32 %v4421_v33, %v4374_v7  ;;  %v16551_v39 = vld [vmem:[#allocation440_spill] sm:$0xff] }
 0x41b   : > { %v4293_v0 = vmax.f32 %v4209_v36, 0.0  ;;  %v2860_v56 = vsub.f32 %v2692_v48, %v16540_v4  ;;  %v3112_v8 = vsub.f32 %v2944_v3, %v16541_v59  ;;  %v756_v24 = vsub.f32 %v13628_v58, %v13517_v9  ;;  %v16544_v9 = vld [vmem:[#allocation250_spill] sm:$0xff]  ;;  %vm13661_vm15 = vmand %vm3874_vm10, %vm3916_vm13  ;;  %v16554_v48 = vld [vmem:[#allocation296_spill] sm:$0xff] }
 0x41c   : > { %v4208_v25 = vsub.f32 0.0, %v3781_v1  ;;  %v2439_v31 = vadd.f32 1.0, %v672_v18  ;;  %v2607_v27 = vadd.f32 1.0, %v2355_v52  ;;  %v2358_v28 = vsub.f32 %v5483_v26, %v2104_v46  ;;  %v5485_v52 = vld [vmem:[%s5873_s25 + $0x280] sm:$0xff]  ;;  %v16556_v1 = vld [vmem:[#allocation467_spill] sm:$0xff]  ;;  %vm13682_vm0 = vmand %vm13661_vm15, %vm4047_vm6 }
 0x41d   : > { %v4377_v23 = vsel %vm13601_vm11, %v4293_v0, 0.0  ;;  %v3448_v38 = vmul.f32 %v2860_v56, %v2440_v54  ;;  %v3532_v29 = vmul.f32 %v3112_v8, %v757_v16  ;;  %v759_v11 = vsub.f32 %v13646_v2, %v13587_v32  ;;  %v2102_v16 = vpop.permute.xlu0 %2101  ;;  %v13675_v46 = vld [vmem:[%s5873_s25 + $0x7c0] sm:$0xff]  ;;  %vm13695_vm4 = vmand %vm13661_vm15, %vm3961_vm3  ;;  %v16570_v32 = vld [vmem:[#allocation469_spill] sm:$0xff] }
 0x41e   : > { %v4464_v63 = vadd.f32 %v4463_v37, %v4377_v23  ;;  %v4292_v35 = vmax.f32 %v4208_v25, 0.0  ;;  %v2691_v51 = vmul.f32 %v2607_v27, %v16544_v9  ;;  %v2943_v15 = vmul.f32 %v2607_v27, %v16545_v20  ;;  %v16547_v37 = vld [vmem:[#allocation459_spill] sm:$0xff]  ;;  %v2108_v27 = vpop.permute.xlu1 %2107  ;;  %v16561_v23 = vld [vmem:[#allocation461_spill] sm:$0xff]  ;;  %v16562_v9 = vld [vmem:[#allocation450_spill] sm:$0xff] }
 0x41f   : > { %v3616_v49 = vsub.f32 %v3448_v38, %v3532_v29  ;;  %v2442_v34 = vadd.f32 1.0, %v675_v60  ;;  %v2610_v53 = vadd.f32 1.0, %v2358_v28  ;;  %v3833_v30 = vadd.s32 40, %v16093_v55  ;;  %v5488_v29 = vld [vmem:[%s5873_s25 + $0x298] sm:$0xff]  ;;  %vm13711_vm5 = vmand %vm13695_vm4, %vm4047_vm6  ;;  %v16575_v8 = vld [vmem:[#allocation295_spill] sm:$0xff] }
 0x420   : > { %v4376_v40 = vsel %vm13638_vm14, %v4292_v35, 0.0  ;;  %v2859_v45 = vsub.f32 %v2691_v51, %v16546_v41  ;;  %v3111_v5 = vsub.f32 %v2943_v15, %v16547_v37  ;;  %v3368_v43 = vsub.f32 %v16554_v48, %v16553_v22  ;;  %v16563_v20 = vld [vmem:[#allocation429_spill] sm:$0xff] }
 0x421   : > { %v13655_v54 = vadd.f32 %v4422_v12, %v4376_v40  ;;  %v3784_v47 = vadd.f32 %v16550_v6, %v3616_v49  ;;  %v2694_v18 = vmul.f32 %v2610_v53, %v16551_v39  ;;  %v2946_v36 = vmul.f32 %v2610_v53, %v16552_v62  ;;  %v2106_v49 = vpop.permute.xlu0 %2105  ;;  %v5490_v40 = vld [vmem:[%s5873_s25 + $0x7d8] sm:$0xff] }
 0x422   : > { %v3447_v3 = vmul.f32 %v2859_v45, %v2439_v31  ;;  %v3531_v19 = vmul.f32 %v3111_v5, %v756_v24  ;;  %v674_v7 = vsub.f32 %v5485_v52, %v13593_v10  ;;  %v2357_v12 = vsub.f32 %v13675_v46, %v2102_v16  ;;  %v13687_v10 = vld [vmem:[%s5873_s25 + $0x520] sm:$0xff]  ;;  %v16569_v5 = vld [vmem:[#allocation289_spill] sm:$0xff] }
 0x423   : > { %v4211_v13 = vsub.f32 0.0, %v3784_v47  ;;  %v2862_v57 = vsub.f32 %v2694_v18, %v16555_v21  ;;  %v3114_v60 = vsub.f32 %v2946_v36, %v16556_v1  ;;  %vm3875_vm1 = vcmp.ge.s32.totalorder %v3833_v30, 1  ;;  %v5491_v47 = vld [vmem:[%s5873_s25 + $0x290] sm:$0xff] }
 0x424   : > { %v3615_v4 = vsub.f32 %v3447_v3, %v3531_v19  ;;  %vm3917_vm2 = vcmp.lt.s32.totalorder %v3833_v30, 96  ;;  %v758_v56 = vsub.f32 %v13687_v10, %v13628_v58  ;;  %v2609_v31 = vadd.f32 1.0, %v2357_v12  ;;  %v16574_v1 = vld [vmem:[#allocation108_spill] sm:$0xff] }
 0x425   : > { %v4295_v59 = vmax.f32 %v4211_v13, 0.0  ;;  %v3450_v25 = vmul.f32 %v2862_v57, %v2442_v34  ;;  %v3534_v24 = vmul.f32 %v3114_v60, %v759_v11  ;;  %v2441_v38 = vadd.f32 1.0, %v674_v7  ;;  %v5489_v34 = vld [vmem:[%s5873_s25 + $0x538] sm:$0xff]  ;;  %vm13720_vm7 = vmand %vm3875_vm1, %vm3917_vm2 }
 0x426   : > { %v3783_v33 = vadd.f32 %v16561_v23, %v3615_v4  ;;  %v677_v58 = vsub.f32 %v5488_v29, %v13621_v17  ;;  %v3834_v26 = vadd.s32 41, %v16093_v55  ;;  %v2693_v51 = vmul.f32 %v2609_v31, %v16562_v9  ;;  %vm13735_vm9 = vmand %vm13720_vm7, %vm4047_vm6  ;;  %v5493_v29 = vld [vmem:[%s5873_s25 + $0x530] sm:$0xff] }
 0x427   : > { %v4379_v28 = vsel %vm13682_vm0, %v4295_v59, 0.0  ;;  %v3618_v35 = vsub.f32 %v3450_v25, %v3534_v24  ;;  %v2945_v15 = vmul.f32 %v2609_v31, %v16563_v20  ;;  %v761_v53 = vsub.f32 %v5489_v34, %v13646_v2  ;;  %v5492_v2 = vld [vmem:[%s5873_s25 + $0x7d0] sm:$0xff]  ;;  %v16576_v24 = vld [vmem:[#allocation473_spill] sm:$0xff]  ;;  %vm4043_vm10 = vmand %vm13720_vm7, %vm3961_vm3 }
 0x428   : > { %v4465_v11 = vadd.f32 %v4464_v63, %v4379_v28  ;;  %v4210_v55 = vsub.f32 0.0, %v3783_v33  ;;  %v2360_v41 = vsub.f32 %v5490_v40, %v2108_v27  ;;  %v16568_v63 = vld [vmem:[#allocation92_spill] sm:$0xff]  ;;  %v2861_v16 = vsub.f32 %v2693_v51, %v16569_v5  ;;  %v16577_v27 = vld [vmem:[#allocation281_spill] sm:$0xff]  ;;  %v16578_v51 = vld [vmem:[#allocation303_spill] sm:$0xff] }
 0x429   : > { %v3786_v37 = vadd.f32 %v16568_v63, %v3618_v35  ;;  %v3113_v6 = vsub.f32 %v2945_v15, %v16570_v32  ;;  %v676_v39 = vsub.f32 %v5491_v47, %v5485_v52  ;;  %v2444_v62 = vadd.f32 1.0, %v677_v58  ;;  %v16573_v52 = vld [vmem:[#allocation460_spill] sm:$0xff]  ;;  %v16579_v15 = vld [vmem:[#allocation477_spill] sm:$0xff]  ;;  %v16581_v40 = vld [vmem:[#allocation102_spill] sm:$0xff] }
 0x42a   : > { %v4294_v18 = vmax.f32 %v4210_v55, 0.0  ;;  %v2612_v36 = vadd.f32 1.0, %v2360_v41  ;;  %v2359_v3 = vsub.f32 %v5492_v2, %v2106_v49  ;;  %v3449_v7 = vmul.f32 %v2861_v16, %v2441_v38  ;;  %v16580_v55 = vld [vmem:[#allocation476_spill] sm:$0xff]  ;;  %vm4128_vm12 = vmand %vm4043_vm10, %vm4047_vm6 }
 0x42b   : > { %v4213_v19 = vsub.f32 0.0, %v3786_v37  ;;  %v3533_v30 = vmul.f32 %v3113_v6, %v758_v56  ;;  %vm3876_vm8 = vcmp.ge.s32.totalorder %v3834_v26, 1  ;;  %v2443_v59 = vadd.f32 1.0, %v676_v39  ;;  %v16582_v41 = vld [vmem:[#allocation96_spill] sm:$0xff]  ;;  %v4385_v6 = vld [vmem:[#allocation2 + $0x8] sm:$0xff] }
 0x42c   : > { %v4378_v13 = vsel %vm13711_vm5, %v4294_v18, 0.0  ;;  %v2696_v57 = vmul.f32 %v2612_v36, %v16573_v52  ;;  %v2948_v60 = vmul.f32 %v2612_v36, %v16574_v1  ;;  %v2611_v12 = vadd.f32 1.0, %v2359_v3 }
 0x42d   : > { %v4424_v0 = vadd.f32 %v13655_v54, %v4378_v13  ;;  %v4297_v4 = vmax.f32 %v4213_v19, 0.0  ;;  %v3617_v56 = vsub.f32 %v3449_v7, %v3533_v30  ;;  %vm3918_vm11 = vcmp.lt.s32.totalorder %v3834_v26, 96 }
 0x42e   : > { %v2864_v25 = vsub.f32 %v2696_v57, %v16575_v8  ;;  %v3116_v31 = vsub.f32 %v2948_v60, %v16576_v24  ;;  %v2695_v23 = vmul.f32 %v2611_v12, %v16577_v27  ;;  %v2947_v33 = vmul.f32 %v2611_v12, %v16526_v42  ;;  %vm3960_vm13 = vmand %vm3876_vm8, %vm3918_vm11 }
 0x42f   : > { %v4381_v38 = vsel %vm13735_vm9, %v4297_v4, 0.0  ;;  %v3785_v54 = vadd.f32 %v13559_v50, %v3617_v56  ;;  %v760_v58 = vsub.f32 %v5493_v29, %v13687_v10  ;;  %v844_v42 = vsub.f32 %v5492_v2, %v13675_v46  ;;  %vm4131_vm14 = vmand %vm3960_vm13, %vm4047_vm6 }
 0x430   : > { %v4466_v28 = vadd.f32 %v4465_v11, %v4381_v38  ;;  %v3452_v35 = vmul.f32 %v2864_v25, %v2444_v62  ;;  %v3536_v9 = vmul.f32 %v3116_v31, %v761_v53  ;;  %v2863_v20 = vsub.f32 %v2695_v23, %v16578_v51  ;;  %vm4045_vm15 = vmand %vm3960_vm13, %vm3961_vm3  ;;  %v4384_v62 = vld [vmem:[#allocation2] sm:$0xff] }
 0x431   : > { %v3367_v49 = vsub.f32 %v13567_v61, %v16579_v15  ;;  %v4212_v17 = vsub.f32 0.0, %v3785_v54  ;;  %v3115_v34 = vsub.f32 %v2947_v33, %v16580_v55  ;;  %v16583_v50 = vsub.f32 %v16581_v40, %v16582_v41  ;;  %vm4130_vm0 = vmand %vm4045_vm15, %vm4047_vm6 }
 0x432   : > { %v3620_v11 = vsub.f32 %v3452_v35, %v3536_v9  ;;  %v3451_v53 = vmul.f32 %v2863_v20, %v2443_v59 }
 0x433   : > { %v3704_v10 = vmul.f32 %v3368_v43, %v16583_v50  ;;  %v4296_v45 = vmax.f32 %v4212_v17, 0.0  ;;  %v3535_v61 = vmul.f32 %v3115_v34, %v760_v58  ;;  %v3703_v63 = vmul.f32 %v3367_v49, %v844_v42 }
 0x435   : > { %v3788_v46 = vadd.f32 %v3704_v10, %v3620_v11  ;;  %v4380_v37 = vsel %vm4128_vm12, %v4296_v45, 0.0  ;;  %v3619_v5 = vsub.f32 %v3451_v53, %v3535_v61 }
 0x436   : > { %v4425_v16 = vadd.f32 %v4424_v0, %v4380_v37 }
 0x437   : > { %v4215_v22 = vsub.f32 0.0, %v3788_v46  ;;  %v3787_v48 = vadd.f32 %v3703_v63, %v3619_v5 }
 0x439   : > { %v4299_v43 = vmax.f32 %v4215_v22, 0.0  ;;  %v4214_v32 = vsub.f32 0.0, %v3787_v48 }
 0x43b   : > { %v4383_v47 = vsel %vm4131_vm14, %v4299_v43, 0.0  ;;  %v4298_v39 = vmax.f32 %v4214_v32, 0.0 }
 0x43c   : > { %v4467_v26 = vadd.f32 %v4466_v28, %v4383_v47  ;;  %4475 = sbr.rel (%p4655_p3) target bundleno = 1306 (0x51a), region = 44 }
 0x43d   : > { %v4382_v36 = vsel %vm4130_vm0, %v4298_v39, 0.0 }
 0x43e   : > { %v4469_v18 = vadd.f32 %v4467_v26, %v4385_v6  ;;  %v4426_v2 = vadd.f32 %v4425_v16, %v4382_v36 }
 0x440   : > { %4471 = vst [vmem:[#allocation2 + $0x8] sm:$0xff] %v4469_v18  ;;  %v4468_v3 = vadd.f32 %v4426_v2, %v4384_v62 }
 0x442   : > { %4470 = vst [vmem:[#allocation2] sm:$0xff] %v4468_v3 }
 0x447   : > { %v4477_v19 = vld [vmem:[#allocation2 + $0x8] sm:$0xff] }
 0x449   : > { %v4476_v14 = vld [vmem:[#allocation2] sm:$0xff] }
 0x44a   : > { %v4478_v7 = vadd.f32 %v4477_v19, %v4476_v14 }
 0x44c   : > { %4479 = vadd.xlane.f32.xlu0 %v4478_v7 }
 0x4d9   : > { %v4480_v30 = vpop.xlane.xlu0 %4479 }
 0x4da   : > { %v4481_v44 = vrot.slane %v4480_v30, 4 }
 0x4dc   : > { %v4482_v13 = vadd.f32 %v4481_v44, %v4480_v30 }
 0x4de   : > { %v4483_v21 = vrot.slane %v4482_v13, 2 }
 0x4e0   : > { %v4484_v52 = vadd.f32 %v4483_v21, %v4482_v13 }
 0x4e2   : > { %v4485_v57 = vrot.slane %v4484_v52, 1 }
 0x4e4   : > { %v4486_v1 = vadd.f32 %v4485_v57, %v4484_v52 }
 0x4e6   : > { %4675 = vpush %v4486_v1 }
 0x517   : > { %s4676_s15 = spop %4675 }
 0x518   : > { %v4488_v60 = vstv %s4676_s15 }
 0x519   : > { %4490 = vst [vmem:[%s309_s23] sm:$0xff] %v4488_v60 }
 0x51a PF: > { %s4657_s18 = sshll.u32 %s5632_s19, 7  ;;  %s16584_s30 = sld [smem:[#allocation499_spill]] }
 0x51b   : > { %s4505_s9 = sshll.u32 %s309_s23, 4  ;;  %s4492_s11 = scalar_lea.sflag [#allocation5], %s307_s7  ;;  %s4506_s9 = int_to_ptr.vmem [resolvable:$true] %s4505_s9 }
 0x51c   : > { %s5494_s17 = scalar_lea.vmem %s4506_s9, 128  ;;  %s5659_s21 = smov [#allocation8]  }
 0x51d   : > { %p5495_p6 = scmp.ne.s32.totalorder %s4506_s9, %s5494_s17  ;;  %s5498_s25 = sshll.u32 %s5659_s21, 4  ;;  %s5499_s25 = int_to_ptr.vmem [resolvable:$false] %s5498_s25 }
 0x51e   : > { %s5500_s27 = scalar_lea.vmem %s5499_s25, 256  ;;  %p5501_p13 = scmp.lt.s32.totalorder %s4506_s9, %s5499_s25 }
 0x51f   : > { %p5496_p4 = pnand %p5495_p6, %p5825_p0  ;;  %p5502_p1 = scmp.lt.s32.totalorder %s5500_s27, %s5494_s17 }
 0x520   : > { %s13783_s24 = scalar_lea.hbm %s16584_s30, %s4657_s18 }
 0x521   : > { %p5497_p12 = pneg %p5496_p4  ;;  %p5503_p2 = por %p5502_p1, %p5501_p13 }
 0x523   : > { %p5504_p8 = pnand %p5503_p2, %p5497_p12 }
 0x525   : > { %5507 = shalt.err (!%p5504_p8)
}
 0x526   : > { %s5508_s19 = scalar_lea.hbm %s13783_s24, 128  ;;  %s5512_s12 = scalar_lea.hbm %s16584_s30, 256 }
 0x527   : > { %p5509_p5 = scmp.ne.s32.totalorder %s13783_s24, %s5508_s19  ;;  %p5513_p9 = scmp.lt.u32.totalorder %s13783_s24, %s16584_s30 }
 0x528   : > { %p5514_p3 = scmp.lt.u32.totalorder %s5512_s12, %s5508_s19  ;;  %p5516_p4 = scmp.lt.u32.totalorder %s5508_s19, %s13783_s24 }
 0x529   : > { %p5510_p10 = pnand %p5509_p5, %p5825_p0 }
 0x52a   : > { %p5515_p6 = por %p5514_p3, %p5513_p9 }
 0x52b   : > { %p5511_p11 = pneg %p5510_p10 }
 0x52c   : > { %p5517_p12 = por %p5516_p4, %p5515_p6 }
 0x52e   : > { %p5518_p13 = pnand %p5517_p12, %p5511_p11 }
 0x530   : > { %5521 = shalt.err (!%p5518_p13)
}
 0x531   : > { %4687 = dma.vmem_to_hbm [thread:$0]  (%p5825_p0), %s4506_s9, 128, %s13783_s24, %s4492_s11  }
 0x532 PF: > { %s16585_s8 = sld [smem:[#allocation17_spill]]  ;;  %p4693_p1 = scmp.ge.s32.totalorder %s5644_s22, 2 }
 0x534   : > { %p4690_p2 = pnand %p4693_p1, %p5829_p7 }
 0x538   : > { %s4517_s23 = sand.u32 1, %s16585_s8  }
 0x539   : > { %s4518_s29 = scalar_lea.sflag [#allocation5], %s4517_s23 }
 0x53a   : > { %5587 = dma.done.wait (!%p4690_p2), %s4518_s29, 128  }
 0x53b   : > { %5589 = vsyncadd (!%p4690_p2), %s4518_s29, 4294967168  ;;  %s21_s22 = sadd.s32 1, %s5644_s22   ;;  %s16588_s5 = sld [smem:[#allocation18_spill]] }
 0x53c   : > { %p13811_p8 = scmp.ge.s32.totalorder %s21_s22, 6   ;;  %s16589_s11 = sld [smem:[#allocation26_spill]] }
 0x53d   : > { %s16590_s15 = sld [smem:[#allocation25_spill]]  ;;  %s16591_s18 = sld [smem:[#allocation19_spill]] }
 0x53e   : > { %s16592_s17 = sld [smem:[#allocation24_spill]]  ;;  %s16593_s6 = sld [smem:[#allocation20_spill]] }
 0x53f   : > { %s16594_s19 = sld [smem:[#allocation21_spill]]  ;;  %s16595_s28 = sld [smem:[#allocation22_spill]] }
 0x540   : > { %s16596_s21 = sld [smem:[#allocation23_spill]]  ;;  %s16598_s9 = smov %s5596_s10 }
 0x541   : > { %s16599_s10 = smov %s16588_s5  ;;  %s16600_s12 = smov %s5608_s13 }
 0x542   : > { %s16601_s13 = smov %s5612_s14  ;;  %20 = sbr.rel (!%p13811_p8) target bundleno = 14 (0xe), region = 104 }
 0x543   : > { %s16602_s14 = smov %s16590_s15  ;;  %s16603_s15 = smov %s5620_s16 }
 0x544   : > { %s16604_s16 = smov %s16591_s18  ;;  %s16605_s18 = smov %s16593_s6 }
 0x545   : > { %s16606_s20 = smov %s16595_s28 }
 0x549   :  { %4523 = vsyncpa [#allocation4], 1 }
 0x54a   :  { %4525 = vsyncpa [#allocation4 + $0x1], 1 }
 0x54b   :  { %4526 = vsyncpa [#allocation7], 1 }
 0x54c   :  { %4528 = vsyncpa [#allocation7 + $0x1], 1 }
 0x54d   :  { %4529 = vsyncpa [#allocation5], 1 }
 0x54e   :  { %4531 = vsyncpa [#allocation5 + $0x1], 1 }

</bundles_post_ra>
